<compile_context>
chip_gen: v6e
topology: v6e:2x2x1
jax: 0.10.0
libtpu: 0.0.40
codegen_flags: <defaults>
</compile_context>

<pallas_src>
import functools

import jax
import jax.numpy as jnp
from jax.experimental import pallas as pl
from jax.experimental.pallas import tpu as pltpu


# ---------------------------------------------------------------------------
# Pallas kernels
# ---------------------------------------------------------------------------
def _conv3x3_bn_act_kernel(xp_ref, w_ref, s_ref, b_ref, o_ref, *, H, W, relu):
    """One batch image: 3x3/s1 conv via in-kernel im2col (9 shifted dots),
    folded-BN scale/bias epilogue, optional ReLU."""
    xp = xp_ref[0]                                   # (H+2, W+2, Cin) f32 halo tile
    Cin = xp.shape[-1]
    Cout = o_ref.shape[-1]
    acc = jnp.zeros((H * W, Cout), jnp.float32)
    k = 0
    for dy in range(3):
        for dx in range(3):
            patch = xp[dy:dy + H, dx:dx + W, :].reshape(H * W, Cin)
            acc = acc + jnp.dot(patch.astype(jnp.bfloat16), w_ref[k],
                                preferred_element_type=jnp.float32)
            k += 1
    y = acc * s_ref[...] + b_ref[...]                # folded BN, f32 epilogue
    if relu:
        y = jnp.maximum(y, 0.0)
    o_ref[0] = y.reshape(H, W, Cout).astype(o_ref.dtype)


def _conv3x3_bn_res_gap_fc_kernel(xp_ref, w_ref, s_ref, b_ref, skip_ref,
                                  fcw_ref, fcb_ref,
                                  fmap_ref, feat_ref, logit_ref, *, H, W):
    """Last conv of the block fused with residual-add + ReLU, global average
    pool and the fc head (logits), all in one epilogue."""
    xp = xp_ref[0]                                   # (H+2, W+2, C) f32
    Cin = xp.shape[-1]
    C = fmap_ref.shape[-1]
    acc = jnp.zeros((H * W, C), jnp.float32)
    k = 0
    for dy in range(3):
        for dx in range(3):
            patch = xp[dy:dy + H, dx:dx + W, :].reshape(H * W, Cin)
            acc = acc + jnp.dot(patch.astype(jnp.bfloat16), w_ref[k],
                                preferred_element_type=jnp.float32)
            k += 1
    y = acc * s_ref[...] + b_ref[...]                                # conv + BN
    x1 = jnp.maximum(y + skip_ref[0].reshape(H * W, C), 0.0)         # skip + ReLU
    fmap_ref[0] = x1.reshape(H, W, C).astype(fmap_ref.dtype)

    feats = jnp.mean(x1, axis=0, keepdims=True)                      # GAP -> (1, C)
    feat_ref[0] = feats.astype(feat_ref.dtype)

    # fc head: mean(x1) @ W == mean(x1 @ W) by linearity; the latter keeps an
    # MXU-friendly (H*W, C) @ (C, nc) shape.
    z = jnp.dot(x1, fcw_ref[...], preferred_element_type=jnp.float32)
    logits = jnp.mean(z, axis=0, keepdims=True) + fcb_ref[...]
    logit_ref[0] = logits.astype(logit_ref.dtype)


# ---------------------------------------------------------------------------
# Wrappers (halo pad, weight layout, BN folding)
# ---------------------------------------------------------------------------
def fold_bn(gamma, beta, mean, var, eps=1e-5):
    scale = gamma / jnp.sqrt(var + eps)
    bias = beta - mean * scale
    return scale, bias


def _conv_inputs(x_nhwc, w_oihw, bn):
    _, _, _, cin = x_nhwc.shape
    cout = w_oihw.shape[0]
    xp = jnp.pad(x_nhwc, ((0, 0), (1, 1), (1, 1), (0, 0)))            # halo pad
    # PyTorch (Cout,Cin,3,3) -> (kh,kw,Cin,Cout) -> (9,Cin,Cout) bf16 taps (MXU-native).
    w3d = jnp.transpose(w_oihw, (2, 3, 1, 0)).reshape(9, cin, cout).astype(jnp.bfloat16)
    scale, bias = fold_bn(*bn)
    return (xp, w3d,
            scale.reshape(1, cout).astype(jnp.float32),
            bias.reshape(1, cout).astype(jnp.float32))


def conv3x3_bn_act(x_nhwc, w_oihw, bn, *, relu):
    B, H, W, Cin = x_nhwc.shape
    Cout = w_oihw.shape[0]
    xp, w3d, s, b = _conv_inputs(x_nhwc, w_oihw, bn)
    kern = functools.partial(_conv3x3_bn_act_kernel, H=H, W=W, relu=relu)
    return pl.pallas_call(
        kern,
        out_shape=jax.ShapeDtypeStruct((B, H, W, Cout), jnp.float32),
        grid_spec=pltpu.PrefetchScalarGridSpec(
            num_scalar_prefetch=0,
            grid=(B,),
            in_specs=[
                pl.BlockSpec((1, H + 2, W + 2, Cin), lambda i: (i, 0, 0, 0)),
                pl.BlockSpec((9, Cin, Cout), lambda i: (0, 0, 0)),
                pl.BlockSpec((1, Cout), lambda i: (0, 0)),
                pl.BlockSpec((1, Cout), lambda i: (0, 0)),
            ],
            out_specs=pl.BlockSpec((1, H, W, Cout), lambda i: (i, 0, 0, 0)),
        ),
        compiler_params=pltpu.CompilerParams(dimension_semantics=("parallel",)),
    )(xp, w3d, s, b)


def conv3x3_bn_res_gap_fc(x_nhwc, w_oihw, bn, skip_nhwc, fc_w, fc_b):
    B, H, W, Cin = x_nhwc.shape
    C = w_oihw.shape[0]
    nc = fc_w.shape[0]
    xp, w3d, s, b = _conv_inputs(x_nhwc, w_oihw, bn)
    fcw = fc_w.T.astype(jnp.float32)                 # (C, nc): logits = f @ W.T + b
    fcb = fc_b.reshape(1, nc).astype(jnp.float32)
    kern = functools.partial(_conv3x3_bn_res_gap_fc_kernel, H=H, W=W)
    fmap, feat, logits = pl.pallas_call(
        kern,
        out_shape=(
            jax.ShapeDtypeStruct((B, H, W, C), jnp.float32),
            jax.ShapeDtypeStruct((B, 1, C), jnp.float32),
            jax.ShapeDtypeStruct((B, 1, nc), jnp.float32),
        ),
        grid_spec=pltpu.PrefetchScalarGridSpec(
            num_scalar_prefetch=0,
            grid=(B,),
            in_specs=[
                pl.BlockSpec((1, H + 2, W + 2, Cin), lambda i: (i, 0, 0, 0)),
                pl.BlockSpec((9, Cin, C), lambda i: (0, 0, 0)),
                pl.BlockSpec((1, C), lambda i: (0, 0)),
                pl.BlockSpec((1, C), lambda i: (0, 0)),
                pl.BlockSpec((1, H, W, C), lambda i: (i, 0, 0, 0)),
                pl.BlockSpec((C, nc), lambda i: (0, 0)),
                pl.BlockSpec((1, nc), lambda i: (0, 0)),
            ],
            out_specs=[
                pl.BlockSpec((1, H, W, C), lambda i: (i, 0, 0, 0)),
                pl.BlockSpec((1, 1, C), lambda i: (i, 0, 0)),
                pl.BlockSpec((1, 1, nc), lambda i: (i, 0, 0)),
            ],
        ),
        compiler_params=pltpu.CompilerParams(dimension_semantics=("parallel",)),
    )(xp, w3d, s, b, skip_nhwc, fcw, fcb)
    return fmap, feat.reshape(B, C), logits.reshape(B, nc)


# ---------------------------------------------------------------------------
# BaseNet forward
# ---------------------------------------------------------------------------
def basenet_forward(x_nchw, params):
    x = jnp.transpose(x_nchw, (0, 2, 3, 1))          # PyTorch NCHW -> NHWC

    # --- convnet (resnet32-style stem + one basic residual block) ---
    x0 = conv3x3_bn_act(x, params["conv0_w"], params["bn0"], relu=True)
    y = conv3x3_bn_act(x0, params["conv1_w"], params["bn1"], relu=True)
    # conv2 + BN + residual + ReLU + GAP + fc head, all in one kernel.
    x1, features, logits = conv3x3_bn_res_gap_fc(
        y, params["conv2_w"], params["bn2"], x0, params["fc_w"], params["fc_b"])

    # fmaps reported in PyTorch NCHW layout (plain-XLA relayout; tiny at this size).
    convnet_out = {
        "fmaps": [jnp.transpose(x0, (0, 3, 1, 2)),
                  jnp.transpose(x1, (0, 3, 1, 2))],
        "features": features,
    }
    out = {"logits": logits}
    out.update(convnet_out)                          # matches out.update(x)
    return out


# ---------------------------------------------------------------------------
# Deterministic parameter init + run
# ---------------------------------------------------------------------------
def init_params(key, cin=3, c=16, nb_classes=10):
    ks = jax.random.split(key, 10)

    def bn(kg, kb):
        gamma = 1.0 + 0.1 * jax.random.normal(kg, (c,), jnp.float32)
        beta = 0.1 * jax.random.normal(kb, (c,), jnp.float32)
        mean = jnp.zeros((c,), jnp.float32)
        var = jnp.ones((c,), jnp.float32)
        return (gamma, beta, mean, var)

    return {
        "conv0_w": 0.1 * jax.random.normal(ks[0], (c, cin, 3, 3), jnp.float32),
        "bn0": bn(ks[1], ks[2]),
        "conv1_w": 0.1 * jax.random.normal(ks[3], (c, c, 3, 3), jnp.float32),
        "bn1": bn(ks[4], ks[5]),
        "conv2_w": 0.1 * jax.random.normal(ks[6], (c, c, 3, 3), jnp.float32),
        "bn2": bn(ks[7], ks[8]),
        "fc_w": 0.1 * jax.random.normal(ks[9], (nb_classes, c), jnp.float32),
        "fc_b": jnp.zeros((nb_classes,), jnp.float32),
    }


if __name__ == "__main__":
    key = jax.random.PRNGKey(0)
    k_x, k_p = jax.random.split(key)

    B, Cin, H, W = 2, 3, 16, 16
    C, NB_CLASSES = 16, 10

    x = jax.random.normal(k_x, (B, Cin, H, W), jnp.float32)   # PyTorch NCHW input
    params = init_params(k_p, cin=Cin, c=C, nb_classes=NB_CLASSES)

    fwd = jax.jit(basenet_forward)
    out = fwd(x, params)
    jax.block_until_ready(out["logits"])

    assert out["features"].shape == (B, C)
    assert out["logits"].shape == (B, NB_CLASSES)
    assert out["fmaps"][0].shape == (B, C, H, W)
    assert out["fmaps"][1].shape == (B, C, H, W)

    # TODO(synk): update_fc / generate_fc / copy / freeze are training-time
    # plumbing with no kernel equivalent; only the forward pass is implemented.
    print("KERNEL_OK")
</pallas_src>

<mosaic_0001>
module attributes {stable_mosaic.version = 11 : i64} {
  func.func @_conv3x3_bn_act_kernel(%arg0: i32, %arg1: memref<1x18x18x3xf32, #tpu.memory_space<vmem>>, %arg2: memref<9x3x16xbf16, #tpu.memory_space<vmem>>, %arg3: memref<1x16xf32, #tpu.memory_space<vmem>>, %arg4: memref<1x16xf32, #tpu.memory_space<vmem>>, %arg5: memref<1x16x16x16xf32, #tpu.memory_space<vmem>>) attributes {dimension_semantics = [#tpu.dimension_semantics<parallel>], iteration_bounds = array<i64: 2>, scalar_prefetch = 0 : i64, scratch_operands = 0 : i64, tpu.core_type = #tpu.core_type<tc>, window_params = [{transform_indices = @transform_0, window_bounds = array<i64: 1, 18, 18, 3>}, {pipeline_mode = #tpu.pipeline_mode<synchronous>, transform_indices = @transform_1, window_bounds = array<i64: 9, 3, 16>}, {pipeline_mode = #tpu.pipeline_mode<synchronous>, transform_indices = @transform_2, window_bounds = array<i64: 1, 16>}, {pipeline_mode = #tpu.pipeline_mode<synchronous>, transform_indices = @transform_3, window_bounds = array<i64: 1, 16>}, {transform_indices = @transform_4, window_bounds = array<i64: 1, 16, 16, 16>}]} {
    %c0 = arith.constant 0 : index
    %c0_0 = arith.constant 0 : index
    %c0_1 = arith.constant 0 : index
    %c0_2 = arith.constant 0 : index
    %0 = vector.load %arg1[%c0, %c0_0, %c0_1, %c0_2] : memref<1x18x18x3xf32, #tpu.memory_space<vmem>>, vector<1x18x18x3xf32>
    %1 = vector.shape_cast %0 : vector<1x18x18x3xf32> to vector<18x18x3xf32>
    %cst = arith.constant 0.000000e+00 : f32
    %2 = vector.broadcast %cst : f32 to vector<256x16xf32>
    %3 = vector.extract_strided_slice %1 {offsets = [0, 0, 0], sizes = [16, 16, 3], strides = [1, 1, 1]} : vector<18x18x3xf32> to vector<16x16x3xf32>
    %4 = vector.shape_cast %3 : vector<16x16x3xf32> to vector<256x3xf32>
    %5 = arith.truncf %4 : vector<256x3xf32> to vector<256x3xbf16>
    %c0_3 = arith.constant 0 : index
    %c0_4 = arith.constant 0 : index
    %c0_5 = arith.constant 0 : index
    %6 = vector.load %arg2[%c0_3, %c0_4, %c0_5] : memref<9x3x16xbf16, #tpu.memory_space<vmem>>, vector<1x3x16xbf16>
    %7 = vector.shape_cast %6 : vector<1x3x16xbf16> to vector<3x16xbf16>
    %cst_6 = arith.constant dense<0.000000e+00> : vector<256x16xf32>
    %8 = tpu.matmul %5, %7, %cst_6 {dimension_numbers = #tpu.dot_dimension_numbers<[1], [0], [0], [1], [0, 0, 1, 1], [], []>} : vector<256x3xbf16>, vector<3x16xbf16>, vector<256x16xf32> -> vector<256x16xf32>
    %9 = arith.addf %2, %8 : vector<256x16xf32>
    %10 = vector.extract_strided_slice %1 {offsets = [0, 1, 0], sizes = [16, 16, 3], strides = [1, 1, 1]} : vector<18x18x3xf32> to vector<16x16x3xf32>
    %11 = vector.shape_cast %10 : vector<16x16x3xf32> to vector<256x3xf32>
    %12 = arith.truncf %11 : vector<256x3xf32> to vector<256x3xbf16>
    %c1 = arith.constant 1 : index
    %c0_7 = arith.constant 0 : index
    %c0_8 = arith.constant 0 : index
    %13 = vector.load %arg2[%c1, %c0_7, %c0_8] : memref<9x3x16xbf16, #tpu.memory_space<vmem>>, vector<1x3x16xbf16>
    %14 = vector.shape_cast %13 : vector<1x3x16xbf16> to vector<3x16xbf16>
    %cst_9 = arith.constant dense<0.000000e+00> : vector<256x16xf32>
    %15 = tpu.matmul %12, %14, %cst_9 {dimension_numbers = #tpu.dot_dimension_numbers<[1], [0], [0], [1], [0, 0, 1, 1], [], []>} : vector<256x3xbf16>, vector<3x16xbf16>, vector<256x16xf32> -> vector<256x16xf32>
    %16 = arith.addf %9, %15 : vector<256x16xf32>
    %17 = vector.extract_strided_slice %1 {offsets = [0, 2, 0], sizes = [16, 16, 3], strides = [1, 1, 1]} : vector<18x18x3xf32> to vector<16x16x3xf32>
    %18 = vector.shape_cast %17 : vector<16x16x3xf32> to vector<256x3xf32>
    %19 = arith.truncf %18 : vector<256x3xf32> to vector<256x3xbf16>
    %c2 = arith.constant 2 : index
    %c0_10 = arith.constant 0 : index
    %c0_11 = arith.constant 0 : index
    %20 = vector.load %arg2[%c2, %c0_10, %c0_11] : memref<9x3x16xbf16, #tpu.memory_space<vmem>>, vector<1x3x16xbf16>
    %21 = vector.shape_cast %20 : vector<1x3x16xbf16> to vector<3x16xbf16>
    %cst_12 = arith.constant dense<0.000000e+00> : vector<256x16xf32>
    %22 = tpu.matmul %19, %21, %cst_12 {dimension_numbers = #tpu.dot_dimension_numbers<[1], [0], [0], [1], [0, 0, 1, 1], [], []>} : vector<256x3xbf16>, vector<3x16xbf16>, vector<256x16xf32> -> vector<256x16xf32>
    %23 = arith.addf %16, %22 : vector<256x16xf32>
    %24 = vector.extract_strided_slice %1 {offsets = [1, 0, 0], sizes = [16, 16, 3], strides = [1, 1, 1]} : vector<18x18x3xf32> to vector<16x16x3xf32>
    %25 = vector.shape_cast %24 : vector<16x16x3xf32> to vector<256x3xf32>
    %26 = arith.truncf %25 : vector<256x3xf32> to vector<256x3xbf16>
    %c3 = arith.constant 3 : index
    %c0_13 = arith.constant 0 : index
    %c0_14 = arith.constant 0 : index
    %27 = vector.load %arg2[%c3, %c0_13, %c0_14] : memref<9x3x16xbf16, #tpu.memory_space<vmem>>, vector<1x3x16xbf16>
    %28 = vector.shape_cast %27 : vector<1x3x16xbf16> to vector<3x16xbf16>
    %cst_15 = arith.constant dense<0.000000e+00> : vector<256x16xf32>
    %29 = tpu.matmul %26, %28, %cst_15 {dimension_numbers = #tpu.dot_dimension_numbers<[1], [0], [0], [1], [0, 0, 1, 1], [], []>} : vector<256x3xbf16>, vector<3x16xbf16>, vector<256x16xf32> -> vector<256x16xf32>
    %30 = arith.addf %23, %29 : vector<256x16xf32>
    %31 = vector.extract_strided_slice %1 {offsets = [1, 1, 0], sizes = [16, 16, 3], strides = [1, 1, 1]} : vector<18x18x3xf32> to vector<16x16x3xf32>
    %32 = vector.shape_cast %31 : vector<16x16x3xf32> to vector<256x3xf32>
    %33 = arith.truncf %32 : vector<256x3xf32> to vector<256x3xbf16>
    %c4 = arith.constant 4 : index
    %c0_16 = arith.constant 0 : index
    %c0_17 = arith.constant 0 : index
    %34 = vector.load %arg2[%c4, %c0_16, %c0_17] : memref<9x3x16xbf16, #tpu.memory_space<vmem>>, vector<1x3x16xbf16>
    %35 = vector.shape_cast %34 : vector<1x3x16xbf16> to vector<3x16xbf16>
    %cst_18 = arith.constant dense<0.000000e+00> : vector<256x16xf32>
    %36 = tpu.matmul %33, %35, %cst_18 {dimension_numbers = #tpu.dot_dimension_numbers<[1], [0], [0], [1], [0, 0, 1, 1], [], []>} : vector<256x3xbf16>, vector<3x16xbf16>, vector<256x16xf32> -> vector<256x16xf32>
    %37 = arith.addf %30, %36 : vector<256x16xf32>
    %38 = vector.extract_strided_slice %1 {offsets = [1, 2, 0], sizes = [16, 16, 3], strides = [1, 1, 1]} : vector<18x18x3xf32> to vector<16x16x3xf32>
    %39 = vector.shape_cast %38 : vector<16x16x3xf32> to vector<256x3xf32>
    %40 = arith.truncf %39 : vector<256x3xf32> to vector<256x3xbf16>
    %c5 = arith.constant 5 : index
    %c0_19 = arith.constant 0 : index
    %c0_20 = arith.constant 0 : index
    %41 = vector.load %arg2[%c5, %c0_19, %c0_20] : memref<9x3x16xbf16, #tpu.memory_space<vmem>>, vector<1x3x16xbf16>
    %42 = vector.shape_cast %41 : vector<1x3x16xbf16> to vector<3x16xbf16>
    %cst_21 = arith.constant dense<0.000000e+00> : vector<256x16xf32>
    %43 = tpu.matmul %40, %42, %cst_21 {dimension_numbers = #tpu.dot_dimension_numbers<[1], [0], [0], [1], [0, 0, 1, 1], [], []>} : vector<256x3xbf16>, vector<3x16xbf16>, vector<256x16xf32> -> vector<256x16xf32>
    %44 = arith.addf %37, %43 : vector<256x16xf32>
    %45 = vector.extract_strided_slice %1 {offsets = [2, 0, 0], sizes = [16, 16, 3], strides = [1, 1, 1]} : vector<18x18x3xf32> to vector<16x16x3xf32>
    %46 = vector.shape_cast %45 : vector<16x16x3xf32> to vector<256x3xf32>
    %47 = arith.truncf %46 : vector<256x3xf32> to vector<256x3xbf16>
    %c6 = arith.constant 6 : index
    %c0_22 = arith.constant 0 : index
    %c0_23 = arith.constant 0 : index
    %48 = vector.load %arg2[%c6, %c0_22, %c0_23] : memref<9x3x16xbf16, #tpu.memory_space<vmem>>, vector<1x3x16xbf16>
    %49 = vector.shape_cast %48 : vector<1x3x16xbf16> to vector<3x16xbf16>
    %cst_24 = arith.constant dense<0.000000e+00> : vector<256x16xf32>
    %50 = tpu.matmul %47, %49, %cst_24 {dimension_numbers = #tpu.dot_dimension_numbers<[1], [0], [0], [1], [0, 0, 1, 1], [], []>} : vector<256x3xbf16>, vector<3x16xbf16>, vector<256x16xf32> -> vector<256x16xf32>
    %51 = arith.addf %44, %50 : vector<256x16xf32>
    %52 = vector.extract_strided_slice %1 {offsets = [2, 1, 0], sizes = [16, 16, 3], strides = [1, 1, 1]} : vector<18x18x3xf32> to vector<16x16x3xf32>
    %53 = vector.shape_cast %52 : vector<16x16x3xf32> to vector<256x3xf32>
    %54 = arith.truncf %53 : vector<256x3xf32> to vector<256x3xbf16>
    %c7 = arith.constant 7 : index
    %c0_25 = arith.constant 0 : index
    %c0_26 = arith.constant 0 : index
    %55 = vector.load %arg2[%c7, %c0_25, %c0_26] : memref<9x3x16xbf16, #tpu.memory_space<vmem>>, vector<1x3x16xbf16>
    %56 = vector.shape_cast %55 : vector<1x3x16xbf16> to vector<3x16xbf16>
    %cst_27 = arith.constant dense<0.000000e+00> : vector<256x16xf32>
    %57 = tpu.matmul %54, %56, %cst_27 {dimension_numbers = #tpu.dot_dimension_numbers<[1], [0], [0], [1], [0, 0, 1, 1], [], []>} : vector<256x3xbf16>, vector<3x16xbf16>, vector<256x16xf32> -> vector<256x16xf32>
    %58 = arith.addf %51, %57 : vector<256x16xf32>
    %59 = vector.extract_strided_slice %1 {offsets = [2, 2, 0], sizes = [16, 16, 3], strides = [1, 1, 1]} : vector<18x18x3xf32> to vector<16x16x3xf32>
    %60 = vector.shape_cast %59 : vector<16x16x3xf32> to vector<256x3xf32>
    %61 = arith.truncf %60 : vector<256x3xf32> to vector<256x3xbf16>
    %c8 = arith.constant 8 : index
    %c0_28 = arith.constant 0 : index
    %c0_29 = arith.constant 0 : index
    %62 = vector.load %arg2[%c8, %c0_28, %c0_29] : memref<9x3x16xbf16, #tpu.memory_space<vmem>>, vector<1x3x16xbf16>
    %63 = vector.shape_cast %62 : vector<1x3x16xbf16> to vector<3x16xbf16>
    %cst_30 = arith.constant dense<0.000000e+00> : vector<256x16xf32>
    %64 = tpu.matmul %61, %63, %cst_30 {dimension_numbers = #tpu.dot_dimension_numbers<[1], [0], [0], [1], [0, 0, 1, 1], [], []>} : vector<256x3xbf16>, vector<3x16xbf16>, vector<256x16xf32> -> vector<256x16xf32>
    %65 = arith.addf %58, %64 : vector<256x16xf32>
    %c0_31 = arith.constant 0 : index
    %c0_32 = arith.constant 0 : index
    %66 = vector.load %arg3[%c0_31, %c0_32] : memref<1x16xf32, #tpu.memory_space<vmem>>, vector<1x16xf32>
    %67 = vector.broadcast %66 : vector<1x16xf32> to vector<256x16xf32>
    %68 = arith.mulf %65, %67 : vector<256x16xf32>
    %c0_33 = arith.constant 0 : index
    %c0_34 = arith.constant 0 : index
    %69 = vector.load %arg4[%c0_33, %c0_34] : memref<1x16xf32, #tpu.memory_space<vmem>>, vector<1x16xf32>
    %70 = vector.broadcast %69 : vector<1x16xf32> to vector<256x16xf32>
    %71 = arith.addf %68, %70 : vector<256x16xf32>
    %cst_35 = arith.constant 0.000000e+00 : f32
    %72 = vector.broadcast %cst_35 : f32 to vector<256x16xf32>
    %73 = arith.maximumf %71, %72 : vector<256x16xf32>
    %74 = vector.shape_cast %73 : vector<256x16xf32> to vector<16x16x16xf32>
    %c0_36 = arith.constant 0 : index
    %c0_37 = arith.constant 0 : index
    %c0_38 = arith.constant 0 : index
    %c0_39 = arith.constant 0 : index
    %75 = vector.load %arg5[%c0_36, %c0_37, %c0_38, %c0_39] : memref<1x16x16x16xf32, #tpu.memory_space<vmem>>, vector<1x16x16x16xf32>
    %76 = vector.shape_cast %75 : vector<1x16x16x16xf32> to vector<16x16x16xf32>
    %77 = vector.shape_cast %74 : vector<16x16x16xf32> to vector<1x16x16x16xf32>
    tpu.vector_store %arg5[%c0_36, %c0_37, %c0_38, %c0_39], %77 {strides = array<i32>} : memref<1x16x16x16xf32, #tpu.memory_space<vmem>>, vector<1x16x16x16xf32>,
    return
  }
  func.func @transform_0(%arg0: i32) -> (i32, i32, i32, i32) {
    %c0_i32 = arith.constant 0 : i32
    %c0_i32_0 = arith.constant 0 : i32
    %c0_i32_1 = arith.constant 0 : i32
    %c0_i32_2 = arith.constant 0 : i32
    return %arg0, %c0_i32, %c0_i32_0, %c0_i32_1 : i32, i32, i32, i32
  }
  func.func @transform_1(%arg0: i32) -> (i32, i32, i32) {
    %c0_i32 = arith.constant 0 : i32
    %c0_i32_0 = arith.constant 0 : i32
    %c0_i32_1 = arith.constant 0 : i32
    %c0_i32_2 = arith.constant 0 : i32
    return %c0_i32, %c0_i32_0, %c0_i32_1 : i32, i32, i32
  }
  func.func @transform_2(%arg0: i32) -> (i32, i32) {
    %c0_i32 = arith.constant 0 : i32
    %c0_i32_0 = arith.constant 0 : i32
    %c0_i32_1 = arith.constant 0 : i32
    return %c0_i32, %c0_i32_0 : i32, i32
  }
  func.func @transform_3(%arg0: i32) -> (i32, i32) {
    %c0_i32 = arith.constant 0 : i32
    %c0_i32_0 = arith.constant 0 : i32
    %c0_i32_1 = arith.constant 0 : i32
    return %c0_i32, %c0_i32_0 : i32, i32
  }
  func.func @transform_4(%arg0: i32) -> (i32, i32, i32, i32) {
    %c0_i32 = arith.constant 0 : i32
    %c0_i32_0 = arith.constant 0 : i32
    %c0_i32_1 = arith.constant 0 : i32
    %c0_i32_2 = arith.constant 0 : i32
    return %arg0, %c0_i32, %c0_i32_0, %c0_i32_1 : i32, i32, i32, i32
  }
}

module attributes {stable_mosaic.version = 11 : i64} {
  func.func @_conv3x3_bn_act_kernel(%arg0: i32, %arg1: memref<1x18x18x16xf32, #tpu.memory_space<vmem>>, %arg2: memref<9x16x16xbf16, #tpu.memory_space<vmem>>, %arg3: memref<1x16xf32, #tpu.memory_space<vmem>>, %arg4: memref<1x16xf32, #tpu.memory_space<vmem>>, %arg5: memref<1x16x16x16xf32, #tpu.memory_space<vmem>>) attributes {dimension_semantics = [#tpu.dimension_semantics<parallel>], iteration_bounds = array<i64: 2>, scalar_prefetch = 0 : i64, scratch_operands = 0 : i64, tpu.core_type = #tpu.core_type<tc>, window_params = [{transform_indices = @transform_0, window_bounds = array<i64: 1, 18, 18, 16>}, {pipeline_mode = #tpu.pipeline_mode<synchronous>, transform_indices = @transform_1, window_bounds = array<i64: 9, 16, 16>}, {pipeline_mode = #tpu.pipeline_mode<synchronous>, transform_indices = @transform_2, window_bounds = array<i64: 1, 16>}, {pipeline_mode = #tpu.pipeline_mode<synchronous>, transform_indices = @transform_3, window_bounds = array<i64: 1, 16>}, {transform_indices = @transform_4, window_bounds = array<i64: 1, 16, 16, 16>}]} {
    %c0 = arith.constant 0 : index
    %c0_0 = arith.constant 0 : index
    %c0_1 = arith.constant 0 : index
    %c0_2 = arith.constant 0 : index
    %0 = vector.load %arg1[%c0, %c0_0, %c0_1, %c0_2] : memref<1x18x18x16xf32, #tpu.memory_space<vmem>>, vector<1x18x18x16xf32>
    %1 = vector.shape_cast %0 : vector<1x18x18x16xf32> to vector<18x18x16xf32>
    %cst = arith.constant 0.000000e+00 : f32
    %2 = vector.broadcast %cst : f32 to vector<256x16xf32>
    %3 = vector.extract_strided_slice %1 {offsets = [0, 0, 0], sizes = [16, 16, 16], strides = [1, 1, 1]} : vector<18x18x16xf32> to vector<16x16x16xf32>
    %4 = vector.shape_cast %3 : vector<16x16x16xf32> to vector<256x16xf32>
    %5 = arith.truncf %4 : vector<256x16xf32> to vector<256x16xbf16>
    %c0_3 = arith.constant 0 : index
    %c0_4 = arith.constant 0 : index
    %c0_5 = arith.constant 0 : index
    %6 = vector.load %arg2[%c0_3, %c0_4, %c0_5] : memref<9x16x16xbf16, #tpu.memory_space<vmem>>, vector<1x16x16xbf16>
    %7 = vector.shape_cast %6 : vector<1x16x16xbf16> to vector<16x16xbf16>
    %cst_6 = arith.constant dense<0.000000e+00> : vector<256x16xf32>
    %8 = tpu.matmul %5, %7, %cst_6 {dimension_numbers = #tpu.dot_dimension_numbers<[1], [0], [0], [1], [0, 0, 1, 1], [], []>} : vector<256x16xbf16>, vector<16x16xbf16>, vector<256x16xf32> -> vector<256x16xf32>
    %9 = arith.addf %2, %8 : vector<256x16xf32>
    %10 = vector.extract_strided_slice %1 {offsets = [0, 1, 0], sizes = [16, 16, 16], strides = [1, 1, 1]} : vector<18x18x16xf32> to vector<16x16x16xf32>
    %11 = vector.shape_cast %10 : vector<16x16x16xf32> to vector<256x16xf32>
    %12 = arith.truncf %11 : vector<256x16xf32> to vector<256x16xbf16>
    %c1 = arith.constant 1 : index
    %c0_7 = arith.constant 0 : index
    %c0_8 = arith.constant 0 : index
    %13 = vector.load %arg2[%c1, %c0_7, %c0_8] : memref<9x16x16xbf16, #tpu.memory_space<vmem>>, vector<1x16x16xbf16>
    %14 = vector.shape_cast %13 : vector<1x16x16xbf16> to vector<16x16xbf16>
    %cst_9 = arith.constant dense<0.000000e+00> : vector<256x16xf32>
    %15 = tpu.matmul %12, %14, %cst_9 {dimension_numbers = #tpu.dot_dimension_numbers<[1], [0], [0], [1], [0, 0, 1, 1], [], []>} : vector<256x16xbf16>, vector<16x16xbf16>, vector<256x16xf32> -> vector<256x16xf32>
    %16 = arith.addf %9, %15 : vector<256x16xf32>
    %17 = vector.extract_strided_slice %1 {offsets = [0, 2, 0], sizes = [16, 16, 16], strides = [1, 1, 1]} : vector<18x18x16xf32> to vector<16x16x16xf32>
    %18 = vector.shape_cast %17 : vector<16x16x16xf32> to vector<256x16xf32>
    %19 = arith.truncf %18 : vector<256x16xf32> to vector<256x16xbf16>
    %c2 = arith.constant 2 : index
    %c0_10 = arith.constant 0 : index
    %c0_11 = arith.constant 0 : index
    %20 = vector.load %arg2[%c2, %c0_10, %c0_11] : memref<9x16x16xbf16, #tpu.memory_space<vmem>>, vector<1x16x16xbf16>
    %21 = vector.shape_cast %20 : vector<1x16x16xbf16> to vector<16x16xbf16>
    %cst_12 = arith.constant dense<0.000000e+00> : vector<256x16xf32>
    %22 = tpu.matmul %19, %21, %cst_12 {dimension_numbers = #tpu.dot_dimension_numbers<[1], [0], [0], [1], [0, 0, 1, 1], [], []>} : vector<256x16xbf16>, vector<16x16xbf16>, vector<256x16xf32> -> vector<256x16xf32>
    %23 = arith.addf %16, %22 : vector<256x16xf32>
    %24 = vector.extract_strided_slice %1 {offsets = [1, 0, 0], sizes = [16, 16, 16], strides = [1, 1, 1]} : vector<18x18x16xf32> to vector<16x16x16xf32>
    %25 = vector.shape_cast %24 : vector<16x16x16xf32> to vector<256x16xf32>
    %26 = arith.truncf %25 : vector<256x16xf32> to vector<256x16xbf16>
    %c3 = arith.constant 3 : index
    %c0_13 = arith.constant 0 : index
    %c0_14 = arith.constant 0 : index
    %27 = vector.load %arg2[%c3, %c0_13, %c0_14] : memref<9x16x16xbf16, #tpu.memory_space<vmem>>, vector<1x16x16xbf16>
    %28 = vector.shape_cast %27 : vector<1x16x16xbf16> to vector<16x16xbf16>
    %cst_15 = arith.constant dense<0.000000e+00> : vector<256x16xf32>
    %29 = tpu.matmul %26, %28, %cst_15 {dimension_numbers = #tpu.dot_dimension_numbers<[1], [0], [0], [1], [0, 0, 1, 1], [], []>} : vector<256x16xbf16>, vector<16x16xbf16>, vector<256x16xf32> -> vector<256x16xf32>
    %30 = arith.addf %23, %29 : vector<256x16xf32>
    %31 = vector.extract_strided_slice %1 {offsets = [1, 1, 0], sizes = [16, 16, 16], strides = [1, 1, 1]} : vector<18x18x16xf32> to vector<16x16x16xf32>
    %32 = vector.shape_cast %31 : vector<16x16x16xf32> to vector<256x16xf32>
    %33 = arith.truncf %32 : vector<256x16xf32> to vector<256x16xbf16>
    %c4 = arith.constant 4 : index
    %c0_16 = arith.constant 0 : index
    %c0_17 = arith.constant 0 : index
    %34 = vector.load %arg2[%c4, %c0_16, %c0_17] : memref<9x16x16xbf16, #tpu.memory_space<vmem>>, vector<1x16x16xbf16>
    %35 = vector.shape_cast %34 : vector<1x16x16xbf16> to vector<16x16xbf16>
    %cst_18 = arith.constant dense<0.000000e+00> : vector<256x16xf32>
    %36 = tpu.matmul %33, %35, %cst_18 {dimension_numbers = #tpu.dot_dimension_numbers<[1], [0], [0], [1], [0, 0, 1, 1], [], []>} : vector<256x16xbf16>, vector<16x16xbf16>, vector<256x16xf32> -> vector<256x16xf32>
    %37 = arith.addf %30, %36 : vector<256x16xf32>
    %38 = vector.extract_strided_slice %1 {offsets = [1, 2, 0], sizes = [16, 16, 16], strides = [1, 1, 1]} : vector<18x18x16xf32> to vector<16x16x16xf32>
    %39 = vector.shape_cast %38 : vector<16x16x16xf32> to vector<256x16xf32>
    %40 = arith.truncf %39 : vector<256x16xf32> to vector<256x16xbf16>
    %c5 = arith.constant 5 : index
    %c0_19 = arith.constant 0 : index
    %c0_20 = arith.constant 0 : index
    %41 = vector.load %arg2[%c5, %c0_19, %c0_20] : memref<9x16x16xbf16, #tpu.memory_space<vmem>>, vector<1x16x16xbf16>
    %42 = vector.shape_cast %41 : vector<1x16x16xbf16> to vector<16x16xbf16>
    %cst_21 = arith.constant dense<0.000000e+00> : vector<256x16xf32>
    %43 = tpu.matmul %40, %42, %cst_21 {dimension_numbers = #tpu.dot_dimension_numbers<[1], [0], [0], [1], [0, 0, 1, 1], [], []>} : vector<256x16xbf16>, vector<16x16xbf16>, vector<256x16xf32> -> vector<256x16xf32>
    %44 = arith.addf %37, %43 : vector<256x16xf32>
    %45 = vector.extract_strided_slice %1 {offsets = [2, 0, 0], sizes = [16, 16, 16], strides = [1, 1, 1]} : vector<18x18x16xf32> to vector<16x16x16xf32>
    %46 = vector.shape_cast %45 : vector<16x16x16xf32> to vector<256x16xf32>
    %47 = arith.truncf %46 : vector<256x16xf32> to vector<256x16xbf16>
    %c6 = arith.constant 6 : index
    %c0_22 = arith.constant 0 : index
    %c0_23 = arith.constant 0 : index
    %48 = vector.load %arg2[%c6, %c0_22, %c0_23] : memref<9x16x16xbf16, #tpu.memory_space<vmem>>, vector<1x16x16xbf16>
    %49 = vector.shape_cast %48 : vector<1x16x16xbf16> to vector<16x16xbf16>
    %cst_24 = arith.constant dense<0.000000e+00> : vector<256x16xf32>
    %50 = tpu.matmul %47, %49, %cst_24 {dimension_numbers = #tpu.dot_dimension_numbers<[1], [0], [0], [1], [0, 0, 1, 1], [], []>} : vector<256x16xbf16>, vector<16x16xbf16>, vector<256x16xf32> -> vector<256x16xf32>
    %51 = arith.addf %44, %50 : vector<256x16xf32>
    %52 = vector.extract_strided_slice %1 {offsets = [2, 1, 0], sizes = [16, 16, 16], strides = [1, 1, 1]} : vector<18x18x16xf32> to vector<16x16x16xf32>
    %53 = vector.shape_cast %52 : vector<16x16x16xf32> to vector<256x16xf32>
    %54 = arith.truncf %53 : vector<256x16xf32> to vector<256x16xbf16>
    %c7 = arith.constant 7 : index
    %c0_25 = arith.constant 0 : index
    %c0_26 = arith.constant 0 : index
    %55 = vector.load %arg2[%c7, %c0_25, %c0_26] : memref<9x16x16xbf16, #tpu.memory_space<vmem>>, vector<1x16x16xbf16>
    %56 = vector.shape_cast %55 : vector<1x16x16xbf16> to vector<16x16xbf16>
    %cst_27 = arith.constant dense<0.000000e+00> : vector<256x16xf32>
    %57 = tpu.matmul %54, %56, %cst_27 {dimension_numbers = #tpu.dot_dimension_numbers<[1], [0], [0], [1], [0, 0, 1, 1], [], []>} : vector<256x16xbf16>, vector<16x16xbf16>, vector<256x16xf32> -> vector<256x16xf32>
    %58 = arith.addf %51, %57 : vector<256x16xf32>
    %59 = vector.extract_strided_slice %1 {offsets = [2, 2, 0], sizes = [16, 16, 16], strides = [1, 1, 1]} : vector<18x18x16xf32> to vector<16x16x16xf32>
    %60 = vector.shape_cast %59 : vector<16x16x16xf32> to vector<256x16xf32>
    %61 = arith.truncf %60 : vector<256x16xf32> to vector<256x16xbf16>
    %c8 = arith.constant 8 : index
    %c0_28 = arith.constant 0 : index
    %c0_29 = arith.constant 0 : index
    %62 = vector.load %arg2[%c8, %c0_28, %c0_29] : memref<9x16x16xbf16, #tpu.memory_space<vmem>>, vector<1x16x16xbf16>
    %63 = vector.shape_cast %62 : vector<1x16x16xbf16> to vector<16x16xbf16>
    %cst_30 = arith.constant dense<0.000000e+00> : vector<256x16xf32>
    %64 = tpu.matmul %61, %63, %cst_30 {dimension_numbers = #tpu.dot_dimension_numbers<[1], [0], [0], [1], [0, 0, 1, 1], [], []>} : vector<256x16xbf16>, vector<16x16xbf16>, vector<256x16xf32> -> vector<256x16xf32>
    %65 = arith.addf %58, %64 : vector<256x16xf32>
    %c0_31 = arith.constant 0 : index
    %c0_32 = arith.constant 0 : index
    %66 = vector.load %arg3[%c0_31, %c0_32] : memref<1x16xf32, #tpu.memory_space<vmem>>, vector<1x16xf32>
    %67 = vector.broadcast %66 : vector<1x16xf32> to vector<256x16xf32>
    %68 = arith.mulf %65, %67 : vector<256x16xf32>
    %c0_33 = arith.constant 0 : index
    %c0_34 = arith.constant 0 : index
    %69 = vector.load %arg4[%c0_33, %c0_34] : memref<1x16xf32, #tpu.memory_space<vmem>>, vector<1x16xf32>
    %70 = vector.broadcast %69 : vector<1x16xf32> to vector<256x16xf32>
    %71 = arith.addf %68, %70 : vector<256x16xf32>
    %cst_35 = arith.constant 0.000000e+00 : f32
    %72 = vector.broadcast %cst_35 : f32 to vector<256x16xf32>
    %73 = arith.maximumf %71, %72 : vector<256x16xf32>
    %74 = vector.shape_cast %73 : vector<256x16xf32> to vector<16x16x16xf32>
    %c0_36 = arith.constant 0 : index
    %c0_37 = arith.constant 0 : index
    %c0_38 = arith.constant 0 : index
    %c0_39 = arith.constant 0 : index
    %75 = vector.load %arg5[%c0_36, %c0_37, %c0_38, %c0_39] : memref<1x16x16x16xf32, #tpu.memory_space<vmem>>, vector<1x16x16x16xf32>
    %76 = vector.shape_cast %75 : vector<1x16x16x16xf32> to vector<16x16x16xf32>
    %77 = vector.shape_cast %74 : vector<16x16x16xf32> to vector<1x16x16x16xf32>
    tpu.vector_store %arg5[%c0_36, %c0_37, %c0_38, %c0_39], %77 {strides = array<i32>} : memref<1x16x16x16xf32, #tpu.memory_space<vmem>>, vector<1x16x16x16xf32>,
    return
  }
  func.func @transform_0(%arg0: i32) -> (i32, i32, i32, i32) {
    %c0_i32 = arith.constant 0 : i32
    %c0_i32_0 = arith.constant 0 : i32
    %c0_i32_1 = arith.constant 0 : i32
    %c0_i32_2 = arith.constant 0 : i32
    return %arg0, %c0_i32, %c0_i32_0, %c0_i32_1 : i32, i32, i32, i32
  }
  func.func @transform_1(%arg0: i32) -> (i32, i32, i32) {
    %c0_i32 = arith.constant 0 : i32
    %c0_i32_0 = arith.constant 0 : i32
    %c0_i32_1 = arith.constant 0 : i32
    %c0_i32_2 = arith.constant 0 : i32
    return %c0_i32, %c0_i32_0, %c0_i32_1 : i32, i32, i32
  }
  func.func @transform_2(%arg0: i32) -> (i32, i32) {
    %c0_i32 = arith.constant 0 : i32
    %c0_i32_0 = arith.constant 0 : i32
    %c0_i32_1 = arith.constant 0 : i32
    return %c0_i32, %c0_i32_0 : i32, i32
  }
  func.func @transform_3(%arg0: i32) -> (i32, i32) {
    %c0_i32 = arith.constant 0 : i32
    %c0_i32_0 = arith.constant 0 : i32
    %c0_i32_1 = arith.constant 0 : i32
    return %c0_i32, %c0_i32_0 : i32, i32
  }
  func.func @transform_4(%arg0: i32) -> (i32, i32, i32, i32) {
    %c0_i32 = arith.constant 0 : i32
    %c0_i32_0 = arith.constant 0 : i32
    %c0_i32_1 = arith.constant 0 : i32
    %c0_i32_2 = arith.constant 0 : i32
    return %arg0, %c0_i32, %c0_i32_0, %c0_i32_1 : i32, i32, i32, i32
  }
}

module attributes {stable_mosaic.version = 11 : i64} {
  func.func @_conv3x3_bn_res_gap_fc_kernel(%arg0: i32, %arg1: memref<1x18x18x16xf32, #tpu.memory_space<vmem>>, %arg2: memref<9x16x16xbf16, #tpu.memory_space<vmem>>, %arg3: memref<1x16xf32, #tpu.memory_space<vmem>>, %arg4: memref<1x16xf32, #tpu.memory_space<vmem>>, %arg5: memref<1x16x16x16xf32, #tpu.memory_space<vmem>>, %arg6: memref<16x10xf32, #tpu.memory_space<vmem>>, %arg7: memref<1x10xf32, #tpu.memory_space<vmem>>, %arg8: memref<1x16x16x16xf32, #tpu.memory_space<vmem>>, %arg9: memref<1x1x16xf32, #tpu.memory_space<vmem>>, %arg10: memref<1x1x10xf32, #tpu.memory_space<vmem>>) attributes {dimension_semantics = [#tpu.dimension_semantics<parallel>], iteration_bounds = array<i64: 2>, scalar_prefetch = 0 : i64, scratch_operands = 0 : i64, tpu.core_type = #tpu.core_type<tc>, window_params = [{transform_indices = @transform_0, window_bounds = array<i64: 1, 18, 18, 16>}, {pipeline_mode = #tpu.pipeline_mode<synchronous>, transform_indices = @transform_1, window_bounds = array<i64: 9, 16, 16>}, {pipeline_mode = #tpu.pipeline_mode<synchronous>, transform_indices = @transform_2, window_bounds = array<i64: 1, 16>}, {pipeline_mode = #tpu.pipeline_mode<synchronous>, transform_indices = @transform_3, window_bounds = array<i64: 1, 16>}, {transform_indices = @transform_4, window_bounds = array<i64: 1, 16, 16, 16>}, {pipeline_mode = #tpu.pipeline_mode<synchronous>, transform_indices = @transform_5, window_bounds = array<i64: 16, 10>}, {pipeline_mode = #tpu.pipeline_mode<synchronous>, transform_indices = @transform_6, window_bounds = array<i64: 1, 10>}, {transform_indices = @transform_7, window_bounds = array<i64: 1, 16, 16, 16>}, {transform_indices = @transform_8, window_bounds = array<i64: 1, 1, 16>}, {transform_indices = @transform_9, window_bounds = array<i64: 1, 1, 10>}]} {
    %c0 = arith.constant 0 : index
    %c0_0 = arith.constant 0 : index
    %c0_1 = arith.constant 0 : index
    %c0_2 = arith.constant 0 : index
    %0 = vector.load %arg1[%c0, %c0_0, %c0_1, %c0_2] : memref<1x18x18x16xf32, #tpu.memory_space<vmem>>, vector<1x18x18x16xf32>
    %1 = vector.shape_cast %0 : vector<1x18x18x16xf32> to vector<18x18x16xf32>
    %cst = arith.constant 0.000000e+00 : f32
    %2 = vector.broadcast %cst : f32 to vector<256x16xf32>
    %3 = vector.extract_strided_slice %1 {offsets = [0, 0, 0], sizes = [16, 16, 16], strides = [1, 1, 1]} : vector<18x18x16xf32> to vector<16x16x16xf32>
    %4 = vector.shape_cast %3 : vector<16x16x16xf32> to vector<256x16xf32>
    %5 = arith.truncf %4 : vector<256x16xf32> to vector<256x16xbf16>
    %c0_3 = arith.constant 0 : index
    %c0_4 = arith.constant 0 : index
    %c0_5 = arith.constant 0 : index
    %6 = vector.load %arg2[%c0_3, %c0_4, %c0_5] : memref<9x16x16xbf16, #tpu.memory_space<vmem>>, vector<1x16x16xbf16>
    %7 = vector.shape_cast %6 : vector<1x16x16xbf16> to vector<16x16xbf16>
    %cst_6 = arith.constant dense<0.000000e+00> : vector<256x16xf32>
    %8 = tpu.matmul %5, %7, %cst_6 {dimension_numbers = #tpu.dot_dimension_numbers<[1], [0], [0], [1], [0, 0, 1, 1], [], []>} : vector<256x16xbf16>, vector<16x16xbf16>, vector<256x16xf32> -> vector<256x16xf32>
    %9 = arith.addf %2, %8 : vector<256x16xf32>
    %10 = vector.extract_strided_slice %1 {offsets = [0, 1, 0], sizes = [16, 16, 16], strides = [1, 1, 1]} : vector<18x18x16xf32> to vector<16x16x16xf32>
    %11 = vector.shape_cast %10 : vector<16x16x16xf32> to vector<256x16xf32>
    %12 = arith.truncf %11 : vector<256x16xf32> to vector<256x16xbf16>
    %c1 = arith.constant 1 : index
    %c0_7 = arith.constant 0 : index
    %c0_8 = arith.constant 0 : index
    %13 = vector.load %arg2[%c1, %c0_7, %c0_8] : memref<9x16x16xbf16, #tpu.memory_space<vmem>>, vector<1x16x16xbf16>
    %14 = vector.shape_cast %13 : vector<1x16x16xbf16> to vector<16x16xbf16>
    %cst_9 = arith.constant dense<0.000000e+00> : vector<256x16xf32>
    %15 = tpu.matmul %12, %14, %cst_9 {dimension_numbers = #tpu.dot_dimension_numbers<[1], [0], [0], [1], [0, 0, 1, 1], [], []>} : vector<256x16xbf16>, vector<16x16xbf16>, vector<256x16xf32> -> vector<256x16xf32>
    %16 = arith.addf %9, %15 : vector<256x16xf32>
    %17 = vector.extract_strided_slice %1 {offsets = [0, 2, 0], sizes = [16, 16, 16], strides = [1, 1, 1]} : vector<18x18x16xf32> to vector<16x16x16xf32>
    %18 = vector.shape_cast %17 : vector<16x16x16xf32> to vector<256x16xf32>
    %19 = arith.truncf %18 : vector<256x16xf32> to vector<256x16xbf16>
    %c2 = arith.constant 2 : index
    %c0_10 = arith.constant 0 : index
    %c0_11 = arith.constant 0 : index
    %20 = vector.load %arg2[%c2, %c0_10, %c0_11] : memref<9x16x16xbf16, #tpu.memory_space<vmem>>, vector<1x16x16xbf16>
    %21 = vector.shape_cast %20 : vector<1x16x16xbf16> to vector<16x16xbf16>
    %cst_12 = arith.constant dense<0.000000e+00> : vector<256x16xf32>
    %22 = tpu.matmul %19, %21, %cst_12 {dimension_numbers = #tpu.dot_dimension_numbers<[1], [0], [0], [1], [0, 0, 1, 1], [], []>} : vector<256x16xbf16>, vector<16x16xbf16>, vector<256x16xf32> -> vector<256x16xf32>
    %23 = arith.addf %16, %22 : vector<256x16xf32>
    %24 = vector.extract_strided_slice %1 {offsets = [1, 0, 0], sizes = [16, 16, 16], strides = [1, 1, 1]} : vector<18x18x16xf32> to vector<16x16x16xf32>
    %25 = vector.shape_cast %24 : vector<16x16x16xf32> to vector<256x16xf32>
    %26 = arith.truncf %25 : vector<256x16xf32> to vector<256x16xbf16>
    %c3 = arith.constant 3 : index
    %c0_13 = arith.constant 0 : index
    %c0_14 = arith.constant 0 : index
    %27 = vector.load %arg2[%c3, %c0_13, %c0_14] : memref<9x16x16xbf16, #tpu.memory_space<vmem>>, vector<1x16x16xbf16>
    %28 = vector.shape_cast %27 : vector<1x16x16xbf16> to vector<16x16xbf16>
    %cst_15 = arith.constant dense<0.000000e+00> : vector<256x16xf32>
    %29 = tpu.matmul %26, %28, %cst_15 {dimension_numbers = #tpu.dot_dimension_numbers<[1], [0], [0], [1], [0, 0, 1, 1], [], []>} : vector<256x16xbf16>, vector<16x16xbf16>, vector<256x16xf32> -> vector<256x16xf32>
    %30 = arith.addf %23, %29 : vector<256x16xf32>
    %31 = vector.extract_strided_slice %1 {offsets = [1, 1, 0], sizes = [16, 16, 16], strides = [1, 1, 1]} : vector<18x18x16xf32> to vector<16x16x16xf32>
    %32 = vector.shape_cast %31 : vector<16x16x16xf32> to vector<256x16xf32>
    %33 = arith.truncf %32 : vector<256x16xf32> to vector<256x16xbf16>
    %c4 = arith.constant 4 : index
    %c0_16 = arith.constant 0 : index
    %c0_17 = arith.constant 0 : index
    %34 = vector.load %arg2[%c4, %c0_16, %c0_17] : memref<9x16x16xbf16, #tpu.memory_space<vmem>>, vector<1x16x16xbf16>
    %35 = vector.shape_cast %34 : vector<1x16x16xbf16> to vector<16x16xbf16>
    %cst_18 = arith.constant dense<0.000000e+00> : vector<256x16xf32>
    %36 = tpu.matmul %33, %35, %cst_18 {dimension_numbers = #tpu.dot_dimension_numbers<[1], [0], [0], [1], [0, 0, 1, 1], [], []>} : vector<256x16xbf16>, vector<16x16xbf16>, vector<256x16xf32> -> vector<256x16xf32>
    %37 = arith.addf %30, %36 : vector<256x16xf32>
    %38 = vector.extract_strided_slice %1 {offsets = [1, 2, 0], sizes = [16, 16, 16], strides = [1, 1, 1]} : vector<18x18x16xf32> to vector<16x16x16xf32>
    %39 = vector.shape_cast %38 : vector<16x16x16xf32> to vector<256x16xf32>
    %40 = arith.truncf %39 : vector<256x16xf32> to vector<256x16xbf16>
    %c5 = arith.constant 5 : index
    %c0_19 = arith.constant 0 : index
    %c0_20 = arith.constant 0 : index
    %41 = vector.load %arg2[%c5, %c0_19, %c0_20] : memref<9x16x16xbf16, #tpu.memory_space<vmem>>, vector<1x16x16xbf16>
    %42 = vector.shape_cast %41 : vector<1x16x16xbf16> to vector<16x16xbf16>
    %cst_21 = arith.constant dense<0.000000e+00> : vector<256x16xf32>
    %43 = tpu.matmul %40, %42, %cst_21 {dimension_numbers = #tpu.dot_dimension_numbers<[1], [0], [0], [1], [0, 0, 1, 1], [], []>} : vector<256x16xbf16>, vector<16x16xbf16>, vector<256x16xf32> -> vector<256x16xf32>
    %44 = arith.addf %37, %43 : vector<256x16xf32>
    %45 = vector.extract_strided_slice %1 {offsets = [2, 0, 0], sizes = [16, 16, 16], strides = [1, 1, 1]} : vector<18x18x16xf32> to vector<16x16x16xf32>
    %46 = vector.shape_cast %45 : vector<16x16x16xf32> to vector<256x16xf32>
    %47 = arith.truncf %46 : vector<256x16xf32> to vector<256x16xbf16>
    %c6 = arith.constant 6 : index
    %c0_22 = arith.constant 0 : index
    %c0_23 = arith.constant 0 : index
    %48 = vector.load %arg2[%c6, %c0_22, %c0_23] : memref<9x16x16xbf16, #tpu.memory_space<vmem>>, vector<1x16x16xbf16>
    %49 = vector.shape_cast %48 : vector<1x16x16xbf16> to vector<16x16xbf16>
    %cst_24 = arith.constant dense<0.000000e+00> : vector<256x16xf32>
    %50 = tpu.matmul %47, %49, %cst_24 {dimension_numbers = #tpu.dot_dimension_numbers<[1], [0], [0], [1], [0, 0, 1, 1], [], []>} : vector<256x16xbf16>, vector<16x16xbf16>, vector<256x16xf32> -> vector<256x16xf32>
    %51 = arith.addf %44, %50 : vector<256x16xf32>
    %52 = vector.extract_strided_slice %1 {offsets = [2, 1, 0], sizes = [16, 16, 16], strides = [1, 1, 1]} : vector<18x18x16xf32> to vector<16x16x16xf32>
    %53 = vector.shape_cast %52 : vector<16x16x16xf32> to vector<256x16xf32>
    %54 = arith.truncf %53 : vector<256x16xf32> to vector<256x16xbf16>
    %c7 = arith.constant 7 : index
    %c0_25 = arith.constant 0 : index
    %c0_26 = arith.constant 0 : index
    %55 = vector.load %arg2[%c7, %c0_25, %c0_26] : memref<9x16x16xbf16, #tpu.memory_space<vmem>>, vector<1x16x16xbf16>
    %56 = vector.shape_cast %55 : vector<1x16x16xbf16> to vector<16x16xbf16>
    %cst_27 = arith.constant dense<0.000000e+00> : vector<256x16xf32>
    %57 = tpu.matmul %54, %56, %cst_27 {dimension_numbers = #tpu.dot_dimension_numbers<[1], [0], [0], [1], [0, 0, 1, 1], [], []>} : vector<256x16xbf16>, vector<16x16xbf16>, vector<256x16xf32> -> vector<256x16xf32>
    %58 = arith.addf %51, %57 : vector<256x16xf32>
    %59 = vector.extract_strided_slice %1 {offsets = [2, 2, 0], sizes = [16, 16, 16], strides = [1, 1, 1]} : vector<18x18x16xf32> to vector<16x16x16xf32>
    %60 = vector.shape_cast %59 : vector<16x16x16xf32> to vector<256x16xf32>
    %61 = arith.truncf %60 : vector<256x16xf32> to vector<256x16xbf16>
    %c8 = arith.constant 8 : index
    %c0_28 = arith.constant 0 : index
    %c0_29 = arith.constant 0 : index
    %62 = vector.load %arg2[%c8, %c0_28, %c0_29] : memref<9x16x16xbf16, #tpu.memory_space<vmem>>, vector<1x16x16xbf16>
    %63 = vector.shape_cast %62 : vector<1x16x16xbf16> to vector<16x16xbf16>
    %cst_30 = arith.constant dense<0.000000e+00> : vector<256x16xf32>
    %64 = tpu.matmul %61, %63, %cst_30 {dimension_numbers = #tpu.dot_dimension_numbers<[1], [0], [0], [1], [0, 0, 1, 1], [], []>} : vector<256x16xbf16>, vector<16x16xbf16>, vector<256x16xf32> -> vector<256x16xf32>
    %65 = arith.addf %58, %64 : vector<256x16xf32>
    %c0_31 = arith.constant 0 : index
    %c0_32 = arith.constant 0 : index
    %66 = vector.load %arg3[%c0_31, %c0_32] : memref<1x16xf32, #tpu.memory_space<vmem>>, vector<1x16xf32>
    %67 = vector.broadcast %66 : vector<1x16xf32> to vector<256x16xf32>
    %68 = arith.mulf %65, %67 : vector<256x16xf32>
    %c0_33 = arith.constant 0 : index
    %c0_34 = arith.constant 0 : index
    %69 = vector.load %arg4[%c0_33, %c0_34] : memref<1x16xf32, #tpu.memory_space<vmem>>, vector<1x16xf32>
    %70 = vector.broadcast %69 : vector<1x16xf32> to vector<256x16xf32>
    %71 = arith.addf %68, %70 : vector<256x16xf32>
    %c0_35 = arith.constant 0 : index
    %c0_36 = arith.constant 0 : index
    %c0_37 = arith.constant 0 : index
    %c0_38 = arith.constant 0 : index
    %72 = vector.load %arg5[%c0_35, %c0_36, %c0_37, %c0_38] : memref<1x16x16x16xf32, #tpu.memory_space<vmem>>, vector<1x16x16x16xf32>
    %73 = vector.shape_cast %72 : vector<1x16x16x16xf32> to vector<16x16x16xf32>
    %74 = vector.shape_cast %73 : vector<16x16x16xf32> to vector<256x16xf32>
    %75 = arith.addf %71, %74 : vector<256x16xf32>
    %cst_39 = arith.constant 0.000000e+00 : f32
    %76 = vector.broadcast %cst_39 : f32 to vector<256x16xf32>
    %77 = arith.maximumf %75, %76 : vector<256x16xf32>
    %78 = vector.shape_cast %77 : vector<256x16xf32> to vector<16x16x16xf32>
    %c0_40 = arith.constant 0 : index
    %c0_41 = arith.constant 0 : index
    %c0_42 = arith.constant 0 : index
    %c0_43 = arith.constant 0 : index
    %79 = vector.load %arg8[%c0_40, %c0_41, %c0_42, %c0_43] : memref<1x16x16x16xf32, #tpu.memory_space<vmem>>, vector<1x16x16x16xf32>
    %80 = vector.shape_cast %79 : vector<1x16x16x16xf32> to vector<16x16x16xf32>
    %81 = vector.shape_cast %78 : vector<16x16x16xf32> to vector<1x16x16x16xf32>
    tpu.vector_store %arg8[%c0_40, %c0_41, %c0_42, %c0_43], %81 {strides = array<i32>} : memref<1x16x16x16xf32, #tpu.memory_space<vmem>>, vector<1x16x16x16xf32>,
    %cst_44 = arith.constant dense<0.000000e+00> : vector<16xf32>
    %82 = vector.multi_reduction <add>, %77, %cst_44 [0] : vector<256x16xf32> to vector<16xf32>
    %83 = vector.shape_cast %82 : vector<16xf32> to vector<1x16xf32>
    %cst_45 = arith.constant 2.560000e+02 : f32
    %84 = vector.broadcast %cst_45 : f32 to vector<1x16xf32>
    %85 = arith.divf %83, %84 : vector<1x16xf32>
    %c0_46 = arith.constant 0 : index
    %c0_47 = arith.constant 0 : index
    %c0_48 = arith.constant 0 : index
    %86 = vector.load %arg9[%c0_46, %c0_47, %c0_48] : memref<1x1x16xf32, #tpu.memory_space<vmem>>, vector<1x1x16xf32>
    %87 = vector.shape_cast %86 : vector<1x1x16xf32> to vector<1x16xf32>
    %88 = vector.shape_cast %85 : vector<1x16xf32> to vector<1x1x16xf32>
    tpu.vector_store %arg9[%c0_46, %c0_47, %c0_48], %88 {strides = array<i32>} : memref<1x1x16xf32, #tpu.memory_space<vmem>>, vector<1x1x16xf32>,
    %c0_49 = arith.constant 0 : index
    %c0_50 = arith.constant 0 : index
    %89 = vector.load %arg6[%c0_49, %c0_50] : memref<16x10xf32, #tpu.memory_space<vmem>>, vector<16x10xf32>
    %cst_51 = arith.constant dense<0.000000e+00> : vector<256x10xf32>
    %90 = tpu.matmul %77, %89, %cst_51 {dimension_numbers = #tpu.dot_dimension_numbers<[1], [0], [0], [1], [0, 0, 1, 1], [], []>} : vector<256x16xf32>, vector<16x10xf32>, vector<256x10xf32> -> vector<256x10xf32>
    %cst_52 = arith.constant dense<0.000000e+00> : vector<10xf32>
    %91 = vector.multi_reduction <add>, %90, %cst_52 [0] : vector<256x10xf32> to vector<10xf32>
    %92 = vector.shape_cast %91 : vector<10xf32> to vector<1x10xf32>
    %cst_53 = arith.constant 2.560000e+02 : f32
    %93 = vector.broadcast %cst_53 : f32 to vector<1x10xf32>
    %94 = arith.divf %92, %93 : vector<1x10xf32>
    %c0_54 = arith.constant 0 : index
    %c0_55 = arith.constant 0 : index
    %95 = vector.load %arg7[%c0_54, %c0_55] : memref<1x10xf32, #tpu.memory_space<vmem>>, vector<1x10xf32>
    %96 = arith.addf %94, %95 : vector<1x10xf32>
    %c0_56 = arith.constant 0 : index
    %c0_57 = arith.constant 0 : index
    %c0_58 = arith.constant 0 : index
    %97 = vector.load %arg10[%c0_56, %c0_57, %c0_58] : memref<1x1x10xf32, #tpu.memory_space<vmem>>, vector<1x1x10xf32>
    %98 = vector.shape_cast %97 : vector<1x1x10xf32> to vector<1x10xf32>
    %99 = vector.shape_cast %96 : vector<1x10xf32> to vector<1x1x10xf32>
    tpu.vector_store %arg10[%c0_56, %c0_57, %c0_58], %99 {strides = array<i32>} : memref<1x1x10xf32, #tpu.memory_space<vmem>>, vector<1x1x10xf32>,
    return
  }
  func.func @transform_0(%arg0: i32) -> (i32, i32, i32, i32) {
    %c0_i32 = arith.constant 0 : i32
    %c0_i32_0 = arith.constant 0 : i32
    %c0_i32_1 = arith.constant 0 : i32
    %c0_i32_2 = arith.constant 0 : i32
    return %arg0, %c0_i32, %c0_i32_0, %c0_i32_1 : i32, i32, i32, i32
  }
  func.func @transform_1(%arg0: i32) -> (i32, i32, i32) {
    %c0_i32 = arith.constant 0 : i32
    %c0_i32_0 = arith.constant 0 : i32
    %c0_i32_1 = arith.constant 0 : i32
    %c0_i32_2 = arith.constant 0 : i32
    return %c0_i32, %c0_i32_0, %c0_i32_1 : i32, i32, i32
  }
  func.func @transform_2(%arg0: i32) -> (i32, i32) {
    %c0_i32 = arith.constant 0 : i32
    %c0_i32_0 = arith.constant 0 : i32
    %c0_i32_1 = arith.constant 0 : i32
    return %c0_i32, %c0_i32_0 : i32, i32
  }
  func.func @transform_3(%arg0: i32) -> (i32, i32) {
    %c0_i32 = arith.constant 0 : i32
    %c0_i32_0 = arith.constant 0 : i32
    %c0_i32_1 = arith.constant 0 : i32
    return %c0_i32, %c0_i32_0 : i32, i32
  }
  func.func @transform_4(%arg0: i32) -> (i32, i32, i32, i32) {
    %c0_i32 = arith.constant 0 : i32
    %c0_i32_0 = arith.constant 0 : i32
    %c0_i32_1 = arith.constant 0 : i32
    %c0_i32_2 = arith.constant 0 : i32
    return %arg0, %c0_i32, %c0_i32_0, %c0_i32_1 : i32, i32, i32, i32
  }
  func.func @transform_5(%arg0: i32) -> (i32, i32) {
    %c0_i32 = arith.constant 0 : i32
    %c0_i32_0 = arith.constant 0 : i32
    %c0_i32_1 = arith.constant 0 : i32
    return %c0_i32, %c0_i32_0 : i32, i32
  }
  func.func @transform_6(%arg0: i32) -> (i32, i32) {
    %c0_i32 = arith.constant 0 : i32
    %c0_i32_0 = arith.constant 0 : i32
    %c0_i32_1 = arith.constant 0 : i32
    return %c0_i32, %c0_i32_0 : i32, i32
  }
  func.func @transform_7(%arg0: i32) -> (i32, i32, i32, i32) {
    %c0_i32 = arith.constant 0 : i32
    %c0_i32_0 = arith.constant 0 : i32
    %c0_i32_1 = arith.constant 0 : i32
    %c0_i32_2 = arith.constant 0 : i32
    return %arg0, %c0_i32, %c0_i32_0, %c0_i32_1 : i32, i32, i32, i32
  }
  func.func @transform_8(%arg0: i32) -> (i32, i32, i32) {
    %c0_i32 = arith.constant 0 : i32
    %c0_i32_0 = arith.constant 0 : i32
    %c0_i32_1 = arith.constant 0 : i32
    return %arg0, %c0_i32, %c0_i32_0 : i32, i32, i32
  }
  func.func @transform_9(%arg0: i32) -> (i32, i32, i32) {
    %c0_i32 = arith.constant 0 : i32
    %c0_i32_0 = arith.constant 0 : i32
    %c0_i32_1 = arith.constant 0 : i32
    return %arg0, %c0_i32, %c0_i32_0 : i32, i32, i32
  }
}

</mosaic_0001>

<bundles_post_ra>
// kernel: basenet_forward.3
= control target key start
LH: loop header
LB: loop body
LE: loop exit
PB: predicated region body
PF: predicated region fallthrough
CT: control target
= control target key end

     0   :  { %s3367_s15 = smov 0   ;;  %s4788_s0 = inlined_call_operand.vmem [shape: f32[2,18,18,3], index: 0, kind: input, shape index: {}]   ;;  %s4789_s1 = inlined_call_operand.vmem [shape: bf16[9,3,16], index: 1, kind: input, shape index: {}]   ;;  %s4790_s2 = inlined_call_operand.vmem [shape: f32[1,16], index: 2, kind: input, shape index: {}]   ;;  %s4791_s3 = inlined_call_operand.vmem [shape: f32[1,16], index: 3, kind: input, shape index: {}]   ;;  %s4792_s4 = inlined_call_operand.vmem [shape: f32[2,16,16,16], index: 4, kind: output, shape index: {}]  }
   0x1 LB: > { %s2697_s16 = sadd.s32 4294967295, %s3339_s15   ;;  %p2701_p0 = scmp.ge.s32.totalorder %s3339_s15, 1  ;;  %s3339_s15 = sphi %s3367_s15, %s14_s15  }
   0x2   : > { %p162_p1 = scmp.lt.s32.totalorder %s3339_s15, 3 }
   0x4   : > { %p163_p2 = pnand %p2701_p0, %p162_p1 }
   0x6   : > { %166 = sbr.rel (%p163_p2) target bundleno = 518 (0x206), region = 36 }
   0xb   : > { %v2705_v0 = vld [vmem:[%s4789_s1 + $0x2] sm:$0x3]  ;;  %vm498_vm0 = vcmask 1040384   ;;  %vm499_vm1 = vcmask 1041408   ;;  %p188_p3 = scmp.lt.s32.totalorder %s2697_s16, 1  ;;  %v3341_v1 = vmov 65535  }
   0xc   : > { %v500_v2 = vsel %vm498_vm0, 4294967295, %v3341_v1  ;;  %v269_v3 = vld [vmem:[%s4789_s1] sm:$0x3]  ;;  %v2738_v5 = vld [vmem:[%s4789_s1 + $0x4] sm:$0x3]  ;;  %vm318_vm2 = vcmask 1046528  }
   0xd   : > { %v3381_v4 = vsel %vm499_vm1, %v500_v2, 0  ;;  %s4962_s16 = smov (!%p188_p3, %s2697_s16), 1  ;;  %v2755_v12 = vld [vmem:[%s4789_s1 + $0x6] sm:$0x3]  ;;  %v2772_v21 = vld [vmem:[%s4789_s1 + $0x8] sm:$0x3] }
   0xe   : > { %v503_v6 = vand.u32 %v2705_v0, %v3381_v4  ;;  %v3390_v7 = vand.u32 %v3381_v4, %v269_v3  ;;  %v3393_v8 = vand.u32 %v2738_v5, %v3381_v4  ;;  %s3323_s23 = smul.u32 432, %s4962_s16  ;;  %vm449_vm3 = vcmask 23552   ;;  %s2861_s19 = sshll.u32 %s4962_s16, 8 }
   0xf   : > { %v3468_v40 = vand.u32 %v2755_v12, %v3381_v4  ;;  %v3482_v46 = vand.u32 %v2772_v21, %v3381_v4  ;;  %vm878_vm4 = vcmask 1045504   ;;  %s4584_s21 = scalar_lea.vmem %s4792_s4, %s2861_s19  ;;  %vm2609_vm5 = vcmask 130048  }
  0x10   : > { %3321 = vmatprep.subr.bf16.mxu1 %v503_v6  ;;  %3015 = vmatprep.subr.bf16.mxu0 %v503_v6  ;;  %s3399_s26 = scalar_lea.vmem %s4788_s0, %s3323_s23 }
  0x11   : > { %3322 = vmatpush3.bf16.msra.mxu1 %v503_v6  ;;  %3016 = vmatpush3.bf16.msra.mxu0 %v503_v6  ;;  %v3402_v9 = vld [vmem:[%s3399_s26] sm:$0xff]  ;;  %v3405_v10 = vld [vmem:[%s3399_s26 + $0x8] sm:$0xff]  ;;  %v3408_v11 = vld [vmem:[%s3399_s26 + $0x10] sm:$0x3] }
  0x12   : > { %3049 = vmatprep.subr.bf16.mxu1 %v3390_v7  ;;  %3083 = vmatprep.subr.bf16.mxu0 %v3393_v8  ;;  %v319_v13 = vrot.slane %v3402_v9, 1  ;;  %v320_v14 = vrot.slane %v3405_v10, 1  ;;  %v322_v15 = vrot.slane %v3408_v11, 1  ;;  %v3419_v16 = vld [vmem:[%s3399_s26 + $0xc0] sm:$0xff]  ;;  %v3422_v17 = vld [vmem:[%s3399_s26 + $0xc8] sm:$0xff]  ;;  %v3436_v25 = vld [vmem:[%s3399_s26 + $0x18] sm:$0xff] }
  0x13   : > { %v3425_v18 = vld [vmem:[%s3399_s26 + $0xd0] sm:$0x3]  ;;  %v359_v19 = vrot.slane %v3419_v16, 1  ;;  %v360_v20 = vrot.slane %v3422_v17, 1  ;;  %v3439_v26 = vld [vmem:[%s3399_s26 + $0x20] sm:$0xff]  ;;  %v324_v30 = vrot.slane %v3436_v25, 1 }
  0x14   : > { %4823 = vst [vmem:[#allocation2_spill] sm:$0xff] %v3425_v18  ;;  %v321_v22 = vsel %vm318_vm2, %v319_v13, %v320_v14  ;;  %v323_v23 = vsel %vm318_vm2, %v320_v14, %v322_v15  ;;  %v362_v24 = vrot.slane %v3425_v18, 1  ;;  %v3442_v27 = vld [vmem:[%s3399_s26 + $0x28] sm:$0x3]  ;;  %v325_v31 = vrot.slane %v3439_v26, 1  ;;  %v3448_v32 = vld [vmem:[%s3399_s26 + $0xd8] sm:$0xff] }
  0x15   : > { %v431_v28 = vpack.c.bf16 %v323_v23, %v321_v22  ;;  %v361_v29 = vsel %vm318_vm2, %v359_v19, %v360_v20  ;;  %v3451_v33 = vld [vmem:[%s3399_s26 + $0xe0] sm:$0xff]  ;;  %v3454_v34 = vld [vmem:[%s3399_s26 + $0xe8] sm:$0x3]  ;;  %v327_v36 = vrot.slane %v3442_v27, 1  ;;  %v3459_v37 = vld [vmem:[%s3399_s26 + $0x30] sm:$0xff]  ;;  %v364_v43 = vrot.slane %v3448_v32, 1 }
  0x16   : > { %4824 = vst [vmem:[#allocation3_spill] sm:$0xff] %v3454_v34  ;;  %v363_v35 = vsel %vm318_vm2, %v360_v20, %v362_v24  ;;  %v3462_v38 = vld [vmem:[%s3399_s26 + $0x38] sm:$0xff]  ;;  %v3465_v39 = vld [vmem:[%s3399_s26 + $0xf0] sm:$0xff]  ;;  %v326_v42 = vsel %vm318_vm2, %v324_v30, %v325_v31  ;;  %v3476_v44 = vld [vmem:[%s3399_s26 + $0x40] sm:$0x3]  ;;  %v365_v48 = vrot.slane %v3451_v33, 1 }
  0x17   : > { %3017 = vmatprep.mubr.msk.bf16.mxu0 %vm449_vm3, %v431_v28  ;;  %v3471_v41 = vpack.c.bf16 %v363_v35, %v361_v29  ;;  %v3479_v45 = vld [vmem:[%s3399_s26 + $0xf8] sm:$0xff]  ;;  %v328_v47 = vsel %vm318_vm2, %v325_v31, %v327_v36  ;;  %v367_v49 = vrot.slane %v3454_v34, 1  ;;  %v329_v50 = vrot.slane %v3459_v37, 1  ;;  %v3489_v51 = vld [vmem:[%s3399_s26 + $0x100] sm:$0x3]  ;;  %v3492_v52 = vld [vmem:[%s3399_s26 + $0x48] sm:$0xff] }
  0x18   : > { %4826 = vst [vmem:[#allocation5_spill] sm:$0xff] %v3489_v51  ;;  %v3496_v53 = vpack.c.bf16 %v328_v47, %v326_v42  ;;  %v330_v54 = vrot.slane %v3462_v38, 1  ;;  %v332_v55 = vrot.slane %v3476_v44, 1  ;;  %v369_v56 = vrot.slane %v3465_v39, 1  ;;  %v3502_v57 = vld [vmem:[%s3399_s26 + $0x50] sm:$0xff]  ;;  %v3512_v63 = vld [vmem:[%s3399_s26 + $0x108] sm:$0xff] }
  0x19   : > { %4825 = vst [vmem:[#allocation4_spill] sm:$0xff] %v3471_v41  ;;  %3033 = vmatprep.mubr.msk.bf16.mxu1 %vm449_vm3, %v3471_v41  ;;  %v366_v58 = vsel %vm318_vm2, %v364_v43, %v365_v48  ;;  %v368_v59 = vsel %vm318_vm2, %v365_v48, %v367_v49  ;;  %v370_v60 = vrot.slane %v3479_v45, 1  ;;  %v372_v61 = vrot.slane %v3489_v51, 1  ;;  %v3509_v62 = vld [vmem:[%s3399_s26 + $0x58] sm:$0x3]  ;;  %v3515_v0 = vld [vmem:[%s3399_s26 + $0x110] sm:$0xff] }
  0x1a   : > { %4827 = vst [vmem:[#allocation6_spill] sm:$0xff] %v3496_v53  ;;  %3018 = vmatmul.mubr.msk.bf16.vlgmr.msra.gmra.mxu0 %vm449_vm3, %v3496_v53  ;;  %v3519_v1 = vpack.c.bf16 %v368_v59, %v366_v58  ;;  %v331_v2 = vsel %vm318_vm2, %v329_v50, %v330_v54  ;;  %v333_v3 = vsel %vm318_vm2, %v330_v54, %v332_v55  ;;  %v334_v5 = vrot.slane %v3492_v52, 1  ;;  %v3525_v6 = vld [vmem:[%s3399_s26 + $0x118] sm:$0x3]  ;;  %v3528_v12 = vld [vmem:[%s3399_s26 + $0x60] sm:$0xff]  ;;  %v3531_v13 = vld [vmem:[%s3399_s26 + $0x68] sm:$0xff] }
  0x1b   : > { %4829 = vst [vmem:[#allocation8_spill] sm:$0xff] %v3525_v6  ;;  %3084 = vmatpush3.bf16.msra.mxu0 %v3393_v8  ;;  %v3534_v14 = vpack.c.bf16 %v333_v3, %v331_v2  ;;  %v371_v15 = vsel %vm318_vm2, %v369_v56, %v370_v60  ;;  %v373_v19 = vsel %vm318_vm2, %v370_v60, %v372_v61  ;;  %v335_v20 = vrot.slane %v3502_v57, 1  ;;  %v3540_v21 = vld [vmem:[%s3399_s26 + $0x70] sm:$0x3]  ;;  %v3543_v22 = vld [vmem:[%s3399_s26 + $0x120] sm:$0xff]  ;;  %v3553_v29 = vld [vmem:[%s3399_s26 + $0x128] sm:$0xff] }
  0x1c   : > { %4828 = vst [vmem:[#allocation7_spill] sm:$0xff] %v3519_v1  ;;  %3034 = vmatmul.mubr.msk.bf16.vlgmr.msra.gmra.mxu1 %vm449_vm3, %v3519_v1  ;;  %v3547_v23 = vpack.c.bf16 %v373_v19, %v371_v15  ;;  %v337_v8 = vrot.slane %v3509_v62, 1  ;;  %v374_v24 = vrot.slane %v3512_v63, 1  ;;  %v375_v28 = vrot.slane %v3515_v0, 1  ;;  %3151 = vmatprep.subr.bf16.mxu0 %v3482_v46  ;;  %v3564_v42 = vld [vmem:[%s3399_s26 + $0x130] sm:$0x3] }
  0x1d   : > { %4830 = vst [vmem:[#allocation9_spill] sm:$0xff] %v3534_v14  ;;  %3050 = vmatpush3.bf16.msra.mxu1 %v3390_v7  ;;  %3021 = vmatprep.mubr.msk.bf16.mxu0 %vm449_vm3, %v3534_v14  ;;  %v336_v30 = vsel %vm318_vm2, %v334_v5, %v335_v20  ;;  %v377_v31 = vrot.slane %v3525_v6, 1  ;;  %v339_v35 = vrot.slane %v3528_v12, 1  ;;  %v340_v36 = vrot.slane %v3531_v13, 1  ;;  %4832 = vst [vmem:[#allocation11_spill] sm:$0xff] %v3564_v42  ;;  %v3567_v43 = vld [vmem:[%s3399_s26 + $0x78] sm:$0xff] }
  0x1e   : > { %4831 = vst [vmem:[#allocation10_spill] sm:$0xff] %v3547_v23  ;;  %3037 = vmatprep.mubr.msk.bf16.mxu1 %vm449_vm3, %v3547_v23  ;;  %v338_v7 = vsel %vm318_vm2, %v335_v20, %v337_v8  ;;  %v376_v47 = vsel %vm318_vm2, %v374_v24, %v375_v28  ;;  %v342_v48 = vrot.slane %v3540_v21, 1  ;;  %v379_v49 = vrot.slane %v3543_v22, 1  ;;  %v3576_v50 = vld [vmem:[%s3399_s26 + $0x80] sm:$0xff]  ;;  %v3579_v54 = vld [vmem:[%s3399_s26 + $0x88] sm:$0x3]  ;;  %3117 = vmatprep.subr.bf16.mxu1 %v3468_v40 }
  0x1f   : > { %v3582_v55 = vpack.c.bf16 %v338_v7, %v336_v30  ;;  %v378_v56 = vsel %vm318_vm2, %v375_v28, %v377_v31  ;;  %v341_v58 = vsel %vm318_vm2, %v339_v35, %v340_v36  ;;  %v380_v59 = vrot.slane %v3553_v29, 1  ;;  %v3588_v60 = vld [vmem:[%s3399_s26 + $0x138] sm:$0xff]  ;;  %v3591_v61 = vld [vmem:[%s3399_s26 + $0x140] sm:$0xff]  ;;  %v3594_v2 = vld [vmem:[%s3399_s26 + $0x148] sm:$0x3] }
  0x20   : > { %4834 = vst [vmem:[#allocation13_spill] sm:$0xff] %v3594_v2  ;;  %v3596_v3 = vpack.c.bf16 %v378_v56, %v376_v47  ;;  %v343_v5 = vsel %vm318_vm2, %v340_v36, %v342_v48  ;;  %v382_v15 = vrot.slane %v3564_v42, 1  ;;  %v344_v19 = vrot.slane %v3567_v43, 1  ;;  %v3602_v20 = vld [vmem:[%s3399_s26 + $0x90] sm:$0xff]  ;;  %v3610_v31 = vld [vmem:[%s3399_s26 + $0x98] sm:$0xff]  ;;  %v3638_v1 = vld [vmem:[%s3399_s26 + $0xa8] sm:$0xff] }
  0x21   : > { %4833 = vst [vmem:[#allocation12_spill] sm:$0xff] %v3582_v55  ;;  %v3604_v8 = vpack.c.bf16 %v343_v5, %v341_v58  ;;  %v381_v24 = vsel %vm318_vm2, %v379_v49, %v380_v59  ;;  %v345_v28 = vrot.slane %v3576_v50, 1  ;;  %v347_v30 = vrot.slane %v3579_v54, 1  ;;  %v3613_v35 = vld [vmem:[%s3399_s26 + $0x150] sm:$0xff]  ;;  %v3622_v49 = vld [vmem:[%s3399_s26 + $0xa0] sm:$0x3] }
  0x22   : > { %4835 = vst [vmem:[#allocation14_spill] sm:$0xff] %v3596_v3  ;;  %3022 = vmatmul.mubr.msk.bf16.gmra.mxu0 %vm449_vm3, %v3582_v55  ;;  %v383_v36 = vsel %vm318_vm2, %v380_v59, %v382_v15  ;;  %v384_v7 = vrot.slane %v3588_v60, 1  ;;  %v385_v47 = vrot.slane %v3591_v61, 1  ;;  %v387_v48 = vrot.slane %v3594_v2, 1  ;;  %v3625_v56 = vld [vmem:[%s3399_s26 + $0x158] sm:$0xff]  ;;  %4840 = vst [vmem:[#allocation19_spill] sm:$0xff] %v3638_v1 }
  0x23   : > { %4836 = vst [vmem:[#allocation15_spill] sm:$0xff] %v3604_v8  ;;  %4837 = vst [vmem:[#allocation16_spill] sm:$0xff] %v3625_v56  ;;  %3025 = vmatprep.mubr.msk.bf16.mxu0 %vm449_vm3, %v3604_v8  ;;  %v3629_v58 = vpack.c.bf16 %v383_v36, %v381_v24  ;;  %v346_v5 = vsel %vm318_vm2, %v344_v19, %v345_v28  ;;  %v348_v59 = vsel %vm318_vm2, %v345_v28, %v347_v30  ;;  %v3635_v23 = vld [vmem:[%s3399_s26 + $0x160] sm:$0x3]  ;;  %v3647_v28 = vld [vmem:[%s3399_s26 + $0xb0] sm:$0xff] }
  0x24   : > { %v349_v15 = vrot.slane %v3602_v20, 1  ;;  %4839 = vst [vmem:[#allocation18_spill] sm:$0xff] %v3635_v23  ;;  %v879_v41 = vrot.slane %v3402_v9, 2  ;;  %v880_v55 = vrot.slane %v3405_v10, 2  ;;  %3038 = vmatmul.mubr.msk.bf16.gmra.mxu1 %vm449_vm3, %v3596_v3  ;;  %v386_v19 = vsel %vm318_vm2, %v384_v7, %v385_v47  ;;  %v3650_v30 = vld [vmem:[%s3399_s26 + $0xb8] sm:$0x3] }
  0x25   : > { %4838 = vst [vmem:[#allocation17_spill] sm:$0xff] %v3629_v58  ;;  %v350_v24 = vrot.slane %v3610_v31, 1  ;;  %3041 = vmatprep.mubr.msk.bf16.mxu1 %vm449_vm3, %v3629_v58  ;;  %v388_v36 = vsel %vm318_vm2, %v385_v47, %v387_v48  ;;  %v352_v8 = vrot.slane %v3622_v49, 1  ;;  %v389_v14 = vrot.slane %v3613_v35, 1  ;;  %v3664_v6 = vld [vmem:[%s3399_s26 + $0x168] sm:$0xff]  ;;  %v3667_v51 = vld [vmem:[%s3399_s26 + $0x170] sm:$0xff] }
  0x26   : > { %v390_v3 = vrot.slane %v3625_v56, 1  ;;  %v3658_v53 = vpack.c.bf16 %v348_v59, %v346_v5  ;;  %v392_v2 = vrot.slane %v3635_v23, 1  ;;  %v354_v42 = vrot.slane %v3638_v1, 1  ;;  %v3670_v58 = vld [vmem:[%s3399_s26 + $0x178] sm:$0x3] }
  0x27   : > { %v351_v7 = vsel %vm318_vm2, %v349_v15, %v350_v24  ;;  %v353_v47 = vsel %vm318_vm2, %v350_v24, %v352_v8  ;;  %v355_v34 = vrot.slane %v3647_v28, 1  ;;  %v357_v5 = vrot.slane %v3650_v30, 1 }
  0x28   : > { %v391_v48 = vsel %vm318_vm2, %v389_v14, %v390_v3  ;;  %v882_v59 = vrot.slane %v3408_v11, 2  ;;  %v3677_v15 = vpack.c.bf16 %v388_v36, %v386_v19  ;;  %v3679_v23 = vpack.c.bf16 %v353_v47, %v351_v7 }
  0x29   : > { %v393_v18 = vsel %vm318_vm2, %v390_v3, %v392_v2  ;;  %v394_v56 = vrot.slane %v3664_v6, 1  ;;  %v395_v8 = vrot.slane %v3667_v51, 1  ;;  %v397_v14 = vrot.slane %v3670_v58, 1 }
  0x2a   : > { %v3682_v1 = vpack.c.bf16 %v393_v18, %v391_v48  ;;  %3026 = vmatmul.mubr.msk.bf16.gmra.mxu0 %vm449_vm3, %v3658_v53  ;;  %v356_v11 = vsel %vm318_vm2, %v354_v42, %v355_v34  ;;  %v358_v19 = vsel %vm318_vm2, %v355_v34, %v357_v5  ;;  %v881_v18 = vsel %vm878_vm4, %v879_v41, %v880_v55 }
  0x2b   : > { %3029 = vmatprep.mubr.msk.bf16.mxu0 %vm449_vm3, %v3679_v23  ;;  %v883_v2 = vsel %vm878_vm4, %v880_v55, %v882_v59  ;;  %v396_v3 = vsel %vm318_vm2, %v394_v56, %v395_v8  ;;  %v398_v24 = vsel %vm318_vm2, %v395_v8, %v397_v14  ;;  %v3701_v36 = vpack.c.bf16 %v358_v19, %v356_v11  ;;  %v2806_v59 = vld [vmem:[%s4789_s1 + $0xc] sm:$0x3] }
  0x2c   : > { %3042 = vmatmul.mubr.msk.bf16.gmra.mxu1 %vm449_vm3, %v3677_v15  ;;  %v884_v42 = vrot.slane %v3436_v25, 2  ;;  %v885_v34 = vrot.slane %v3439_v26, 2  ;;  %v887_v7 = vrot.slane %v3442_v27, 2  ;;  %v991_v47 = vpack.c.bf16 %v883_v2, %v881_v18 }
  0x2d   : > { %3045 = vmatprep.mubr.msk.bf16.mxu1 %vm449_vm3, %v3682_v1  ;;  %v3706_v48 = vpack.c.bf16 %v398_v24, %v396_v3  ;;  %v889_v41 = vrot.slane %v3459_v37, 2  ;;  %v890_v55 = vrot.slane %v3462_v38, 2  ;;  %v892_v5 = vrot.slane %v3476_v44, 2 }
  0x2e   : > { %v253_v56 = vpack.c.bf16 %v3405_v10, %v3402_v9  ;;  %v886_v27 = vsel %vm878_vm4, %v884_v42, %v885_v34  ;;  %v888_v8 = vsel %vm878_vm4, %v885_v34, %v887_v7  ;;  %v3727_v10 = vand.u32 %v2806_v59, %v3381_v4 }
  0x2f   : > { %4841 = vst [vmem:[#allocation20_spill] sm:$0xff] %v3706_v48  ;;  %v891_v44 = vsel %vm878_vm4, %v889_v41, %v890_v55  ;;  %v893_v9 = vsel %vm878_vm4, %v890_v55, %v892_v5  ;;  %v3731_v14 = vpack.c.bf16 %v3439_v26, %v3436_v25  ;;  %v3733_v11 = vpack.c.bf16 %v888_v8, %v886_v27  ;;  %v2789_v25 = vld [vmem:[%s4789_s1 + $0xa] sm:$0x3] }
  0x30   : > { %v894_v19 = vrot.slane %v3492_v52, 2  ;;  %v3738_v18 = vpack.c.bf16 %v3422_v17, %v3419_v16  ;;  %v3740_v2 = vpack.c.bf16 %v893_v9, %v891_v44  ;;  %v895_v3 = vrot.slane %v3502_v57, 2 }
  0x31   : > { %v897_v24 = vrot.slane %v3509_v62, 2  ;;  %v3746_v42 = vpack.c.bf16 %v3451_v33, %v3448_v32  ;;  %v899_v26 = vrot.slane %v3528_v12, 2  ;;  %v900_v34 = vrot.slane %v3531_v13, 2 }
  0x32   : > { %3030 = vmatmul.mubr.msk.bf16.gmra.mxu0 %vm449_vm3, %v3701_v36  ;;  %v902_v7 = vrot.slane %v3540_v21, 2  ;;  %v3760_v62 = vpack.c.bf16 %v3462_v38, %v3459_v37  ;;  %v3765_v41 = vand.u32 %v2789_v25, %v3381_v4  ;;  %v896_v21 = vsel %vm878_vm4, %v894_v19, %v895_v3 }
  0x33   : > { %3085 = vmatprep.mubr.msk.bf16.mxu0 %vm449_vm3, %v991_v47  ;;  %v3756_v47 = vpack.c.bf16 %v3479_v45, %v3465_v39  ;;  %v898_v55 = vsel %vm878_vm4, %v895_v3, %v897_v24  ;;  %v3774_v5 = vpack.c.bf16 %v3515_v0, %v3512_v63  ;;  %v901_v37 = vsel %vm878_vm4, %v899_v26, %v900_v34  ;;  %v4842_v3 = vld [vmem:[#allocation16_spill] sm:$0xff] }
  0x34   : > { %3046 = vmatmul.mubr.msk.bf16.gmra.mxu1 %vm449_vm3, %v3706_v48  ;;  %v903_v38 = vsel %vm878_vm4, %v900_v34, %v902_v7  ;;  %v3792_v59 = vpack.c.bf16 %v898_v55, %v896_v21  ;;  %v3796_v27 = vpack.c.bf16 %v3591_v61, %v3588_v60  ;;  %v904_v44 = vrot.slane %v3567_v43, 2  ;;  %v4843_v21 = vld [vmem:[#allocation19_spill] sm:$0xff] }
  0x35   : > { %3051 = vmatprep.mubr.msk.bf16.mxu1 %vm449_vm3, %v253_v56  ;;  %v3790_v56 = vpack.c.bf16 %v3502_v57, %v3492_v52  ;;  %v3799_v8 = vpack.c.bf16 %v903_v38, %v901_v37  ;;  %v907_v9 = vrot.slane %v3579_v54, 2  ;;  %v909_v19 = vrot.slane %v3602_v20, 2 }
  0x36   : > { %v910_v52 = vrot.slane %v3610_v31, 2  ;;  %v912_v57 = vrot.slane %v3622_v49, 2  ;;  %v3809_v24 = vpack.c.bf16 %v4842_v3, %v3613_v35  ;;  %v3813_v25 = vpack.c.bf16 %v3531_v13, %v3528_v12 }
  0x37   : > { %v3817_v26 = vpack.c.bf16 %v3667_v51, %v3664_v6  ;;  %v914_v55 = vrot.slane %v4843_v21, 2  ;;  %v915_v37 = vrot.slane %v3647_v28, 2  ;;  %v917_v38 = vrot.slane %v3650_v30, 2 }
  0x38   : > { %v911_v12 = vsel %vm878_vm4, %v909_v19, %v910_v52  ;;  %v913_v13 = vsel %vm878_vm4, %v910_v52, %v912_v57  ;;  %v919_v19 = vrot.slane %v3419_v16, 2  ;;  %v920_v52 = vrot.slane %v3422_v17, 2 }
  0x39   : > { %v3833_v7 = vpack.c.bf16 %v913_v13, %v911_v12  ;;  %v3847_v57 = vpack.c.bf16 %v3610_v31, %v3602_v20  ;;  %v916_v30 = vsel %vm878_vm4, %v914_v55, %v915_v37  ;;  %v924_v20 = vrot.slane %v3448_v32, 2 }
  0x3a   : > { %3086 = vmatmul.mubr.msk.bf16.vlgmr.msra.gmra.mxu0 %vm449_vm3, %v3733_v11  ;;  %v921_v16 = vsel %vm878_vm4, %v919_v19, %v920_v52  ;;  %v925_v31 = vrot.slane %v3451_v33, 2  ;;  %v3870_v13 = vpack.c.bf16 %v3647_v28, %v4843_v21  ;;  %v929_v55 = vrot.slane %v3465_v39, 2 }
  0x3b   : > { %3152 = vmatpush3.bf16.msra.mxu0 %v3482_v46  ;;  %3089 = vmatprep.mubr.msk.bf16.mxu0 %vm449_vm3, %v3740_v2  ;;  %v3782_v46 = vpack.c.bf16 %v3553_v29, %v3543_v22  ;;  %v935_v19 = vrot.slane %v3515_v0, 2 }
  0x3c   : > { %3052 = vmatmul.mubr.msk.bf16.vlgmr.msra.gmra.mxu1 %vm449_vm3, %v3731_v14  ;;  %3219 = vmatprep.subr.bf16.mxu0 %v3727_v10  ;;  %v926_v32 = vsel %vm878_vm4, %v924_v20, %v925_v31 }
  0x3d   : > { %3118 = vmatpush3.bf16.msra.mxu1 %v3468_v40  ;;  %3055 = vmatprep.mubr.msk.bf16.mxu1 %vm449_vm3, %v3760_v62  ;;  %v905_v40 = vrot.slane %v3576_v50, 2 }
  0x3e   : > { %3185 = vmatprep.subr.bf16.mxu1 %v3765_v41 }
  0x3f   : > { %v906_v54 = vsel %vm878_vm4, %v904_v44, %v905_v40  ;;  %v908_v49 = vsel %vm878_vm4, %v905_v40, %v907_v9  ;;  %v4844_v44 = vld [vmem:[#allocation2_spill] sm:$0xff]  ;;  %v3841_v9 = vpack.c.bf16 %v3576_v50, %v3567_v43 }
  0x40   : > { %v3831_v34 = vpack.c.bf16 %v908_v49, %v906_v54  ;;  %v922_v40 = vrot.slane %v4844_v44, 2  ;;  %v918_v54 = vsel %vm878_vm4, %v915_v37, %v917_v38  ;;  %v4845_v49 = vld [vmem:[#allocation3_spill] sm:$0xff]  ;;  %v930_v37 = vrot.slane %v3479_v45, 2  ;;  %v4846_v38 = vld [vmem:[#allocation5_spill] sm:$0xff] }
  0x41   : > { %v3861_v43 = vpack.c.bf16 %v918_v54, %v916_v30  ;;  %v927_v12 = vrot.slane %v4845_v49, 2  ;;  %v932_v44 = vrot.slane %v4846_v38, 2  ;;  %v939_v54 = vrot.slane %v3543_v22, 2 }
  0x42   : > { %3090 = vmatmul.mubr.msk.bf16.gmra.mxu0 %vm449_vm3, %v3792_v59  ;;  %v923_v17 = vsel %vm878_vm4, %v920_v52, %v922_v40  ;;  %v931_v28 = vsel %vm878_vm4, %v929_v55, %v930_v37  ;;  %v934_v40 = vrot.slane %v3512_v63, 2  ;;  %v4847_v52 = vld [vmem:[#allocation8_spill] sm:$0xff]  ;;  %v945_v55 = vrot.slane %v3591_v61, 2 }
  0x43   : > { %3093 = vmatprep.mubr.msk.bf16.mxu0 %vm449_vm3, %v3799_v8  ;;  %v3863_v50 = vpack.c.bf16 %v923_v17, %v921_v16  ;;  %v928_v33 = vsel %vm878_vm4, %v925_v31, %v927_v12  ;;  %v933_v39 = vsel %vm878_vm4, %v930_v37, %v932_v44  ;;  %v937_v30 = vrot.slane %v4847_v52, 2  ;;  %v4848_v17 = vld [vmem:[#allocation11_spill] sm:$0xff]  ;;  %v4849_v37 = vld [vmem:[#allocation13_spill] sm:$0xff] }
  0x44   : > { %3056 = vmatmul.mubr.msk.bf16.gmra.mxu1 %vm449_vm3, %v3790_v56  ;;  %v3887_v45 = vpack.c.bf16 %v928_v33, %v926_v32  ;;  %v3889_v21 = vpack.c.bf16 %v933_v39, %v931_v28  ;;  %v940_v16 = vrot.slane %v3553_v29, 2  ;;  %v942_v20 = vrot.slane %v4848_v17, 2  ;;  %v4850_v33 = vld [vmem:[#allocation18_spill] sm:$0xff] }
  0x45   : > { %3059 = vmatprep.mubr.msk.bf16.mxu1 %vm449_vm3, %v3813_v25  ;;  %v936_v31 = vsel %vm878_vm4, %v934_v40, %v935_v19  ;;  %v938_v63 = vsel %vm878_vm4, %v935_v19, %v937_v30  ;;  %v944_v12 = vrot.slane %v3588_v60, 2  ;;  %v947_v38 = vrot.slane %v4849_v37, 2  ;;  %v247_v17 = vld [vmem:[%s3399_s26 + $0x180] sm:$0xff]  ;;  %v2840_v37 = vld [vmem:[%s4789_s1 + $0x10] sm:$0x3] }
  0x46   : > { %v941_v0 = vsel %vm878_vm4, %v939_v54, %v940_v16  ;;  %v943_v22 = vsel %vm878_vm4, %v940_v16, %v942_v20  ;;  %v3909_v29 = vpack.c.bf16 %v938_v63, %v936_v31  ;;  %v949_v44 = vrot.slane %v3613_v35, 2  ;;  %v248_v20 = vld [vmem:[%s3399_s26 + $0x188] sm:$0xff]  ;;  %v249_v31 = vld [vmem:[%s3399_s26 + $0x190] sm:$0x3] }
  0x47   : > { %v3911_v49 = vpack.c.bf16 %v943_v22, %v941_v0  ;;  %v950_v32 = vrot.slane %v4842_v3, 2  ;;  %v952_v28 = vrot.slane %v4850_v33, 2  ;;  %v946_v39 = vsel %vm878_vm4, %v944_v12, %v945_v55 }
  0x48   : > { %v948_v60 = vsel %vm878_vm4, %v945_v55, %v947_v38  ;;  %v954_v19 = vrot.slane %v3664_v6, 2  ;;  %v955_v52 = vrot.slane %v3667_v51, 2  ;;  %v957_v30 = vrot.slane %v3670_v58, 2  ;;  %v4851_v55 = vld [vmem:[#allocation6_spill] sm:$0xff]  ;;  %v2823_v38 = vld [vmem:[%s4789_s1 + $0xe] sm:$0x3] }
  0x49   : > { %v951_v61 = vsel %vm878_vm4, %v949_v44, %v950_v32  ;;  %v953_v35 = vsel %vm878_vm4, %v950_v32, %v952_v28  ;;  %v3931_v3 = vpack.c.bf16 %v948_v60, %v946_v39  ;;  %v1667_v51 = vrot.slane %v247_v17, 2  ;;  %v4852_v32 = vld [vmem:[#allocation9_spill] sm:$0xff]  ;;  %v4853_v28 = vld [vmem:[#allocation12_spill] sm:$0xff]  ;;  %v4858_v39 = vld [vmem:[#allocation14_spill] sm:$0xff] }
  0x4a   : > { %3094 = vmatmul.mubr.msk.bf16.gmra.mxu0 %vm449_vm3, %v3831_v34  ;;  %v3933_v40 = vpack.c.bf16 %v953_v35, %v951_v61  ;;  %v956_v54 = vsel %vm878_vm4, %v954_v19, %v955_v52  ;;  %v958_v16 = vsel %vm878_vm4, %v955_v52, %v957_v30  ;;  %v1668_v6 = vrot.slane %v248_v20, 2  ;;  %v4859_v60 = vld [vmem:[#allocation17_spill] sm:$0xff] }
  0x4b   : > { %3097 = vmatprep.mubr.msk.bf16.mxu0 %vm449_vm3, %v3833_v7  ;;  %v3950_v58 = vpack.c.bf16 %v958_v16, %v956_v54  ;;  %v1670_v63 = vrot.slane %v249_v31, 2  ;;  %v2304_v44 = vand.u32 %v2840_v37, %v3381_v4  ;;  %v2095_v33 = vand.u32 %v2823_v38, %v3381_v4  ;;  %v4855_v4 = vld [vmem:[#allocation4_spill] sm:$0xff] }
  0x4c   : > { %3060 = vmatmul.mubr.msk.bf16.gmra.mxu1 %vm449_vm3, %v3841_v9  ;;  %v1669_v0 = vsel %vm878_vm4, %v1667_v51, %v1668_v6  ;;  %v1458_v61 = vrot.slane %v247_v17, 1  ;;  %v1459_v35 = vrot.slane %v248_v20, 1  ;;  %v1461_v19 = vrot.slane %v249_v31, 1  ;;  %v4123_v31 = vld [vmem:[%s3399_s26 + $0x1a0] sm:$0xff] }
  0x4d   : > { %3063 = vmatprep.mubr.msk.bf16.mxu1 %vm449_vm3, %v3847_v57  ;;  %v1671_v22 = vsel %vm878_vm4, %v1668_v6, %v1670_v63  ;;  %v1253_v16 = vpack.c.bf16 %v248_v20, %v247_v17  ;;  %v4120_v6 = vld [vmem:[%s3399_s26 + $0x198] sm:$0xff] }
  0x4e   : > { %v3957_v12 = vpack.c.bf16 %v1671_v22, %v1669_v0  ;;  %v1460_v52 = vsel %vm318_vm2, %v1458_v61, %v1459_v35  ;;  %v1462_v30 = vsel %vm318_vm2, %v1459_v35, %v1461_v19 }
  0x4f   : > { %v4033_v54 = vpack.c.bf16 %v1462_v30, %v1460_v52 }
  0x51   : > { %4860 = vst [vmem:[#allocation16_spill] sm:$0xff] %v4033_v54 }
  0x52   : > { %3098 = vmatmul.mubr.msk.bf16.gmra.mxu0 %vm449_vm3, %v3861_v43 }
  0x53   : > { %3101 = vmatprep.mubr.msk.bf16.mxu0 %vm449_vm3, %v3863_v50 }
  0x54   : > { %3064 = vmatmul.mubr.msk.bf16.gmra.mxu1 %vm449_vm3, %v3870_v13 }
  0x55   : > { %3067 = vmatprep.mubr.msk.bf16.mxu1 %vm449_vm3, %v3738_v18 }
  0x5a   : > { %3102 = vmatmul.mubr.msk.bf16.gmra.mxu0 %vm449_vm3, %v3887_v45 }
  0x5b   : > { %3105 = vmatprep.mubr.msk.bf16.mxu0 %vm449_vm3, %v3889_v21 }
  0x5c   : > { %3068 = vmatmul.mubr.msk.bf16.gmra.mxu1 %vm449_vm3, %v3746_v42 }
  0x5d   : > { %3071 = vmatprep.mubr.msk.bf16.mxu1 %vm449_vm3, %v3756_v47 }
  0x62   : > { %3106 = vmatmul.mubr.msk.bf16.gmra.mxu0 %vm449_vm3, %v3909_v29 }
  0x63   : > { %3109 = vmatprep.mubr.msk.bf16.mxu0 %vm449_vm3, %v3911_v49 }
  0x64   : > { %3072 = vmatmul.mubr.msk.bf16.gmra.mxu1 %vm449_vm3, %v3774_v5 }
  0x65   : > { %3075 = vmatprep.mubr.msk.bf16.mxu1 %vm449_vm3, %v3782_v46 }
  0x6a   : > { %3110 = vmatmul.mubr.msk.bf16.gmra.mxu0 %vm449_vm3, %v3931_v3 }
  0x6b   : > { %3113 = vmatprep.mubr.msk.bf16.mxu0 %vm449_vm3, %v3933_v40 }
  0x6c   : > { %3076 = vmatmul.mubr.msk.bf16.gmra.mxu1 %vm449_vm3, %v3796_v27 }
  0x6d   : > { %3079 = vmatprep.mubr.msk.bf16.mxu1 %vm449_vm3, %v3809_v24 }
  0x72   : > { %3114 = vmatmul.mubr.msk.bf16.gmra.mxu0 %vm449_vm3, %v3950_v58 }
  0x73   : > { %3153 = vmatprep.mubr.msk.bf16.mxu0 %vm449_vm3, %v4851_v55 }
  0x74   : > { %3080 = vmatmul.mubr.msk.bf16.gmra.mxu1 %vm449_vm3, %v3817_v26 }
  0x75   : > { %3119 = vmatprep.mubr.msk.bf16.mxu1 %vm449_vm3, %v3731_v14  ;;  %v4854_v14 = vld [vmem:[#allocation15_spill] sm:$0xff] }
  0x7a   : > { %3154 = vmatmul.mubr.msk.bf16.vlgmr.msra.gmra.mxu0 %vm449_vm3, %v4852_v32 }
  0x7b   : > { %3220 = vmatpush3.bf16.msra.mxu0 %v3727_v10  ;;  %3157 = vmatprep.mubr.msk.bf16.mxu0 %vm449_vm3, %v4853_v28  ;;  %v4856_v10 = vld [vmem:[#allocation7_spill] sm:$0xff] }
  0x7c   : > { %3120 = vmatmul.mubr.msk.bf16.vlgmr.msra.gmra.mxu1 %vm449_vm3, %v3760_v62  ;;  %3287 = vmatprep.subr.bf16.mxu0 %v2304_v44 }
  0x7d   : > { %3186 = vmatpush3.bf16.msra.mxu1 %v3765_v41  ;;  %3123 = vmatprep.mubr.msk.bf16.mxu1 %vm449_vm3, %v3790_v56  ;;  %v4857_v41 = vld [vmem:[#allocation10_spill] sm:$0xff] }
  0x7e   : > { %3253 = vmatprep.subr.bf16.mxu1 %v2095_v33 }
  0x82   : > { %3158 = vmatmul.mubr.msk.bf16.gmra.mxu0 %vm449_vm3, %v4854_v14 }
  0x83   : > { %3161 = vmatprep.mubr.msk.bf16.mxu0 %vm449_vm3, %v3658_v53 }
  0x84   : > { %3124 = vmatmul.mubr.msk.bf16.gmra.mxu1 %vm449_vm3, %v3813_v25 }
  0x85   : > { %3127 = vmatprep.mubr.msk.bf16.mxu1 %vm449_vm3, %v3841_v9 }
  0x8a   : > { %3162 = vmatmul.mubr.msk.bf16.gmra.mxu0 %vm449_vm3, %v3679_v23 }
  0x8b   : > { %3165 = vmatprep.mubr.msk.bf16.mxu0 %vm449_vm3, %v3701_v36 }
  0x8c   : > { %3128 = vmatmul.mubr.msk.bf16.gmra.mxu1 %vm449_vm3, %v3847_v57 }
  0x8d   : > { %3131 = vmatprep.mubr.msk.bf16.mxu1 %vm449_vm3, %v3870_v13 }
  0x92   : > { %3166 = vmatmul.mubr.msk.bf16.gmra.mxu0 %vm449_vm3, %v4855_v4 }
  0x93   : > { %3169 = vmatprep.mubr.msk.bf16.mxu0 %vm449_vm3, %v4856_v10 }
  0x94   : > { %3132 = vmatmul.mubr.msk.bf16.gmra.mxu1 %vm449_vm3, %v3738_v18 }
  0x95   : > { %3135 = vmatprep.mubr.msk.bf16.mxu1 %vm449_vm3, %v3746_v42 }
  0x9a   : > { %3170 = vmatmul.mubr.msk.bf16.gmra.mxu0 %vm449_vm3, %v4857_v41 }
  0x9b   : > { %3173 = vmatprep.mubr.msk.bf16.mxu0 %vm449_vm3, %v4858_v39 }
  0x9c   : > { %3136 = vmatmul.mubr.msk.bf16.gmra.mxu1 %vm449_vm3, %v3756_v47 }
  0x9d   : > { %3139 = vmatprep.mubr.msk.bf16.mxu1 %vm449_vm3, %v3774_v5 }
  0xa2   : > { %3174 = vmatmul.mubr.msk.bf16.gmra.mxu0 %vm449_vm3, %v4859_v60 }
  0xa3   : > { %3177 = vmatprep.mubr.msk.bf16.mxu0 %vm449_vm3, %v3677_v15 }
  0xa4   : > { %3140 = vmatmul.mubr.msk.bf16.gmra.mxu1 %vm449_vm3, %v3782_v46 }
  0xa5   : > { %3143 = vmatprep.mubr.msk.bf16.mxu1 %vm449_vm3, %v3796_v27 }
  0xaa   : > { %3178 = vmatmul.mubr.msk.bf16.gmra.mxu0 %vm449_vm3, %v3682_v1 }
  0xab   : > { %3181 = vmatprep.mubr.msk.bf16.mxu0 %vm449_vm3, %v3706_v48 }
  0xac   : > { %3144 = vmatmul.mubr.msk.bf16.gmra.mxu1 %vm449_vm3, %v3809_v24 }
  0xad   : > { %3147 = vmatprep.mubr.msk.bf16.mxu1 %vm449_vm3, %v3817_v26 }
  0xb2   : > { %3182 = vmatmul.mubr.msk.bf16.gmra.mxu0 %vm449_vm3, %v4033_v54 }
  0xb3   : > { %3221 = vmatprep.mubr.msk.bf16.mxu0 %vm449_vm3, %v3760_v62 }
  0xb4   : > { %3148 = vmatmul.mubr.msk.bf16.gmra.mxu1 %vm449_vm3, %v1253_v16 }
  0xb5   : > { %3187 = vmatprep.mubr.msk.bf16.mxu1 %vm449_vm3, %v3733_v11 }
  0xba   : > { %3222 = vmatmul.mubr.msk.bf16.vlgmr.msra.gmra.mxu0 %vm449_vm3, %v3790_v56 }
  0xbb   : > { %3288 = vmatpush3.bf16.msra.mxu0 %v2304_v44  ;;  %3225 = vmatprep.mubr.msk.bf16.mxu0 %vm449_vm3, %v3813_v25 }
  0xbc   : > { %3188 = vmatmul.mubr.msk.bf16.vlgmr.msra.gmra.mxu1 %vm449_vm3, %v3740_v2 }
  0xbd   : > { %3254 = vmatpush3.bf16.msra.mxu1 %v2095_v33  ;;  %3191 = vmatprep.mubr.msk.bf16.mxu1 %vm449_vm3, %v3792_v59 }
  0xc2   : > { %3226 = vmatmul.mubr.msk.bf16.gmra.mxu0 %vm449_vm3, %v3841_v9 }
  0xc3   : > { %3229 = vmatprep.mubr.msk.bf16.mxu0 %vm449_vm3, %v3847_v57 }
  0xc4   : > { %3192 = vmatmul.mubr.msk.bf16.gmra.mxu1 %vm449_vm3, %v3799_v8 }
  0xc5   : > { %3195 = vmatprep.mubr.msk.bf16.mxu1 %vm449_vm3, %v3831_v34 }
  0xca   : > { %3230 = vmatmul.mubr.msk.bf16.gmra.mxu0 %vm449_vm3, %v3870_v13 }
  0xcb   : > { %3233 = vmatprep.mubr.msk.bf16.mxu0 %vm449_vm3, %v3738_v18 }
  0xcc   : > { %3196 = vmatmul.mubr.msk.bf16.gmra.mxu1 %vm449_vm3, %v3833_v7 }
  0xcd   : > { %3199 = vmatprep.mubr.msk.bf16.mxu1 %vm449_vm3, %v3861_v43 }
  0xd2   : > { %3234 = vmatmul.mubr.msk.bf16.gmra.mxu0 %vm449_vm3, %v3746_v42 }
  0xd3   : > { %3237 = vmatprep.mubr.msk.bf16.mxu0 %vm449_vm3, %v3756_v47 }
  0xd4   : > { %3200 = vmatmul.mubr.msk.bf16.gmra.mxu1 %vm449_vm3, %v3863_v50 }
  0xd5   : > { %3203 = vmatprep.mubr.msk.bf16.mxu1 %vm449_vm3, %v3887_v45 }
  0xda   : > { %v3019_v11 = vpop.f32.mrf.mxu0  ;;  %3238 = vmatmul.mubr.msk.bf16.gmra.mxu0 %vm449_vm3, %v3774_v5 }
  0xdb   : > { %3241 = vmatprep.mubr.msk.bf16.mxu0 %vm449_vm3, %v3782_v46 }
  0xdc   : > { %v4078_v18 = vpop.f32.mrf.mxu1  ;;  %3204 = vmatmul.mubr.msk.bf16.gmra.mxu1 %vm449_vm3, %v3889_v21  ;;  %v539_v42 = vpop.f32.mrf.mxu0 }
  0xdd   : > { %3207 = vmatprep.mubr.msk.bf16.mxu1 %vm449_vm3, %v3909_v29 }
  0xde   : > { %v4084_v47 = vpop.f32.mrf.mxu1  ;;  %v3020_v62 = vpop.f32.mrf.mxu0 }
  0xe0   : > { %v4086_v56 = vpop.f32.mrf.mxu1  ;;  %v542_v25 = vpop.f32.mrf.mxu0 }
  0xe2   : > { %v4088_v9 = vpop.f32.mrf.mxu1  ;;  %v4090_v5 = vpop.f32.mrf.mxu0  ;;  %3242 = vmatmul.mubr.msk.bf16.gmra.mxu0 %vm449_vm3, %v3796_v27 }
  0xe3   : > { %3245 = vmatprep.mubr.msk.bf16.mxu0 %vm449_vm3, %v3809_v24 }
  0xe4   : > { %v4096_v46 = vpop.f32.mrf.mxu1  ;;  %3208 = vmatmul.mubr.msk.bf16.gmra.mxu1 %vm449_vm3, %v3911_v49  ;;  %v4100_v57 = vpop.f32.mrf.mxu0 }
  0xe5   : > { %3211 = vmatprep.mubr.msk.bf16.mxu1 %vm449_vm3, %v3931_v3 }
  0xe6   : > { %v4104_v13 = vpop.f32.mrf.mxu1  ;;  %v4106_v17 = vpop.f32.mrf.mxu0 }
  0xe8   : > { %v4108_v20 = vpop.f32.mrf.mxu1  ;;  %v4110_v27 = vpop.f32.mrf.mxu0 }
  0xea   : > { %v4112_v51 = vpop.f32.mrf.mxu1  ;;  %v4114_v24 = vpop.f32.mrf.mxu0  ;;  %3246 = vmatmul.mubr.msk.bf16.gmra.mxu0 %vm449_vm3, %v3817_v26  ;;  %v1876_v26 = vpack.c.bf16 %v4123_v31, %v4120_v6 }
  0xeb   : > { %3249 = vmatprep.mubr.msk.bf16.mxu0 %vm449_vm3, %v1253_v16 }
  0xec   : > { %v4125_v63 = vpop.f32.mrf.mxu1  ;;  %3212 = vmatmul.mubr.msk.bf16.gmra.mxu1 %vm449_vm3, %v3933_v40  ;;  %v4129_v0 = vpop.f32.mrf.mxu0 }
  0xed   : > { %4861 = vst [vmem:[#allocation19_spill] sm:$0xff] %v4125_v63  ;;  %3215 = vmatprep.mubr.msk.bf16.mxu1 %vm449_vm3, %v3950_v58 }
  0xee   : > { %v4133_v22 = vpop.f32.mrf.mxu1  ;;  %v4135_v55 = vpop.f32.mrf.mxu0 }
  0xef   : > { %4862 = vst [vmem:[#allocation2_spill] sm:$0xff] %v4133_v22 }
  0xf0   : > { %v4139_v37 = vpop.f32.mrf.mxu1  ;;  %v4141_v38 = vpop.f32.mrf.mxu0 }
  0xf1   : > { %4863 = vst [vmem:[#allocation3_spill] sm:$0xff] %v4139_v37 }
  0xf2   : > { %v4143_v44 = vpop.f32.mrf.mxu1  ;;  %v4145_v33 = vpop.f32.mrf.mxu0  ;;  %3250 = vmatmul.mubr.msk.bf16.gmra.mxu0 %vm449_vm3, %v1876_v26 }
  0xf3   : > { %4864 = vst [vmem:[#allocation5_spill] sm:$0xff] %v4143_v44  ;;  %3289 = vmatprep.mubr.msk.bf16.mxu0 %vm449_vm3, %v3740_v2 }
  0xf4   : > { %v4150_v61 = vpop.f32.mrf.mxu1  ;;  %3216 = vmatmul.mubr.msk.bf16.gmra.mxu1 %vm449_vm3, %v3957_v12  ;;  %v4154_v35 = vpop.f32.mrf.mxu0 }
  0xf5   : > { %4865 = vst [vmem:[#allocation8_spill] sm:$0xff] %v4150_v61  ;;  %3255 = vmatprep.mubr.msk.bf16.mxu1 %vm449_vm3, %v4852_v32 }
  0xf6   : > { %v4158_v19 = vpop.f32.mrf.mxu1  ;;  %v4160_v52 = vpop.f32.mrf.mxu0 }
  0xf7   : > { %4866 = vst [vmem:[#allocation11_spill] sm:$0xff] %v4158_v19 }
  0xf8   : > { %v4162_v30 = vpop.f32.mrf.mxu1  ;;  %v4164_v16 = vpop.f32.mrf.mxu0 }
  0xf9   : > { %4867 = vst [vmem:[#allocation13_spill] sm:$0xff] %v4162_v30 }
  0xfa   : > { %v4166_v26 = vpop.f32.mrf.mxu1  ;;  %v3087_v2 = vpop.f32.mrf.mxu0  ;;  %3290 = vmatmul.mubr.msk.bf16.vlgmr.msra.gmra.mxu0 %vm449_vm3, %v3792_v59 }
  0xfb   : > { %4868 = vst [vmem:[#allocation18_spill] sm:$0xff] %v4166_v26  ;;  %3293 = vmatprep.mubr.msk.bf16.mxu0 %vm449_vm3, %v3799_v8 }
  0xfc   : > { %v3053_v61 = vpop.f32.mrf.mxu1  ;;  %3256 = vmatmul.mubr.msk.bf16.vlgmr.msra.gmra.mxu1 %vm449_vm3, %v4853_v28  ;;  %v1094_v32 = vpop.f32.mrf.mxu0 }
  0xfd   : > { %v760_v19 = vadd.f32 %v3053_v61, %v3019_v11  ;;  %3259 = vmatprep.mubr.msk.bf16.mxu1 %vm449_vm3, %v4854_v14 }
  0xfe   : > { %v751_v30 = vpop.f32.mrf.mxu1  ;;  %v3088_v44 = vpop.f32.mrf.mxu0 }
  0xff   : > { %v4176_v37 = vadd.f32 %v3087_v2, %v760_v19  ;;  %v752_v26 = vadd.f32 %v751_v30, %v539_v42 }
 0x100   : > { %v3054_v22 = vpop.f32.mrf.mxu1  ;;  %v1097_v54 = vpop.f32.mrf.mxu0 }
 0x101   : > { %v4178_v59 = vadd.f32 %v1094_v32, %v752_v26  ;;  %v763_v63 = vadd.f32 %v3054_v22, %v3020_v62 }
 0x102   : > { %v754_v8 = vpop.f32.mrf.mxu1  ;;  %v3091_v48 = vpop.f32.mrf.mxu0  ;;  %3294 = vmatmul.mubr.msk.bf16.gmra.mxu0 %vm449_vm3, %v3831_v34 }
 0x103   : > { %v4182_v28 = vadd.f32 %v3088_v44, %v763_v63  ;;  %v755_v11 = vadd.f32 %v754_v8, %v542_v25  ;;  %3297 = vmatprep.mubr.msk.bf16.mxu0 %vm449_vm3, %v3833_v7 }
 0x104   : > { %v3057_v14 = vpop.f32.mrf.mxu1  ;;  %3260 = vmatmul.mubr.msk.bf16.gmra.mxu1 %vm449_vm3, %v3658_v53  ;;  %v1110_v42 = vpop.f32.mrf.mxu0 }
 0x105   : > { %v4188_v61 = vadd.f32 %v1097_v54, %v755_v11  ;;  %v776_v62 = vadd.f32 %v3057_v14, %v4090_v5  ;;  %3263 = vmatprep.mubr.msk.bf16.mxu1 %vm449_vm3, %v3679_v23 }
 0x106   : > { %v767_v22 = vpop.f32.mrf.mxu1  ;;  %v3092_v34 = vpop.f32.mrf.mxu0 }
 0x107   : > { %v4193_v63 = vadd.f32 %v3091_v48, %v776_v62  ;;  %v768_v25 = vadd.f32 %v767_v22, %v4100_v57 }
 0x108   : > { %v3058_v44 = vpop.f32.mrf.mxu1  ;;  %v1113_v7 = vpop.f32.mrf.mxu0 }
 0x109   : > { %v4196_v19 = vadd.f32 %v1110_v42, %v768_v25  ;;  %v779_v53 = vadd.f32 %v3058_v44, %v4106_v17 }
 0x10a   : > { %v770_v30 = vpop.f32.mrf.mxu1  ;;  %v3095_v54 = vpop.f32.mrf.mxu0  ;;  %3298 = vmatmul.mubr.msk.bf16.gmra.mxu0 %vm449_vm3, %v3861_v43 }
 0x10b   : > { %v4201_v5 = vadd.f32 %v3092_v34, %v779_v53  ;;  %v771_v23 = vadd.f32 %v770_v30, %v4110_v27  ;;  %3301 = vmatprep.mubr.msk.bf16.mxu0 %vm449_vm3, %v3863_v50 }
 0x10c   : > { %v3061_v48 = vpop.f32.mrf.mxu1  ;;  %3264 = vmatmul.mubr.msk.bf16.gmra.mxu1 %vm449_vm3, %v3701_v36  ;;  %v1126_v57 = vpop.f32.mrf.mxu0 }
 0x10d   : > { %v4208_v26 = vadd.f32 %v1113_v7, %v771_v23  ;;  %v792_v17 = vadd.f32 %v3061_v48, %v4114_v24  ;;  %3267 = vmatprep.mubr.msk.bf16.mxu1 %vm449_vm3, %v4855_v4 }
 0x10e   : > { %v783_v43 = vpop.f32.mrf.mxu1  ;;  %v3096_v2 = vpop.f32.mrf.mxu0 }
 0x10f   : > { %v4213_v32 = vadd.f32 %v3095_v54, %v792_v17  ;;  %v784_v27 = vadd.f32 %v783_v43, %v4129_v0 }
 0x110   : > { %v3062_v8 = vpop.f32.mrf.mxu1  ;;  %v1129_v50 = vpop.f32.mrf.mxu0 }
 0x111   : > { %v4216_v11 = vadd.f32 %v1126_v57, %v784_v27  ;;  %v795_v36 = vadd.f32 %v3062_v8, %v4135_v55 }
 0x112   : > { %v786_v14 = vpop.f32.mrf.mxu1  ;;  %v3099_v42 = vpop.f32.mrf.mxu0  ;;  %3302 = vmatmul.mubr.msk.bf16.gmra.mxu0 %vm449_vm3, %v3887_v45 }
 0x113   : > { %v4221_v24 = vadd.f32 %v3096_v2, %v795_v36  ;;  %v787_v4 = vadd.f32 %v786_v14, %v4141_v38  ;;  %3305 = vmatprep.mubr.msk.bf16.mxu0 %vm449_vm3, %v3889_v21 }
 0x114   : > { %v3065_v62 = vpop.f32.mrf.mxu1  ;;  %3268 = vmatmul.mubr.msk.bf16.gmra.mxu1 %vm449_vm3, %v4856_v10  ;;  %v1142_v0 = vpop.f32.mrf.mxu0 }
 0x115   : > { %v4228_v22 = vadd.f32 %v1129_v50, %v787_v4  ;;  %v808_v55 = vadd.f32 %v3065_v62, %v4145_v33  ;;  %3271 = vmatprep.mubr.msk.bf16.mxu1 %vm449_vm3, %v4857_v41  ;;  %v252_v50 = vld [vmem:[%s3399_s26 + $0x1a8] sm:$0x3]  ;;  %v2081_v62 = vrot.slane %v4120_v6, 1 }
 0x116   : > { %v799_v45 = vpop.f32.mrf.mxu1  ;;  %v3100_v34 = vpop.f32.mrf.mxu0 }
 0x117   : > { %v4233_v25 = vadd.f32 %v3099_v42, %v808_v55  ;;  %v800_v38 = vadd.f32 %v799_v45, %v4154_v35  ;;  %v2291_v42 = vrot.slane %v4123_v31, 2 }
 0x118   : > { %v3066_v44 = vpop.f32.mrf.mxu1  ;;  %v1145_v21 = vpop.f32.mrf.mxu0 }
 0x119   : > { %v4236_v7 = vadd.f32 %v1142_v0, %v800_v38  ;;  %v811_v10 = vadd.f32 %v3066_v44, %v4160_v52 }
 0x11a   : > { %v802_v53 = vpop.f32.mrf.mxu1  ;;  %v3103_v30 = vpop.f32.mrf.mxu0  ;;  %3306 = vmatmul.mubr.msk.bf16.gmra.mxu0 %vm449_vm3, %v3909_v29 }
 0x11b   : > { %v4241_v33 = vadd.f32 %v3100_v34, %v811_v10  ;;  %v803_v41 = vadd.f32 %v802_v53, %v4164_v16  ;;  %3309 = vmatprep.mubr.msk.bf16.mxu0 %vm449_vm3, %v3911_v49  ;;  %v2084_v34 = vrot.slane %v252_v50, 1  ;;  %v4869_v53 = vld [vmem:[#allocation20_spill] sm:$0xff] }
 0x11c   : > { %v3069_v54 = vpop.f32.mrf.mxu1  ;;  %3272 = vmatmul.mubr.msk.bf16.gmra.mxu1 %vm449_vm3, %v4858_v39  ;;  %v1158_v35 = vpop.f32.mrf.mxu0 }
 0x11d   : > { %v4248_v23 = vadd.f32 %v1145_v21, %v803_v41  ;;  %v824_v52 = vadd.f32 %v3069_v54, %v4078_v18  ;;  %3275 = vmatprep.mubr.msk.bf16.mxu1 %vm449_vm3, %v4859_v60  ;;  %v4870_v41 = vld [vmem:[#allocation19_spill] sm:$0xff]  ;;  %v4871_v54 = vld [vmem:[#allocation16_spill] sm:$0xff] }
 0x11e   : > { %v815_v29 = vpop.f32.mrf.mxu1  ;;  %v3104_v48 = vpop.f32.mrf.mxu0 }
 0x11f   : > { %v4253_v57 = vadd.f32 %v3103_v30, %v824_v52  ;;  %v816_v16 = vadd.f32 %v815_v29, %v4084_v47 }
 0x120   : > { %v3070_v49 = vpop.f32.mrf.mxu1  ;;  %v1161_v17 = vpop.f32.mrf.mxu0 }
 0x121   : > { %v4256_v43 = vadd.f32 %v1158_v35, %v816_v16  ;;  %v827_v39 = vadd.f32 %v3070_v49, %v4086_v56  ;;  %v4872_v16 = vld [vmem:[#allocation2_spill] sm:$0xff] }
 0x122   : > { %v818_v2 = vpop.f32.mrf.mxu1  ;;  %v3107_v27 = vpop.f32.mrf.mxu0  ;;  %3310 = vmatmul.mubr.msk.bf16.gmra.mxu0 %vm449_vm3, %v3931_v3  ;;  %v2290_v3 = vrot.slane %v4120_v6, 2 }
 0x123   : > { %v4261_v18 = vadd.f32 %v3104_v48, %v827_v39  ;;  %v819_v60 = vadd.f32 %v818_v2, %v4088_v9  ;;  %3313 = vmatprep.mubr.msk.bf16.mxu0 %vm449_vm3, %v3933_v40 }
 0x124   : > { %v3073_v8 = vpop.f32.mrf.mxu1  ;;  %3276 = vmatmul.mubr.msk.bf16.gmra.mxu1 %vm449_vm3, %v3677_v15  ;;  %v1174_v47 = vpop.f32.mrf.mxu0  ;;  %v2293_v15 = vrot.slane %v252_v50, 2  ;;  %v2292_v6 = vsel %vm878_vm4, %v2290_v3, %v2291_v42  ;;  %v4874_v3 = vld [vmem:[#allocation5_spill] sm:$0xff] }
 0x125   : > { %v4269_v36 = vadd.f32 %v1161_v17, %v819_v60  ;;  %v840_v56 = vadd.f32 %v3073_v8, %v4096_v46  ;;  %3279 = vmatprep.mubr.msk.bf16.mxu1 %vm449_vm3, %v3682_v1  ;;  %v2082_v46 = vrot.slane %v4123_v31, 1  ;;  %v4873_v60 = vld [vmem:[#allocation3_spill] sm:$0xff] }
 0x126   : > { %v831_v14 = vpop.f32.mrf.mxu1  ;;  %v3108_v9 = vpop.f32.mrf.mxu0  ;;  %v2294_v31 = vsel %vm878_vm4, %v2291_v42, %v2293_v15  ;;  %v4875_v15 = vld [vmem:[#allocation8_spill] sm:$0xff] }
 0x127   : > { %v4276_v40 = vadd.f32 %v3107_v27, %v840_v56  ;;  %v832_v4 = vadd.f32 %v831_v14, %v4104_v13  ;;  %v2297_v29 = vpack.c.bf16 %v2294_v31, %v2292_v6  ;;  %v4877_v6 = vld [vmem:[#allocation13_spill] sm:$0xff] }
 0x128   : > { %v3074_v0 = vpop.f32.mrf.mxu1  ;;  %v1177_v55 = vpop.f32.mrf.mxu0 }
 0x129   : > { %v4281_v45 = vadd.f32 %v1174_v47, %v832_v4  ;;  %v843_v1 = vadd.f32 %v3074_v0, %v4108_v20 }
 0x12a   : > { %v834_v38 = vpop.f32.mrf.mxu1  ;;  %v3111_v44 = vpop.f32.mrf.mxu0  ;;  %3314 = vmatmul.mubr.msk.bf16.gmra.mxu0 %vm449_vm3, %v3950_v58 }
 0x12b   : > { %v4286_v21 = vadd.f32 %v3108_v9, %v843_v1  ;;  %v835_v13 = vadd.f32 %v834_v38, %v4112_v51  ;;  %3317 = vmatprep.mubr.msk.bf16.mxu0 %vm449_vm3, %v3957_v12  ;;  %v2083_v51 = vsel %vm318_vm2, %v2081_v62, %v2082_v46  ;;  %v2085_v12 = vsel %vm318_vm2, %v2082_v46, %v2084_v34  ;;  %v4876_v1 = vld [vmem:[#allocation11_spill] sm:$0xff] }
 0x12c   : > { %v3077_v10 = vpop.f32.mrf.mxu1  ;;  %3280 = vmatmul.mubr.msk.bf16.gmra.mxu1 %vm449_vm3, %v4869_v53  ;;  %v1190_v20 = vpop.f32.mrf.mxu0  ;;  %v2088_v2 = vpack.c.bf16 %v2085_v12, %v2083_v51 }
 0x12d   : > { %v4295_v30 = vadd.f32 %v1177_v55, %v835_v13  ;;  %v856_v58 = vadd.f32 %v3077_v10, %v4870_v41  ;;  %3283 = vmatprep.mubr.msk.bf16.mxu1 %vm449_vm3, %v4871_v54  ;;  %v4878_v41 = vld [vmem:[#allocation18_spill] sm:$0xff] }
 0x12e   : > { %v847_v35 = vpop.f32.mrf.mxu1  ;;  %v3112_v52 = vpop.f32.mrf.mxu0 }
 0x12f   : > { %v4302_v48 = vadd.f32 %v3111_v44, %v856_v58  ;;  %v848_v49 = vadd.f32 %v847_v35, %v4872_v16 }
 0x130   : > { %v3078_v17 = vpop.f32.mrf.mxu1  ;;  %v1193_v39 = vpop.f32.mrf.mxu0 }
 0x131   : > { %v4305_v27 = vadd.f32 %v1190_v20, %v848_v49  ;;  %v859_v8 = vadd.f32 %v3078_v17, %v4873_v60 }
 0x132   : > { %v850_v47 = vpop.f32.mrf.mxu1  ;;  %v3115_v50 = vpop.f32.mrf.mxu0  ;;  %3318 = vmatmul.mubr.msk.bf16.gmra.mxu0 %vm449_vm3, %v2297_v29 }
 0x133   : > { %v4309_v56 = vadd.f32 %v3112_v52, %v859_v8  ;;  %v851_v14 = vadd.f32 %v850_v47, %v4874_v3 }
 0x134   : > { %v3081_v9 = vpop.f32.mrf.mxu1  ;;  %3284 = vmatmul.mubr.msk.bf16.gmra.mxu1 %vm449_vm3, %v2088_v2  ;;  %v1206_v42 = vpop.f32.mrf.mxu0 }
 0x135   : > { %v4313_v4 = vadd.f32 %v1193_v39, %v851_v14  ;;  %v872_v62 = vadd.f32 %v3081_v9, %v4875_v15 }
 0x136   : > { %v863_v0 = vpop.f32.mrf.mxu1  ;;  %v3116_v55 = vpop.f32.mrf.mxu0 }
 0x137   : > { %v4316_v46 = vadd.f32 %v3115_v50, %v872_v62  ;;  %v864_v34 = vadd.f32 %v863_v0, %v4876_v1 }
 0x138   : > { %v3082_v38 = vpop.f32.mrf.mxu1  ;;  %v1209_v44 = vpop.f32.mrf.mxu0 }
 0x139   : > { %v4319_v13 = vadd.f32 %v1206_v42, %v864_v34  ;;  %v875_v31 = vadd.f32 %v3082_v38, %v4877_v6 }
 0x13a   : > { %v866_v10 = vpop.f32.mrf.mxu1  ;;  %v3155_v53 = vpop.f32.mrf.mxu0 }
 0x13b   : > { %v4322_v20 = vadd.f32 %v3116_v55, %v875_v31  ;;  %v867_v58 = vadd.f32 %v866_v10, %v4878_v41 }
 0x13c   : > { %v3121_v54 = vpop.f32.mrf.mxu1  ;;  %v1508_v51 = vpop.f32.mrf.mxu0 }
 0x13d   : > { %v4325_v12 = vadd.f32 %v1209_v44, %v867_v58  ;;  %v1425_v35 = vadd.f32 %v3121_v54, %v4176_v37 }
 0x13e   : > { %v1296_v52 = vpop.f32.mrf.mxu1  ;;  %v3156_v29 = vpop.f32.mrf.mxu0 }
 0x13f   : > { %v4328_v16 = vadd.f32 %v3155_v53, %v1425_v35  ;;  %v1423_v49 = vadd.f32 %v1296_v52, %v4178_v59 }
 0x140   : > { %v3122_v17 = vpop.f32.mrf.mxu1  ;;  %v1511_v39 = vpop.f32.mrf.mxu0 }
 0x141   : > { %v4331_v2 = vadd.f32 %v1508_v51, %v1423_v49  ;;  %v1426_v60 = vadd.f32 %v3122_v17, %v4182_v28 }
 0x142   : > { %v1299_v8 = vpop.f32.mrf.mxu1  ;;  %v3159_v47 = vpop.f32.mrf.mxu0 }
 0x143   : > { %v4334_v50 = vadd.f32 %v3156_v29, %v1426_v60  ;;  %v1424_v3 = vadd.f32 %v1299_v8, %v4188_v61 }
 0x144   : > { %v3125_v14 = vpop.f32.mrf.mxu1  ;;  %v1524_v37 = vpop.f32.mrf.mxu0 }
 0x145   : > { %v4337_v9 = vadd.f32 %v1511_v39, %v1424_v3  ;;  %v1429_v42 = vadd.f32 %v3125_v14, %v4193_v63 }
 0x146   : > { %v1312_v15 = vpop.f32.mrf.mxu1  ;;  %v3160_v59 = vpop.f32.mrf.mxu0 }
 0x147   : > { %v4340_v62 = vadd.f32 %v3159_v47, %v1429_v42  ;;  %v1427_v0 = vadd.f32 %v1312_v15, %v4196_v19 }
 0x148   : > { %v3126_v55 = vpop.f32.mrf.mxu1  ;;  %v1527_v28 = vpop.f32.mrf.mxu0 }
 0x149   : > { %v4343_v1 = vadd.f32 %v1524_v37, %v1427_v0  ;;  %v1430_v34 = vadd.f32 %v3126_v55, %v4201_v5 }
 0x14a   : > { %v1315_v38 = vpop.f32.mrf.mxu1  ;;  %v3163_v61 = vpop.f32.mrf.mxu0 }
 0x14b   : > { %v4346_v44 = vadd.f32 %v3160_v59, %v1430_v34  ;;  %v1428_v6 = vadd.f32 %v1315_v38, %v4208_v26 }
 0x14c   : > { %v3129_v31 = vpop.f32.mrf.mxu1  ;;  %v1540_v63 = vpop.f32.mrf.mxu0 }
 0x14d   : > { %v4349_v10 = vadd.f32 %v1527_v28, %v1428_v6  ;;  %v1433_v53 = vadd.f32 %v3129_v31, %v4213_v32 }
 0x14e   : > { %v1328_v41 = vpop.f32.mrf.mxu1  ;;  %v3164_v19 = vpop.f32.mrf.mxu0 }
 0x14f   : > { %v4352_v58 = vadd.f32 %v3163_v61, %v1433_v53  ;;  %v1431_v54 = vadd.f32 %v1328_v41, %v4216_v11 }
 0x150   : > { %v3130_v51 = vpop.f32.mrf.mxu1  ;;  %v1543_v5 = vpop.f32.mrf.mxu0 }
 0x151   : > { %v4355_v35 = vadd.f32 %v1540_v63, %v1431_v54  ;;  %v1434_v52 = vadd.f32 %v3130_v51, %v4221_v24 }
 0x152   : > { %v1331_v29 = vpop.f32.mrf.mxu1  ;;  %v3167_v26 = vpop.f32.mrf.mxu0 }
 0x153   : > { %v4358_v49 = vadd.f32 %v3164_v19, %v1434_v52  ;;  %v1432_v17 = vadd.f32 %v1331_v29, %v4228_v22 }
 0x154   : > { %v3133_v39 = vpop.f32.mrf.mxu1  ;;  %v1556_v32 = vpop.f32.mrf.mxu0 }
 0x155   : > { %v4361_v60 = vadd.f32 %v1543_v5, %v1432_v17  ;;  %v1437_v8 = vadd.f32 %v3133_v39, %v4233_v25 }
 0x156   : > { %v1344_v47 = vpop.f32.mrf.mxu1  ;;  %v3168_v11 = vpop.f32.mrf.mxu0 }
 0x157   : > { %v4364_v3 = vadd.f32 %v3167_v26, %v1437_v8  ;;  %v1435_v14 = vadd.f32 %v1344_v47, %v4236_v7 }
 0x158   : > { %v3134_v37 = vpop.f32.mrf.mxu1  ;;  %v1559_v24 = vpop.f32.mrf.mxu0 }
 0x159   : > { %v4367_v42 = vadd.f32 %v1556_v32, %v1435_v14  ;;  %v1438_v15 = vadd.f32 %v3134_v37, %v4241_v33 }
 0x15a   : > { %v1347_v59 = vpop.f32.mrf.mxu1  ;;  %v3171_v22 = vpop.f32.mrf.mxu0 }
 0x15b   : > { %v4370_v0 = vadd.f32 %v3168_v11, %v1438_v15  ;;  %v1436_v55 = vadd.f32 %v1347_v59, %v4248_v23 }
 0x15c   : > { %v3137_v28 = vpop.f32.mrf.mxu1  ;;  %v1572_v25 = vpop.f32.mrf.mxu0 }
 0x15d   : > { %v4373_v34 = vadd.f32 %v1559_v24, %v1436_v55  ;;  %v1441_v38 = vadd.f32 %v3137_v28, %v4253_v57 }
 0x15e   : > { %v1360_v61 = vpop.f32.mrf.mxu1  ;;  %v3172_v7 = vpop.f32.mrf.mxu0 }
 0x15f   : > { %v4376_v6 = vadd.f32 %v3171_v22, %v1441_v38  ;;  %v1439_v31 = vadd.f32 %v1360_v61, %v4256_v43 }
 0x160   : > { %v3138_v63 = vpop.f32.mrf.mxu1  ;;  %v1575_v33 = vpop.f32.mrf.mxu0 }
 0x161   : > { %v4379_v53 = vadd.f32 %v1572_v25, %v1439_v31  ;;  %v1442_v41 = vadd.f32 %v3138_v63, %v4261_v18 }
 0x162   : > { %v1363_v19 = vpop.f32.mrf.mxu1  ;;  %v3175_v23 = vpop.f32.mrf.mxu0 }
 0x163   : > { %v4382_v54 = vadd.f32 %v3172_v7, %v1442_v41  ;;  %v1440_v51 = vadd.f32 %v1363_v19, %v4269_v36 }
 0x164   : > { %v3141_v5 = vpop.f32.mrf.mxu1  ;;  %v1588_v57 = vpop.f32.mrf.mxu0 }
 0x165   : > { %4879 = vst [vmem:[#allocation6_spill] sm:$0xff] %v4382_v54  ;;  %v4385_v52 = vadd.f32 %v1575_v33, %v1440_v51  ;;  %v1445_v29 = vadd.f32 %v3141_v5, %v4276_v40 }
 0x166   : > { %v1376_v26 = vpop.f32.mrf.mxu1  ;;  %v3176_v43 = vpop.f32.mrf.mxu0 }
 0x167   : > { %4880 = vst [vmem:[#allocation9_spill] sm:$0xff] %v4385_v52  ;;  %v4388_v17 = vadd.f32 %v3175_v23, %v1445_v29  ;;  %v1443_v39 = vadd.f32 %v1376_v26, %v4281_v45 }
 0x168   : > { %v3142_v32 = vpop.f32.mrf.mxu1  ;;  %v1591_v18 = vpop.f32.mrf.mxu0 }
 0x169   : > { %4881 = vst [vmem:[#allocation12_spill] sm:$0xff] %v4388_v17  ;;  %v4391_v8 = vadd.f32 %v1588_v57, %v1443_v39  ;;  %v1446_v47 = vadd.f32 %v3142_v32, %v4286_v21 }
 0x16a   : > { %v1379_v11 = vpop.f32.mrf.mxu1  ;;  %v3179_v36 = vpop.f32.mrf.mxu0 }
 0x16b   : > { %4882 = vst [vmem:[#allocation15_spill] sm:$0xff] %v4391_v8  ;;  %v4394_v14 = vadd.f32 %v3176_v43, %v1446_v47  ;;  %v1444_v37 = vadd.f32 %v1379_v11, %v4295_v30 }
 0x16c   : > { %v3145_v24 = vpop.f32.mrf.mxu1  ;;  %v1604_v40 = vpop.f32.mrf.mxu0 }
 0x16d   : > { %4883 = vst [vmem:[#allocation4_spill] sm:$0xff] %v4394_v14  ;;  %v4397_v15 = vadd.f32 %v1591_v18, %v1444_v37  ;;  %v1449_v59 = vadd.f32 %v3145_v24, %v4302_v48 }
 0x16e   : > { %v1392_v22 = vpop.f32.mrf.mxu1  ;;  %v3180_v45 = vpop.f32.mrf.mxu0 }
 0x16f   : > { %4884 = vst [vmem:[#allocation7_spill] sm:$0xff] %v4397_v15  ;;  %v4400_v55 = vadd.f32 %v3179_v36, %v1449_v59  ;;  %v1447_v28 = vadd.f32 %v1392_v22, %v4305_v27 }
 0x170   : > { %v3146_v25 = vpop.f32.mrf.mxu1  ;;  %v1607_v21 = vpop.f32.mrf.mxu0 }
 0x171   : > { %4885 = vst [vmem:[#allocation10_spill] sm:$0xff] %v4400_v55  ;;  %v4403_v38 = vadd.f32 %v1604_v40, %v1447_v28  ;;  %v1450_v61 = vadd.f32 %v3146_v25, %v4309_v56 }
 0x172   : > { %v1395_v7 = vpop.f32.mrf.mxu1  ;;  %v3183_v30 = vpop.f32.mrf.mxu0 }
 0x173   : > { %4886 = vst [vmem:[#allocation14_spill] sm:$0xff] %v4403_v38  ;;  %v4406_v31 = vadd.f32 %v3180_v45, %v1450_v61  ;;  %v1448_v63 = vadd.f32 %v1395_v7, %v4313_v4 }
 0x174   : > { %v3149_v33 = vpop.f32.mrf.mxu1  ;;  %v1620_v48 = vpop.f32.mrf.mxu0 }
 0x175   : > { %4887 = vst [vmem:[#allocation17_spill] sm:$0xff] %v4406_v31  ;;  %v4409_v41 = vadd.f32 %v1607_v21, %v1448_v63  ;;  %v1453_v19 = vadd.f32 %v3149_v33, %v4316_v46 }
 0x176   : > { %v1408_v23 = vpop.f32.mrf.mxu1  ;;  %v3184_v27 = vpop.f32.mrf.mxu0 }
 0x177   : > { %4888 = vst [vmem:[#allocation20_spill] sm:$0xff] %v4409_v41  ;;  %v4412_v51 = vadd.f32 %v3183_v30, %v1453_v19  ;;  %v1451_v5 = vadd.f32 %v1408_v23, %v4319_v13 }
 0x178   : > { %v3150_v57 = vpop.f32.mrf.mxu1  ;;  %v1623_v56 = vpop.f32.mrf.mxu0 }
 0x179   : > { %4889 = vst [vmem:[#allocation19_spill] sm:$0xff] %v4412_v51  ;;  %v4415_v29 = vadd.f32 %v1620_v48, %v1451_v5  ;;  %v1454_v26 = vadd.f32 %v3150_v57, %v4322_v20 }
 0x17a   : > { %v1411_v43 = vpop.f32.mrf.mxu1  ;;  %v4418_v4 = vpop.f32.mrf.mxu0 }
 0x17b   : > { %4890 = vst [vmem:[#allocation16_spill] sm:$0xff] %v4415_v29  ;;  %v4420_v39 = vadd.f32 %v3184_v27, %v1454_v26  ;;  %v1452_v32 = vadd.f32 %v1411_v43, %v4325_v12 }
 0x17c   : > { %v3189_v46 = vpop.f32.mrf.mxu1  ;;  %v4423_v18 = vpop.f32.mrf.mxu0 }
 0x17d   : > { %4891 = vst [vmem:[#allocation2_spill] sm:$0xff] %v4420_v39  ;;  %v4425_v47 = vadd.f32 %v1623_v56, %v1452_v32 }
 0x17e   : > { %v1717_v11 = vpop.f32.mrf.mxu1  ;;  %v4427_v13 = vpop.f32.mrf.mxu0 }
 0x17f   : > { %4892 = vst [vmem:[#allocation3_spill] sm:$0xff] %v4425_v47 }
 0x180   : > { %v4429_v36 = vpop.f32.mrf.mxu1  ;;  %v4431_v37 = vpop.f32.mrf.mxu0 }
 0x182   : > { %v4433_v20 = vpop.f32.mrf.mxu1  ;;  %v4435_v24 = vpop.f32.mrf.mxu0 }
 0x184   : > { %v4437_v40 = vpop.f32.mrf.mxu1  ;;  %v4439_v59 = vpop.f32.mrf.mxu0 }
 0x186   : > { %v4441_v12 = vpop.f32.mrf.mxu1  ;;  %v4443_v22 = vpop.f32.mrf.mxu0 }
 0x188   : > { %v4445_v45 = vpop.f32.mrf.mxu1  ;;  %v4447_v28 = vpop.f32.mrf.mxu0 }
 0x18a   : > { %v4449_v25 = vpop.f32.mrf.mxu1  ;;  %v4451_v21 = vpop.f32.mrf.mxu0 }
 0x18c   : > { %v4453_v61 = vpop.f32.mrf.mxu1  ;;  %v4455_v7 = vpop.f32.mrf.mxu0 }
 0x18e   : > { %v4457_v30 = vpop.f32.mrf.mxu1  ;;  %v4459_v63 = vpop.f32.mrf.mxu0 }
 0x190   : > { %v4461_v33 = vpop.f32.mrf.mxu1  ;;  %v4463_v48 = vpop.f32.mrf.mxu0 }
 0x192   : > { %v4465_v19 = vpop.f32.mrf.mxu1  ;;  %v4467_v23 = vpop.f32.mrf.mxu0 }
 0x194   : > { %v4469_v27 = vpop.f32.mrf.mxu1  ;;  %v4471_v5 = vpop.f32.mrf.mxu0 }
 0x196   : > { %v4473_v57 = vpop.f32.mrf.mxu1  ;;  %v4475_v56 = vpop.f32.mrf.mxu0 }
 0x198   : > { %v4477_v26 = vpop.f32.mrf.mxu1  ;;  %v4479_v43 = vpop.f32.mrf.mxu0 }
 0x19a   : > { %v4481_v32 = vpop.f32.mrf.mxu1  ;;  %v4483_v47 = vpop.f32.mrf.mxu0 }
 0x19c   : > { %v4485_v39 = vpop.f32.mrf.mxu1  ;;  %v4487_v29 = vpop.f32.mrf.mxu0 }
 0x19d   : > { %4893 = vst [vmem:[#allocation5_spill] sm:$0xff] %v4487_v29 }
 0x19e   : > { %v4489_v51 = vpop.f32.mrf.mxu1  ;;  %v4491_v41 = vpop.f32.mrf.mxu0 }
 0x19f   : > { %4894 = vst [vmem:[#allocation8_spill] sm:$0xff] %v4491_v41 }
 0x1a0   : > { %v4493_v31 = vpop.f32.mrf.mxu1  ;;  %v4495_v38 = vpop.f32.mrf.mxu0 }
 0x1a1   : > { %4895 = vst [vmem:[#allocation11_spill] sm:$0xff] %v4493_v31  ;;  %4896 = vst [vmem:[#allocation13_spill] sm:$0xff] %v4495_v38 }
 0x1a2   : > { %v4497_v55 = vpop.f32.mrf.mxu1  ;;  %v4499_v15 = vpop.f32.mrf.mxu0 }
 0x1a3   : > { %4897 = vst [vmem:[#allocation18_spill] sm:$0xff] %v4497_v55  ;;  %4898 = vst [vmem:[#allocation21_spill] sm:$0xff] %v4499_v15 }
 0x1a4   : > { %v4501_v14 = vpop.f32.mrf.mxu1  ;;  %v4503_v8 = vpop.f32.mrf.mxu0 }
 0x1a5   : > { %4899 = vst [vmem:[#allocation22_spill] sm:$0xff] %v4501_v14  ;;  %4900 = vst [vmem:[#allocation23_spill] sm:$0xff] %v4503_v8 }
 0x1a6   : > { %v4505_v17 = vpop.f32.mrf.mxu1  ;;  %v4507_v52 = vpop.f32.mrf.mxu0 }
 0x1a7   : > { %4901 = vst [vmem:[#allocation24_spill] sm:$0xff] %v4505_v17  ;;  %4902 = vst [vmem:[#allocation25_spill] sm:$0xff] %v4507_v52 }
 0x1a8   : > { %v4509_v29 = vpop.f32.mrf.mxu1  ;;  %v4511_v54 = vpop.f32.mrf.mxu0 }
 0x1a9   : > { %4903 = vst [vmem:[#allocation26_spill] sm:$0xff] %v4509_v29  ;;  %4904 = vst [vmem:[#allocation27_spill] sm:$0xff] %v4511_v54 }
 0x1aa   : > { %v4513_v41 = vpop.f32.mrf.mxu1  ;;  %v4515_v31 = vpop.f32.mrf.mxu0 }
 0x1ab   : > { %4905 = vst [vmem:[#allocation28_spill] sm:$0xff] %v4513_v41  ;;  %4906 = vst [vmem:[#allocation29_spill] sm:$0xff] %v4515_v31 }
 0x1ac   : > { %v4517_v38 = vpop.f32.mrf.mxu1  ;;  %v4519_v55 = vpop.f32.mrf.mxu0 }
 0x1ad   : > { %4907 = vst [vmem:[#allocation30_spill] sm:$0xff] %v4517_v38  ;;  %4908 = vst [vmem:[#allocation31_spill] sm:$0xff] %v4519_v55  ;;  %v1846_v55 = vadd.f32 %v3189_v46, %v4328_v16  ;;  %v1845_v16 = vadd.f32 %v4433_v20, %v4337_v9  ;;  %v4568_v9 = vld [vmem:[%s4791_s3] ss:$0 sm:$0xff] }
 0x1ae   : > { %v4521_v15 = vpop.f32.mrf.mxu1  ;;  %v4523_v14 = vpop.f32.mrf.mxu0 }
 0x1af   : > { %4909 = vst [vmem:[#allocation32_spill] sm:$0xff] %v4521_v15  ;;  %4910 = vst [vmem:[#allocation33_spill] sm:$0xff] %v4523_v14 }
 0x1b0   : > { %v4525_v8 = vpop.f32.mrf.mxu1  ;;  %v4527_v17 = vpop.f32.mrf.mxu0 }
 0x1b1   : > { %4911 = vst [vmem:[#allocation34_spill] sm:$0xff] %v4525_v8  ;;  %4912 = vst [vmem:[#allocation35_spill] sm:$0xff] %v4527_v17  ;;  %v1844_v17 = vadd.f32 %v1717_v11, %v4331_v2  ;;  %v4558_v2 = vld [vmem:[%s4790_s2] ss:$0 sm:$0xff] }
 0x1b2   : > { %v4529_v52 = vpop.f32.mrf.mxu1  ;;  %v4531_v29 = vpop.f32.mrf.mxu0 }
 0x1b3   : > { %4913 = vst [vmem:[#allocation36_spill] sm:$0xff] %v4529_v52  ;;  %4914 = vst [vmem:[#allocation37_spill] sm:$0xff] %v4531_v29  ;;  %v2048_v29 = vadd.f32 %v4418_v4, %v1846_v55 }
 0x1b4   : > { %v4533_v54 = vpop.f32.mrf.mxu1  ;;  %v4535_v41 = vpop.f32.mrf.mxu0 }
 0x1b5   : > { %4915 = vst [vmem:[#allocation38_spill] sm:$0xff] %v4533_v54  ;;  %4916 = vst [vmem:[#allocation39_spill] sm:$0xff] %v4535_v41  ;;  %v1847_v41 = vadd.f32 %v4429_v36, %v4334_v50  ;;  %v1850_v36 = vadd.f32 %v4437_v40, %v4340_v62  ;;  %v1851_v62 = vadd.f32 %v4445_v45, %v4346_v44 }
 0x1b6   : > { %v4537_v31 = vpop.f32.mrf.mxu1  ;;  %v4539_v38 = vpop.f32.mrf.mxu0 }
 0x1b7   : > { %4917 = vst [vmem:[#allocation40_spill] sm:$0xff] %v4537_v31  ;;  %4918 = vst [vmem:[#allocation41_spill] sm:$0xff] %v4539_v38  ;;  %v2046_v38 = vadd.f32 %v4423_v18, %v1844_v17  ;;  %v2049_v55 = vadd.f32 %v4427_v13, %v1847_v41  ;;  %v1848_v17 = vadd.f32 %v4441_v12, %v4343_v1 }
 0x1b8   : > { %v4542_v15 = vpop.f32.mrf.mxu1  ;;  %v4544_v14 = vpop.f32.mrf.mxu0  ;;  %v2047_v18 = vadd.f32 %v4431_v37, %v1845_v16  ;;  %v1849_v16 = vadd.f32 %v4449_v25, %v4349_v10  ;;  %v1854_v10 = vadd.f32 %v4453_v61, %v4352_v58 }
 0x1b9   : > { %4919 = vst [vmem:[#allocation42_spill] sm:$0xff] %v4544_v14  ;;  %v2050_v37 = vadd.f32 %v4439_v59, %v1848_v17  ;;  %v2053_v59 = vadd.f32 %v4443_v22, %v1851_v62 }
 0x1ba   : > { %v4547_v8 = vpop.f32.mrf.mxu1  ;;  %v3291_v52 = vpop.f32.mrf.mxu0 }
 0x1bc   : > { %v3257_v54 = vpop.f32.mrf.mxu1  ;;  %v2340_v31 = vpop.f32.mrf.mxu0 }
 0x1bd   : > { %v2260_v46 = vadd.f32 %v3257_v54, %v2048_v29 }
 0x1be   : > { %v2131_v11 = vpop.f32.mrf.mxu1  ;;  %v3292_v14 = vpop.f32.mrf.mxu0 }
 0x1bf   : > { %v2469_v4 = vadd.f32 %v3291_v52, %v2260_v46  ;;  %v2258_v50 = vadd.f32 %v2131_v11, %v2046_v38  ;;  %v2052_v11 = vadd.f32 %v4435_v24, %v1850_v36 }
 0x1c0   : > { %v3258_v54 = vpop.f32.mrf.mxu1  ;;  %v2343_v29 = vpop.f32.mrf.mxu0 }
 0x1c1   : > { %v2508_v41 = vmul.f32 %v4558_v2, %v2469_v4  ;;  %v2467_v52 = vadd.f32 %v2340_v31, %v2258_v50  ;;  %v2261_v38 = vadd.f32 %v3258_v54, %v2049_v55 }
 0x1c2   : > { %v2134_v13 = vpop.f32.mrf.mxu1  ;;  %v3295_v20 = vpop.f32.mrf.mxu0 }
 0x1c3   : > { %v2547_v1 = vadd.f32 %v4568_v9, %v2508_v41  ;;  %v2506_v40 = vmul.f32 %v4558_v2, %v2467_v52  ;;  %v2470_v12 = vadd.f32 %v3292_v14, %v2261_v38  ;;  %v2259_v46 = vadd.f32 %v2134_v13, %v2047_v18 }
 0x1c4   : > { %v3261_v44 = vpop.f32.mrf.mxu1  ;;  %v2356_v31 = vpop.f32.mrf.mxu0  ;;  %v2051_v41 = vadd.f32 %v4447_v28, %v1849_v16  ;;  %v2056_v13 = vadd.f32 %v4451_v21, %v1854_v10  ;;  %v1853_v21 = vadd.f32 %v4465_v19, %v4361_v60  ;;  %v1858_v60 = vadd.f32 %v4469_v27, %v4364_v3 }
 0x1c5   : > { %v2579_v45 = vmax.f32 %v2547_v1, 0.0  ;;  %v2545_v14 = vadd.f32 %v4568_v9, %v2506_v40  ;;  %v2509_v55 = vmul.f32 %v4558_v2, %v2470_v12  ;;  %v2468_v24 = vadd.f32 %v2343_v29, %v2259_v46 }
 0x1c6   : > { %v2264_v25 = vadd.f32 %v3261_v44, %v2052_v11  ;;  %v2147_v4 = vpop.f32.mrf.mxu1  ;;  %v3296_v50 = vpop.f32.mrf.mxu0  ;;  %v1852_v1 = vadd.f32 %v4457_v30, %v4355_v35  ;;  %v1855_v40 = vadd.f32 %v4461_v33, %v4358_v49 }
 0x1c7   : > { %2612 = vst.msk [vmem:[%s4584_s21 + $0x10] sm:$0xff] %vm2609_vm5, %v2579_v45  ;;  %v2577_v36 = vmax.f32 %v2545_v14, 0.0  ;;  %v2548_v17 = vadd.f32 %v4568_v9, %v2509_v55  ;;  %v2507_v54 = vmul.f32 %v4558_v2, %v2468_v24  ;;  %v2262_v18 = vadd.f32 %v2147_v4, %v2050_v37 }
 0x1c8   : > { %v2473_v29 = vadd.f32 %v3295_v20, %v2264_v25  ;;  %v3262_v52 = vpop.f32.mrf.mxu1  ;;  %v2359_v22 = vpop.f32.mrf.mxu0  ;;  %v2054_v14 = vadd.f32 %v4455_v7, %v1852_v1  ;;  %v2057_v55 = vadd.f32 %v4459_v63, %v1855_v40  ;;  %v1856_v7 = vadd.f32 %v4473_v57, %v4367_v42 }
 0x1c9   : > { %2610 = vst.msk [vmem:[%s4584_s21] sm:$0xff] %vm2609_vm5, %v2577_v36  ;;  %v2580_v58 = vmax.f32 %v2548_v17, 0.0  ;;  %v2546_v61 = vadd.f32 %v4568_v9, %v2507_v54  ;;  %v2471_v38 = vadd.f32 %v2356_v31, %v2262_v18  ;;  %v2265_v62 = vadd.f32 %v3262_v52, %v2053_v59 }
 0x1ca   : > { %v2512_v28 = vmul.f32 %v4558_v2, %v2473_v29  ;;  %v2150_v20 = vpop.f32.mrf.mxu1  ;;  %v3299_v12 = vpop.f32.mrf.mxu0  ;;  %v2055_v36 = vadd.f32 %v4463_v48, %v1853_v21  ;;  %v2060_v29 = vadd.f32 %v4467_v23, %v1858_v60 }
 0x1cb   : > { %2613 = vst.msk [vmem:[%s4584_s21 + $0x18] sm:$0xff] %vm2609_vm5, %v2580_v58  ;;  %v2578_v46 = vmax.f32 %v2546_v61, 0.0  ;;  %v2510_v11 = vmul.f32 %v4558_v2, %v2471_v38  ;;  %v2474_v37 = vadd.f32 %v3296_v50, %v2265_v62  ;;  %v2263_v16 = vadd.f32 %v2150_v20, %v2051_v41 }
 0x1cc   : > { %v2551_v44 = vadd.f32 %v4568_v9, %v2512_v28  ;;  %v3265_v35 = vpop.f32.mrf.mxu1  ;;  %v2372_v30 = vpop.f32.mrf.mxu0  ;;  %v2058_v38 = vadd.f32 %v4471_v5, %v1856_v7  ;;  %v1859_v62 = vadd.f32 %v4477_v26, %v4370_v0  ;;  %v1862_v5 = vadd.f32 %v4485_v39, %v4376_v6 }
 0x1cd   : > { %2611 = vst.msk [vmem:[%s4584_s21 + $0x8] sm:$0xff] %vm2609_vm5, %v2578_v46  ;;  %v2549_v49 = vadd.f32 %v4568_v9, %v2510_v11  ;;  %v2513_v33 = vmul.f32 %v4558_v2, %v2474_v37  ;;  %v2472_v31 = vadd.f32 %v2359_v22, %v2263_v16  ;;  %v2268_v45 = vadd.f32 %v3265_v35, %v2056_v13 }
 0x1ce   : > { %v2583_v19 = vmax.f32 %v2551_v44, 0.0  ;;  %v2163_v24 = vpop.f32.mrf.mxu1  ;;  %v3300_v59 = vpop.f32.mrf.mxu0  ;;  %v1857_v13 = vadd.f32 %v4481_v32, %v4373_v34  ;;  %v2061_v21 = vadd.f32 %v4475_v56, %v1859_v62  ;;  %v1860_v6 = vadd.f32 %v4489_v51, %v4379_v53  ;;  %v4921_v56 = vld [vmem:[#allocation11_spill] sm:$0xff] }
 0x1cf   : > { %v2581_v10 = vmax.f32 %v2549_v49, 0.0  ;;  %v2552_v25 = vadd.f32 %v4568_v9, %v2513_v33  ;;  %v2511_v4 = vmul.f32 %v4558_v2, %v2472_v31  ;;  %v2477_v50 = vadd.f32 %v3299_v12, %v2268_v45 }
 0x1d0   : > { %2616 = vst.msk [vmem:[%s4584_s21 + $0x30] sm:$0xff] %vm2609_vm5, %v2583_v19  ;;  %v2266_v63 = vadd.f32 %v2163_v24, %v2054_v14  ;;  %v3266_v17 = vpop.f32.mrf.mxu1  ;;  %v2375_v3 = vpop.f32.mrf.mxu0  ;;  %v2059_v44 = vadd.f32 %v4479_v43, %v1857_v13  ;;  %v2064_v14 = vadd.f32 %v4483_v47, %v1862_v5 }
 0x1d1   : > { %2614 = vst.msk [vmem:[%s4584_s21 + $0x20] sm:$0xff] %vm2609_vm5, %v2581_v10  ;;  %v2584_v27 = vmax.f32 %v2552_v25, 0.0  ;;  %v2550_v54 = vadd.f32 %v4568_v9, %v2511_v4  ;;  %v2516_v18 = vmul.f32 %v4558_v2, %v2477_v50  ;;  %v2269_v41 = vadd.f32 %v3266_v17, %v2057_v55  ;;  %v4920_v55 = vld [vmem:[#allocation6_spill] sm:$0xff]  ;;  %v4922_v25 = vld [vmem:[#allocation5_spill] sm:$0xff] }
 0x1d2   : > { %v2475_v48 = vadd.f32 %v2372_v30, %v2266_v63  ;;  %v2166_v52 = vpop.f32.mrf.mxu1  ;;  %v3303_v22 = vpop.f32.mrf.mxu0  ;;  %v1863_v60 = vadd.f32 %v4921_v56, %v4920_v55  ;;  %v2062_v4 = vadd.f32 %v4922_v25, %v1860_v6  ;;  %v4935_v55 = vld [vmem:[#allocation7_spill] sm:$0xff]  ;;  %v4936_v56 = vld [vmem:[#allocation28_spill] sm:$0xff]  ;;  %v4937_v25 = vld [vmem:[#allocation25_spill] sm:$0xff] }
 0x1d3   : > { %2617 = vst.msk [vmem:[%s4584_s21 + $0x38] sm:$0xff] %vm2609_vm5, %v2584_v27  ;;  %v2582_v42 = vmax.f32 %v2550_v54, 0.0  ;;  %v2555_v57 = vadd.f32 %v4568_v9, %v2516_v18  ;;  %v2478_v58 = vadd.f32 %v3300_v59, %v2269_v41  ;;  %v2267_v61 = vadd.f32 %v2166_v52, %v2055_v36  ;;  %v4923_v27 = vld [vmem:[#allocation8_spill] sm:$0xff]  ;;  %v4924_v18 = vld [vmem:[#allocation9_spill] sm:$0xff]  ;;  %v4925_v41 = vld [vmem:[#allocation18_spill] sm:$0xff] }
 0x1d4   : > { %v2514_v23 = vmul.f32 %v4558_v2, %v2475_v48  ;;  %v3269_v1 = vpop.f32.mrf.mxu1  ;;  %v2388_v40 = vpop.f32.mrf.mxu0  ;;  %v2065_v54 = vadd.f32 %v4923_v27, %v1863_v60  ;;  %v4926_v48 = vld [vmem:[#allocation12_spill] sm:$0xff]  ;;  %v4927_v52 = vld [vmem:[#allocation22_spill] sm:$0xff]  ;;  %v1865_v60 = vadd.f32 %v4936_v56, %v4935_v55  ;;  %v4938_v27 = vld [vmem:[#allocation27_spill] sm:$0xff] }
 0x1d5   : > { %2615 = vst.msk [vmem:[%s4584_s21 + $0x28] sm:$0xff] %vm2609_vm5, %v2582_v42  ;;  %v2587_v28 = vmax.f32 %v2555_v57, 0.0  ;;  %v2517_v20 = vmul.f32 %v4558_v2, %v2478_v58  ;;  %v2476_v12 = vadd.f32 %v2375_v3, %v2267_v61  ;;  %v2272_v46 = vadd.f32 %v3269_v1, %v2060_v29  ;;  %v4929_v1 = vld [vmem:[#allocation24_spill] sm:$0xff]  ;;  %v4950_v55 = vld [vmem:[#allocation19_spill] sm:$0xff]  ;;  %v4951_v56 = vld [vmem:[#allocation38_spill] sm:$0xff] }
 0x1d6   : > { %v2553_v11 = vadd.f32 %v4568_v9, %v2514_v23  ;;  %v2179_v0 = vpop.f32.mrf.mxu1  ;;  %v3304_v26 = vpop.f32.mrf.mxu0  ;;  %v1861_v29 = vadd.f32 %v4925_v41, %v4924_v18  ;;  %v4928_v23 = vld [vmem:[#allocation15_spill] sm:$0xff]  ;;  %v4939_v18 = vld [vmem:[#allocation10_spill] sm:$0xff] }
 0x1d7   : > { %2620 = vst.msk [vmem:[%s4584_s21 + $0x50] sm:$0xff] %vm2609_vm5, %v2587_v28  ;;  %v2556_v34 = vadd.f32 %v4568_v9, %v2517_v20  ;;  %v2515_v32 = vmul.f32 %v4558_v2, %v2476_v12  ;;  %v2481_v37 = vadd.f32 %v3303_v22, %v2272_v46  ;;  %v2270_v16 = vadd.f32 %v2179_v0, %v2058_v38  ;;  %v4940_v41 = vld [vmem:[#allocation30_spill] sm:$0xff] }
 0x1d8   : > { %v2585_v39 = vmax.f32 %v2553_v11, 0.0  ;;  %v3270_v35 = vpop.f32.mrf.mxu1  ;;  %v2391_v30 = vpop.f32.mrf.mxu0  ;;  %v1866_v22 = vadd.f32 %v4927_v52, %v4926_v48  ;;  %v4941_v48 = vld [vmem:[#allocation14_spill] sm:$0xff]  ;;  %v4942_v52 = vld [vmem:[#allocation32_spill] sm:$0xff] }
 0x1d9   : > { %v2588_v49 = vmax.f32 %v2556_v34, 0.0  ;;  %v2554_v33 = vadd.f32 %v4568_v9, %v2515_v32  ;;  %v2520_v31 = vmul.f32 %v4558_v2, %v2481_v37  ;;  %v2479_v45 = vadd.f32 %v2388_v40, %v2270_v16  ;;  %v4931_v32 = vld [vmem:[#allocation21_spill] sm:$0xff]  ;;  %v4932_v16 = vld [vmem:[#allocation4_spill] sm:$0xff] }
 0x1da   : > { %2618 = vst.msk [vmem:[%s4584_s21 + $0x40] sm:$0xff] %vm2609_vm5, %v2585_v39  ;;  %v2273_v43 = vadd.f32 %v3270_v35, %v2061_v21  ;;  %v2182_v19 = vpop.f32.mrf.mxu1  ;;  %v3307_v53 = vpop.f32.mrf.mxu0  ;;  %v1864_v40 = vadd.f32 %v4929_v1, %v4928_v23  ;;  %v2068_v37 = vadd.f32 %v4931_v32, %v1866_v22  ;;  %v4933_v21 = vld [vmem:[#allocation26_spill] sm:$0xff]  ;;  %v1868_v22 = vadd.f32 %v4942_v52, %v4941_v48  ;;  %v4943_v23 = vld [vmem:[#allocation17_spill] sm:$0xff]  ;;  %v4946_v32 = vld [vmem:[#allocation31_spill] sm:$0xff] }
 0x1db   : > { %2621 = vst.msk [vmem:[%s4584_s21 + $0x58] sm:$0xff] %vm2609_vm5, %v2588_v49  ;;  %v2586_v51 = vmax.f32 %v2554_v33, 0.0  ;;  %v2559_v24 = vadd.f32 %v4568_v9, %v2520_v31  ;;  %v2518_v59 = vmul.f32 %v4558_v2, %v2479_v45  ;;  %v2271_v10 = vadd.f32 %v2182_v19, %v2059_v44  ;;  %v4934_v45 = vld [vmem:[#allocation23_spill] sm:$0xff]  ;;  %v4944_v1 = vld [vmem:[#allocation34_spill] sm:$0xff] }
 0x1dc   : > { %v2482_v47 = vadd.f32 %v3304_v26, %v2273_v43  ;;  %v3273_v50 = vpop.f32.mrf.mxu1  ;;  %v2404_v36 = vpop.f32.mrf.mxu0  ;;  %v4930_v26 = vld [vmem:[#allocation13_spill] sm:$0xff]  ;;  %v1867_v44 = vadd.f32 %v4933_v21, %v4932_v16  ;;  %v4947_v16 = vld [vmem:[#allocation20_spill] sm:$0xff]  ;;  %v4956_v48 = vld [vmem:[#allocation2_spill] sm:$0xff] }
 0x1dd   : > { %2619 = vst.msk [vmem:[%s4584_s21 + $0x48] sm:$0xff] %vm2609_vm5, %v2586_v51  ;;  %v2591_v7 = vmax.f32 %v2559_v24, 0.0  ;;  %v2557_v63 = vadd.f32 %v4568_v9, %v2518_v59  ;;  %v2480_v17 = vadd.f32 %v2391_v30, %v2271_v10  ;;  %v2276_v3 = vadd.f32 %v3273_v50, %v2064_v14  ;;  %v4948_v21 = vld [vmem:[#allocation36_spill] sm:$0xff] }
 0x1de   : > { %v2521_v42 = vmul.f32 %v4558_v2, %v2482_v47  ;;  %v2195_v57 = vpop.f32.mrf.mxu1  ;;  %v3308_v58 = vpop.f32.mrf.mxu0  ;;  %v2063_v34 = vadd.f32 %v4930_v26, %v1861_v29  ;;  %v2066_v14 = vadd.f32 %v4934_v45, %v1864_v40  ;;  %v1870_v29 = vadd.f32 %v4940_v41, %v4939_v18  ;;  %v4945_v26 = vld [vmem:[#allocation29_spill] sm:$0xff]  ;;  %v4954_v18 = vld [vmem:[#allocation16_spill] sm:$0xff] }
 0x1df   : > { %2624 = vst.msk [vmem:[%s4584_s21 + $0x70] sm:$0xff] %vm2609_vm5, %v2591_v7  ;;  %v2589_v61 = vmax.f32 %v2557_v63, 0.0  ;;  %v2519_v38 = vmul.f32 %v4558_v2, %v2480_v17  ;;  %v2485_v62 = vadd.f32 %v3307_v53, %v2276_v3  ;;  %v2274_v13 = vadd.f32 %v2195_v57, %v2062_v4  ;;  %v4949_v45 = vld [vmem:[#allocation33_spill] sm:$0xff]  ;;  %v4955_v41 = vld [vmem:[#allocation40_spill] sm:$0xff] }
 0x1e0   : > { %v2560_v28 = vadd.f32 %v4568_v9, %v2521_v42  ;;  %v3274_v20 = vpop.f32.mrf.mxu1  ;;  %v2407_v12 = vpop.f32.mrf.mxu0  ;;  %v2069_v4 = vadd.f32 %v4937_v25, %v1867_v44  ;;  %v1871_v40 = vadd.f32 %v4944_v1, %v4943_v23  ;;  %v1869_v44 = vadd.f32 %v4948_v21, %v4947_v16  ;;  %v4952_v25 = vld [vmem:[#allocation35_spill] sm:$0xff] }
 0x1e1   : > { %2622 = vst.msk [vmem:[%s4584_s21 + $0x60] sm:$0xff] %vm2609_vm5, %v2589_v61  ;;  %v2558_v46 = vadd.f32 %v4568_v9, %v2519_v38  ;;  %v2524_v5 = vmul.f32 %v4558_v2, %v2485_v62  ;;  %v2483_v11 = vadd.f32 %v2404_v36, %v2274_v13  ;;  %v2277_v0 = vadd.f32 %v3274_v20, %v2065_v54 }
 0x1e2   : > { %v2592_v6 = vmax.f32 %v2560_v28, 0.0  ;;  %v2198_v39 = vpop.f32.mrf.mxu1  ;;  %v3311_v35 = vpop.f32.mrf.mxu0  ;;  %v2067_v54 = vadd.f32 %v4938_v27, %v1865_v60  ;;  %v1874_v60 = vadd.f32 %v4951_v56, %v4950_v55  ;;  %v4953_v27 = vld [vmem:[#allocation37_spill] sm:$0xff]  ;;  %v1875_v52 = vadd.f32 %v4542_v15, %v4956_v48 }
 0x1e3   : > { %v2590_v30 = vmax.f32 %v2558_v46, 0.0  ;;  %v2563_v49 = vadd.f32 %v4568_v9, %v2524_v5  ;;  %v2522_v33 = vmul.f32 %v4558_v2, %v2483_v11  ;;  %v2486_v31 = vadd.f32 %v3308_v58, %v2277_v0 }
 0x1e4   : > { %2625 = vst.msk [vmem:[%s4584_s21 + $0x78] sm:$0xff] %vm2609_vm5, %v2592_v6  ;;  %v2275_v43 = vadd.f32 %v2198_v39, %v2063_v34  ;;  %v3277_v19 = vpop.f32.mrf.mxu1  ;;  %v2420_v53 = vpop.f32.mrf.mxu0  ;;  %v2072_v34 = vadd.f32 %v4945_v26, %v1870_v29  ;;  %v1872_v29 = vadd.f32 %v4955_v41, %v4954_v18 }
 0x1e5   : > { %2623 = vst.msk [vmem:[%s4584_s21 + $0x68] sm:$0xff] %vm2609_vm5, %v2590_v30  ;;  %v2595_v51 = vmax.f32 %v2563_v49, 0.0  ;;  %v2561_v24 = vadd.f32 %v4568_v9, %v2522_v33  ;;  %v2525_v59 = vmul.f32 %v4558_v2, %v2486_v31  ;;  %v2280_v10 = vadd.f32 %v3277_v19, %v2068_v37 }
 0x1e6   : > { %v2484_v47 = vadd.f32 %v2407_v12, %v2275_v43  ;;  %v2211_v50 = vpop.f32.mrf.mxu1  ;;  %v3312_v36 = vpop.f32.mrf.mxu0  ;;  %v2070_v37 = vadd.f32 %v4946_v32, %v1868_v22 }
 0x1e7   : > { %2628 = vst.msk [vmem:[%s4584_s21 + $0x90] sm:$0xff] %vm2609_vm5, %v2595_v51  ;;  %v2593_v7 = vmax.f32 %v2561_v24, 0.0  ;;  %v2564_v63 = vadd.f32 %v4568_v9, %v2525_v59  ;;  %v2489_v17 = vadd.f32 %v3311_v35, %v2280_v10  ;;  %v2278_v3 = vadd.f32 %v2211_v50, %v2066_v14 }
 0x1e8   : > { %v2523_v42 = vmul.f32 %v4558_v2, %v2484_v47  ;;  %v3278_v57 = vpop.f32.mrf.mxu1  ;;  %v2423_v58 = vpop.f32.mrf.mxu0  ;;  %v2073_v14 = vadd.f32 %v4949_v45, %v1871_v40 }
 0x1e9   : > { %2626 = vst.msk [vmem:[%s4584_s21 + $0x80] sm:$0xff] %vm2609_vm5, %v2593_v7  ;;  %v2596_v61 = vmax.f32 %v2564_v63, 0.0  ;;  %v2528_v38 = vmul.f32 %v4558_v2, %v2489_v17  ;;  %v2487_v62 = vadd.f32 %v2420_v53, %v2278_v3  ;;  %v2281_v13 = vadd.f32 %v3278_v57, %v2069_v4 }
 0x1ea   : > { %v2562_v28 = vadd.f32 %v4568_v9, %v2523_v42  ;;  %v2214_v20 = vpop.f32.mrf.mxu1  ;;  %v3315_v12 = vpop.f32.mrf.mxu0  ;;  %v2071_v4 = vadd.f32 %v4952_v25, %v1869_v44  ;;  %v4960_v44 = vld [vmem:[#allocation42_spill] sm:$0xff] }
 0x1eb   : > { %2629 = vst.msk [vmem:[%s4584_s21 + $0x98] sm:$0xff] %vm2609_vm5, %v2596_v61  ;;  %v2567_v46 = vadd.f32 %v4568_v9, %v2528_v38  ;;  %v2526_v5 = vmul.f32 %v4558_v2, %v2487_v62  ;;  %v2490_v11 = vadd.f32 %v3312_v36, %v2281_v13  ;;  %v2279_v0 = vadd.f32 %v2214_v20, %v2067_v54  ;;  %v4957_v13 = vld [vmem:[#allocation3_spill] sm:$0xff] }
 0x1ec   : > { %v2594_v6 = vmax.f32 %v2562_v28, 0.0  ;;  %v3281_v39 = vpop.f32.mrf.mxu1  ;;  %v2436_v35 = vpop.f32.mrf.mxu0  ;;  %v2076_v54 = vadd.f32 %v4953_v27, %v1874_v60  ;;  %v1873_v23 = vadd.f32 %v4547_v8, %v4957_v13 }
 0x1ed   : > { %v2599_v30 = vmax.f32 %v2567_v46, 0.0  ;;  %v2565_v49 = vadd.f32 %v4568_v9, %v2526_v5  ;;  %v2529_v33 = vmul.f32 %v4558_v2, %v2490_v11  ;;  %v2488_v31 = vadd.f32 %v2423_v58, %v2279_v0  ;;  %v4958_v5 = vld [vmem:[#allocation39_spill] sm:$0xff]  ;;  %v4959_v0 = vld [vmem:[#allocation41_spill] sm:$0xff] }
 0x1ee   : > { %2627 = vst.msk [vmem:[%s4584_s21 + $0x88] sm:$0xff] %vm2609_vm5, %v2594_v6  ;;  %v2284_v43 = vadd.f32 %v3281_v39, %v2072_v34  ;;  %v2227_v19 = vpop.f32.mrf.mxu1  ;;  %v3316_v53 = vpop.f32.mrf.mxu0  ;;  %v2074_v11 = vadd.f32 %v4958_v5, %v1872_v29  ;;  %v2077_v26 = vadd.f32 %v4959_v0, %v1875_v52  ;;  %v2075_v6 = vadd.f32 %v4960_v44, %v1873_v23 }
 0x1ef   : > { %2632 = vst.msk [vmem:[%s4584_s21 + $0xb0] sm:$0xff] %vm2609_vm5, %v2599_v30  ;;  %v2597_v51 = vmax.f32 %v2565_v49, 0.0  ;;  %v2568_v24 = vadd.f32 %v4568_v9, %v2529_v33  ;;  %v2527_v59 = vmul.f32 %v4558_v2, %v2488_v31  ;;  %v2282_v10 = vadd.f32 %v2227_v19, %v2070_v37 }
 0x1f0   : > { %v2493_v47 = vadd.f32 %v3315_v12, %v2284_v43  ;;  %v3282_v50 = vpop.f32.mrf.mxu1  ;;  %v2439_v36 = vpop.f32.mrf.mxu0 }
 0x1f1   : > { %2630 = vst.msk [vmem:[%s4584_s21 + $0xa0] sm:$0xff] %vm2609_vm5, %v2597_v51  ;;  %v2600_v7 = vmax.f32 %v2568_v24, 0.0  ;;  %v2566_v63 = vadd.f32 %v4568_v9, %v2527_v59  ;;  %v2491_v17 = vadd.f32 %v2436_v35, %v2282_v10  ;;  %v2285_v3 = vadd.f32 %v3282_v50, %v2073_v14 }
 0x1f2   : > { %v2532_v22 = vmul.f32 %v4558_v2, %v2493_v47  ;;  %v2230_v42 = vpop.f32.mrf.mxu1  ;;  %v3319_v57 = vpop.f32.mrf.mxu0 }
 0x1f3   : > { %2633 = vst.msk [vmem:[%s4584_s21 + $0xb8] sm:$0xff] %vm2609_vm5, %v2600_v7  ;;  %v2598_v58 = vmax.f32 %v2566_v63, 0.0  ;;  %v2530_v61 = vmul.f32 %v4558_v2, %v2491_v17  ;;  %v2494_v38 = vadd.f32 %v3316_v53, %v2285_v3  ;;  %v2283_v62 = vadd.f32 %v2230_v42, %v2071_v4 }
 0x1f4   : > { %v2571_v1 = vadd.f32 %v4568_v9, %v2532_v22  ;;  %v3285_v40 = vpop.f32.mrf.mxu1  ;;  %v2452_v28 = vpop.f32.mrf.mxu0 }
 0x1f5   : > { %2631 = vst.msk [vmem:[%s4584_s21 + $0xa8] sm:$0xff] %vm2609_vm5, %v2598_v58  ;;  %v2569_v15 = vadd.f32 %v4568_v9, %v2530_v61  ;;  %v2533_v20 = vmul.f32 %v4558_v2, %v2494_v38  ;;  %v2492_v12 = vadd.f32 %v2439_v36, %v2283_v62  ;;  %v2288_v46 = vadd.f32 %v3285_v40, %v2076_v54 }
 0x1f6   : > { %v2603_v34 = vmax.f32 %v2571_v1, 0.0  ;;  %v2243_v8 = vpop.f32.mrf.mxu1  ;;  %v3320_v30 = vpop.f32.mrf.mxu0 }
 0x1f7   : > { %v2601_v32 = vmax.f32 %v2569_v15, 0.0  ;;  %v2572_v37 = vadd.f32 %v4568_v9, %v2533_v20  ;;  %v2531_v16 = vmul.f32 %v4558_v2, %v2492_v12  ;;  %v2497_v21 = vadd.f32 %v3319_v57, %v2288_v46 }
 0x1f8   : > { %2636 = vst.msk [vmem:[%s4584_s21 + $0xd0] sm:$0xff] %vm2609_vm5, %v2603_v34  ;;  %v2286_v39 = vadd.f32 %v2243_v8, %v2074_v11  ;;  %v3286_v35 = vpop.f32.mrf.mxu1  ;;  %v2455_v51 = vpop.f32.mrf.mxu0 }
 0x1f9   : > { %2634 = vst.msk [vmem:[%s4584_s21 + $0xc0] sm:$0xff] %vm2609_vm5, %v2601_v32  ;;  %v2604_v49 = vmax.f32 %v2572_v37, 0.0  ;;  %v2570_v33 = vadd.f32 %v4568_v9, %v2531_v16  ;;  %v2536_v31 = vmul.f32 %v4558_v2, %v2497_v21  ;;  %v2289_v45 = vadd.f32 %v3286_v35, %v2077_v26 }
 0x1fa   : > { %v2495_v14 = vadd.f32 %v2452_v28, %v2286_v39  ;;  %v2246_v55 = vpop.f32.mrf.mxu1 }
 0x1fb   : > { %2637 = vst.msk [vmem:[%s4584_s21 + $0xd8] sm:$0xff] %vm2609_vm5, %v2604_v49  ;;  %v2602_v56 = vmax.f32 %v2570_v33, 0.0  ;;  %v2575_v60 = vadd.f32 %v4568_v9, %v2536_v31  ;;  %v2498_v43 = vadd.f32 %v3320_v30, %v2289_v45  ;;  %v2287_v19 = vadd.f32 %v2246_v55, %v2075_v6 }
 0x1fc   : > { %v2534_v53 = vmul.f32 %v4558_v2, %v2495_v14 }
 0x1fd   : > { %2635 = vst.msk [vmem:[%s4584_s21 + $0xc8] sm:$0xff] %vm2609_vm5, %v2602_v56  ;;  %v2607_v24 = vmax.f32 %v2575_v60, 0.0  ;;  %v2537_v59 = vmul.f32 %v4558_v2, %v2498_v43  ;;  %v2496_v10 = vadd.f32 %v2455_v51, %v2287_v19 }
 0x1fe   : > { %v2573_v25 = vadd.f32 %v4568_v9, %v2534_v53 }
 0x1ff   : > { %2640 = vst.msk [vmem:[%s4584_s21 + $0xf0] sm:$0xff] %vm2609_vm5, %v2607_v24  ;;  %v2576_v4 = vadd.f32 %v4568_v9, %v2537_v59  ;;  %v2535_v47 = vmul.f32 %v4558_v2, %v2496_v10 }
 0x200   : > { %v2605_v50 = vmax.f32 %v2573_v25, 0.0 }
 0x201   : > { %v2608_v36 = vmax.f32 %v2576_v4, 0.0  ;;  %v2574_v7 = vadd.f32 %v4568_v9, %v2535_v47 }
 0x202   : > { %2638 = vst.msk [vmem:[%s4584_s21 + $0xe0] sm:$0xff] %vm2609_vm5, %v2605_v50 }
 0x203   : > { %2641 = vst.msk [vmem:[%s4584_s21 + $0xf8] sm:$0xff] %vm2609_vm5, %v2608_v36  ;;  %v2606_v63 = vmax.f32 %v2574_v7, 0.0 }
 0x205   : > { %2639 = vst.msk [vmem:[%s4584_s21 + $0xe8] sm:$0xff] %vm2609_vm5, %v2606_v63 }
 0x206 PF: > { %s14_s15 = sadd.s32 1, %s3339_s15  }
 0x207   : > { %p11_p4 = scmp.ge.s32.totalorder %s14_s15, 4  }
 0x209   :  { %13 = sbr.rel (!%p11_p4) target bundleno = 1 (0x1), region = 74 }

// kernel: basenet_forward.4
= control target key start
LH: loop header
LB: loop body
LE: loop exit
PB: predicated region body
PF: predicated region fallthrough
CT: control target
= control target key end

     0   :  { %s3422_s15 = smov 0   ;;  %s4838_s0 = inlined_call_operand.vmem [shape: f32[2,18,18,16], index: 0, kind: input, shape index: {}]   ;;  %s4839_s1 = inlined_call_operand.vmem [shape: bf16[9,16,16], index: 1, kind: input, shape index: {}]   ;;  %s4840_s2 = inlined_call_operand.vmem [shape: f32[1,16], index: 2, kind: input, shape index: {}]   ;;  %s4841_s3 = inlined_call_operand.vmem [shape: f32[1,16], index: 3, kind: input, shape index: {}]   ;;  %s4842_s4 = inlined_call_operand.vmem [shape: f32[2,16,16,16], index: 4, kind: output, shape index: {}]  }
   0x1 LB: > { %s2728_s16 = sadd.s32 4294967295, %s3395_s15   ;;  %p2732_p0 = scmp.ge.s32.totalorder %s3395_s15, 1  ;;  %s3395_s15 = sphi %s3422_s15, %s14_s15  }
   0x2   : > { %p162_p1 = scmp.lt.s32.totalorder %s3395_s15, 3 }
   0x4   : > { %p163_p2 = pnand %p2732_p0, %p162_p1 }
   0x6   : > { %166 = sbr.rel (%p163_p2) target bundleno = 518 (0x206), region = 36 }
   0xb   : > { %v3380_v0 = vld [vmem:[%s4839_s1 + $0x8] sm:$0xff]   ;;  %p188_p3 = scmp.lt.s32.totalorder %s2728_s16, 1  ;;  %v3438_v1 = vld [vmem:[%s4839_s1] sm:$0xff]   ;;  %v3443_v2 = vld [vmem:[%s4839_s1 + $0x10] sm:$0xff]   ;;  %vm319_vm0 = vcmask 1046528   ;;  %vm457_vm1 = vcmask 130048  }
   0xc   : > { %3369 = vmatprep.subr.bf16.mxu1 %v3380_v0  ;;  %3063 = vmatprep.subr.bf16.mxu0 %v3380_v0  ;;  %v3547_v50 = vld [vmem:[%s4839_s1 + $0x18] sm:$0xff]   ;;  %v3552_v51 = vld [vmem:[%s4839_s1 + $0x20] sm:$0xff]   ;;  %vm882_vm2 = vcmask 1045504  }
   0xd   : > { %s5008_s16 = smov (!%p188_p3, %s2728_s16), 1  ;;  %3370 = vmatpush3.bf16.msra.mxu1 %v3380_v0  ;;  %3064 = vmatpush3.bf16.msra.mxu0 %v3380_v0 }
   0xe   : > { %s3371_s23 = smul.u32 432, %s5008_s16  ;;  %3097 = vmatprep.subr.bf16.mxu1 %v3438_v1  ;;  %3131 = vmatprep.subr.bf16.mxu0 %v3443_v2  ;;  %s2909_s19 = sshll.u32 %s5008_s16, 8 }
   0xf   : > { %s4634_s21 = scalar_lea.vmem %s4842_s4, %s2909_s19 }
  0x10   : > { %s3451_s26 = scalar_lea.vmem %s4838_s0, %s3371_s23 }
  0x11   : > { %v3454_v3 = vld [vmem:[%s3451_s26] sm:$0xff]  ;;  %v3457_v4 = vld [vmem:[%s3451_s26 + $0x8] sm:$0xff]  ;;  %v3460_v5 = vld [vmem:[%s3451_s26 + $0x10] sm:$0x3] }
  0x12   : > { %v320_v6 = vrot.slane %v3454_v3, 1  ;;  %v321_v7 = vrot.slane %v3457_v4, 1  ;;  %v323_v8 = vrot.slane %v3460_v5, 1  ;;  %v3466_v9 = vld [vmem:[%s3451_s26 + $0xc0] sm:$0xff]  ;;  %v3469_v10 = vld [vmem:[%s3451_s26 + $0xc8] sm:$0xff]  ;;  %v3480_v17 = vld [vmem:[%s3451_s26 + $0x18] sm:$0xff] }
  0x13   : > { %v3472_v11 = vld [vmem:[%s3451_s26 + $0xd0] sm:$0x3]  ;;  %v360_v12 = vrot.slane %v3466_v9, 1  ;;  %v361_v13 = vrot.slane %v3469_v10, 1  ;;  %v3483_v18 = vld [vmem:[%s3451_s26 + $0x20] sm:$0xff]  ;;  %v325_v22 = vrot.slane %v3480_v17, 1 }
  0x14   : > { %v322_v14 = vsel %vm319_vm0, %v320_v6, %v321_v7  ;;  %v324_v15 = vsel %vm319_vm0, %v321_v7, %v323_v8  ;;  %v363_v16 = vrot.slane %v3472_v11, 1  ;;  %v3486_v19 = vld [vmem:[%s3451_s26 + $0x28] sm:$0x3]  ;;  %v326_v23 = vrot.slane %v3483_v18, 1  ;;  %v3492_v24 = vld [vmem:[%s3451_s26 + $0xd8] sm:$0xff]  ;;  %v3495_v25 = vld [vmem:[%s3451_s26 + $0xe0] sm:$0xff] }
  0x15   : > { %v432_v20 = vpack.c.bf16 %v324_v15, %v322_v14  ;;  %v362_v21 = vsel %vm319_vm0, %v360_v12, %v361_v13  ;;  %v3498_v26 = vld [vmem:[%s3451_s26 + $0xe8] sm:$0x3]  ;;  %v328_v29 = vrot.slane %v3486_v19, 1  ;;  %v3504_v30 = vld [vmem:[%s3451_s26 + $0x30] sm:$0xff]  ;;  %v3507_v31 = vld [vmem:[%s3451_s26 + $0x38] sm:$0xff]  ;;  %v365_v36 = vrot.slane %v3492_v24, 1 }
  0x16   : > { %4870 = vst [vmem:[#allocation2_spill] sm:$0xff] %v3498_v26  ;;  %v364_v28 = vsel %vm319_vm0, %v361_v13, %v363_v16  ;;  %v3510_v32 = vld [vmem:[%s3451_s26 + $0xf0] sm:$0xff]  ;;  %v327_v35 = vsel %vm319_vm0, %v325_v22, %v326_v23  ;;  %v3519_v37 = vld [vmem:[%s3451_s26 + $0x40] sm:$0x3]  ;;  %v3522_v38 = vld [vmem:[%s3451_s26 + $0xf8] sm:$0xff]  ;;  %v366_v40 = vrot.slane %v3495_v25, 1 }
  0x17   : > { %3065 = vmatprep.mubr.msk.bf16.mxu0 %vm457_vm1, %v432_v20  ;;  %v3514_v34 = vpack.c.bf16 %v364_v28, %v362_v21  ;;  %v329_v39 = vsel %vm319_vm0, %v326_v23, %v328_v29  ;;  %v368_v41 = vrot.slane %v3498_v26, 1  ;;  %v330_v42 = vrot.slane %v3504_v30, 1  ;;  %v3529_v43 = vld [vmem:[%s3451_s26 + $0x100] sm:$0x3]  ;;  %v3532_v44 = vld [vmem:[%s3451_s26 + $0x48] sm:$0xff]  ;;  %v3542_v49 = vld [vmem:[%s3451_s26 + $0x50] sm:$0xff] }
  0x18   : > { %4872 = vst [vmem:[#allocation4_spill] sm:$0xff] %v3529_v43  ;;  %v3536_v45 = vpack.c.bf16 %v329_v39, %v327_v35  ;;  %v331_v46 = vrot.slane %v3507_v31, 1  ;;  %v333_v47 = vrot.slane %v3519_v37, 1  ;;  %v370_v48 = vrot.slane %v3510_v32, 1  ;;  %v3559_v56 = vld [vmem:[%s3451_s26 + $0x58] sm:$0x3] }
  0x19   : > { %4871 = vst [vmem:[#allocation3_spill] sm:$0xff] %v3514_v34  ;;  %3081 = vmatprep.mubr.msk.bf16.mxu1 %vm457_vm1, %v3514_v34  ;;  %v367_v52 = vsel %vm319_vm0, %v365_v36, %v366_v40  ;;  %v369_v53 = vsel %vm319_vm0, %v366_v40, %v368_v41  ;;  %v371_v54 = vrot.slane %v3522_v38, 1  ;;  %v373_v55 = vrot.slane %v3529_v43, 1  ;;  %v3562_v57 = vld [vmem:[%s3451_s26 + $0x108] sm:$0xff]  ;;  %v3565_v58 = vld [vmem:[%s3451_s26 + $0x110] sm:$0xff]  ;;  %v3578_v0 = vld [vmem:[%s3451_s26 + $0x60] sm:$0xff] }
  0x1a   : > { %4873 = vst [vmem:[#allocation5_spill] sm:$0xff] %v3536_v45  ;;  %3066 = vmatmul.mubr.msk.bf16.vlgmr.msra.gmra.mxu0 %vm457_vm1, %v3536_v45  ;;  %v3569_v59 = vpack.c.bf16 %v369_v53, %v367_v52  ;;  %v332_v60 = vsel %vm319_vm0, %v330_v42, %v331_v46  ;;  %v334_v61 = vsel %vm319_vm0, %v331_v46, %v333_v47  ;;  %v335_v62 = vrot.slane %v3532_v44, 1  ;;  %v3575_v63 = vld [vmem:[%s3451_s26 + $0x118] sm:$0x3]  ;;  %v3581_v6 = vld [vmem:[%s3451_s26 + $0x68] sm:$0xff]  ;;  %v3593_v15 = vld [vmem:[%s3451_s26 + $0x120] sm:$0xff] }
  0x1b   : > { %4875 = vst [vmem:[#allocation7_spill] sm:$0xff] %v3575_v63  ;;  %3132 = vmatpush3.bf16.msra.mxu0 %v3443_v2  ;;  %v3584_v7 = vpack.c.bf16 %v334_v61, %v332_v60  ;;  %v372_v8 = vsel %vm319_vm0, %v370_v48, %v371_v54  ;;  %v374_v12 = vsel %vm319_vm0, %v371_v54, %v373_v55  ;;  %v336_v13 = vrot.slane %v3542_v49, 1  ;;  %v3590_v14 = vld [vmem:[%s3451_s26 + $0x70] sm:$0x3]  ;;  %v3603_v22 = vld [vmem:[%s3451_s26 + $0x128] sm:$0xff]  ;;  %v3617_v39 = vld [vmem:[%s3451_s26 + $0x78] sm:$0xff] }
  0x1c   : > { %4874 = vst [vmem:[#allocation6_spill] sm:$0xff] %v3569_v59  ;;  %3082 = vmatmul.mubr.msk.bf16.vlgmr.msra.gmra.mxu1 %vm457_vm1, %v3569_v59  ;;  %v3597_v16 = vpack.c.bf16 %v374_v12, %v372_v8  ;;  %v338_v2 = vrot.slane %v3559_v56, 1  ;;  %v375_v20 = vrot.slane %v3562_v57, 1  ;;  %v376_v21 = vrot.slane %v3565_v58, 1  ;;  %3199 = vmatprep.subr.bf16.mxu0 %v3552_v51  ;;  %v3614_v36 = vld [vmem:[%s3451_s26 + $0x130] sm:$0x3] }
  0x1d   : > { %4876 = vst [vmem:[#allocation8_spill] sm:$0xff] %v3584_v7  ;;  %3098 = vmatpush3.bf16.msra.mxu1 %v3438_v1  ;;  %3069 = vmatprep.mubr.msk.bf16.mxu0 %vm457_vm1, %v3584_v7  ;;  %v337_v23 = vsel %vm319_vm0, %v335_v62, %v336_v13  ;;  %v378_v28 = vrot.slane %v3575_v63, 1  ;;  %v340_v29 = vrot.slane %v3578_v0, 1  ;;  %v341_v35 = vrot.slane %v3581_v6, 1  ;;  %4878 = vst [vmem:[#allocation10_spill] sm:$0xff] %v3614_v36  ;;  %v3626_v46 = vld [vmem:[%s3451_s26 + $0x80] sm:$0xff] }
  0x1e   : > { %4877 = vst [vmem:[#allocation9_spill] sm:$0xff] %v3597_v16  ;;  %3085 = vmatprep.mubr.msk.bf16.mxu1 %vm457_vm1, %v3597_v16  ;;  %v339_v1 = vsel %vm319_vm0, %v336_v13, %v338_v2  ;;  %v377_v40 = vsel %vm319_vm0, %v375_v20, %v376_v21  ;;  %v343_v41 = vrot.slane %v3590_v14, 1  ;;  %v380_v42 = vrot.slane %v3593_v15, 1  ;;  %v3629_v47 = vld [vmem:[%s3451_s26 + $0x88] sm:$0x3]  ;;  %3165 = vmatprep.subr.bf16.mxu1 %v3547_v50  ;;  %v3638_v55 = vld [vmem:[%s3451_s26 + $0x138] sm:$0xff] }
  0x1f   : > { %v3632_v48 = vpack.c.bf16 %v339_v1, %v337_v23  ;;  %v379_v52 = vsel %vm319_vm0, %v376_v21, %v378_v28  ;;  %v342_v53 = vsel %vm319_vm0, %v340_v29, %v341_v35  ;;  %v381_v54 = vrot.slane %v3603_v22, 1  ;;  %v3641_v60 = vld [vmem:[%s3451_s26 + $0x140] sm:$0xff]  ;;  %v3644_v61 = vld [vmem:[%s3451_s26 + $0x148] sm:$0x3]  ;;  %v3652_v2 = vld [vmem:[%s3451_s26 + $0x90] sm:$0xff] }
  0x20   : > { %4880 = vst [vmem:[#allocation12_spill] sm:$0xff] %v3644_v61  ;;  %v3646_v62 = vpack.c.bf16 %v379_v52, %v377_v40  ;;  %v344_v8 = vsel %vm319_vm0, %v341_v35, %v343_v41  ;;  %v383_v12 = vrot.slane %v3614_v36, 1  ;;  %v345_v13 = vrot.slane %v3617_v39, 1  ;;  %v3655_v20 = vld [vmem:[%s3451_s26 + $0x98] sm:$0xff]  ;;  %v3658_v21 = vld [vmem:[%s3451_s26 + $0x150] sm:$0xff]  ;;  %v3712_v45 = vld [vmem:[%s3451_s26 + $0x168] sm:$0xff] }
  0x21   : > { %4879 = vst [vmem:[#allocation11_spill] sm:$0xff] %v3632_v48  ;;  %v3660_v23 = vpack.c.bf16 %v344_v8, %v342_v53  ;;  %v382_v28 = vsel %vm319_vm0, %v380_v42, %v381_v54  ;;  %v346_v29 = vrot.slane %v3626_v46, 1  ;;  %v348_v35 = vrot.slane %v3629_v47, 1  ;;  %v3666_v1 = vld [vmem:[%s3451_s26 + $0xa0] sm:$0x3]  ;;  %v3678_v8 = vld [vmem:[%s3451_s26 + $0x158] sm:$0xff] }
  0x22   : > { %4881 = vst [vmem:[#allocation13_spill] sm:$0xff] %v3646_v62  ;;  %v3669_v40 = vld [vmem:[%s3451_s26 + $0x160] sm:$0x3]  ;;  %3070 = vmatmul.mubr.msk.bf16.gmra.mxu0 %vm457_vm1, %v3632_v48  ;;  %v384_v41 = vsel %vm319_vm0, %v381_v54, %v383_v12  ;;  %v385_v52 = vrot.slane %v3638_v55, 1  ;;  %v386_v42 = vrot.slane %v3641_v60, 1  ;;  %v388_v53 = vrot.slane %v3644_v61, 1 }
  0x23   : > { %4882 = vst [vmem:[#allocation14_spill] sm:$0xff] %v3660_v23  ;;  %4883 = vst [vmem:[#allocation15_spill] sm:$0xff] %v3669_v40  ;;  %3073 = vmatprep.mubr.msk.bf16.mxu0 %vm457_vm1, %v3660_v23  ;;  %v3682_v27 = vpack.c.bf16 %v384_v41, %v382_v28  ;;  %v347_v33 = vsel %vm319_vm0, %v345_v13, %v346_v29  ;;  %v349_v16 = vsel %vm319_vm0, %v346_v29, %v348_v35  ;;  %v3688_v54 = vld [vmem:[%s3451_s26 + $0xa8] sm:$0xff]  ;;  %v3695_v28 = vld [vmem:[%s3451_s26 + $0xb0] sm:$0xff] }
  0x24   : > { %v350_v59 = vrot.slane %v3652_v2, 1  ;;  %3086 = vmatmul.mubr.msk.bf16.gmra.mxu1 %vm457_vm1, %v3646_v62  ;;  %v387_v12 = vsel %vm319_vm0, %v385_v52, %v386_v42  ;;  %v351_v34 = vrot.slane %v3655_v20, 1  ;;  %v3698_v41 = vld [vmem:[%s3451_s26 + $0xb8] sm:$0x3]  ;;  %v389_v13 = vsel %vm319_vm0, %v386_v42, %v388_v53  ;;  %v3715_v61 = vld [vmem:[%s3451_s26 + $0x170] sm:$0xff] }
  0x25   : > { %4884 = vst [vmem:[#allocation16_spill] sm:$0xff] %v3682_v27  ;;  %3089 = vmatprep.mubr.msk.bf16.mxu1 %vm457_vm1, %v3682_v27  ;;  %v353_v29 = vrot.slane %v3666_v1, 1  ;;  %v390_v35 = vrot.slane %v3658_v21, 1  ;;  %v391_v62 = vrot.slane %v3678_v8, 1  ;;  %v3706_v23 = vpack.c.bf16 %v349_v16, %v347_v33  ;;  %v3718_v27 = vld [vmem:[%s3451_s26 + $0x178] sm:$0x3] }
  0x26   : > { %v352_v52 = vsel %vm319_vm0, %v350_v59, %v351_v34  ;;  %v393_v48 = vrot.slane %v3669_v40, 1  ;;  %v355_v7 = vrot.slane %v3688_v54, 1  ;;  %v356_v36 = vrot.slane %v3695_v28, 1 }
  0x27   : > { %v354_v42 = vsel %vm319_vm0, %v351_v34, %v353_v29  ;;  %v392_v53 = vsel %vm319_vm0, %v390_v35, %v391_v62  ;;  %v358_v33 = vrot.slane %v3698_v41, 1  ;;  %v886_v59 = vrot.slane %v3460_v5, 2 }
  0x28   : > { %v3725_v16 = vpack.c.bf16 %v389_v13, %v387_v12  ;;  %v3727_v40 = vpack.c.bf16 %v354_v42, %v352_v52  ;;  %v394_v63 = vsel %vm319_vm0, %v391_v62, %v393_v48  ;;  %v395_v26 = vrot.slane %v3712_v45, 1 }
  0x29   : > { %v3730_v43 = vpack.c.bf16 %v394_v63, %v392_v53  ;;  %v396_v34 = vrot.slane %v3715_v61, 1  ;;  %v398_v29 = vrot.slane %v3718_v27, 1  ;;  %v357_v5 = vsel %vm319_vm0, %v355_v7, %v356_v36 }
  0x2a   : > { %3074 = vmatmul.mubr.msk.bf16.gmra.mxu0 %vm457_vm1, %v3706_v23  ;;  %v359_v12 = vsel %vm319_vm0, %v356_v36, %v358_v33  ;;  %v4886_v63 = vrot.slane %v3457_v4, 2  ;;  %v4887_v48 = vrot.slane %v3454_v3, 2  ;;  %v888_v42 = vrot.slane %v3480_v17, 2 }
  0x2b   : > { %4885 = vst [vmem:[#allocation17_spill] sm:$0xff] %v3730_v43  ;;  %3077 = vmatprep.mubr.msk.bf16.mxu0 %vm457_vm1, %v3727_v40  ;;  %v397_v7 = vsel %vm319_vm0, %v395_v26, %v396_v34  ;;  %v399_v36 = vsel %vm319_vm0, %v396_v34, %v398_v29  ;;  %v3755_v52 = vpack.c.bf16 %v359_v12, %v357_v5  ;;  %v889_v53 = vrot.slane %v3483_v18, 2 }
  0x2c   : > { %3090 = vmatmul.mubr.msk.bf16.gmra.mxu1 %vm457_vm1, %v3725_v16  ;;  %v885_v62 = vsel %vm882_vm2, %v4887_v48, %v4886_v63  ;;  %v4888_v13 = vmov %v4886_v63  ;;  %v891_v33 = vrot.slane %v3486_v19, 2  ;;  %v3760_v48 = vpack.c.bf16 %v399_v36, %v397_v7 }
  0x2d   : > { %v887_v35 = vsel %vm882_vm2, %v4888_v13, %v886_v59  ;;  %3093 = vmatprep.mubr.msk.bf16.mxu1 %vm457_vm1, %v3730_v43  ;;  %v893_v59 = vrot.slane %v3504_v30, 2  ;;  %v894_v13 = vrot.slane %v3507_v31, 2  ;;  %v896_v43 = vrot.slane %v3519_v37, 2 }
  0x2e   : > { %v995_v63 = vpack.c.bf16 %v887_v35, %v885_v62  ;;  %4889 = vst [vmem:[#allocation18_spill] sm:$0xff] %v3760_v48  ;;  %v253_v26 = vpack.c.bf16 %v3457_v4, %v3454_v3  ;;  %v890_v34 = vsel %vm882_vm2, %v888_v42, %v889_v53  ;;  %v892_v19 = vsel %vm882_vm2, %v889_v53, %v891_v33  ;;  %v3806_v53 = vld [vmem:[%s4839_s1 + $0x30] sm:$0xff]  }
  0x2f   : > { %v895_v29 = vsel %vm882_vm2, %v893_v59, %v894_v13  ;;  %v897_v5 = vsel %vm882_vm2, %v894_v13, %v896_v43  ;;  %v3779_v3 = vpack.c.bf16 %v3483_v18, %v3480_v17  ;;  %v3781_v4 = vpack.c.bf16 %v892_v19, %v890_v34 }
  0x30   : > { %v898_v37 = vrot.slane %v3532_v44, 2  ;;  %v3786_v12 = vpack.c.bf16 %v3469_v10, %v3466_v9  ;;  %v3788_v62 = vpack.c.bf16 %v897_v5, %v895_v29  ;;  %v899_v35 = vrot.slane %v3542_v49, 2 }
  0x31   : > { %v901_v43 = vrot.slane %v3559_v56, 2  ;;  %v3794_v7 = vpack.c.bf16 %v3495_v25, %v3492_v24  ;;  %v903_v17 = vrot.slane %v3578_v0, 2  ;;  %v904_v18 = vrot.slane %v3581_v6, 2 }
  0x32   : > { %3078 = vmatmul.mubr.msk.bf16.gmra.mxu0 %vm457_vm1, %v3755_v52  ;;  %v906_v36 = vrot.slane %v3590_v14, 2  ;;  %v3801_v42 = vpack.c.bf16 %v3522_v38, %v3510_v32  ;;  %v3810_v56 = vpack.c.bf16 %v3507_v31, %v3504_v30  ;;  %v3817_v14 = vld [vmem:[%s4839_s1 + $0x28] sm:$0xff]   ;;  %v900_v33 = vsel %vm882_vm2, %v898_v37, %v899_v35 }
  0x33   : > { %3133 = vmatprep.mubr.msk.bf16.mxu0 %vm457_vm1, %v995_v63  ;;  %v902_v63 = vsel %vm882_vm2, %v899_v35, %v901_v43  ;;  %v3826_v30 = vpack.c.bf16 %v3565_v58, %v3562_v57  ;;  %v905_v31 = vsel %vm882_vm2, %v903_v17, %v904_v18  ;;  %v3842_v13 = vpack.c.bf16 %v3542_v49, %v3532_v44 }
  0x34   : > { %3094 = vmatmul.mubr.msk.bf16.gmra.mxu1 %vm457_vm1, %v3760_v48  ;;  %v907_v59 = vsel %vm882_vm2, %v904_v18, %v906_v36  ;;  %v3848_v34 = vpack.c.bf16 %v3641_v60, %v3638_v55  ;;  %v908_v29 = vrot.slane %v3617_v39, 2  ;;  %v911_v5 = vrot.slane %v3629_v47, 2 }
  0x35   : > { %3099 = vmatprep.mubr.msk.bf16.mxu1 %vm457_vm1, %v253_v26  ;;  %v3844_v26 = vpack.c.bf16 %v902_v63, %v900_v33  ;;  %v3851_v19 = vpack.c.bf16 %v907_v59, %v905_v31  ;;  %v913_v37 = vrot.slane %v3652_v2, 2  ;;  %v914_v44 = vrot.slane %v3655_v20, 2 }
  0x36   : > { %v916_v49 = vrot.slane %v3666_v1, 2  ;;  %v3861_v35 = vpack.c.bf16 %v3678_v8, %v3658_v21  ;;  %v3865_v43 = vpack.c.bf16 %v3581_v6, %v3578_v0  ;;  %v3869_v17 = vpack.c.bf16 %v3715_v61, %v3712_v45 }
  0x37   : > { %v915_v0 = vsel %vm882_vm2, %v913_v37, %v914_v44  ;;  %v918_v33 = vrot.slane %v3688_v54, 2  ;;  %v919_v63 = vrot.slane %v3695_v28, 2  ;;  %v921_v31 = vrot.slane %v3698_v41, 2 }
  0x38   : > { %v917_v6 = vsel %vm882_vm2, %v914_v44, %v916_v49  ;;  %v926_v59 = vrot.slane %v3472_v11, 2  ;;  %v3899_v37 = vpack.c.bf16 %v3655_v20, %v3652_v2  ;;  %v928_v2 = vrot.slane %v3492_v24, 2  ;;  %v4890_v44 = vld [vmem:[#allocation2_spill] sm:$0xff] }
  0x39   : > { %v3885_v36 = vpack.c.bf16 %v917_v6, %v915_v0  ;;  %v920_v11 = vsel %vm882_vm2, %v918_v33, %v919_v63  ;;  %v922_v41 = vsel %vm882_vm2, %v919_v63, %v921_v31  ;;  %v929_v20 = vrot.slane %v3495_v25, 2  ;;  %v4891_v6 = vld [vmem:[#allocation4_spill] sm:$0xff] }
  0x3a   : > { %3134 = vmatmul.mubr.msk.bf16.vlgmr.msra.gmra.mxu0 %vm457_vm1, %v3781_v4  ;;  %v931_v49 = vrot.slane %v4890_v44, 2  ;;  %v934_v0 = vrot.slane %v3522_v38, 2  ;;  %v936_v33 = vrot.slane %v4891_v6, 2  ;;  %v938_v63 = vrot.slane %v3562_v57, 2 }
  0x3b   : > { %3200 = vmatpush3.bf16.msra.mxu0 %v3552_v51  ;;  %3137 = vmatprep.mubr.msk.bf16.mxu0 %vm457_vm1, %v3788_v62  ;;  %v3834_v51 = vpack.c.bf16 %v3603_v22, %v3593_v15  ;;  %v930_v24 = vsel %vm882_vm2, %v928_v2, %v929_v20  ;;  %v939_v31 = vrot.slane %v3565_v58, 2  ;;  %v949_v44 = vrot.slane %v3641_v60, 2 }
  0x3c   : > { %3100 = vmatmul.mubr.msk.bf16.vlgmr.msra.gmra.mxu1 %vm457_vm1, %v3779_v3  ;;  %3267 = vmatprep.subr.bf16.mxu0 %v3806_v53  ;;  %v932_v25 = vsel %vm882_vm2, %v929_v20, %v931_v49  ;;  %v948_v20 = vrot.slane %v3638_v55, 2  ;;  %v4894_v49 = vld [vmem:[#allocation12_spill] sm:$0xff]  ;;  %v954_v6 = vrot.slane %v3678_v8, 2 }
  0x3d   : > { %3166 = vmatpush3.bf16.msra.mxu1 %v3547_v50  ;;  %3103 = vmatprep.mubr.msk.bf16.mxu1 %vm457_vm1, %v3810_v56  ;;  %v909_v50 = vrot.slane %v3626_v46, 2  ;;  %v3939_v38 = vpack.c.bf16 %v932_v25, %v930_v24 }
  0x3e   : > { %3233 = vmatprep.subr.bf16.mxu1 %v3817_v14  ;;  %v950_v25 = vsel %vm882_vm2, %v948_v20, %v949_v44  ;;  %v3388_v20 = vld [vmem:[%s4839_s1 + $0x40] sm:$0xff]  }
  0x3f   : > { %v910_v47 = vsel %vm882_vm2, %v908_v29, %v909_v50  ;;  %v912_v1 = vsel %vm882_vm2, %v909_v50, %v911_v5  ;;  %v3893_v29 = vpack.c.bf16 %v3626_v46, %v3617_v39  ;;  %v923_v50 = vrot.slane %v3466_v9, 2 }
  0x40   : > { %v3883_v18 = vpack.c.bf16 %v912_v1, %v910_v47  ;;  %v924_v5 = vrot.slane %v3469_v10, 2  ;;  %v3913_v39 = vpack.c.bf16 %v922_v41, %v920_v11  ;;  %v3922_v47 = vpack.c.bf16 %v3695_v28, %v3688_v54  ;;  %v4893_v41 = vld [vmem:[#allocation10_spill] sm:$0xff] }
  0x41   : > { %v933_v1 = vrot.slane %v3510_v32, 2  ;;  %v937_v32 = vsel %vm882_vm2, %v934_v0, %v936_v33  ;;  %v944_v11 = vrot.slane %v3603_v22, 2  ;;  %v4895_v33 = vld [vmem:[#allocation15_spill] sm:$0xff] }
  0x42   : > { %3138 = vmatmul.mubr.msk.bf16.gmra.mxu0 %vm457_vm1, %v3844_v26  ;;  %v925_v9 = vsel %vm882_vm2, %v923_v50, %v924_v5  ;;  %v927_v10 = vsel %vm882_vm2, %v924_v5, %v926_v59  ;;  %v4892_v59 = vld [vmem:[#allocation7_spill] sm:$0xff]  ;;  %v943_v5 = vrot.slane %v3593_v15, 2  ;;  %v956_v24 = vrot.slane %v4895_v33, 2  ;;  %v4904_v33 = vld [vmem:[#allocation16_spill] sm:$0xff] }
  0x43   : > { %3141 = vmatprep.mubr.msk.bf16.mxu0 %vm457_vm1, %v3851_v19  ;;  %v3915_v46 = vpack.c.bf16 %v927_v10, %v925_v9  ;;  %v935_v54 = vsel %vm882_vm2, %v933_v1, %v934_v0  ;;  %v941_v50 = vrot.slane %v4892_v59, 2  ;;  %v946_v9 = vrot.slane %v4893_v41, 2  ;;  %v249_v41 = vld [vmem:[%s3451_s26 + $0x190] sm:$0x3] }
  0x44   : > { %3104 = vmatmul.mubr.msk.bf16.gmra.mxu1 %vm457_vm1, %v3842_v13  ;;  %v3941_v28 = vpack.c.bf16 %v937_v32, %v935_v54  ;;  %v940_v10 = vsel %vm882_vm2, %v938_v63, %v939_v31  ;;  %v945_v58 = vsel %vm882_vm2, %v943_v5, %v944_v11  ;;  %v951_v1 = vrot.slane %v4894_v49, 2  ;;  %v247_v5 = vld [vmem:[%s3451_s26 + $0x180] sm:$0xff]  ;;  %v3387_v49 = vld [vmem:[%s4839_s1 + $0x38] sm:$0xff]  }
  0x45   : > { %3107 = vmatprep.mubr.msk.bf16.mxu1 %vm457_vm1, %v3865_v43  ;;  %v942_v57 = vsel %vm882_vm2, %v939_v31, %v941_v50  ;;  %v947_v15 = vsel %vm882_vm2, %v944_v11, %v946_v9  ;;  %v953_v0 = vrot.slane %v3658_v21, 2  ;;  %v957_v21 = vsel %vm882_vm2, %v954_v6, %v956_v24  ;;  %v248_v11 = vld [vmem:[%s3451_s26 + $0x188] sm:$0xff] }
  0x46   : > { %v3961_v22 = vpack.c.bf16 %v942_v57, %v940_v10  ;;  %v3963_v2 = vpack.c.bf16 %v947_v15, %v945_v58  ;;  %v952_v55 = vsel %vm882_vm2, %v949_v44, %v951_v1  ;;  %v958_v32 = vrot.slane %v3712_v45, 2  ;;  %v4896_v15 = vld [vmem:[#allocation5_spill] sm:$0xff]  ;;  %v4897_v44 = vld [vmem:[#allocation8_spill] sm:$0xff]  ;;  %v4898_v1 = vld [vmem:[#allocation11_spill] sm:$0xff] }
  0x47   : > { %v955_v60 = vsel %vm882_vm2, %v953_v0, %v954_v6  ;;  %v3983_v8 = vpack.c.bf16 %v952_v55, %v950_v25  ;;  %v959_v63 = vrot.slane %v3715_v61, 2  ;;  %v961_v31 = vrot.slane %v3718_v27, 2  ;;  %v4902_v0 = vld [vmem:[#allocation9_spill] sm:$0xff] }
  0x48   : > { %v3985_v54 = vpack.c.bf16 %v957_v21, %v955_v60  ;;  %v1683_v45 = vrot.slane %v247_v5, 2  ;;  %v1684_v27 = vrot.slane %v248_v11, 2  ;;  %v1686_v9 = vrot.slane %v249_v41, 2  ;;  %v4903_v6 = vld [vmem:[#allocation13_spill] sm:$0xff] }
  0x49   : > { %v960_v59 = vsel %vm882_vm2, %v958_v32, %v959_v63  ;;  %v962_v50 = vsel %vm882_vm2, %v959_v63, %v961_v31  ;;  %v1470_v24 = vrot.slane %v247_v5, 1  ;;  %v1471_v25 = vrot.slane %v248_v11, 1  ;;  %v4905_v60 = vld [vmem:[#allocation17_spill] sm:$0xff] }
  0x4a   : > { %3142 = vmatmul.mubr.msk.bf16.gmra.mxu0 %vm457_vm1, %v3883_v18  ;;  %v4002_v61 = vpack.c.bf16 %v962_v50, %v960_v59  ;;  %v1685_v10 = vsel %vm882_vm2, %v1683_v45, %v1684_v27  ;;  %v1687_v57 = vsel %vm882_vm2, %v1684_v27, %v1686_v9  ;;  %v1473_v55 = vrot.slane %v249_v41, 1  ;;  %v4173_v45 = vld [vmem:[%s3451_s26 + $0x1a0] sm:$0xff] }
  0x4b   : > { %3145 = vmatprep.mubr.msk.bf16.mxu0 %vm457_vm1, %v3885_v36  ;;  %v4009_v58 = vpack.c.bf16 %v1687_v57, %v1685_v10  ;;  %v1472_v21 = vsel %vm319_vm0, %v1470_v24, %v1471_v25  ;;  %v1261_v31 = vpack.c.bf16 %v248_v11, %v247_v5  ;;  %v4170_v11 = vld [vmem:[%s3451_s26 + $0x198] sm:$0xff] }
  0x4c   : > { %3108 = vmatmul.mubr.msk.bf16.gmra.mxu1 %vm457_vm1, %v3893_v29  ;;  %v1474_v32 = vsel %vm319_vm0, %v1471_v25, %v1473_v55 }
  0x4d   : > { %3111 = vmatprep.mubr.msk.bf16.mxu1 %vm457_vm1, %v3899_v37  ;;  %v4083_v63 = vpack.c.bf16 %v1474_v32, %v1472_v21 }
  0x4f   : > { %4906 = vst [vmem:[#allocation2_spill] sm:$0xff] %v4083_v63 }
  0x52   : > { %3146 = vmatmul.mubr.msk.bf16.gmra.mxu0 %vm457_vm1, %v3913_v39 }
  0x53   : > { %3149 = vmatprep.mubr.msk.bf16.mxu0 %vm457_vm1, %v3915_v46 }
  0x54   : > { %3112 = vmatmul.mubr.msk.bf16.gmra.mxu1 %vm457_vm1, %v3922_v47 }
  0x55   : > { %3115 = vmatprep.mubr.msk.bf16.mxu1 %vm457_vm1, %v3786_v12 }
  0x5a   : > { %3150 = vmatmul.mubr.msk.bf16.gmra.mxu0 %vm457_vm1, %v3939_v38 }
  0x5b   : > { %3153 = vmatprep.mubr.msk.bf16.mxu0 %vm457_vm1, %v3941_v28 }
  0x5c   : > { %3116 = vmatmul.mubr.msk.bf16.gmra.mxu1 %vm457_vm1, %v3794_v7 }
  0x5d   : > { %3119 = vmatprep.mubr.msk.bf16.mxu1 %vm457_vm1, %v3801_v42 }
  0x62   : > { %3154 = vmatmul.mubr.msk.bf16.gmra.mxu0 %vm457_vm1, %v3961_v22 }
  0x63   : > { %3157 = vmatprep.mubr.msk.bf16.mxu0 %vm457_vm1, %v3963_v2 }
  0x64   : > { %3120 = vmatmul.mubr.msk.bf16.gmra.mxu1 %vm457_vm1, %v3826_v30 }
  0x65   : > { %3123 = vmatprep.mubr.msk.bf16.mxu1 %vm457_vm1, %v3834_v51 }
  0x6a   : > { %3158 = vmatmul.mubr.msk.bf16.gmra.mxu0 %vm457_vm1, %v3983_v8 }
  0x6b   : > { %3161 = vmatprep.mubr.msk.bf16.mxu0 %vm457_vm1, %v3985_v54 }
  0x6c   : > { %3124 = vmatmul.mubr.msk.bf16.gmra.mxu1 %vm457_vm1, %v3848_v34 }
  0x6d   : > { %3127 = vmatprep.mubr.msk.bf16.mxu1 %vm457_vm1, %v3861_v35 }
  0x72   : > { %3162 = vmatmul.mubr.msk.bf16.gmra.mxu0 %vm457_vm1, %v4002_v61 }
  0x73   : > { %3201 = vmatprep.mubr.msk.bf16.mxu0 %vm457_vm1, %v4896_v15 }
  0x74   : > { %3128 = vmatmul.mubr.msk.bf16.gmra.mxu1 %vm457_vm1, %v3869_v17 }
  0x75   : > { %3167 = vmatprep.mubr.msk.bf16.mxu1 %vm457_vm1, %v3779_v3  ;;  %v4899_v3 = vld [vmem:[#allocation14_spill] sm:$0xff] }
  0x7a   : > { %3202 = vmatmul.mubr.msk.bf16.vlgmr.msra.gmra.mxu0 %vm457_vm1, %v4897_v44 }
  0x7b   : > { %3268 = vmatpush3.bf16.msra.mxu0 %v3806_v53  ;;  %3205 = vmatprep.mubr.msk.bf16.mxu0 %vm457_vm1, %v4898_v1  ;;  %v4900_v53 = vld [vmem:[#allocation3_spill] sm:$0xff] }
  0x7c   : > { %3168 = vmatmul.mubr.msk.bf16.vlgmr.msra.gmra.mxu1 %vm457_vm1, %v3810_v56  ;;  %3335 = vmatprep.subr.bf16.mxu0 %v3388_v20 }
  0x7d   : > { %3234 = vmatpush3.bf16.msra.mxu1 %v3817_v14  ;;  %3171 = vmatprep.mubr.msk.bf16.mxu1 %vm457_vm1, %v3842_v13  ;;  %v4901_v14 = vld [vmem:[#allocation6_spill] sm:$0xff] }
  0x7e   : > { %3301 = vmatprep.subr.bf16.mxu1 %v3387_v49 }
  0x82   : > { %3206 = vmatmul.mubr.msk.bf16.gmra.mxu0 %vm457_vm1, %v4899_v3 }
  0x83   : > { %3209 = vmatprep.mubr.msk.bf16.mxu0 %vm457_vm1, %v3706_v23 }
  0x84   : > { %3172 = vmatmul.mubr.msk.bf16.gmra.mxu1 %vm457_vm1, %v3865_v43 }
  0x85   : > { %3175 = vmatprep.mubr.msk.bf16.mxu1 %vm457_vm1, %v3893_v29 }
  0x8a   : > { %3210 = vmatmul.mubr.msk.bf16.gmra.mxu0 %vm457_vm1, %v3727_v40 }
  0x8b   : > { %3213 = vmatprep.mubr.msk.bf16.mxu0 %vm457_vm1, %v3755_v52 }
  0x8c   : > { %3176 = vmatmul.mubr.msk.bf16.gmra.mxu1 %vm457_vm1, %v3899_v37 }
  0x8d   : > { %3179 = vmatprep.mubr.msk.bf16.mxu1 %vm457_vm1, %v3922_v47 }
  0x92   : > { %3214 = vmatmul.mubr.msk.bf16.gmra.mxu0 %vm457_vm1, %v4900_v53 }
  0x93   : > { %3217 = vmatprep.mubr.msk.bf16.mxu0 %vm457_vm1, %v4901_v14 }
  0x94   : > { %3180 = vmatmul.mubr.msk.bf16.gmra.mxu1 %vm457_vm1, %v3786_v12 }
  0x95   : > { %3183 = vmatprep.mubr.msk.bf16.mxu1 %vm457_vm1, %v3794_v7 }
  0x9a   : > { %3218 = vmatmul.mubr.msk.bf16.gmra.mxu0 %vm457_vm1, %v4902_v0 }
  0x9b   : > { %3221 = vmatprep.mubr.msk.bf16.mxu0 %vm457_vm1, %v4903_v6 }
  0x9c   : > { %3184 = vmatmul.mubr.msk.bf16.gmra.mxu1 %vm457_vm1, %v3801_v42 }
  0x9d   : > { %3187 = vmatprep.mubr.msk.bf16.mxu1 %vm457_vm1, %v3826_v30 }
  0xa2   : > { %3222 = vmatmul.mubr.msk.bf16.gmra.mxu0 %vm457_vm1, %v4904_v33 }
  0xa3   : > { %3225 = vmatprep.mubr.msk.bf16.mxu0 %vm457_vm1, %v3725_v16 }
  0xa4   : > { %3188 = vmatmul.mubr.msk.bf16.gmra.mxu1 %vm457_vm1, %v3834_v51 }
  0xa5   : > { %3191 = vmatprep.mubr.msk.bf16.mxu1 %vm457_vm1, %v3848_v34 }
  0xaa   : > { %3226 = vmatmul.mubr.msk.bf16.gmra.mxu0 %vm457_vm1, %v4905_v60 }
  0xab   : > { %3229 = vmatprep.mubr.msk.bf16.mxu0 %vm457_vm1, %v3760_v48 }
  0xac   : > { %3192 = vmatmul.mubr.msk.bf16.gmra.mxu1 %vm457_vm1, %v3861_v35 }
  0xad   : > { %3195 = vmatprep.mubr.msk.bf16.mxu1 %vm457_vm1, %v3869_v17 }
  0xb2   : > { %3230 = vmatmul.mubr.msk.bf16.gmra.mxu0 %vm457_vm1, %v4083_v63 }
  0xb3   : > { %3269 = vmatprep.mubr.msk.bf16.mxu0 %vm457_vm1, %v3810_v56 }
  0xb4   : > { %3196 = vmatmul.mubr.msk.bf16.gmra.mxu1 %vm457_vm1, %v1261_v31 }
  0xb5   : > { %3235 = vmatprep.mubr.msk.bf16.mxu1 %vm457_vm1, %v3781_v4 }
  0xba   : > { %3270 = vmatmul.mubr.msk.bf16.vlgmr.msra.gmra.mxu0 %vm457_vm1, %v3842_v13 }
  0xbb   : > { %3336 = vmatpush3.bf16.msra.mxu0 %v3388_v20  ;;  %3273 = vmatprep.mubr.msk.bf16.mxu0 %vm457_vm1, %v3865_v43 }
  0xbc   : > { %3236 = vmatmul.mubr.msk.bf16.vlgmr.msra.gmra.mxu1 %vm457_vm1, %v3788_v62 }
  0xbd   : > { %3302 = vmatpush3.bf16.msra.mxu1 %v3387_v49  ;;  %3239 = vmatprep.mubr.msk.bf16.mxu1 %vm457_vm1, %v3844_v26 }
  0xc2   : > { %3274 = vmatmul.mubr.msk.bf16.gmra.mxu0 %vm457_vm1, %v3893_v29 }
  0xc3   : > { %3277 = vmatprep.mubr.msk.bf16.mxu0 %vm457_vm1, %v3899_v37 }
  0xc4   : > { %3240 = vmatmul.mubr.msk.bf16.gmra.mxu1 %vm457_vm1, %v3851_v19 }
  0xc5   : > { %3243 = vmatprep.mubr.msk.bf16.mxu1 %vm457_vm1, %v3883_v18 }
  0xca   : > { %3278 = vmatmul.mubr.msk.bf16.gmra.mxu0 %vm457_vm1, %v3922_v47 }
  0xcb   : > { %3281 = vmatprep.mubr.msk.bf16.mxu0 %vm457_vm1, %v3786_v12 }
  0xcc   : > { %3244 = vmatmul.mubr.msk.bf16.gmra.mxu1 %vm457_vm1, %v3885_v36 }
  0xcd   : > { %3247 = vmatprep.mubr.msk.bf16.mxu1 %vm457_vm1, %v3913_v39 }
  0xd2   : > { %3282 = vmatmul.mubr.msk.bf16.gmra.mxu0 %vm457_vm1, %v3794_v7 }
  0xd3   : > { %3285 = vmatprep.mubr.msk.bf16.mxu0 %vm457_vm1, %v3801_v42 }
  0xd4   : > { %3248 = vmatmul.mubr.msk.bf16.gmra.mxu1 %vm457_vm1, %v3915_v46 }
  0xd5   : > { %3251 = vmatprep.mubr.msk.bf16.mxu1 %vm457_vm1, %v3939_v38 }
  0xda   : > { %v3067_v4 = vpop.f32.mrf.mxu0  ;;  %3286 = vmatmul.mubr.msk.bf16.gmra.mxu0 %vm457_vm1, %v3826_v30 }
  0xdb   : > { %3289 = vmatprep.mubr.msk.bf16.mxu0 %vm457_vm1, %v3834_v51 }
  0xdc   : > { %v4128_v12 = vpop.f32.mrf.mxu1  ;;  %3252 = vmatmul.mubr.msk.bf16.gmra.mxu1 %vm457_vm1, %v3941_v28  ;;  %v540_v7 = vpop.f32.mrf.mxu0 }
  0xdd   : > { %3255 = vmatprep.mubr.msk.bf16.mxu1 %vm457_vm1, %v3961_v22 }
  0xde   : > { %v4134_v42 = vpop.f32.mrf.mxu1  ;;  %v3068_v56 = vpop.f32.mrf.mxu0 }
  0xe0   : > { %v4136_v13 = vpop.f32.mrf.mxu1  ;;  %v543_v43 = vpop.f32.mrf.mxu0 }
  0xe2   : > { %v4138_v29 = vpop.f32.mrf.mxu1  ;;  %v4140_v30 = vpop.f32.mrf.mxu0  ;;  %3290 = vmatmul.mubr.msk.bf16.gmra.mxu0 %vm457_vm1, %v3848_v34 }
  0xe3   : > { %3293 = vmatprep.mubr.msk.bf16.mxu0 %vm457_vm1, %v3861_v35 }
  0xe4   : > { %v4146_v51 = vpop.f32.mrf.mxu1  ;;  %3256 = vmatmul.mubr.msk.bf16.gmra.mxu1 %vm457_vm1, %v3963_v2  ;;  %v4150_v37 = vpop.f32.mrf.mxu0 }
  0xe5   : > { %3259 = vmatprep.mubr.msk.bf16.mxu1 %vm457_vm1, %v3983_v8 }
  0xe6   : > { %v4154_v47 = vpop.f32.mrf.mxu1  ;;  %v4156_v59 = vpop.f32.mrf.mxu0 }
  0xe8   : > { %v4158_v50 = vpop.f32.mrf.mxu1  ;;  %v4160_v34 = vpop.f32.mrf.mxu0 }
  0xea   : > { %v4162_v5 = vpop.f32.mrf.mxu1  ;;  %v4164_v35 = vpop.f32.mrf.mxu0  ;;  %3294 = vmatmul.mubr.msk.bf16.gmra.mxu0 %vm457_vm1, %v3869_v17  ;;  %v1896_v17 = vpack.c.bf16 %v4173_v45, %v4170_v11 }
  0xeb   : > { %3297 = vmatprep.mubr.msk.bf16.mxu0 %vm457_vm1, %v1261_v31 }
  0xec   : > { %v4175_v27 = vpop.f32.mrf.mxu1  ;;  %3260 = vmatmul.mubr.msk.bf16.gmra.mxu1 %vm457_vm1, %v3985_v54  ;;  %v4179_v41 = vpop.f32.mrf.mxu0 }
  0xed   : > { %4907 = vst [vmem:[#allocation4_spill] sm:$0xff] %v4175_v27  ;;  %3263 = vmatprep.mubr.msk.bf16.mxu1 %vm457_vm1, %v4002_v61 }
  0xee   : > { %v4183_v9 = vpop.f32.mrf.mxu1  ;;  %v4185_v10 = vpop.f32.mrf.mxu0 }
  0xef   : > { %4908 = vst [vmem:[#allocation7_spill] sm:$0xff] %v4183_v9 }
  0xf0   : > { %v4189_v57 = vpop.f32.mrf.mxu1  ;;  %v4191_v15 = vpop.f32.mrf.mxu0 }
  0xf1   : > { %4909 = vst [vmem:[#allocation10_spill] sm:$0xff] %v4189_v57 }
  0xf2   : > { %v4193_v20 = vpop.f32.mrf.mxu1  ;;  %v4195_v49 = vpop.f32.mrf.mxu0  ;;  %3298 = vmatmul.mubr.msk.bf16.gmra.mxu0 %vm457_vm1, %v1896_v17 }
  0xf3   : > { %4910 = vst [vmem:[#allocation12_spill] sm:$0xff] %v4193_v20  ;;  %3337 = vmatprep.mubr.msk.bf16.mxu0 %vm457_vm1, %v3788_v62 }
  0xf4   : > { %v4200_v24 = vpop.f32.mrf.mxu1  ;;  %3264 = vmatmul.mubr.msk.bf16.gmra.mxu1 %vm457_vm1, %v4009_v58  ;;  %v4204_v25 = vpop.f32.mrf.mxu0 }
  0xf5   : > { %4911 = vst [vmem:[#allocation15_spill] sm:$0xff] %v4200_v24  ;;  %3303 = vmatprep.mubr.msk.bf16.mxu1 %vm457_vm1, %v4897_v44 }
  0xf6   : > { %v4208_v55 = vpop.f32.mrf.mxu1  ;;  %v4210_v21 = vpop.f32.mrf.mxu0 }
  0xf7   : > { %4912 = vst [vmem:[#allocation5_spill] sm:$0xff] %v4208_v55 }
  0xf8   : > { %v4212_v32 = vpop.f32.mrf.mxu1  ;;  %v4214_v31 = vpop.f32.mrf.mxu0 }
  0xf9   : > { %4913 = vst [vmem:[#allocation8_spill] sm:$0xff] %v4212_v32 }
  0xfa   : > { %v4216_v17 = vpop.f32.mrf.mxu1  ;;  %v3135_v62 = vpop.f32.mrf.mxu0  ;;  %3338 = vmatmul.mubr.msk.bf16.vlgmr.msra.gmra.mxu0 %vm457_vm1, %v3844_v26 }
  0xfb   : > { %4914 = vst [vmem:[#allocation11_spill] sm:$0xff] %v4216_v17  ;;  %3341 = vmatprep.mubr.msk.bf16.mxu0 %vm457_vm1, %v3851_v19 }
  0xfc   : > { %v3101_v24 = vpop.f32.mrf.mxu1  ;;  %3304 = vmatmul.mubr.msk.bf16.vlgmr.msra.gmra.mxu1 %vm457_vm1, %v4898_v1  ;;  %v1102_v44 = vpop.f32.mrf.mxu0 }
  0xfd   : > { %v764_v55 = vadd.f32 %v3101_v24, %v3067_v4  ;;  %3307 = vmatprep.mubr.msk.bf16.mxu1 %vm457_vm1, %v4899_v3 }
  0xfe   : > { %v755_v32 = vpop.f32.mrf.mxu1  ;;  %v3136_v20 = vpop.f32.mrf.mxu0 }
  0xff   : > { %v4226_v57 = vadd.f32 %v3135_v62, %v764_v55  ;;  %v756_v17 = vadd.f32 %v755_v32, %v540_v7 }
 0x100   : > { %v3102_v9 = vpop.f32.mrf.mxu1  ;;  %v1105_v63 = vpop.f32.mrf.mxu0 }
 0x101   : > { %v4228_v26 = vadd.f32 %v1102_v44, %v756_v17  ;;  %v767_v27 = vadd.f32 %v3102_v9, %v3068_v56 }
 0x102   : > { %v758_v19 = vpop.f32.mrf.mxu1  ;;  %v3139_v48 = vpop.f32.mrf.mxu0  ;;  %3342 = vmatmul.mubr.msk.bf16.gmra.mxu0 %vm457_vm1, %v3883_v18 }
 0x103   : > { %v4232_v1 = vadd.f32 %v3136_v20, %v767_v27  ;;  %v759_v4 = vadd.f32 %v758_v19, %v543_v43  ;;  %3345 = vmatprep.mubr.msk.bf16.mxu0 %vm457_vm1, %v3885_v36 }
 0x104   : > { %v3105_v3 = vpop.f32.mrf.mxu1  ;;  %3308 = vmatmul.mubr.msk.bf16.gmra.mxu1 %vm457_vm1, %v3706_v23  ;;  %v1118_v7 = vpop.f32.mrf.mxu0 }
 0x105   : > { %v4238_v24 = vadd.f32 %v1105_v63, %v759_v4  ;;  %v780_v56 = vadd.f32 %v3105_v3, %v4140_v30  ;;  %3311 = vmatprep.mubr.msk.bf16.mxu1 %vm457_vm1, %v3727_v40 }
 0x106   : > { %v771_v9 = vpop.f32.mrf.mxu1  ;;  %v3140_v18 = vpop.f32.mrf.mxu0 }
 0x107   : > { %v4243_v27 = vadd.f32 %v3139_v48, %v780_v56  ;;  %v772_v43 = vadd.f32 %v771_v9, %v4150_v37 }
 0x108   : > { %v3106_v20 = vpop.f32.mrf.mxu1  ;;  %v1121_v36 = vpop.f32.mrf.mxu0 }
 0x109   : > { %v4246_v55 = vadd.f32 %v1118_v7, %v772_v43  ;;  %v783_v23 = vadd.f32 %v3106_v20, %v4156_v59 }
 0x10a   : > { %v774_v32 = vpop.f32.mrf.mxu1  ;;  %v3143_v63 = vpop.f32.mrf.mxu0  ;;  %3346 = vmatmul.mubr.msk.bf16.gmra.mxu0 %vm457_vm1, %v3913_v39 }
 0x10b   : > { %v4251_v30 = vadd.f32 %v3140_v18, %v783_v23  ;;  %v775_v40 = vadd.f32 %v774_v32, %v4160_v34  ;;  %3349 = vmatprep.mubr.msk.bf16.mxu0 %vm457_vm1, %v3915_v46 }
 0x10c   : > { %v3109_v48 = vpop.f32.mrf.mxu1  ;;  %3312 = vmatmul.mubr.msk.bf16.gmra.mxu1 %vm457_vm1, %v3755_v52  ;;  %v1134_v37 = vpop.f32.mrf.mxu0 }
 0x10d   : > { %v4258_v17 = vadd.f32 %v1121_v36, %v775_v40  ;;  %v796_v59 = vadd.f32 %v3109_v48, %v4164_v35  ;;  %3315 = vmatprep.mubr.msk.bf16.mxu1 %vm457_vm1, %v4900_v53 }
 0x10e   : > { %v787_v39 = vpop.f32.mrf.mxu1  ;;  %v3144_v62 = vpop.f32.mrf.mxu0 }
 0x10f   : > { %v4263_v44 = vadd.f32 %v3143_v63, %v796_v59  ;;  %v788_v34 = vadd.f32 %v787_v39, %v4179_v41 }
 0x110   : > { %v3110_v19 = vpop.f32.mrf.mxu1  ;;  %v1137_v46 = vpop.f32.mrf.mxu0 }
 0x111   : > { %v4266_v4 = vadd.f32 %v1134_v37, %v788_v34  ;;  %v799_v52 = vadd.f32 %v3110_v19, %v4185_v10 }
 0x112   : > { %v790_v3 = vpop.f32.mrf.mxu1  ;;  %v3147_v7 = vpop.f32.mrf.mxu0  ;;  %3350 = vmatmul.mubr.msk.bf16.gmra.mxu0 %vm457_vm1, %v3939_v38 }
 0x113   : > { %v4271_v35 = vadd.f32 %v3144_v62, %v799_v52  ;;  %v791_v53 = vadd.f32 %v790_v3, %v4191_v15  ;;  %3353 = vmatprep.mubr.msk.bf16.mxu0 %vm457_vm1, %v3941_v28 }
 0x114   : > { %v3113_v56 = vpop.f32.mrf.mxu1  ;;  %3316 = vmatmul.mubr.msk.bf16.gmra.mxu1 %vm457_vm1, %v4901_v14  ;;  %v1150_v41 = vpop.f32.mrf.mxu0 }
 0x115   : > { %v4278_v9 = vadd.f32 %v1137_v46, %v791_v53  ;;  %v812_v10 = vadd.f32 %v3113_v56, %v4195_v49  ;;  %3319 = vmatprep.mubr.msk.bf16.mxu1 %vm457_vm1, %v4902_v0  ;;  %v252_v46 = vld [vmem:[%s3451_s26 + $0x1a8] sm:$0x3]  ;;  %v2105_v56 = vrot.slane %v4170_v11, 1 }
 0x116   : > { %v803_v38 = vpop.f32.mrf.mxu1  ;;  %v3148_v18 = vpop.f32.mrf.mxu0 }
 0x117   : > { %v4283_v43 = vadd.f32 %v3147_v7, %v812_v10  ;;  %v804_v15 = vadd.f32 %v803_v38, %v4204_v25  ;;  %v2319_v7 = vrot.slane %v4173_v45, 2 }
 0x118   : > { %v3114_v20 = vpop.f32.mrf.mxu1  ;;  %v1153_v28 = vpop.f32.mrf.mxu0 }
 0x119   : > { %v4286_v36 = vadd.f32 %v1150_v41, %v804_v15  ;;  %v815_v14 = vadd.f32 %v3114_v20, %v4210_v21 }
 0x11a   : > { %v806_v23 = vpop.f32.mrf.mxu1  ;;  %v3151_v32 = vpop.f32.mrf.mxu0  ;;  %3354 = vmatmul.mubr.msk.bf16.gmra.mxu0 %vm457_vm1, %v3961_v22 }
 0x11b   : > { %v4291_v49 = vadd.f32 %v3148_v18, %v815_v14  ;;  %v807_v0 = vadd.f32 %v806_v23, %v4214_v31  ;;  %3357 = vmatprep.mubr.msk.bf16.mxu0 %vm457_vm1, %v3963_v2  ;;  %v2108_v18 = vrot.slane %v252_v46, 1  ;;  %v4915_v23 = vld [vmem:[#allocation18_spill] sm:$0xff] }
 0x11c   : > { %v3117_v63 = vpop.f32.mrf.mxu1  ;;  %3320 = vmatmul.mubr.msk.bf16.gmra.mxu1 %vm457_vm1, %v4903_v6  ;;  %v1166_v25 = vpop.f32.mrf.mxu0 }
 0x11d   : > { %v4298_v40 = vadd.f32 %v1153_v28, %v807_v0  ;;  %v828_v21 = vadd.f32 %v3117_v63, %v4128_v12  ;;  %3323 = vmatprep.mubr.msk.bf16.mxu1 %vm457_vm1, %v4904_v33  ;;  %v4916_v0 = vld [vmem:[#allocation4_spill] sm:$0xff]  ;;  %v4917_v63 = vld [vmem:[#allocation2_spill] sm:$0xff] }
 0x11e   : > { %v819_v22 = vpop.f32.mrf.mxu1  ;;  %v3152_v48 = vpop.f32.mrf.mxu0 }
 0x11f   : > { %v4303_v37 = vadd.f32 %v3151_v32, %v828_v21  ;;  %v820_v31 = vadd.f32 %v819_v22, %v4134_v42 }
 0x120   : > { %v3118_v2 = vpop.f32.mrf.mxu1  ;;  %v1169_v59 = vpop.f32.mrf.mxu0 }
 0x121   : > { %v4306_v39 = vadd.f32 %v1166_v25, %v820_v31  ;;  %v831_v6 = vadd.f32 %v3118_v2, %v4136_v13  ;;  %v4918_v31 = vld [vmem:[#allocation7_spill] sm:$0xff] }
 0x122   : > { %v822_v62 = vpop.f32.mrf.mxu1  ;;  %v3155_v34 = vpop.f32.mrf.mxu0  ;;  %3358 = vmatmul.mubr.msk.bf16.gmra.mxu0 %vm457_vm1, %v3983_v8  ;;  %v2318_v8 = vrot.slane %v4170_v11, 2 }
 0x123   : > { %v4311_v12 = vadd.f32 %v3152_v48, %v831_v6  ;;  %v823_v33 = vadd.f32 %v822_v62, %v4138_v29  ;;  %3361 = vmatprep.mubr.msk.bf16.mxu0 %vm457_vm1, %v3985_v54 }
 0x124   : > { %v3121_v19 = vpop.f32.mrf.mxu1  ;;  %3324 = vmatmul.mubr.msk.bf16.gmra.mxu1 %vm457_vm1, %v3725_v16  ;;  %v1182_v42 = vpop.f32.mrf.mxu0  ;;  %v2321_v16 = vrot.slane %v252_v46, 2  ;;  %v2320_v11 = vsel %vm882_vm2, %v2318_v8, %v2319_v7  ;;  %v4920_v8 = vld [vmem:[#allocation12_spill] sm:$0xff] }
 0x125   : > { %v4319_v52 = vadd.f32 %v1169_v59, %v823_v33  ;;  %v844_v13 = vadd.f32 %v3121_v19, %v4146_v51  ;;  %3327 = vmatprep.mubr.msk.bf16.mxu1 %vm457_vm1, %v4905_v60  ;;  %v2106_v51 = vrot.slane %v4173_v45, 1  ;;  %v4919_v33 = vld [vmem:[#allocation10_spill] sm:$0xff] }
 0x126   : > { %v835_v3 = vpop.f32.mrf.mxu1  ;;  %v3156_v29 = vpop.f32.mrf.mxu0  ;;  %v2322_v45 = vsel %vm882_vm2, %v2319_v7, %v2321_v16  ;;  %v4921_v16 = vld [vmem:[#allocation15_spill] sm:$0xff] }
 0x127   : > { %v4326_v54 = vadd.f32 %v3155_v34, %v844_v13  ;;  %v836_v53 = vadd.f32 %v835_v3, %v4154_v47  ;;  %v2325_v22 = vpack.c.bf16 %v2322_v45, %v2320_v11  ;;  %v4923_v11 = vld [vmem:[#allocation8_spill] sm:$0xff] }
 0x128   : > { %v3122_v41 = vpop.f32.mrf.mxu1  ;;  %v1185_v10 = vpop.f32.mrf.mxu0 }
 0x129   : > { %v4331_v38 = vadd.f32 %v1182_v42, %v836_v53  ;;  %v847_v60 = vadd.f32 %v3122_v41, %v4158_v50 }
 0x12a   : > { %v838_v15 = vpop.f32.mrf.mxu1  ;;  %v3159_v20 = vpop.f32.mrf.mxu0  ;;  %3362 = vmatmul.mubr.msk.bf16.gmra.mxu0 %vm457_vm1, %v4002_v61 }
 0x12b   : > { %v4336_v28 = vadd.f32 %v3156_v29, %v847_v60  ;;  %v839_v47 = vadd.f32 %v838_v15, %v4162_v5  ;;  %3365 = vmatprep.mubr.msk.bf16.mxu0 %vm457_vm1, %v4009_v58  ;;  %v2107_v5 = vsel %vm319_vm0, %v2105_v56, %v2106_v51  ;;  %v2109_v58 = vsel %vm319_vm0, %v2106_v51, %v2108_v18  ;;  %v4922_v60 = vld [vmem:[#allocation5_spill] sm:$0xff] }
 0x12c   : > { %v3125_v14 = vpop.f32.mrf.mxu1  ;;  %3328 = vmatmul.mubr.msk.bf16.gmra.mxu1 %vm457_vm1, %v4915_v23  ;;  %v1198_v50 = vpop.f32.mrf.mxu0  ;;  %v2112_v62 = vpack.c.bf16 %v2109_v58, %v2107_v5 }
 0x12d   : > { %v4345_v32 = vadd.f32 %v1185_v10, %v839_v47  ;;  %v860_v61 = vadd.f32 %v3125_v14, %v4916_v0  ;;  %3331 = vmatprep.mubr.msk.bf16.mxu1 %vm457_vm1, %v4917_v63  ;;  %v4924_v0 = vld [vmem:[#allocation11_spill] sm:$0xff] }
 0x12e   : > { %v851_v25 = vpop.f32.mrf.mxu1  ;;  %v3160_v21 = vpop.f32.mrf.mxu0 }
 0x12f   : > { %v4352_v48 = vadd.f32 %v3159_v20, %v860_v61  ;;  %v852_v2 = vadd.f32 %v851_v25, %v4918_v31 }
 0x130   : > { %v3126_v59 = vpop.f32.mrf.mxu1  ;;  %v1201_v6 = vpop.f32.mrf.mxu0 }
 0x131   : > { %v4355_v34 = vadd.f32 %v1198_v50, %v852_v2  ;;  %v863_v19 = vadd.f32 %v3126_v59, %v4919_v33 }
 0x132   : > { %v854_v42 = vpop.f32.mrf.mxu1  ;;  %v3163_v46 = vpop.f32.mrf.mxu0  ;;  %3366 = vmatmul.mubr.msk.bf16.gmra.mxu0 %vm457_vm1, %v2325_v22 }
 0x133   : > { %v4359_v13 = vadd.f32 %v3160_v21, %v863_v19  ;;  %v855_v3 = vadd.f32 %v854_v42, %v4920_v8 }
 0x134   : > { %v3129_v29 = vpop.f32.mrf.mxu1  ;;  %3332 = vmatmul.mubr.msk.bf16.gmra.mxu1 %vm457_vm1, %v2112_v62  ;;  %v1214_v7 = vpop.f32.mrf.mxu0 }
 0x135   : > { %v4363_v53 = vadd.f32 %v1201_v6, %v855_v3  ;;  %v876_v56 = vadd.f32 %v3129_v29, %v4921_v16 }
 0x136   : > { %v867_v41 = vpop.f32.mrf.mxu1  ;;  %v3164_v10 = vpop.f32.mrf.mxu0 }
 0x137   : > { %v4366_v51 = vadd.f32 %v3163_v46, %v876_v56  ;;  %v868_v18 = vadd.f32 %v867_v41, %v4922_v60 }
 0x138   : > { %v3130_v15 = vpop.f32.mrf.mxu1  ;;  %v1217_v20 = vpop.f32.mrf.mxu0 }
 0x139   : > { %v4369_v47 = vadd.f32 %v1214_v7, %v868_v18  ;;  %v879_v45 = vadd.f32 %v3130_v15, %v4923_v11 }
 0x13a   : > { %v870_v14 = vpop.f32.mrf.mxu1  ;;  %v3203_v23 = vpop.f32.mrf.mxu0 }
 0x13b   : > { %v4372_v50 = vadd.f32 %v3164_v10, %v879_v45  ;;  %v871_v61 = vadd.f32 %v870_v14, %v4924_v0 }
 0x13c   : > { %v3169_v63 = vpop.f32.mrf.mxu1  ;;  %v1524_v5 = vpop.f32.mrf.mxu0 }
 0x13d   : > { %v4375_v58 = vadd.f32 %v1217_v20, %v871_v61  ;;  %v1437_v25 = vadd.f32 %v3169_v63, %v4226_v57 }
 0x13e   : > { %v1308_v21 = vpop.f32.mrf.mxu1  ;;  %v3204_v22 = vpop.f32.mrf.mxu0 }
 0x13f   : > { %v4378_v31 = vadd.f32 %v3203_v23, %v1437_v25  ;;  %v1435_v2 = vadd.f32 %v1308_v21, %v4228_v26 }
 0x140   : > { %v3170_v59 = vpop.f32.mrf.mxu1  ;;  %v1527_v6 = vpop.f32.mrf.mxu0 }
 0x141   : > { %v4381_v62 = vadd.f32 %v1524_v5, %v1435_v2  ;;  %v1438_v33 = vadd.f32 %v3170_v59, %v4232_v1 }
 0x142   : > { %v1311_v19 = vpop.f32.mrf.mxu1  ;;  %v3207_v42 = vpop.f32.mrf.mxu0 }
 0x143   : > { %v4384_v46 = vadd.f32 %v3204_v22, %v1438_v33  ;;  %v1436_v8 = vadd.f32 %v1311_v19, %v4238_v24 }
 0x144   : > { %v3173_v3 = vpop.f32.mrf.mxu1  ;;  %v1540_v57 = vpop.f32.mrf.mxu0 }
 0x145   : > { %v4387_v29 = vadd.f32 %v1527_v6, %v1436_v8  ;;  %v1441_v7 = vadd.f32 %v3173_v3, %v4243_v27 }
 0x146   : > { %v1324_v16 = vpop.f32.mrf.mxu1  ;;  %v3208_v26 = vpop.f32.mrf.mxu0 }
 0x147   : > { %v4390_v56 = vadd.f32 %v3207_v42, %v1441_v7  ;;  %v1439_v41 = vadd.f32 %v1324_v16, %v4246_v55 }
 0x148   : > { %v3174_v10 = vpop.f32.mrf.mxu1  ;;  %v1543_v1 = vpop.f32.mrf.mxu0 }
 0x149   : > { %v4393_v60 = vadd.f32 %v1540_v57, %v1439_v41  ;;  %v1442_v18 = vadd.f32 %v3174_v10, %v4251_v30 }
 0x14a   : > { %v1327_v15 = vpop.f32.mrf.mxu1  ;;  %v3211_v24 = vpop.f32.mrf.mxu0 }
 0x14b   : > { %v4396_v20 = vadd.f32 %v3208_v26, %v1442_v18  ;;  %v1440_v11 = vadd.f32 %v1327_v15, %v4258_v17 }
 0x14c   : > { %v3177_v45 = vpop.f32.mrf.mxu1  ;;  %v1556_v27 = vpop.f32.mrf.mxu0 }
 0x14d   : > { %v4399_v14 = vadd.f32 %v1543_v1, %v1440_v11  ;;  %v1445_v23 = vadd.f32 %v3177_v45, %v4263_v44 }
 0x14e   : > { %v1340_v0 = vpop.f32.mrf.mxu1  ;;  %v3212_v55 = vpop.f32.mrf.mxu0 }
 0x14f   : > { %v4402_v61 = vadd.f32 %v3211_v24, %v1445_v23  ;;  %v1443_v63 = vadd.f32 %v1340_v0, %v4266_v4 }
 0x150   : > { %v3178_v5 = vpop.f32.mrf.mxu1  ;;  %v1559_v30 = vpop.f32.mrf.mxu0 }
 0x151   : > { %v4405_v25 = vadd.f32 %v1556_v27, %v1443_v63  ;;  %v1446_v21 = vadd.f32 %v3178_v5, %v4271_v35 }
 0x152   : > { %v1343_v22 = vpop.f32.mrf.mxu1  ;;  %v3215_v17 = vpop.f32.mrf.mxu0 }
 0x153   : > { %v4408_v2 = vadd.f32 %v3212_v55, %v1446_v21  ;;  %v1444_v59 = vadd.f32 %v1343_v22, %v4278_v9 }
 0x154   : > { %v3181_v6 = vpop.f32.mrf.mxu1  ;;  %v1572_v44 = vpop.f32.mrf.mxu0 }
 0x155   : > { %v4411_v33 = vadd.f32 %v1559_v30, %v1444_v59  ;;  %v1449_v19 = vadd.f32 %v3181_v6, %v4283_v43 }
 0x156   : > { %v1356_v42 = vpop.f32.mrf.mxu1  ;;  %v3216_v4 = vpop.f32.mrf.mxu0 }
 0x157   : > { %v4414_v8 = vadd.f32 %v3215_v17, %v1449_v19  ;;  %v1447_v3 = vadd.f32 %v1356_v42, %v4286_v36 }
 0x158   : > { %v3182_v57 = vpop.f32.mrf.mxu1  ;;  %v1575_v35 = vpop.f32.mrf.mxu0 }
 0x159   : > { %v4417_v7 = vadd.f32 %v1572_v44, %v1447_v3  ;;  %v1450_v16 = vadd.f32 %v3182_v57, %v4291_v49 }
 0x15a   : > { %v1359_v26 = vpop.f32.mrf.mxu1  ;;  %v3219_v9 = vpop.f32.mrf.mxu0 }
 0x15b   : > { %v4420_v41 = vadd.f32 %v3216_v4, %v1450_v16  ;;  %v1448_v10 = vadd.f32 %v1359_v26, %v4298_v40 }
 0x15c   : > { %v3185_v1 = vpop.f32.mrf.mxu1  ;;  %v1588_v43 = vpop.f32.mrf.mxu0 }
 0x15d   : > { %v4423_v18 = vadd.f32 %v1575_v35, %v1448_v10  ;;  %v1453_v15 = vadd.f32 %v3185_v1, %v4303_v37 }
 0x15e   : > { %v1372_v24 = vpop.f32.mrf.mxu1  ;;  %v3220_v36 = vpop.f32.mrf.mxu0 }
 0x15f   : > { %v4426_v11 = vadd.f32 %v3219_v9, %v1453_v15  ;;  %v1451_v45 = vadd.f32 %v1372_v24, %v4306_v39 }
 0x160   : > { %v3186_v27 = vpop.f32.mrf.mxu1  ;;  %v1591_v49 = vpop.f32.mrf.mxu0 }
 0x161   : > { %v4429_v23 = vadd.f32 %v1588_v43, %v1451_v45  ;;  %v1454_v0 = vadd.f32 %v3186_v27, %v4311_v12 }
 0x162   : > { %v1375_v55 = vpop.f32.mrf.mxu1  ;;  %v3223_v40 = vpop.f32.mrf.mxu0 }
 0x163   : > { %v4432_v63 = vadd.f32 %v3220_v36, %v1454_v0  ;;  %v1452_v5 = vadd.f32 %v1375_v55, %v4319_v52 }
 0x164   : > { %v3189_v30 = vpop.f32.mrf.mxu1  ;;  %v1604_v37 = vpop.f32.mrf.mxu0 }
 0x165   : > { %4925 = vst [vmem:[#allocation14_spill] sm:$0xff] %v4432_v63  ;;  %v4435_v21 = vadd.f32 %v1591_v49, %v1452_v5  ;;  %v1457_v22 = vadd.f32 %v3189_v30, %v4326_v54 }
 0x166   : > { %v1388_v17 = vpop.f32.mrf.mxu1  ;;  %v3224_v39 = vpop.f32.mrf.mxu0 }
 0x167   : > { %4926 = vst [vmem:[#allocation3_spill] sm:$0xff] %v4435_v21  ;;  %v4438_v59 = vadd.f32 %v3223_v40, %v1457_v22  ;;  %v1455_v6 = vadd.f32 %v1388_v17, %v4331_v38 }
 0x168   : > { %v3190_v44 = vpop.f32.mrf.mxu1  ;;  %v1607_v12 = vpop.f32.mrf.mxu0 }
 0x169   : > { %4927 = vst [vmem:[#allocation6_spill] sm:$0xff] %v4438_v59  ;;  %v4441_v19 = vadd.f32 %v1604_v37, %v1455_v6  ;;  %v1458_v42 = vadd.f32 %v3190_v44, %v4336_v28 }
 0x16a   : > { %v1391_v4 = vpop.f32.mrf.mxu1  ;;  %v3227_v52 = vpop.f32.mrf.mxu0 }
 0x16b   : > { %4928 = vst [vmem:[#allocation9_spill] sm:$0xff] %v4441_v19  ;;  %v4444_v3 = vadd.f32 %v3224_v39, %v1458_v42  ;;  %v1456_v57 = vadd.f32 %v1391_v4, %v4345_v32 }
 0x16c   : > { %v3193_v35 = vpop.f32.mrf.mxu1  ;;  %v1620_v54 = vpop.f32.mrf.mxu0 }
 0x16d   : > { %4929 = vst [vmem:[#allocation13_spill] sm:$0xff] %v4444_v3  ;;  %v4447_v16 = vadd.f32 %v1607_v12, %v1456_v57  ;;  %v1461_v26 = vadd.f32 %v3193_v35, %v4352_v48 }
 0x16e   : > { %v1404_v9 = vpop.f32.mrf.mxu1  ;;  %v3228_v38 = vpop.f32.mrf.mxu0 }
 0x16f   : > { %4930 = vst [vmem:[#allocation16_spill] sm:$0xff] %v4447_v16  ;;  %v4450_v10 = vadd.f32 %v3227_v52, %v1461_v26  ;;  %v1459_v1 = vadd.f32 %v1404_v9, %v4355_v34 }
 0x170   : > { %v3194_v43 = vpop.f32.mrf.mxu1  ;;  %v1623_v28 = vpop.f32.mrf.mxu0 }
 0x171   : > { %4931 = vst [vmem:[#allocation17_spill] sm:$0xff] %v4450_v10  ;;  %v4453_v15 = vadd.f32 %v1620_v54, %v1459_v1  ;;  %v1462_v24 = vadd.f32 %v3194_v43, %v4359_v13 }
 0x172   : > { %v1407_v36 = vpop.f32.mrf.mxu1  ;;  %v3231_v32 = vpop.f32.mrf.mxu0 }
 0x173   : > { %4932 = vst [vmem:[#allocation18_spill] sm:$0xff] %v4453_v15  ;;  %v4456_v45 = vadd.f32 %v3228_v38, %v1462_v24  ;;  %v1460_v27 = vadd.f32 %v1407_v36, %v4363_v53 }
 0x174   : > { %v3197_v49 = vpop.f32.mrf.mxu1  ;;  %v1636_v48 = vpop.f32.mrf.mxu0 }
 0x175   : > { %4933 = vst [vmem:[#allocation4_spill] sm:$0xff] %v4456_v45  ;;  %v4459_v0 = vadd.f32 %v1623_v28, %v1460_v27  ;;  %v1465_v55 = vadd.f32 %v3197_v49, %v4366_v51 }
 0x176   : > { %v1420_v40 = vpop.f32.mrf.mxu1  ;;  %v3232_v34 = vpop.f32.mrf.mxu0 }
 0x177   : > { %4934 = vst [vmem:[#allocation2_spill] sm:$0xff] %v4459_v0  ;;  %v4462_v5 = vadd.f32 %v3231_v32, %v1465_v55  ;;  %v1463_v30 = vadd.f32 %v1420_v40, %v4369_v47 }
 0x178   : > { %v3198_v37 = vpop.f32.mrf.mxu1  ;;  %v1639_v13 = vpop.f32.mrf.mxu0 }
 0x179   : > { %4935 = vst [vmem:[#allocation7_spill] sm:$0xff] %v4462_v5  ;;  %v4465_v22 = vadd.f32 %v1636_v48, %v1463_v30  ;;  %v1466_v17 = vadd.f32 %v3198_v37, %v4372_v50 }
 0x17a   : > { %v1423_v39 = vpop.f32.mrf.mxu1  ;;  %v4468_v53 = vpop.f32.mrf.mxu0 }
 0x17b   : > { %4936 = vst [vmem:[#allocation10_spill] sm:$0xff] %v4465_v22  ;;  %v4470_v6 = vadd.f32 %v3232_v34, %v1466_v17  ;;  %v1464_v44 = vadd.f32 %v1423_v39, %v4375_v58 }
 0x17c   : > { %v3237_v51 = vpop.f32.mrf.mxu1  ;;  %v4473_v12 = vpop.f32.mrf.mxu0 }
 0x17d   : > { %4937 = vst [vmem:[#allocation12_spill] sm:$0xff] %v4470_v6  ;;  %v4475_v42 = vadd.f32 %v1639_v13, %v1464_v44 }
 0x17e   : > { %v1737_v4 = vpop.f32.mrf.mxu1  ;;  %v4477_v47 = vpop.f32.mrf.mxu0 }
 0x17f   : > { %4938 = vst [vmem:[#allocation15_spill] sm:$0xff] %v4475_v42 }
 0x180   : > { %v4479_v52 = vpop.f32.mrf.mxu1  ;;  %v4481_v57 = vpop.f32.mrf.mxu0 }
 0x182   : > { %v4483_v50 = vpop.f32.mrf.mxu1  ;;  %v4485_v35 = vpop.f32.mrf.mxu0 }
 0x184   : > { %v4487_v54 = vpop.f32.mrf.mxu1  ;;  %v4489_v26 = vpop.f32.mrf.mxu0 }
 0x186   : > { %v4491_v58 = vpop.f32.mrf.mxu1  ;;  %v4493_v9 = vpop.f32.mrf.mxu0 }
 0x188   : > { %v4495_v38 = vpop.f32.mrf.mxu1  ;;  %v4497_v1 = vpop.f32.mrf.mxu0 }
 0x18a   : > { %v4499_v43 = vpop.f32.mrf.mxu1  ;;  %v4501_v28 = vpop.f32.mrf.mxu0 }
 0x18c   : > { %v4503_v24 = vpop.f32.mrf.mxu1  ;;  %v4505_v36 = vpop.f32.mrf.mxu0 }
 0x18e   : > { %v4507_v32 = vpop.f32.mrf.mxu1  ;;  %v4509_v27 = vpop.f32.mrf.mxu0 }
 0x190   : > { %v4511_v49 = vpop.f32.mrf.mxu1  ;;  %v4513_v48 = vpop.f32.mrf.mxu0 }
 0x192   : > { %v4515_v55 = vpop.f32.mrf.mxu1  ;;  %v4517_v40 = vpop.f32.mrf.mxu0 }
 0x194   : > { %v4519_v34 = vpop.f32.mrf.mxu1  ;;  %v4521_v30 = vpop.f32.mrf.mxu0 }
 0x196   : > { %v4523_v37 = vpop.f32.mrf.mxu1  ;;  %v4525_v13 = vpop.f32.mrf.mxu0 }
 0x198   : > { %v4527_v17 = vpop.f32.mrf.mxu1  ;;  %v4529_v39 = vpop.f32.mrf.mxu0 }
 0x19a   : > { %v4531_v44 = vpop.f32.mrf.mxu1  ;;  %v4533_v42 = vpop.f32.mrf.mxu0 }
 0x19c   : > { %v4535_v6 = vpop.f32.mrf.mxu1  ;;  %v4537_v22 = vpop.f32.mrf.mxu0 }
 0x19d   : > { %4939 = vst [vmem:[#allocation5_spill] sm:$0xff] %v4537_v22 }
 0x19e   : > { %v4539_v5 = vpop.f32.mrf.mxu1  ;;  %v4541_v0 = vpop.f32.mrf.mxu0 }
 0x19f   : > { %4940 = vst [vmem:[#allocation8_spill] sm:$0xff] %v4541_v0 }
 0x1a0   : > { %v4543_v45 = vpop.f32.mrf.mxu1  ;;  %v4545_v15 = vpop.f32.mrf.mxu0 }
 0x1a1   : > { %4941 = vst [vmem:[#allocation11_spill] sm:$0xff] %v4543_v45  ;;  %4942 = vst [vmem:[#allocation19_spill] sm:$0xff] %v4545_v15 }
 0x1a2   : > { %v4547_v10 = vpop.f32.mrf.mxu1  ;;  %v4549_v16 = vpop.f32.mrf.mxu0 }
 0x1a3   : > { %4943 = vst [vmem:[#allocation20_spill] sm:$0xff] %v4547_v10  ;;  %4944 = vst [vmem:[#allocation21_spill] sm:$0xff] %v4549_v16 }
 0x1a4   : > { %v4551_v3 = vpop.f32.mrf.mxu1  ;;  %v4553_v19 = vpop.f32.mrf.mxu0 }
 0x1a5   : > { %4945 = vst [vmem:[#allocation22_spill] sm:$0xff] %v4551_v3  ;;  %4946 = vst [vmem:[#allocation23_spill] sm:$0xff] %v4553_v19 }
 0x1a6   : > { %v4555_v59 = vpop.f32.mrf.mxu1  ;;  %v4557_v21 = vpop.f32.mrf.mxu0 }
 0x1a7   : > { %4947 = vst [vmem:[#allocation24_spill] sm:$0xff] %v4555_v59  ;;  %4948 = vst [vmem:[#allocation25_spill] sm:$0xff] %v4557_v21 }
 0x1a8   : > { %v4559_v22 = vpop.f32.mrf.mxu1  ;;  %v4561_v63 = vpop.f32.mrf.mxu0 }
 0x1a9   : > { %4949 = vst [vmem:[#allocation26_spill] sm:$0xff] %v4559_v22  ;;  %4950 = vst [vmem:[#allocation27_spill] sm:$0xff] %v4561_v63 }
 0x1aa   : > { %v4563_v0 = vpop.f32.mrf.mxu1  ;;  %v4565_v45 = vpop.f32.mrf.mxu0 }
 0x1ab   : > { %4951 = vst [vmem:[#allocation28_spill] sm:$0xff] %v4563_v0  ;;  %4952 = vst [vmem:[#allocation29_spill] sm:$0xff] %v4565_v45 }
 0x1ac   : > { %v4567_v15 = vpop.f32.mrf.mxu1  ;;  %v4569_v10 = vpop.f32.mrf.mxu0 }
 0x1ad   : > { %4953 = vst [vmem:[#allocation30_spill] sm:$0xff] %v4567_v15  ;;  %4954 = vst [vmem:[#allocation31_spill] sm:$0xff] %v4569_v10  ;;  %v1866_v10 = vadd.f32 %v3237_v51, %v4378_v31  ;;  %v1865_v31 = vadd.f32 %v4483_v50, %v4387_v29  ;;  %v4618_v29 = vld [vmem:[%s4841_s3] ss:$0 sm:$0xff] }
 0x1ae   : > { %v4571_v16 = vpop.f32.mrf.mxu1  ;;  %v4573_v3 = vpop.f32.mrf.mxu0 }
 0x1af   : > { %4955 = vst [vmem:[#allocation32_spill] sm:$0xff] %v4571_v16  ;;  %4956 = vst [vmem:[#allocation33_spill] sm:$0xff] %v4573_v3 }
 0x1b0   : > { %v4575_v19 = vpop.f32.mrf.mxu1  ;;  %v4577_v59 = vpop.f32.mrf.mxu0 }
 0x1b1   : > { %4957 = vst [vmem:[#allocation34_spill] sm:$0xff] %v4575_v19  ;;  %4958 = vst [vmem:[#allocation35_spill] sm:$0xff] %v4577_v59  ;;  %v1864_v59 = vadd.f32 %v1737_v4, %v4381_v62  ;;  %v4608_v62 = vld [vmem:[%s4840_s2] ss:$0 sm:$0xff] }
 0x1b2   : > { %v4579_v21 = vpop.f32.mrf.mxu1  ;;  %v4581_v22 = vpop.f32.mrf.mxu0 }
 0x1b3   : > { %4959 = vst [vmem:[#allocation36_spill] sm:$0xff] %v4579_v21  ;;  %4960 = vst [vmem:[#allocation37_spill] sm:$0xff] %v4581_v22  ;;  %v2072_v22 = vadd.f32 %v4468_v53, %v1866_v10 }
 0x1b4   : > { %v4583_v63 = vpop.f32.mrf.mxu1  ;;  %v4585_v0 = vpop.f32.mrf.mxu0 }
 0x1b5   : > { %4961 = vst [vmem:[#allocation38_spill] sm:$0xff] %v4583_v63  ;;  %4962 = vst [vmem:[#allocation39_spill] sm:$0xff] %v4585_v0  ;;  %v1867_v0 = vadd.f32 %v4479_v52, %v4384_v46  ;;  %v1870_v52 = vadd.f32 %v4487_v54, %v4390_v56  ;;  %v1871_v56 = vadd.f32 %v4495_v38, %v4396_v20 }
 0x1b6   : > { %v4587_v45 = vpop.f32.mrf.mxu1  ;;  %v4589_v15 = vpop.f32.mrf.mxu0 }
 0x1b7   : > { %4963 = vst [vmem:[#allocation40_spill] sm:$0xff] %v4587_v45  ;;  %4964 = vst [vmem:[#allocation41_spill] sm:$0xff] %v4589_v15  ;;  %v2070_v15 = vadd.f32 %v4473_v12, %v1864_v59  ;;  %v2073_v10 = vadd.f32 %v4477_v47, %v1867_v0  ;;  %v1868_v59 = vadd.f32 %v4491_v58, %v4393_v60 }
 0x1b8   : > { %v4592_v16 = vpop.f32.mrf.mxu1  ;;  %v4594_v3 = vpop.f32.mrf.mxu0  ;;  %v2071_v12 = vadd.f32 %v4481_v57, %v1865_v31  ;;  %v1869_v31 = vadd.f32 %v4499_v43, %v4399_v14  ;;  %v1874_v14 = vadd.f32 %v4503_v24, %v4402_v61 }
 0x1b9   : > { %4965 = vst [vmem:[#allocation42_spill] sm:$0xff] %v4594_v3  ;;  %v2074_v57 = vadd.f32 %v4489_v26, %v1868_v59  ;;  %v2077_v26 = vadd.f32 %v4493_v9, %v1871_v56 }
 0x1ba   : > { %v4597_v19 = vpop.f32.mrf.mxu1  ;;  %v3339_v21 = vpop.f32.mrf.mxu0 }
 0x1bc   : > { %v3305_v63 = vpop.f32.mrf.mxu1  ;;  %v2372_v45 = vpop.f32.mrf.mxu0 }
 0x1bd   : > { %v2288_v51 = vadd.f32 %v3305_v63, %v2072_v22 }
 0x1be   : > { %v2159_v4 = vpop.f32.mrf.mxu1  ;;  %v3340_v3 = vpop.f32.mrf.mxu0 }
 0x1bf   : > { %v2501_v53 = vadd.f32 %v3339_v21, %v2288_v51  ;;  %v2286_v46 = vadd.f32 %v2159_v4, %v2070_v15  ;;  %v2076_v4 = vadd.f32 %v4485_v35, %v1870_v52 }
 0x1c0   : > { %v3306_v63 = vpop.f32.mrf.mxu1  ;;  %v2375_v22 = vpop.f32.mrf.mxu0 }
 0x1c1   : > { %v2540_v0 = vmul.f32 %v4608_v62, %v2501_v53  ;;  %v2499_v21 = vadd.f32 %v2372_v45, %v2286_v46  ;;  %v2289_v15 = vadd.f32 %v3306_v63, %v2073_v10 }
 0x1c2   : > { %v2162_v47 = vpop.f32.mrf.mxu1  ;;  %v3343_v50 = vpop.f32.mrf.mxu0 }
 0x1c3   : > { %v2579_v60 = vadd.f32 %v4618_v29, %v2540_v0  ;;  %v2538_v54 = vmul.f32 %v4608_v62, %v2499_v21  ;;  %v2502_v58 = vadd.f32 %v3340_v3, %v2289_v15  ;;  %v2287_v51 = vadd.f32 %v2162_v47, %v2071_v12 }
 0x1c4   : > { %v3309_v20 = vpop.f32.mrf.mxu1  ;;  %v2388_v45 = vpop.f32.mrf.mxu0  ;;  %v2075_v0 = vadd.f32 %v4497_v1, %v1869_v31  ;;  %v2080_v47 = vadd.f32 %v4501_v28, %v1874_v14  ;;  %v1873_v28 = vadd.f32 %v4515_v55, %v4411_v33  ;;  %v1878_v33 = vadd.f32 %v4519_v34, %v4414_v8 }
 0x1c5   : > { %v2611_v38 = vmax.f32 %v2579_v60, 0.0  ;;  %v2577_v10 = vadd.f32 %v4618_v29, %v2538_v54  ;;  %v2541_v3 = vmul.f32 %v4608_v62, %v2502_v58  ;;  %v2500_v35 = vadd.f32 %v2375_v22, %v2287_v51 }
 0x1c6   : > { %v2292_v43 = vadd.f32 %v3309_v20, %v2076_v4  ;;  %v2175_v53 = vpop.f32.mrf.mxu1  ;;  %v3344_v46 = vpop.f32.mrf.mxu0  ;;  %v1872_v60 = vadd.f32 %v4507_v32, %v4405_v25  ;;  %v1875_v54 = vadd.f32 %v4511_v49, %v4408_v2 }
 0x1c7   : > { %2643 = vst.msk [vmem:[%s4634_s21 + $0x10] sm:$0xff] %vm457_vm1, %v2611_v38  ;;  %v2609_v52 = vmax.f32 %v2577_v10, 0.0  ;;  %v2580_v59 = vadd.f32 %v4618_v29, %v2541_v3  ;;  %v2539_v63 = vmul.f32 %v4608_v62, %v2500_v35  ;;  %v2290_v12 = vadd.f32 %v2175_v53, %v2074_v57 }
 0x1c8   : > { %v2505_v22 = vadd.f32 %v3343_v50, %v2292_v43  ;;  %v3310_v21 = vpop.f32.mrf.mxu1  ;;  %v2391_v9 = vpop.f32.mrf.mxu0  ;;  %v2078_v10 = vadd.f32 %v4505_v36, %v1872_v60  ;;  %v2081_v3 = vadd.f32 %v4509_v27, %v1875_v54  ;;  %v1876_v36 = vadd.f32 %v4523_v37, %v4417_v7 }
 0x1c9   : > { %2641 = vst.msk [vmem:[%s4634_s21] sm:$0xff] %vm457_vm1, %v2609_v52  ;;  %v2612_v61 = vmax.f32 %v2580_v59, 0.0  ;;  %v2578_v24 = vadd.f32 %v4618_v29, %v2539_v63  ;;  %v2503_v15 = vadd.f32 %v2388_v45, %v2290_v12  ;;  %v2293_v56 = vadd.f32 %v3310_v21, %v2077_v26 }
 0x1ca   : > { %v2544_v1 = vmul.f32 %v4608_v62, %v2505_v22  ;;  %v2178_v50 = vpop.f32.mrf.mxu1  ;;  %v3347_v58 = vpop.f32.mrf.mxu0  ;;  %v2079_v52 = vadd.f32 %v4513_v48, %v1873_v28  ;;  %v2084_v22 = vadd.f32 %v4517_v40, %v1878_v33 }
 0x1cb   : > { %2644 = vst.msk [vmem:[%s4634_s21 + $0x18] sm:$0xff] %vm457_vm1, %v2612_v61  ;;  %v2610_v51 = vmax.f32 %v2578_v24, 0.0  ;;  %v2542_v4 = vmul.f32 %v4608_v62, %v2503_v15  ;;  %v2506_v57 = vadd.f32 %v3344_v46, %v2293_v56  ;;  %v2291_v31 = vadd.f32 %v2178_v50, %v2075_v0 }
 0x1cc   : > { %v2583_v20 = vadd.f32 %v4618_v29, %v2544_v1  ;;  %v3313_v25 = vpop.f32.mrf.mxu1  ;;  %v2404_v32 = vpop.f32.mrf.mxu0  ;;  %v2082_v15 = vadd.f32 %v4521_v30, %v1876_v36  ;;  %v1879_v56 = vadd.f32 %v4527_v17, %v4420_v41  ;;  %v1882_v30 = vadd.f32 %v4535_v6, %v4426_v11 }
 0x1cd   : > { %2642 = vst.msk [vmem:[%s4634_s21 + $0x8] sm:$0xff] %vm457_vm1, %v2610_v51  ;;  %v2581_v2 = vadd.f32 %v4618_v29, %v2542_v4  ;;  %v2545_v49 = vmul.f32 %v4608_v62, %v2506_v57  ;;  %v2504_v45 = vadd.f32 %v2391_v9, %v2291_v31  ;;  %v2296_v38 = vadd.f32 %v3313_v25, %v2080_v47 }
 0x1ce   : > { %v2615_v55 = vmax.f32 %v2583_v20, 0.0  ;;  %v2191_v35 = vpop.f32.mrf.mxu1  ;;  %v3348_v26 = vpop.f32.mrf.mxu0  ;;  %v1877_v47 = vadd.f32 %v4531_v44, %v4423_v18  ;;  %v2085_v28 = vadd.f32 %v4525_v13, %v1879_v56  ;;  %v1880_v11 = vadd.f32 %v4539_v5, %v4429_v23  ;;  %v4967_v13 = vld [vmem:[#allocation11_spill] sm:$0xff] }
 0x1cf   : > { %v2613_v14 = vmax.f32 %v2581_v2, 0.0  ;;  %v2584_v43 = vadd.f32 %v4618_v29, %v2545_v49  ;;  %v2543_v53 = vmul.f32 %v4608_v62, %v2504_v45  ;;  %v2509_v46 = vadd.f32 %v3347_v58, %v2296_v38 }
 0x1d0   : > { %2647 = vst.msk [vmem:[%s4634_s21 + $0x30] sm:$0xff] %vm457_vm1, %v2615_v55  ;;  %v2294_v27 = vadd.f32 %v2191_v35, %v2078_v10  ;;  %v3314_v59 = vpop.f32.mrf.mxu1  ;;  %v2407_v8 = vpop.f32.mrf.mxu0  ;;  %v2083_v20 = vadd.f32 %v4529_v39, %v1877_v47  ;;  %v2088_v10 = vadd.f32 %v4533_v42, %v1882_v30 }
 0x1d1   : > { %2645 = vst.msk [vmem:[%s4634_s21 + $0x20] sm:$0xff] %vm457_vm1, %v2613_v14  ;;  %v2616_v34 = vmax.f32 %v2584_v43, 0.0  ;;  %v2582_v63 = vadd.f32 %v4618_v29, %v2543_v53  ;;  %v2548_v12 = vmul.f32 %v4608_v62, %v2509_v46  ;;  %v2297_v0 = vadd.f32 %v3314_v59, %v2081_v3  ;;  %v4966_v3 = vld [vmem:[#allocation14_spill] sm:$0xff]  ;;  %v4968_v43 = vld [vmem:[#allocation5_spill] sm:$0xff] }
 0x1d2   : > { %v2507_v48 = vadd.f32 %v2404_v32, %v2294_v27  ;;  %v2194_v21 = vpop.f32.mrf.mxu1  ;;  %v3351_v9 = vpop.f32.mrf.mxu0  ;;  %v1883_v33 = vadd.f32 %v4967_v13, %v4966_v3  ;;  %v2086_v53 = vadd.f32 %v4968_v43, %v1880_v11  ;;  %v4981_v3 = vld [vmem:[#allocation16_spill] sm:$0xff]  ;;  %v4983_v43 = vld [vmem:[#allocation25_spill] sm:$0xff] }
 0x1d3   : > { %2648 = vst.msk [vmem:[%s4634_s21 + $0x38] sm:$0xff] %vm457_vm1, %v2616_v34  ;;  %v2614_v7 = vmax.f32 %v2582_v63, 0.0  ;;  %v2587_v37 = vadd.f32 %v4618_v29, %v2548_v12  ;;  %v2510_v61 = vadd.f32 %v3348_v26, %v2297_v0  ;;  %v2295_v24 = vadd.f32 %v2194_v21, %v2079_v52  ;;  %v4969_v34 = vld [vmem:[#allocation8_spill] sm:$0xff]  ;;  %v4970_v12 = vld [vmem:[#allocation3_spill] sm:$0xff]  ;;  %v4973_v21 = vld [vmem:[#allocation22_spill] sm:$0xff] }
 0x1d4   : > { %v2546_v40 = vmul.f32 %v4608_v62, %v2507_v48  ;;  %v3317_v60 = vpop.f32.mrf.mxu1  ;;  %v2420_v54 = vpop.f32.mrf.mxu0  ;;  %v2089_v63 = vadd.f32 %v4969_v34, %v1883_v33  ;;  %v4971_v0 = vld [vmem:[#allocation20_spill] sm:$0xff]  ;;  %v4972_v48 = vld [vmem:[#allocation6_spill] sm:$0xff]  ;;  %v4984_v34 = vld [vmem:[#allocation27_spill] sm:$0xff] }
 0x1d5   : > { %2646 = vst.msk [vmem:[%s4634_s21 + $0x28] sm:$0xff] %vm457_vm1, %v2614_v7  ;;  %v2619_v1 = vmax.f32 %v2587_v37, 0.0  ;;  %v2549_v50 = vmul.f32 %v4608_v62, %v2510_v61  ;;  %v2508_v58 = vadd.f32 %v2407_v8, %v2295_v24  ;;  %v2300_v51 = vadd.f32 %v3317_v60, %v2084_v22  ;;  %v4975_v60 = vld [vmem:[#allocation24_spill] sm:$0xff] }
 0x1d6   : > { %v2585_v4 = vadd.f32 %v4618_v29, %v2546_v40  ;;  %v2207_v41 = vpop.f32.mrf.mxu1  ;;  %v3352_v17 = vpop.f32.mrf.mxu0  ;;  %v1881_v22 = vadd.f32 %v4971_v0, %v4970_v12  ;;  %v4974_v40 = vld [vmem:[#allocation9_spill] sm:$0xff]  ;;  %v4982_v13 = vld [vmem:[#allocation28_spill] sm:$0xff]  ;;  %v4986_v0 = vld [vmem:[#allocation30_spill] sm:$0xff] }
 0x1d7   : > { %2651 = vst.msk [vmem:[%s4634_s21 + $0x50] sm:$0xff] %vm457_vm1, %v2619_v1  ;;  %v2588_v18 = vadd.f32 %v4618_v29, %v2549_v50  ;;  %v2547_v44 = vmul.f32 %v4608_v62, %v2508_v58  ;;  %v2513_v57 = vadd.f32 %v3351_v9, %v2300_v51  ;;  %v2298_v31 = vadd.f32 %v2207_v41, %v2082_v15  ;;  %v4985_v12 = vld [vmem:[#allocation17_spill] sm:$0xff] }
 0x1d8   : > { %v2617_v6 = vmax.f32 %v2585_v4, 0.0  ;;  %v3318_v25 = vpop.f32.mrf.mxu1  ;;  %v2423_v32 = vpop.f32.mrf.mxu0  ;;  %v1886_v9 = vadd.f32 %v4973_v21, %v4972_v48  ;;  %v1885_v33 = vadd.f32 %v4982_v13, %v4981_v3  ;;  %v4987_v48 = vld [vmem:[#allocation18_spill] sm:$0xff]  ;;  %v4988_v21 = vld [vmem:[#allocation32_spill] sm:$0xff]  ;;  %v4996_v3 = vld [vmem:[#allocation7_spill] sm:$0xff] }
 0x1d9   : > { %v2620_v2 = vmax.f32 %v2588_v18, 0.0  ;;  %v2586_v49 = vadd.f32 %v4618_v29, %v2547_v44  ;;  %v2552_v45 = vmul.f32 %v4608_v62, %v2513_v57  ;;  %v2511_v38 = vadd.f32 %v2420_v54, %v2298_v31  ;;  %v4977_v44 = vld [vmem:[#allocation21_spill] sm:$0xff]  ;;  %v4997_v13 = vld [vmem:[#allocation38_spill] sm:$0xff] }
 0x1da   : > { %2649 = vst.msk [vmem:[%s4634_s21 + $0x40] sm:$0xff] %vm457_vm1, %v2617_v6  ;;  %v2301_v39 = vadd.f32 %v3318_v25, %v2085_v28  ;;  %v2210_v55 = vpop.f32.mrf.mxu1  ;;  %v3355_v23 = vpop.f32.mrf.mxu0  ;;  %v1884_v54 = vadd.f32 %v4975_v60, %v4974_v40  ;;  %v2092_v57 = vadd.f32 %v4977_v44, %v1886_v9  ;;  %v4978_v31 = vld [vmem:[#allocation13_spill] sm:$0xff]  ;;  %v4979_v28 = vld [vmem:[#allocation26_spill] sm:$0xff]  ;;  %v1888_v9 = vadd.f32 %v4988_v21, %v4987_v48  ;;  %v4989_v40 = vld [vmem:[#allocation4_spill] sm:$0xff] }
 0x1db   : > { %2652 = vst.msk [vmem:[%s4634_s21 + $0x58] sm:$0xff] %vm457_vm1, %v2620_v2  ;;  %v2618_v5 = vmax.f32 %v2586_v49, 0.0  ;;  %v2591_v35 = vadd.f32 %v4618_v29, %v2552_v45  ;;  %v2550_v26 = vmul.f32 %v4608_v62, %v2511_v38  ;;  %v2299_v14 = vadd.f32 %v2210_v55, %v2083_v20  ;;  %v4980_v38 = vld [vmem:[#allocation23_spill] sm:$0xff]  ;;  %v4990_v60 = vld [vmem:[#allocation34_spill] sm:$0xff]  ;;  %v5002_v48 = vld [vmem:[#allocation12_spill] sm:$0xff] }
 0x1dc   : > { %v2514_v42 = vadd.f32 %v3352_v17, %v2301_v39  ;;  %v3321_v46 = vpop.f32.mrf.mxu1  ;;  %v2436_v52 = vpop.f32.mrf.mxu0  ;;  %v4976_v17 = vld [vmem:[#allocation19_spill] sm:$0xff]  ;;  %v1887_v20 = vadd.f32 %v4979_v28, %v4978_v31  ;;  %v4993_v31 = vld [vmem:[#allocation2_spill] sm:$0xff]  ;;  %v4994_v28 = vld [vmem:[#allocation36_spill] sm:$0xff]  ;;  %v1895_v21 = vadd.f32 %v4592_v16, %v5002_v48 }
 0x1dd   : > { %2650 = vst.msk [vmem:[%s4634_s21 + $0x48] sm:$0xff] %vm457_vm1, %v2618_v5  ;;  %v2623_v36 = vmax.f32 %v2591_v35, 0.0  ;;  %v2589_v27 = vadd.f32 %v4618_v29, %v2550_v26  ;;  %v2512_v59 = vadd.f32 %v2423_v32, %v2299_v14  ;;  %v2304_v8 = vadd.f32 %v3321_v46, %v2088_v10  ;;  %v4992_v44 = vld [vmem:[#allocation31_spill] sm:$0xff] }
 0x1de   : > { %v2553_v7 = vmul.f32 %v4608_v62, %v2514_v42  ;;  %v2223_v37 = vpop.f32.mrf.mxu1  ;;  %v3356_v61 = vpop.f32.mrf.mxu0  ;;  %v2087_v18 = vadd.f32 %v4976_v17, %v1881_v22  ;;  %v2090_v10 = vadd.f32 %v4980_v38, %v1884_v54  ;;  %v1890_v22 = vadd.f32 %v4986_v0, %v4985_v12  ;;  %v4991_v17 = vld [vmem:[#allocation29_spill] sm:$0xff]  ;;  %v5000_v12 = vld [vmem:[#allocation10_spill] sm:$0xff]  ;;  %v5001_v0 = vld [vmem:[#allocation40_spill] sm:$0xff] }
 0x1df   : > { %2655 = vst.msk [vmem:[%s4634_s21 + $0x70] sm:$0xff] %vm457_vm1, %v2623_v36  ;;  %v2621_v24 = vmax.f32 %v2589_v27, 0.0  ;;  %v2551_v15 = vmul.f32 %v4608_v62, %v2512_v59  ;;  %v2517_v56 = vadd.f32 %v3355_v23, %v2304_v8  ;;  %v2302_v47 = vadd.f32 %v2223_v37, %v2086_v53  ;;  %v4995_v38 = vld [vmem:[#allocation33_spill] sm:$0xff] }
 0x1e0   : > { %v2592_v1 = vadd.f32 %v4618_v29, %v2553_v7  ;;  %v3322_v50 = vpop.f32.mrf.mxu1  ;;  %v2439_v58 = vpop.f32.mrf.mxu0  ;;  %v2093_v53 = vadd.f32 %v4983_v43, %v1887_v20  ;;  %v1891_v54 = vadd.f32 %v4990_v60, %v4989_v40  ;;  %v1889_v20 = vadd.f32 %v4994_v28, %v4993_v31  ;;  %v4998_v43 = vld [vmem:[#allocation35_spill] sm:$0xff] }
 0x1e1   : > { %2653 = vst.msk [vmem:[%s4634_s21 + $0x60] sm:$0xff] %vm457_vm1, %v2621_v24  ;;  %v2590_v51 = vadd.f32 %v4618_v29, %v2551_v15  ;;  %v2556_v30 = vmul.f32 %v4608_v62, %v2517_v56  ;;  %v2515_v4 = vadd.f32 %v2436_v52, %v2302_v47  ;;  %v2305_v41 = vadd.f32 %v3322_v50, %v2089_v63 }
 0x1e2   : > { %v2624_v11 = vmax.f32 %v2592_v1, 0.0  ;;  %v2226_v6 = vpop.f32.mrf.mxu1  ;;  %v3359_v25 = vpop.f32.mrf.mxu0  ;;  %v2091_v63 = vadd.f32 %v4984_v34, %v1885_v33  ;;  %v1894_v33 = vadd.f32 %v4997_v13, %v4996_v3  ;;  %v4999_v34 = vld [vmem:[#allocation37_spill] sm:$0xff] }
 0x1e3   : > { %v2622_v32 = vmax.f32 %v2590_v51, 0.0  ;;  %v2595_v2 = vadd.f32 %v4618_v29, %v2556_v30  ;;  %v2554_v49 = vmul.f32 %v4608_v62, %v2515_v4  ;;  %v2518_v45 = vadd.f32 %v3356_v61, %v2305_v41 }
 0x1e4   : > { %2656 = vst.msk [vmem:[%s4634_s21 + $0x78] sm:$0xff] %vm457_vm1, %v2624_v11  ;;  %v2303_v39 = vadd.f32 %v2226_v6, %v2087_v18  ;;  %v3325_v55 = vpop.f32.mrf.mxu1  ;;  %v2452_v23 = vpop.f32.mrf.mxu0  ;;  %v2096_v18 = vadd.f32 %v4991_v17, %v1890_v22  ;;  %v1892_v22 = vadd.f32 %v5001_v0, %v5000_v12 }
 0x1e5   : > { %2654 = vst.msk [vmem:[%s4634_s21 + $0x68] sm:$0xff] %vm457_vm1, %v2622_v32  ;;  %v2627_v5 = vmax.f32 %v2595_v2, 0.0  ;;  %v2593_v35 = vadd.f32 %v4618_v29, %v2554_v49  ;;  %v2557_v26 = vmul.f32 %v4608_v62, %v2518_v45  ;;  %v2308_v14 = vadd.f32 %v3325_v55, %v2092_v57 }
 0x1e6   : > { %v2516_v42 = vadd.f32 %v2439_v58, %v2303_v39  ;;  %v2239_v46 = vpop.f32.mrf.mxu1  ;;  %v3360_v52 = vpop.f32.mrf.mxu0  ;;  %v2094_v57 = vadd.f32 %v4992_v44, %v1888_v9 }
 0x1e7   : > { %2659 = vst.msk [vmem:[%s4634_s21 + $0x90] sm:$0xff] %vm457_vm1, %v2627_v5  ;;  %v2625_v36 = vmax.f32 %v2593_v35, 0.0  ;;  %v2596_v27 = vadd.f32 %v4618_v29, %v2557_v26  ;;  %v2521_v59 = vadd.f32 %v3359_v25, %v2308_v14  ;;  %v2306_v8 = vadd.f32 %v2239_v46, %v2090_v10 }
 0x1e8   : > { %v2555_v7 = vmul.f32 %v4608_v62, %v2516_v42  ;;  %v3326_v37 = vpop.f32.mrf.mxu1  ;;  %v2455_v61 = vpop.f32.mrf.mxu0  ;;  %v2097_v10 = vadd.f32 %v4995_v38, %v1891_v54 }
 0x1e9   : > { %2657 = vst.msk [vmem:[%s4634_s21 + $0x80] sm:$0xff] %vm457_vm1, %v2625_v36  ;;  %v2628_v24 = vmax.f32 %v2596_v27, 0.0  ;;  %v2560_v15 = vmul.f32 %v4608_v62, %v2521_v59  ;;  %v2519_v56 = vadd.f32 %v2452_v23, %v2306_v8  ;;  %v2309_v47 = vadd.f32 %v3326_v37, %v2093_v53 }
 0x1ea   : > { %v2594_v1 = vadd.f32 %v4618_v29, %v2555_v7  ;;  %v2242_v50 = vpop.f32.mrf.mxu1  ;;  %v3363_v58 = vpop.f32.mrf.mxu0  ;;  %v2095_v53 = vadd.f32 %v4998_v43, %v1889_v20  ;;  %v5006_v20 = vld [vmem:[#allocation42_spill] sm:$0xff] }
 0x1eb   : > { %2660 = vst.msk [vmem:[%s4634_s21 + $0x98] sm:$0xff] %vm457_vm1, %v2628_v24  ;;  %v2599_v51 = vadd.f32 %v4618_v29, %v2560_v15  ;;  %v2558_v30 = vmul.f32 %v4608_v62, %v2519_v56  ;;  %v2522_v4 = vadd.f32 %v3360_v52, %v2309_v47  ;;  %v2307_v41 = vadd.f32 %v2242_v50, %v2091_v63  ;;  %v5003_v47 = vld [vmem:[#allocation15_spill] sm:$0xff] }
 0x1ec   : > { %v2626_v11 = vmax.f32 %v2594_v1, 0.0  ;;  %v3329_v6 = vpop.f32.mrf.mxu1  ;;  %v2468_v25 = vpop.f32.mrf.mxu0  ;;  %v2100_v63 = vadd.f32 %v4999_v34, %v1894_v33  ;;  %v1893_v40 = vadd.f32 %v4597_v19, %v5003_v47 }
 0x1ed   : > { %v2631_v32 = vmax.f32 %v2599_v51, 0.0  ;;  %v2597_v2 = vadd.f32 %v4618_v29, %v2558_v30  ;;  %v2561_v49 = vmul.f32 %v4608_v62, %v2522_v4  ;;  %v2520_v45 = vadd.f32 %v2455_v61, %v2307_v41  ;;  %v5004_v30 = vld [vmem:[#allocation39_spill] sm:$0xff]  ;;  %v5005_v41 = vld [vmem:[#allocation41_spill] sm:$0xff] }
 0x1ee   : > { %2658 = vst.msk [vmem:[%s4634_s21 + $0x88] sm:$0xff] %vm457_vm1, %v2626_v11  ;;  %v2312_v39 = vadd.f32 %v3329_v6, %v2096_v18  ;;  %v2255_v55 = vpop.f32.mrf.mxu1  ;;  %v3364_v23 = vpop.f32.mrf.mxu0  ;;  %v2098_v4 = vadd.f32 %v5004_v30, %v1892_v22  ;;  %v2101_v17 = vadd.f32 %v5005_v41, %v1895_v21  ;;  %v2099_v11 = vadd.f32 %v5006_v20, %v1893_v40 }
 0x1ef   : > { %2663 = vst.msk [vmem:[%s4634_s21 + $0xb0] sm:$0xff] %vm457_vm1, %v2631_v32  ;;  %v2629_v5 = vmax.f32 %v2597_v2, 0.0  ;;  %v2600_v35 = vadd.f32 %v4618_v29, %v2561_v49  ;;  %v2559_v26 = vmul.f32 %v4608_v62, %v2520_v45  ;;  %v2310_v14 = vadd.f32 %v2255_v55, %v2094_v57 }
 0x1f0   : > { %v2525_v42 = vadd.f32 %v3363_v58, %v2312_v39  ;;  %v3330_v46 = vpop.f32.mrf.mxu1  ;;  %v2471_v52 = vpop.f32.mrf.mxu0 }
 0x1f1   : > { %2661 = vst.msk [vmem:[%s4634_s21 + $0xa0] sm:$0xff] %vm457_vm1, %v2629_v5  ;;  %v2632_v36 = vmax.f32 %v2600_v35, 0.0  ;;  %v2598_v27 = vadd.f32 %v4618_v29, %v2559_v26  ;;  %v2523_v59 = vadd.f32 %v2468_v25, %v2310_v14  ;;  %v2313_v8 = vadd.f32 %v3330_v46, %v2097_v10 }
 0x1f2   : > { %v2564_v9 = vmul.f32 %v4608_v62, %v2525_v42  ;;  %v2258_v7 = vpop.f32.mrf.mxu1  ;;  %v3367_v37 = vpop.f32.mrf.mxu0 }
 0x1f3   : > { %2664 = vst.msk [vmem:[%s4634_s21 + $0xb8] sm:$0xff] %vm457_vm1, %v2632_v36  ;;  %v2630_v61 = vmax.f32 %v2598_v27, 0.0  ;;  %v2562_v24 = vmul.f32 %v4608_v62, %v2523_v59  ;;  %v2526_v15 = vadd.f32 %v3364_v23, %v2313_v8  ;;  %v2311_v56 = vadd.f32 %v2258_v7, %v2095_v53 }
 0x1f4   : > { %v2603_v60 = vadd.f32 %v4618_v29, %v2564_v9  ;;  %v3333_v54 = vpop.f32.mrf.mxu1  ;;  %v2484_v1 = vpop.f32.mrf.mxu0 }
 0x1f5   : > { %2662 = vst.msk [vmem:[%s4634_s21 + $0xa8] sm:$0xff] %vm457_vm1, %v2630_v61  ;;  %v2601_v16 = vadd.f32 %v4618_v29, %v2562_v24  ;;  %v2565_v50 = vmul.f32 %v4608_v62, %v2526_v15  ;;  %v2524_v58 = vadd.f32 %v2471_v52, %v2311_v56  ;;  %v2316_v51 = vadd.f32 %v3333_v54, %v2100_v63 }
 0x1f6   : > { %v2635_v18 = vmax.f32 %v2603_v60, 0.0  ;;  %v2271_v19 = vpop.f32.mrf.mxu1  ;;  %v3368_v32 = vpop.f32.mrf.mxu0 }
 0x1f7   : > { %v2633_v44 = vmax.f32 %v2601_v16, 0.0  ;;  %v2604_v57 = vadd.f32 %v4618_v29, %v2565_v50  ;;  %v2563_v31 = vmul.f32 %v4608_v62, %v2524_v58  ;;  %v2529_v28 = vadd.f32 %v3367_v37, %v2316_v51 }
 0x1f8   : > { %2667 = vst.msk [vmem:[%s4634_s21 + $0xd0] sm:$0xff] %vm457_vm1, %v2635_v18  ;;  %v2314_v6 = vadd.f32 %v2271_v19, %v2098_v4  ;;  %v3334_v25 = vpop.f32.mrf.mxu1  ;;  %v2487_v5 = vpop.f32.mrf.mxu0 }
 0x1f9   : > { %2665 = vst.msk [vmem:[%s4634_s21 + $0xc0] sm:$0xff] %vm457_vm1, %v2633_v44  ;;  %v2636_v2 = vmax.f32 %v2604_v57, 0.0  ;;  %v2602_v49 = vadd.f32 %v4618_v29, %v2563_v31  ;;  %v2568_v45 = vmul.f32 %v4608_v62, %v2529_v28  ;;  %v2317_v38 = vadd.f32 %v3334_v25, %v2101_v17 }
 0x1fa   : > { %v2527_v10 = vadd.f32 %v2484_v1, %v2314_v6  ;;  %v2274_v3 = vpop.f32.mrf.mxu1 }
 0x1fb   : > { %2668 = vst.msk [vmem:[%s4634_s21 + $0xd8] sm:$0xff] %vm457_vm1, %v2636_v2  ;;  %v2634_v13 = vmax.f32 %v2602_v49, 0.0  ;;  %v2607_v33 = vadd.f32 %v4618_v29, %v2568_v45  ;;  %v2530_v39 = vadd.f32 %v3368_v32, %v2317_v38  ;;  %v2315_v55 = vadd.f32 %v2274_v3, %v2099_v11 }
 0x1fc   : > { %v2566_v23 = vmul.f32 %v4608_v62, %v2527_v10 }
 0x1fd   : > { %2666 = vst.msk [vmem:[%s4634_s21 + $0xc8] sm:$0xff] %vm457_vm1, %v2634_v13  ;;  %v2639_v35 = vmax.f32 %v2607_v33, 0.0  ;;  %v2569_v26 = vmul.f32 %v4608_v62, %v2530_v39  ;;  %v2528_v14 = vadd.f32 %v2487_v5, %v2315_v55 }
 0x1fe   : > { %v2605_v43 = vadd.f32 %v4618_v29, %v2566_v23 }
 0x1ff   : > { %2671 = vst.msk [vmem:[%s4634_s21 + $0xf0] sm:$0xff] %vm457_vm1, %v2639_v35  ;;  %v2608_v53 = vadd.f32 %v4618_v29, %v2569_v26  ;;  %v2567_v42 = vmul.f32 %v4608_v62, %v2528_v14 }
 0x200   : > { %v2637_v46 = vmax.f32 %v2605_v43, 0.0 }
 0x201   : > { %v2640_v52 = vmax.f32 %v2608_v53, 0.0  ;;  %v2606_v36 = vadd.f32 %v4618_v29, %v2567_v42 }
 0x202   : > { %2669 = vst.msk [vmem:[%s4634_s21 + $0xe0] sm:$0xff] %vm457_vm1, %v2637_v46 }
 0x203   : > { %2672 = vst.msk [vmem:[%s4634_s21 + $0xf8] sm:$0xff] %vm457_vm1, %v2640_v52  ;;  %v2638_v27 = vmax.f32 %v2606_v36, 0.0 }
 0x205   : > { %2670 = vst.msk [vmem:[%s4634_s21 + $0xe8] sm:$0xff] %vm457_vm1, %v2638_v27 }
 0x206 PF: > { %s14_s15 = sadd.s32 1, %s3395_s15  }
 0x207   : > { %p11_p4 = scmp.ge.s32.totalorder %s14_s15, 4  }
 0x209   :  { %13 = sbr.rel (!%p11_p4) target bundleno = 1 (0x1), region = 74 }

// kernel: basenet_forward.5
= control target key start
LH: loop header
LB: loop body
LE: loop exit
PB: predicated region body
PF: predicated region fallthrough
CT: control target
= control target key end

     0   :  { %s6418_s0 = inlined_call_operand.vmem [shape: f32[2,18,18,16], index: 0, kind: input, shape index: {}]   ;;  %s6419_s1 = inlined_call_operand.vmem [shape: bf16[9,16,16], index: 1, kind: input, shape index: {}]   ;;  %s6420_s2 = inlined_call_operand.vmem [shape: f32[1,16], index: 2, kind: input, shape index: {}]   ;;  %s6421_s3 = inlined_call_operand.vmem [shape: f32[1,16], index: 3, kind: input, shape index: {}]   ;;  %s6422_s4 = inlined_call_operand.vmem [shape: f32[2,16,16,16], index: 4, kind: input, shape index: {}]   ;;  %s6423_s5 = inlined_call_operand.vmem [shape: f32[16,10], index: 5, kind: input, shape index: {}]   ;;  %s6424_s6 = inlined_call_operand.vmem [shape: f32[1,10], index: 6, kind: input, shape index: {}]   ;;  %s6425_s7 = inlined_call_operand.vmem [shape: f32[2,16,16,16], index: 7, kind: output, shape index: {0}]   ;;  %s6426_s8 = inlined_call_operand.hbm [shape: f32[2,1,16], index: 8, kind: output, shape index: {1}]   ;;  %s6427_s9 = inlined_call_operand.hbm [shape: f32[2,1,10], index: 9, kind: output, shape index: {2}]  }
   0x1   :  { %6461 = sst [smem:[#allocation59_spill]] %s6418_s0 }
   0x2   :  { %6462 = sst [smem:[#allocation60_spill]] %s6419_s1 }
   0x3   :  { %15 = vsyncpa [#allocation3], 0 }
   0x4   :  { %17 = vsyncpa [#allocation3 + $0x1], 0 }
   0x5   :  { %18 = vsyncpa [#allocation5], 0 }
   0x6   :  { %20 = vsyncpa [#allocation5 + $0x1], 0  ;;  %s4501_s30 = smov 0   ;;  %s4503_s10 = smov 0  }
   0x7   :  { %s4505_s11 = smov 0   ;;  %s4507_s12 = smov 0  }
   0x8 LB: > { %s4522_s13 = sadd.s32 4294967295, %s4447_s12   ;;  %s3540_s14 = sadd.s32 4294967294, %s4447_s12   ;;  %s4447_s12 = sphi %s4507_s12, %s6629_s12   ;;  %s4443_s11 = sphi %s4505_s11, %s6628_s11   ;;  %s4439_s10 = sphi %s4503_s10, %s6627_s10   ;;  %s4435_s30 = sphi %s4501_s30, %s6626_s30  }
   0x9   : > { %s4526_s15 = sadd.s32 1, %s4447_s12   ;;  %s216_s16 = sadd.s32 1, %s4443_s11 }
   0xa   : > { %s213_s17 = ssub.s32 %s4447_s12, %s4526_s15  ;;  %p226_p0 = scmp.ne.s32.totalorder %s4443_s11, %s4439_s10 }
   0xb   : > { %p214_p1 = scmp.eq.s32.totalorder %s213_s17, 0  ;;  %p227_p2 = scmp.eq.s32.totalorder %s4522_s13, 1 }
   0xc   : > { %p232_p3 = scmp.ne.s32.totalorder %s4439_s10, %s4435_s30  ;;  %p233_p4 = scmp.eq.s32.totalorder %s3540_s14, 1 }
   0xd   : > { %s4537_s18 = scalar_select %p214_p1, %s4443_s11, %s216_s16  }
   0xe   : > { %p4539_p5 = por %p227_p2, %p226_p0  ;;  %p4543_p6 = por %p233_p4, %p232_p3 }
   0xf   : > { %p3543_p7 = scmp.ge.s32.totalorder %s4447_s12, 1  ;;  %p308_p8 = scmp.lt.s32.totalorder %s4447_s12, 3 }
  0x11   : > { %p309_p9 = pnand %p3543_p7, %p308_p8 }
  0x13   : > { %312 = sbr.rel (%p309_p9) target bundleno = 795 (0x31b), region = 48 }
  0x18   : > { %s6465_s1 = sld [smem:[#allocation60_spill]]  ;;  %p357_p10 = scmp.lt.s32.totalorder %s4522_s13, 1  ;;  %vm493_vm0 = vcmask 1046528   ;;  %vm631_vm1 = vcmask 130048   ;;  %vm1056_vm2 = vcmask 1045504   ;;  %vm2982_vm3 = vcmask 122880  }
  0x19   : > { %s6466_s0 = sld [smem:[#allocation59_spill]]  ;;  %s6460_s27 = sshll.u32 %s4522_s13, 4 }
  0x1a   : > { %s4557_s25 = scalar_select %p357_p10, %s4522_s13, 1 }
  0x1b   : > { %s3405_s14 = scalar_lea.hbm %s6426_s8, %s6460_s27  ;;  %s4449_s22 = smov [#allocation2]  }
  0x1c   : > { %s4303_s28 = smul.u32 432, %s4557_s25  ;;  %s3756_s26 = sshll.u32 %s4557_s25, 8 }
  0x1d   : > { %s5943_s16 = scalar_lea.vmem %s6422_s4, %s3756_s26  ;;  %s6001_s24 = scalar_lea.vmem %s6425_s7, %s3756_s26 }
  0x1e   : > { %v4348_v0 = vld [vmem:[%s6465_s1 + $0x8] sm:$0xff]   ;;  %v4349_v1 = vld [vmem:[%s6465_s1] sm:$0xff]   ;;  %v4350_v2 = vld [vmem:[%s6465_s1 + $0x10] sm:$0xff]   ;;  %s6325_s25 = sand.u32 1, %s4439_s10   ;;  %s4361_s23 = sshll.u32 %s4449_s22, 4  ;;  %s4362_s23 = int_to_ptr.vmem [resolvable:$false] %s4361_s23 }
  0x1f   : > { %3945 = vmatprep.subr.bf16.mxu0 %v4348_v0  ;;  %3979 = vmatprep.subr.bf16.mxu1 %v4349_v1  ;;  %v4351_v3 = vld [vmem:[%s6465_s1 + $0x18] sm:$0xff]   ;;  %s4569_s21 = scalar_lea.vmem %s6466_s0, %s4303_s28  ;;  %v4646_v37 = vld [vmem:[%s6465_s1 + $0x20] sm:$0xff]   ;;  %s350_s26 = scalar_lea.vmem [#allocation2], %s6325_s25 }
  0x20   : > { %3946 = vmatpush3.bf16.msra.mxu0 %v4348_v0  ;;  %3980 = vmatpush3.bf16.msra.mxu1 %v4349_v1  ;;  %v4572_v4 = vld [vmem:[%s4569_s21] sm:$0xff]  ;;  %v4575_v5 = vld [vmem:[%s4569_s21 + $0x8] sm:$0xff]  ;;  %v4578_v6 = vld [vmem:[%s4569_s21 + $0x10] sm:$0x3]  ;;  %6476 = vst [vmem:[#allocation17_spill] sm:$0xff] %v4646_v37  ;;  %s3388_s17 = scalar_lea.sflag [#allocation3], %s6325_s25 }
  0x21   : > { %4013 = vmatprep.subr.bf16.mxu0 %v4350_v2  ;;  %4047 = vmatprep.subr.bf16.mxu1 %v4351_v3  ;;  %6467 = vst [vmem:[#allocation8_spill] sm:$0xff] %v4572_v4  ;;  %6468 = vst [vmem:[#allocation9_spill] sm:$0xff] %v4575_v5  ;;  %v494_v7 = vrot.slane %v4572_v4, 1  ;;  %v495_v8 = vrot.slane %v4575_v5, 1  ;;  %v497_v9 = vrot.slane %v4578_v6, 1  ;;  %v4584_v10 = vld [vmem:[%s4569_s21 + $0x18] sm:$0xff]  ;;  %v427_v12 = vpack.c.bf16 %v4575_v5, %v4572_v4 }
  0x22   : > { %6469 = vst [vmem:[#allocation10_spill] sm:$0xff] %v4578_v6  ;;  %v4587_v11 = vld [vmem:[%s4569_s21 + $0x20] sm:$0xff]  ;;  %v4592_v13 = vld [vmem:[%s4569_s21 + $0x28] sm:$0x3]  ;;  %v499_v14 = vrot.slane %v4584_v10, 1  ;;  %v4596_v15 = vld [vmem:[%s4569_s21 + $0x30] sm:$0xff] }
  0x23   : > { %6470 = vst [vmem:[#allocation11_spill] sm:$0xff] %v4596_v15  ;;  %v496_v16 = vsel %vm493_vm0, %v494_v7, %v495_v8  ;;  %v498_v17 = vsel %vm493_vm0, %v495_v8, %v497_v9  ;;  %v500_v18 = vrot.slane %v4587_v11, 1  ;;  %v502_v19 = vrot.slane %v4592_v13, 1  ;;  %v4603_v20 = vld [vmem:[%s4569_s21 + $0x38] sm:$0xff]  ;;  %v4606_v21 = vld [vmem:[%s4569_s21 + $0x40] sm:$0x3]  ;;  %3981 = vmatprep.mubr.msk.bf16.mxu1 %vm631_vm1, %v427_v12 }
  0x24   : > { %6471 = vst [vmem:[#allocation12_spill] sm:$0xff] %v4603_v20  ;;  %6472 = vst [vmem:[#allocation13_spill] sm:$0xff] %v4606_v21  ;;  %v606_v22 = vpack.c.bf16 %v498_v17, %v496_v16  ;;  %v4610_v23 = vld [vmem:[%s4569_s21 + $0x48] sm:$0xff]  ;;  %v4613_v24 = vld [vmem:[%s4569_s21 + $0x50] sm:$0xff]  ;;  %v4622_v28 = vpack.c.bf16 %v4587_v11, %v4584_v10  ;;  %v504_v29 = vrot.slane %v4596_v15, 1  ;;  %v505_v33 = vrot.slane %v4603_v20, 1 }
  0x25   : > { %v4616_v25 = vld [vmem:[%s4569_s21 + $0x58] sm:$0x3]  ;;  %v501_v26 = vsel %vm493_vm0, %v499_v14, %v500_v18  ;;  %v503_v27 = vsel %vm493_vm0, %v500_v18, %v502_v19  ;;  %v4626_v30 = vld [vmem:[%s4569_s21 + $0x60] sm:$0xff]  ;;  %v4629_v31 = vld [vmem:[%s4569_s21 + $0x68] sm:$0xff]  ;;  %v507_v34 = vrot.slane %v4606_v21, 1  ;;  %v4638_v35 = vpack.c.bf16 %v4603_v20, %v4596_v15 }
  0x26   : > { %6473 = vst [vmem:[#allocation14_spill] sm:$0xff] %v4622_v28  ;;  %3947 = vmatprep.mubr.msk.bf16.mxu0 %vm631_vm1, %v606_v22  ;;  %v4632_v32 = vpack.c.bf16 %v503_v27, %v501_v26  ;;  %v4641_v36 = vld [vmem:[%s4569_s21 + $0x70] sm:$0x3]  ;;  %3982 = vmatmul.mubr.msk.bf16.vlgmr.msra.gmra.mxu1 %vm631_vm1, %v4622_v28  ;;  %v509_v38 = vrot.slane %v4610_v23, 1  ;;  %v510_v39 = vrot.slane %v4613_v24, 1  ;;  %v512_v40 = vrot.slane %v4616_v25, 1 }
  0x27   : > { %6475 = vst [vmem:[#allocation16_spill] sm:$0xff] %v4638_v35  ;;  %v506_v41 = vsel %vm493_vm0, %v504_v29, %v505_v33  ;;  %v508_v42 = vsel %vm493_vm0, %v505_v33, %v507_v34  ;;  %3985 = vmatprep.mubr.msk.bf16.mxu1 %vm631_vm1, %v4638_v35  ;;  %v514_v43 = vrot.slane %v4626_v30, 1  ;;  %v515_v44 = vrot.slane %v4629_v31, 1  ;;  %v4662_v45 = vld [vmem:[%s4569_s21 + $0x78] sm:$0xff]  ;;  %v4665_v46 = vld [vmem:[%s4569_s21 + $0x80] sm:$0xff]  ;;  %v4676_v52 = vld [vmem:[%s4569_s21 + $0x90] sm:$0xff]  ;;  %4048 = vmatpush3.bf16.msra.mxu1 %v4351_v3 }
  0x28   : > { %6474 = vst [vmem:[#allocation15_spill] sm:$0xff] %v4632_v32  ;;  %3948 = vmatmul.mubr.msk.bf16.vlgmr.msra.gmra.mxu0 %vm631_vm1, %v4632_v32  ;;  %v4668_v47 = vld [vmem:[%s4569_s21 + $0x88] sm:$0x3]  ;;  %v4670_v48 = vpack.c.bf16 %v508_v42, %v506_v41  ;;  %v511_v49 = vsel %vm493_vm0, %v509_v38, %v510_v39  ;;  %v513_v50 = vsel %vm493_vm0, %v510_v39, %v512_v40  ;;  %v517_v51 = vrot.slane %v4641_v36, 1  ;;  %v4679_v53 = vld [vmem:[%s4569_s21 + $0x98] sm:$0xff]  ;;  %v4711_v7 = vld [vmem:[%s4569_s21 + $0xb0] sm:$0xff] }
  0x29   : > { %4014 = vmatpush3.bf16.msra.mxu0 %v4350_v2  ;;  %v4682_v54 = vld [vmem:[%s4569_s21 + $0xa0] sm:$0x3]  ;;  %v4684_v55 = vpack.c.bf16 %v513_v50, %v511_v49  ;;  %v4688_v56 = vpack.c.bf16 %v4613_v24, %v4610_v23  ;;  %v516_v57 = vsel %vm493_vm0, %v514_v43, %v515_v44  ;;  %v4697_v59 = vpack.c.bf16 %v4629_v31, %v4626_v30  ;;  %v4708_v3 = vld [vmem:[%s4569_s21 + $0xa8] sm:$0xff]  ;;  %v4714_v8 = vld [vmem:[%s4569_s21 + $0xb8] sm:$0x3] }
  0x2a   : > { %6477 = vst [vmem:[#allocation18_spill] sm:$0xff] %v4670_v48  ;;  %4081 = vmatprep.subr.bf16.mxu0 %v4646_v37  ;;  %3951 = vmatprep.mubr.msk.bf16.mxu0 %vm631_vm1, %v4670_v48  ;;  %v518_v58 = vsel %vm493_vm0, %v515_v44, %v517_v51  ;;  %v519_v60 = vrot.slane %v4662_v45, 1  ;;  %v520_v61 = vrot.slane %v4665_v46, 1  ;;  %v522_v62 = vrot.slane %v4668_v47, 1  ;;  %v4717_v9 = vld [vmem:[%s4569_s21 + $0xc0] sm:$0xff]  ;;  %v4723_v14 = vld [vmem:[%s4569_s21 + $0xc8] sm:$0xff] }
  0x2b   : > { %6478 = vst [vmem:[#allocation19_spill] sm:$0xff] %v4684_v55  ;;  %6479 = vst [vmem:[#allocation20_spill] sm:$0xff] %v4688_v56  ;;  %v524_v63 = vrot.slane %v4676_v52, 1  ;;  %v525_v0 = vrot.slane %v4679_v53, 1  ;;  %v527_v1 = vrot.slane %v4682_v54, 1  ;;  %v4705_v2 = vpack.c.bf16 %v518_v58, %v516_v57  ;;  %v4729_v17 = vld [vmem:[%s4569_s21 + $0xd8] sm:$0xff] }
  0x2c   : > { %6480 = vst [vmem:[#allocation21_spill] sm:$0xff] %v4697_v59  ;;  %v521_v12 = vsel %vm493_vm0, %v519_v60, %v520_v61  ;;  %v4726_v16 = vld [vmem:[%s4569_s21 + $0xd0] sm:$0x3]  ;;  %v523_v18 = vsel %vm493_vm0, %v520_v61, %v522_v62  ;;  %v4739_v26 = vld [vmem:[%s4569_s21 + $0xe0] sm:$0xff]  ;;  %v4742_v27 = vld [vmem:[%s4569_s21 + $0xe8] sm:$0x3]  ;;  %v4769_v44 = vpack.c.bf16 %v4665_v46, %v4662_v45  ;;  %v4773_v49 = vpack.c.bf16 %v4679_v53, %v4676_v52 }
  0x2d   : > { %6481 = vst [vmem:[#allocation22_spill] sm:$0xff] %v4705_v2  ;;  %v526_v19 = vsel %vm493_vm0, %v524_v63, %v525_v0  ;;  %v528_v22 = vsel %vm493_vm0, %v525_v0, %v527_v1  ;;  %v4745_v29 = vld [vmem:[%s4569_s21 + $0xf0] sm:$0xff]  ;;  %v529_v33 = vrot.slane %v4708_v3, 1  ;;  %v530_v34 = vrot.slane %v4711_v7, 1  ;;  %v4753_v39 = vld [vmem:[%s4569_s21 + $0xf8] sm:$0xff]  ;;  %v4759_v41 = vld [vmem:[%s4569_s21 + $0x108] sm:$0xff] }
  0x2e   : > { %3986 = vmatmul.mubr.msk.bf16.gmra.mxu1 %vm631_vm1, %v4688_v56  ;;  %v532_v38 = vrot.slane %v4714_v8, 1  ;;  %v4756_v40 = vld [vmem:[%s4569_s21 + $0x100] sm:$0x3]  ;;  %v4764_v42 = vld [vmem:[%s6465_s1 + $0x28] sm:$0xff]   ;;  %6483 = vst [vmem:[#allocation24_spill] sm:$0xff] %v4769_v44  ;;  %6484 = vst [vmem:[#allocation25_spill] sm:$0xff] %v4773_v49  ;;  %v4778_v51 = vpack.c.bf16 %v523_v18, %v521_v12  ;;  %v4780_v57 = vpack.c.bf16 %v528_v22, %v526_v19 }
  0x2f   : > { %3989 = vmatprep.mubr.msk.bf16.mxu1 %vm631_vm1, %v4697_v59  ;;  %6482 = vst [vmem:[#allocation23_spill] sm:$0xff] %v4764_v42  ;;  %v4776_v50 = vld [vmem:[%s4569_s21 + $0x110] sm:$0xff]  ;;  %v534_v58 = vrot.slane %v4717_v9, 1  ;;  %v535_v60 = vrot.slane %v4723_v14, 1  ;;  %v4785_v61 = vld [vmem:[%s4569_s21 + $0x118] sm:$0x3]  ;;  %4115 = vmatprep.subr.bf16.mxu1 %v4764_v42  ;;  %v531_v12 = vsel %vm493_vm0, %v529_v33, %v530_v34  ;;  %v4819_v37 = vpack.c.bf16 %v4723_v14, %v4717_v9 }
  0x30   : > { %3952 = vmatmul.mubr.msk.bf16.gmra.mxu0 %vm631_vm1, %v4684_v55  ;;  %6485 = vst [vmem:[#allocation26_spill] sm:$0xff] %v4778_v51  ;;  %6486 = vst [vmem:[#allocation27_spill] sm:$0xff] %v4780_v57  ;;  %v537_v62 = vrot.slane %v4726_v16, 1  ;;  %v539_v63 = vrot.slane %v4729_v17, 1  ;;  %v540_v0 = vrot.slane %v4739_v26, 1  ;;  %v542_v1 = vrot.slane %v4742_v27, 1 }
  0x31   : > { %3955 = vmatprep.mubr.msk.bf16.mxu0 %vm631_vm1, %v4705_v2  ;;  %v533_v18 = vsel %vm493_vm0, %v530_v34, %v532_v38  ;;  %v544_v19 = vrot.slane %v4745_v29, 1  ;;  %v545_v22 = vrot.slane %v4753_v39, 1  ;;  %v4797_v43 = vld [vmem:[%s4569_s21 + $0x120] sm:$0xff]  ;;  %v4800_v2 = vld [vmem:[%s4569_s21 + $0x128] sm:$0xff]  ;;  %v547_v55 = vrot.slane %v4756_v40, 1  ;;  %v4830_v28 = vld [vmem:[%s4569_s21 + $0x138] sm:$0xff] }
  0x32   : > { %v549_v48 = vrot.slane %v4759_v41, 1  ;;  %v550_v32 = vrot.slane %v4776_v50, 1  ;;  %v552_v59 = vrot.slane %v4785_v61, 1  ;;  %v4807_v33 = vld [vmem:[%s4569_s21 + $0x130] sm:$0x3]  ;;  %v1063_v34 = vrot.slane %v4587_v11, 2 }
  0x33   : > { %6487 = vst [vmem:[#allocation28_spill] sm:$0xff] %v4807_v33  ;;  %v4814_v38 = vpack.c.bf16 %v4711_v7, %v4708_v3  ;;  %v536_v42 = vsel %vm493_vm0, %v534_v58, %v535_v60  ;;  %v1065_v56 = vrot.slane %v4592_v13, 2  ;;  %v538_v11 = vsel %vm493_vm0, %v535_v60, %v537_v62  ;;  %v4840_v60 = vld [vmem:[%s4569_s21 + $0x140] sm:$0xff]  ;;  %v4843_v62 = vld [vmem:[%s4569_s21 + $0x148] sm:$0x3]  ;;  %v4862_v15 = vld [vmem:[%s4569_s21 + $0x150] sm:$0xff] }
  0x34   : > { %v543_v35 = vsel %vm493_vm0, %v540_v0, %v542_v1  ;;  %v4834_v13 = vpack.c.bf16 %v533_v18, %v531_v12  ;;  %v554_v58 = vrot.slane %v4797_v43, 1  ;;  %6488 = vst [vmem:[#allocation29_spill] sm:$0xff] %v4843_v62  ;;  %v551_v1 = vsel %vm493_vm0, %v549_v48, %v550_v32 }
  0x35   : > { %v553_v12 = vsel %vm493_vm0, %v550_v32, %v552_v59  ;;  %v4849_v18 = vpack.c.bf16 %v538_v11, %v536_v42  ;;  %v4855_v21 = vpack.c.bf16 %v4739_v26, %v4729_v17  ;;  %v4859_v20 = vpack.c.bf16 %v4753_v39, %v4745_v29  ;;  %v4875_v59 = vld [vmem:[%s4569_s21 + $0x160] sm:$0x3] }
  0x36   : > { %3990 = vmatmul.mubr.msk.bf16.gmra.mxu1 %vm631_vm1, %v4769_v44  ;;  %v541_v44 = vsel %vm493_vm0, %v539_v63, %v540_v0  ;;  %v546_v63 = vsel %vm493_vm0, %v544_v19, %v545_v22  ;;  %v548_v0 = vsel %vm493_vm0, %v545_v22, %v547_v55  ;;  %v4865_v19 = vld [vmem:[%s4569_s21 + $0x158] sm:$0xff]  ;;  %v4869_v48 = vpack.c.bf16 %v4776_v50, %v4759_v41 }
  0x37   : > { %3993 = vmatprep.mubr.msk.bf16.mxu1 %vm631_vm1, %v4773_v49  ;;  %v557_v49 = vrot.slane %v4807_v33, 1  ;;  %v559_v32 = vrot.slane %v4830_v28, 1  ;;  %v562_v55 = vrot.slane %v4843_v62, 1  ;;  %v4877_v42 = vpack.c.bf16 %v548_v0, %v546_v63 }
  0x38   : > { %3956 = vmatmul.mubr.msk.bf16.gmra.mxu0 %vm631_vm1, %v4778_v51  ;;  %v555_v51 = vrot.slane %v4800_v2, 1  ;;  %v564_v6 = vrot.slane %v4862_v15, 1  ;;  %v565_v5 = vrot.slane %v4865_v19, 1  ;;  %v6489_v4 = vrot.slane %v4584_v10, 2 }
  0x39   : > { %3959 = vmatprep.mubr.msk.bf16.mxu0 %vm631_vm1, %v4780_v57  ;;  %v4851_v57 = vpack.c.bf16 %v543_v35, %v541_v44  ;;  %v560_v35 = vrot.slane %v4840_v60, 1  ;;  %v4879_v44 = vpack.c.bf16 %v553_v12, %v551_v1  ;;  %v1066_v62 = vsel %vm1056_vm2, %v1063_v34, %v1065_v56 }
  0x3a   : > { %v556_v22 = vsel %vm493_vm0, %v554_v58, %v555_v51  ;;  %v558_v11 = vsel %vm493_vm0, %v555_v51, %v557_v49  ;;  %v1064_v33 = vsel %vm1056_vm2, %v6489_v4, %v1063_v34  ;;  %v4893_v63 = vpack.c.bf16 %v4800_v2, %v4797_v43 }
  0x3b   : > { %v4897_v49 = vpack.c.bf16 %v4840_v60, %v4830_v28  ;;  %v567_v51 = vrot.slane %v4875_v59, 1  ;;  %v4900_v58 = vpack.c.bf16 %v1066_v62, %v1064_v33  ;;  %v4906_v4 = vpack.c.bf16 %v558_v11, %v556_v22 }
  0x3c   : > { %v4909_v10 = vsel %vm493_vm0, %v559_v32, %v560_v35  ;;  %v4912_v56 = vsel %vm493_vm0, %v560_v35, %v562_v55  ;;  %v1072_v34 = vrot.slane %v4610_v23, 2  ;;  %v1073_v33 = vrot.slane %v4613_v24, 2 }
  0x3d   : > { %v1075_v62 = vrot.slane %v4616_v25, 2  ;;  %v1077_v0 = vrot.slane %v4626_v30, 2  ;;  %v1078_v1 = vrot.slane %v4629_v31, 2  ;;  %v4922_v12 = vsel %vm493_vm0, %v564_v6, %v565_v5 }
  0x3e   : > { %3994 = vmatmul.mubr.msk.bf16.gmra.mxu1 %vm631_vm1, %v4814_v38  ;;  %v4926_v32 = vpack.c.bf16 %v4865_v19, %v4862_v15  ;;  %v1080_v23 = vrot.slane %v4641_v36, 2  ;;  %v1082_v35 = vrot.slane %v4662_v45, 2  ;;  %v4931_v55 = vsel %vm493_vm0, %v565_v5, %v567_v51 }
  0x3f   : > { %3997 = vmatprep.mubr.msk.bf16.mxu1 %vm631_vm1, %v4819_v37  ;;  %v1074_v24 = vsel %vm1056_vm2, %v1072_v34, %v1073_v33  ;;  %v1076_v25 = vsel %vm1056_vm2, %v1073_v33, %v1075_v62  ;;  %v1079_v30 = vsel %vm1056_vm2, %v1077_v0, %v1078_v1  ;;  %v1083_v22 = vrot.slane %v4665_v46, 2 }
  0x40   : > { %3960 = vmatmul.mubr.msk.bf16.gmra.mxu0 %vm631_vm1, %v4834_v13  ;;  %v4936_v31 = vpack.c.bf16 %v1076_v25, %v1074_v24  ;;  %v1081_v6 = vsel %vm1056_vm2, %v1078_v1, %v1080_v23  ;;  %v1085_v11 = vrot.slane %v4668_v47, 2  ;;  %v1087_v45 = vrot.slane %v4676_v52, 2 }
  0x41   : > { %3963 = vmatprep.mubr.msk.bf16.mxu0 %vm631_vm1, %v4849_v18  ;;  %v4941_v36 = vpack.c.bf16 %v1081_v6, %v1079_v30  ;;  %v1088_v5 = vrot.slane %v4679_v53, 2  ;;  %v1090_v51 = vrot.slane %v4682_v54, 2  ;;  %v1084_v34 = vsel %vm1056_vm2, %v1082_v35, %v1083_v22 }
  0x42   : > { %v1086_v33 = vsel %vm1056_vm2, %v1083_v22, %v1085_v11  ;;  %v1092_v62 = vrot.slane %v4708_v3, 2  ;;  %v1093_v0 = vrot.slane %v4711_v7, 2  ;;  %v1095_v53 = vrot.slane %v4714_v8, 2 }
  0x43   : > { %v4952_v46 = vpack.c.bf16 %v1086_v33, %v1084_v34  ;;  %v1089_v47 = vsel %vm1056_vm2, %v1087_v45, %v1088_v5  ;;  %v1091_v52 = vsel %vm1056_vm2, %v1088_v5, %v1090_v51  ;;  %v1097_v7 = vrot.slane %v4717_v9, 2 }
  0x44   : > { %v4961_v54 = vpack.c.bf16 %v1091_v52, %v1089_v47  ;;  %v1094_v3 = vsel %vm1056_vm2, %v1092_v62, %v1093_v0  ;;  %v1098_v1 = vrot.slane %v4723_v14, 2  ;;  %v1096_v23 = vsel %vm1056_vm2, %v1093_v0, %v1095_v53  ;;  %v6490_v62 = vld [vmem:[#allocation28_spill] sm:$0xff]  ;;  %v6491_v52 = vld [vmem:[#allocation29_spill] sm:$0xff] }
  0x45   : > { %v1100_v8 = vrot.slane %v4726_v16, 2  ;;  %v1102_v35 = vrot.slane %v4729_v17, 2  ;;  %v1103_v24 = vrot.slane %v4739_v26, 2  ;;  %v4972_v25 = vpack.c.bf16 %v1096_v23, %v1094_v3 }
  0x46   : > { %3998 = vmatmul.mubr.msk.bf16.gmra.mxu1 %vm631_vm1, %v4855_v21  ;;  %v1099_v30 = vsel %vm1056_vm2, %v1097_v7, %v1098_v1  ;;  %v1105_v6 = vrot.slane %v4742_v27, 2  ;;  %v1107_v9 = vrot.slane %v4745_v29, 2  ;;  %v1108_v11 = vrot.slane %v4753_v39, 2  ;;  %v419_v7 = vld [vmem:[%s4569_s21 + $0x170] sm:$0xff] }
  0x47   : > { %4001 = vmatprep.mubr.msk.bf16.mxu1 %vm631_vm1, %v4859_v20  ;;  %v1101_v14 = vsel %vm1056_vm2, %v1098_v1, %v1100_v8  ;;  %v1104_v22 = vsel %vm1056_vm2, %v1102_v35, %v1103_v24  ;;  %v1110_v16 = vrot.slane %v4756_v40, 2  ;;  %v1112_v26 = vrot.slane %v4759_v41, 2  ;;  %v420_v35 = vld [vmem:[%s4569_s21 + $0x178] sm:$0x3] }
  0x48   : > { %3964 = vmatmul.mubr.msk.bf16.gmra.mxu0 %vm631_vm1, %v4851_v57  ;;  %v4981_v45 = vpack.c.bf16 %v1101_v14, %v1099_v30  ;;  %v1106_v17 = vsel %vm1056_vm2, %v1103_v24, %v1105_v6  ;;  %v1113_v5 = vrot.slane %v4776_v50, 2  ;;  %v1109_v27 = vsel %vm1056_vm2, %v1107_v9, %v1108_v11 }
  0x49   : > { %3967 = vmatprep.mubr.msk.bf16.mxu0 %vm631_vm1, %v4877_v42  ;;  %v4986_v51 = vpack.c.bf16 %v1106_v17, %v1104_v22  ;;  %v1111_v29 = vsel %vm1056_vm2, %v1108_v11, %v1110_v16  ;;  %v1115_v34 = vrot.slane %v4785_v61, 2  ;;  %v1117_v40 = vrot.slane %v4797_v43, 2 }
  0x4a   : > { %v4991_v33 = vpack.c.bf16 %v1111_v29, %v1109_v27  ;;  %v1114_v39 = vsel %vm1056_vm2, %v1112_v26, %v1113_v5  ;;  %v1118_v41 = vrot.slane %v4800_v2, 2  ;;  %v1120_v0 = vrot.slane %v6490_v62, 2 }
  0x4b   : > { %v1116_v50 = vsel %vm1056_vm2, %v1113_v5, %v1115_v34  ;;  %v1122_v61 = vrot.slane %v4830_v28, 2  ;;  %v1123_v47 = vrot.slane %v4840_v60, 2  ;;  %v1125_v53 = vrot.slane %v6491_v52, 2  ;;  %v418_v28 = vld [vmem:[%s4569_s21 + $0x168] sm:$0xff]  ;;  %v6495_v52 = vld [vmem:[#allocation11_spill] sm:$0xff] }
  0x4c   : > { %v5006_v43 = vpack.c.bf16 %v1116_v50, %v1114_v39  ;;  %v1119_v2 = vsel %vm1056_vm2, %v1117_v40, %v1118_v41  ;;  %v1127_v3 = vrot.slane %v4862_v15, 2  ;;  %v1121_v60 = vsel %vm1056_vm2, %v1118_v41, %v1120_v0  ;;  %v6492_v34 = vld [vmem:[#allocation8_spill] sm:$0xff]  ;;  %v6493_v40 = vld [vmem:[#allocation9_spill] sm:$0xff]  ;;  %v6494_v50 = vld [vmem:[#allocation10_spill] sm:$0xff] }
  0x4d   : > { %v1124_v1 = vsel %vm1056_vm2, %v1122_v61, %v1123_v47  ;;  %v1128_v23 = vrot.slane %v4865_v19, 2  ;;  %v1130_v8 = vrot.slane %v4875_v59, 2  ;;  %v5020_v24 = vpack.c.bf16 %v1121_v60, %v1119_v2 }
  0x4e   : > { %4002 = vmatmul.mubr.msk.bf16.gmra.mxu1 %vm631_vm1, %v4869_v48  ;;  %v1126_v30 = vsel %vm1056_vm2, %v1123_v47, %v1125_v53  ;;  %v1132_v6 = vrot.slane %v418_v28, 2  ;;  %v1133_v15 = vrot.slane %v419_v7, 2  ;;  %v1135_v11 = vrot.slane %v420_v35, 2 }
  0x4f   : > { %4005 = vmatprep.mubr.msk.bf16.mxu1 %vm631_vm1, %v4893_v63  ;;  %v5023_v9 = vpack.c.bf16 %v1126_v30, %v1124_v1  ;;  %v1129_v14 = vsel %vm1056_vm2, %v1127_v3, %v1128_v23  ;;  %v1131_v22 = vsel %vm1056_vm2, %v1128_v23, %v1130_v8  ;;  %v5029_v16 = vpack.c.bf16 %v4912_v56, %v4909_v10  ;;  %v6496_v3 = vld [vmem:[#allocation12_spill] sm:$0xff]  ;;  %v6497_v1 = vld [vmem:[#allocation13_spill] sm:$0xff]  ;;  %v6498_v8 = vld [vmem:[#allocation14_spill] sm:$0xff] }
  0x50   : > { %3968 = vmatmul.mubr.msk.bf16.gmra.mxu0 %vm631_vm1, %v4879_v44  ;;  %v569_v19 = vrot.slane %v418_v28, 1  ;;  %v5031_v59 = vpack.c.bf16 %v1131_v22, %v1129_v14  ;;  %v1134_v17 = vsel %vm1056_vm2, %v1132_v6, %v1133_v15  ;;  %v5036_v26 = vpack.c.bf16 %v4931_v55, %v4922_v12  ;;  %v4354_v30 = vld [vmem:[%s6465_s1 + $0x30] sm:$0xff]   ;;  %v6499_v6 = vld [vmem:[#allocation16_spill] sm:$0xff] }
  0x51   : > { %3971 = vmatprep.mubr.msk.bf16.mxu0 %vm631_vm1, %v4906_v4  ;;  %v570_v5 = vrot.slane %v419_v7, 1  ;;  %v572_v27 = vrot.slane %v420_v35, 1  ;;  %v1136_v29 = vsel %vm1056_vm2, %v1133_v15, %v1135_v11  ;;  %v1057_v39 = vrot.slane %v6492_v34, 2  ;;  %v4355_v15 = vld [vmem:[%s6465_s1 + $0x38] sm:$0xff]   ;;  %v6500_v14 = vld [vmem:[#allocation20_spill] sm:$0xff]  ;;  %v6501_v22 = vld [vmem:[#allocation17_spill] sm:$0xff] }
  0x52   : > { %v1058_v41 = vrot.slane %v6493_v40, 2  ;;  %v1060_v10 = vrot.slane %v6494_v50, 2  ;;  %v5042_v56 = vpack.c.bf16 %v1136_v29, %v1134_v17  ;;  %v5056_v61 = vpack.c.bf16 %v419_v7, %v418_v28  ;;  %v6502_v11 = vld [vmem:[#allocation23_spill] sm:$0xff]  ;;  %v6504_v17 = vld [vmem:[#allocation24_spill] sm:$0xff] }
  0x53   : > { %v571_v12 = vsel %vm493_vm0, %v569_v19, %v570_v5  ;;  %v573_v55 = vsel %vm493_vm0, %v570_v5, %v572_v27  ;;  %v1067_v53 = vrot.slane %v6495_v52, 2  ;;  %v1068_v60 = vrot.slane %v6496_v3, 2  ;;  %v6503_v19 = vld [vmem:[#allocation21_spill] sm:$0xff]  ;;  %v421_v27 = vld [vmem:[%s4569_s21 + $0x180] sm:$0xff] }
  0x54   : > { %v1059_v62 = vsel %vm1056_vm2, %v1057_v39, %v1058_v41  ;;  %v1061_v0 = vsel %vm1056_vm2, %v1058_v41, %v1060_v10  ;;  %v5058_v47 = vpack.c.bf16 %v573_v55, %v571_v12  ;;  %v1070_v23 = vrot.slane %v6497_v1, 2  ;;  %v6505_v5 = vld [vmem:[#allocation25_spill] sm:$0xff]  ;;  %v6506_v39 = vld [vmem:[#allocation15_spill] sm:$0xff]  ;;  %v6507_v41 = vld [vmem:[#allocation18_spill] sm:$0xff] }
  0x55   : > { %v1169_v2 = vpack.c.bf16 %v1061_v0, %v1059_v62  ;;  %v1069_v28 = vsel %vm1056_vm2, %v1067_v53, %v1068_v60  ;;  %v422_v29 = vld [vmem:[%s4569_s21 + $0x188] sm:$0xff]  ;;  %v5153_v40 = vld [vmem:[%s6465_s1 + $0x40] sm:$0xff]   ;;  %v6510_v10 = vld [vmem:[#allocation26_spill] sm:$0xff]  ;;  %v1857_v62 = vrot.slane %v421_v27, 2  ;;  %v1644_v52 = vrot.slane %v421_v27, 1 }
  0x56   : > { %4006 = vmatmul.mubr.msk.bf16.gmra.mxu1 %vm631_vm1, %v4897_v49  ;;  %v1071_v7 = vsel %vm1056_vm2, %v1068_v60, %v1070_v23  ;;  %v5140_v34 = vpack.c.bf16 %v422_v29, %v421_v27  ;;  %v6508_v50 = vld [vmem:[#allocation19_spill] sm:$0xff]  ;;  %v423_v55 = vld [vmem:[%s4569_s21 + $0x190] sm:$0x3]  ;;  %v1858_v0 = vrot.slane %v422_v29, 2  ;;  %v1645_v53 = vrot.slane %v422_v29, 1 }
  0x57   : > { %4009 = vmatprep.mubr.msk.bf16.mxu1 %vm631_vm1, %v4926_v32  ;;  %v5072_v35 = vpack.c.bf16 %v1071_v7, %v1069_v28  ;;  %v6511_v12 = vld [vmem:[#allocation27_spill] sm:$0xff]  ;;  %v1647_v3 = vrot.slane %v423_v55, 1 }
  0x58   : > { %3972 = vmatmul.mubr.msk.bf16.gmra.mxu0 %vm631_vm1, %v5029_v16  ;;  %v1859_v60 = vsel %vm1056_vm2, %v1857_v62, %v1858_v0  ;;  %v5214_v23 = vld [vmem:[%s4569_s21 + $0x198] sm:$0xff]  ;;  %v1646_v28 = vsel %vm493_vm0, %v1644_v52, %v1645_v53 }
  0x59   : > { %3975 = vmatprep.mubr.msk.bf16.mxu0 %vm631_vm1, %v5036_v26  ;;  %v1648_v7 = vsel %vm493_vm0, %v1645_v53, %v1647_v3 }
  0x5a   : > { %v5231_v29 = vpack.c.bf16 %v1648_v7, %v1646_v28 }
  0x5e   : > { %4010 = vmatmul.mubr.msk.bf16.gmra.mxu1 %vm631_vm1, %v5056_v61 }
  0x5f   : > { %4049 = vmatprep.mubr.msk.bf16.mxu1 %vm631_vm1, %v6498_v8  ;;  %v5217_v8 = vld [vmem:[%s4569_s21 + $0x1a0] sm:$0xff] }
  0x60   : > { %3976 = vmatmul.mubr.msk.bf16.gmra.mxu0 %vm631_vm1, %v5058_v47 }
  0x61   : > { %4015 = vmatprep.mubr.msk.bf16.mxu0 %vm631_vm1, %v1169_v2  ;;  %v1860_v2 = vrot.slane %v423_v55, 2 }
  0x63   : > { %v1861_v1 = vsel %vm1056_vm2, %v1858_v0, %v1860_v2 }
  0x66   : > { %4050 = vmatmul.mubr.msk.bf16.vlgmr.msra.gmra.mxu1 %vm631_vm1, %v6499_v6 }
  0x67   : > { %4053 = vmatprep.mubr.msk.bf16.mxu1 %vm631_vm1, %v6500_v14  ;;  %4116 = vmatpush3.bf16.msra.mxu1 %v6502_v11  ;;  %v5228_v11 = vpack.c.bf16 %v1861_v1, %v1859_v60 }
  0x68   : > { %4016 = vmatmul.mubr.msk.bf16.vlgmr.msra.gmra.mxu0 %vm631_vm1, %v4900_v58  ;;  %4183 = vmatprep.subr.bf16.mxu1 %v4355_v15 }
  0x69   : > { %4082 = vmatpush3.bf16.msra.mxu0 %v6501_v22  ;;  %4019 = vmatprep.mubr.msk.bf16.mxu0 %vm631_vm1, %v5072_v35  ;;  %v5226_v22 = vld [vmem:[%s4569_s21 + $0x1a8] sm:$0x3] }
  0x6a   : > { %4149 = vmatprep.subr.bf16.mxu0 %v4354_v30  ;;  %v2495_v27 = vrot.slane %v5226_v22, 2 }
  0x6e   : > { %4054 = vmatmul.mubr.msk.bf16.gmra.mxu1 %vm631_vm1, %v6503_v19 }
  0x6f   : > { %4057 = vmatprep.mubr.msk.bf16.mxu1 %vm631_vm1, %v6504_v17 }
  0x70   : > { %4020 = vmatmul.mubr.msk.bf16.gmra.mxu0 %vm631_vm1, %v4936_v31 }
  0x71   : > { %4023 = vmatprep.mubr.msk.bf16.mxu0 %vm631_vm1, %v4941_v36 }
  0x76   : > { %4058 = vmatmul.mubr.msk.bf16.gmra.mxu1 %vm631_vm1, %v6505_v5 }
  0x77   : > { %4061 = vmatprep.mubr.msk.bf16.mxu1 %vm631_vm1, %v4814_v38 }
  0x78   : > { %4024 = vmatmul.mubr.msk.bf16.gmra.mxu0 %vm631_vm1, %v4952_v46 }
  0x79   : > { %4027 = vmatprep.mubr.msk.bf16.mxu0 %vm631_vm1, %v4961_v54 }
  0x7e   : > { %4062 = vmatmul.mubr.msk.bf16.gmra.mxu1 %vm631_vm1, %v4819_v37 }
  0x7f   : > { %4065 = vmatprep.mubr.msk.bf16.mxu1 %vm631_vm1, %v4855_v21 }
  0x80   : > { %4028 = vmatmul.mubr.msk.bf16.gmra.mxu0 %vm631_vm1, %v4972_v25 }
  0x81   : > { %4031 = vmatprep.mubr.msk.bf16.mxu0 %vm631_vm1, %v4981_v45 }
  0x86   : > { %4066 = vmatmul.mubr.msk.bf16.gmra.mxu1 %vm631_vm1, %v4859_v20 }
  0x87   : > { %4069 = vmatprep.mubr.msk.bf16.mxu1 %vm631_vm1, %v4869_v48 }
  0x88   : > { %4032 = vmatmul.mubr.msk.bf16.gmra.mxu0 %vm631_vm1, %v4986_v51 }
  0x89   : > { %4035 = vmatprep.mubr.msk.bf16.mxu0 %vm631_vm1, %v4991_v33 }
  0x8e   : > { %4070 = vmatmul.mubr.msk.bf16.gmra.mxu1 %vm631_vm1, %v4893_v63 }
  0x8f   : > { %4073 = vmatprep.mubr.msk.bf16.mxu1 %vm631_vm1, %v4897_v49 }
  0x90   : > { %4036 = vmatmul.mubr.msk.bf16.gmra.mxu0 %vm631_vm1, %v5006_v43 }
  0x91   : > { %4039 = vmatprep.mubr.msk.bf16.mxu0 %vm631_vm1, %v5020_v24 }
  0x96   : > { %4074 = vmatmul.mubr.msk.bf16.gmra.mxu1 %vm631_vm1, %v4926_v32 }
  0x97   : > { %4077 = vmatprep.mubr.msk.bf16.mxu1 %vm631_vm1, %v5056_v61 }
  0x98   : > { %4040 = vmatmul.mubr.msk.bf16.gmra.mxu0 %vm631_vm1, %v5023_v9 }
  0x99   : > { %4043 = vmatprep.mubr.msk.bf16.mxu0 %vm631_vm1, %v5031_v59 }
  0x9e   : > { %4078 = vmatmul.mubr.msk.bf16.gmra.mxu1 %vm631_vm1, %v5140_v34 }
  0x9f   : > { %4117 = vmatprep.mubr.msk.bf16.mxu1 %vm631_vm1, %v4900_v58  ;;  %v6509_v58 = vld [vmem:[#allocation22_spill] sm:$0xff] }
  0xa0   : > { %4044 = vmatmul.mubr.msk.bf16.gmra.mxu0 %vm631_vm1, %v5042_v56 }
  0xa1   : > { %4083 = vmatprep.mubr.msk.bf16.mxu0 %vm631_vm1, %v6506_v39 }
  0xa6   : > { %4118 = vmatmul.mubr.msk.bf16.vlgmr.msra.gmra.mxu1 %vm631_vm1, %v5072_v35 }
  0xa7   : > { %4121 = vmatprep.mubr.msk.bf16.mxu1 %vm631_vm1, %v4936_v31  ;;  %4184 = vmatpush3.bf16.msra.mxu1 %v4355_v15  ;;  %v2493_v15 = vrot.slane %v5217_v8, 2 }
  0xa8   : > { %4084 = vmatmul.mubr.msk.bf16.vlgmr.msra.gmra.mxu0 %vm631_vm1, %v6507_v41 }
  0xa9   : > { %4150 = vmatpush3.bf16.msra.mxu0 %v4354_v30  ;;  %4087 = vmatprep.mubr.msk.bf16.mxu0 %vm631_vm1, %v6508_v50  ;;  %v2492_v30 = vrot.slane %v5214_v23, 2  ;;  %v5237_v55 = vsel %vm1056_vm2, %v2493_v15, %v2495_v27 }
  0xaa   : > { %4217 = vmatprep.subr.bf16.mxu0 %v5153_v40 }
  0xab   : > { %v5234_v39 = vsel %vm1056_vm2, %v2492_v30, %v2493_v15 }
  0xae   : > { %4122 = vmatmul.mubr.msk.bf16.gmra.mxu1 %vm631_vm1, %v4941_v36 }
  0xaf   : > { %4125 = vmatprep.mubr.msk.bf16.mxu1 %vm631_vm1, %v4952_v46 }
  0xb0   : > { %4088 = vmatmul.mubr.msk.bf16.gmra.mxu0 %vm631_vm1, %v6509_v58 }
  0xb1   : > { %4091 = vmatprep.mubr.msk.bf16.mxu0 %vm631_vm1, %v6510_v10 }
  0xb6   : > { %4126 = vmatmul.mubr.msk.bf16.gmra.mxu1 %vm631_vm1, %v4961_v54 }
  0xb7   : > { %4129 = vmatprep.mubr.msk.bf16.mxu1 %vm631_vm1, %v4972_v25 }
  0xb8   : > { %4092 = vmatmul.mubr.msk.bf16.gmra.mxu0 %vm631_vm1, %v6511_v12 }
  0xb9   : > { %4095 = vmatprep.mubr.msk.bf16.mxu0 %vm631_vm1, %v4834_v13 }
  0xbe   : > { %4130 = vmatmul.mubr.msk.bf16.gmra.mxu1 %vm631_vm1, %v4981_v45 }
  0xbf   : > { %4133 = vmatprep.mubr.msk.bf16.mxu1 %vm631_vm1, %v4986_v51 }
  0xc0   : > { %4096 = vmatmul.mubr.msk.bf16.gmra.mxu0 %vm631_vm1, %v4849_v18 }
  0xc1   : > { %4099 = vmatprep.mubr.msk.bf16.mxu0 %vm631_vm1, %v4851_v57 }
  0xc6   : > { %4134 = vmatmul.mubr.msk.bf16.gmra.mxu1 %vm631_vm1, %v4991_v33 }
  0xc7   : > { %4137 = vmatprep.mubr.msk.bf16.mxu1 %vm631_vm1, %v5006_v43 }
  0xc8   : > { %4100 = vmatmul.mubr.msk.bf16.gmra.mxu0 %vm631_vm1, %v4877_v42 }
  0xc9   : > { %4103 = vmatprep.mubr.msk.bf16.mxu0 %vm631_vm1, %v4879_v44 }
  0xce   : > { %4138 = vmatmul.mubr.msk.bf16.gmra.mxu1 %vm631_vm1, %v5020_v24 }
  0xcf   : > { %4141 = vmatprep.mubr.msk.bf16.mxu1 %vm631_vm1, %v5023_v9 }
  0xd0   : > { %4104 = vmatmul.mubr.msk.bf16.gmra.mxu0 %vm631_vm1, %v4906_v4 }
  0xd1   : > { %4107 = vmatprep.mubr.msk.bf16.mxu0 %vm631_vm1, %v5029_v16 }
  0xd6   : > { %4142 = vmatmul.mubr.msk.bf16.gmra.mxu1 %vm631_vm1, %v5031_v59 }
  0xd7   : > { %4145 = vmatprep.mubr.msk.bf16.mxu1 %vm631_vm1, %v5042_v56 }
  0xd8   : > { %4108 = vmatmul.mubr.msk.bf16.gmra.mxu0 %vm631_vm1, %v5036_v26 }
  0xd9   : > { %4111 = vmatprep.mubr.msk.bf16.mxu0 %vm631_vm1, %v5058_v47 }
  0xde   : > { %4146 = vmatmul.mubr.msk.bf16.gmra.mxu1 %vm631_vm1, %v5228_v11 }
  0xdf   : > { %4185 = vmatprep.mubr.msk.bf16.mxu1 %vm631_vm1, %v6507_v41 }
  0xe0   : > { %4112 = vmatmul.mubr.msk.bf16.gmra.mxu0 %vm631_vm1, %v5231_v29 }
  0xe1   : > { %4151 = vmatprep.mubr.msk.bf16.mxu0 %vm631_vm1, %v6499_v6 }
  0xe6   : > { %v3983_v0 = vpop.f32.mrf.mxu1  ;;  %4186 = vmatmul.mubr.msk.bf16.vlgmr.msra.gmra.mxu1 %vm631_vm1, %v6508_v50 }
  0xe7   : > { %4189 = vmatprep.mubr.msk.bf16.mxu1 %vm631_vm1, %v6509_v58 }
  0xe8   : > { %v3949_v2 = vpop.f32.mrf.mxu0  ;;  %4152 = vmatmul.mubr.msk.bf16.vlgmr.msra.gmra.mxu0 %vm631_vm1, %v6500_v14  ;;  %v929_v53 = vpop.f32.mrf.mxu1 }
  0xe9   : > { %v5255_v52 = vadd.f32 %v3983_v0, %v3949_v2  ;;  %4218 = vmatpush3.bf16.msra.mxu0 %v5153_v40  ;;  %4155 = vmatprep.mubr.msk.bf16.mxu0 %vm631_vm1, %v6503_v19 }
  0xea   : > { %v714_v6 = vpop.f32.mrf.mxu0  ;;  %v3984_v3 = vpop.f32.mrf.mxu1 }
  0xeb   : > { %v5260_v41 = vadd.f32 %v929_v53, %v714_v6 }
  0xec   : > { %v3950_v50 = vpop.f32.mrf.mxu0  ;;  %v932_v1 = vpop.f32.mrf.mxu1 }
  0xed   : > { %v5262_v60 = vadd.f32 %v3984_v3, %v3950_v50 }
  0xee   : > { %v717_v14 = vpop.f32.mrf.mxu0  ;;  %v3987_v58 = vpop.f32.mrf.mxu1  ;;  %4190 = vmatmul.mubr.msk.bf16.gmra.mxu1 %vm631_vm1, %v6510_v10 }
  0xef   : > { %v5264_v28 = vadd.f32 %v932_v1, %v717_v14  ;;  %4193 = vmatprep.mubr.msk.bf16.mxu1 %vm631_vm1, %v6511_v12 }
  0xf0   : > { %v3953_v40 = vpop.f32.mrf.mxu0  ;;  %4156 = vmatmul.mubr.msk.bf16.gmra.mxu0 %vm631_vm1, %v6504_v17  ;;  %v945_v7 = vpop.f32.mrf.mxu1 }
  0xf1   : > { %v5272_v19 = vadd.f32 %v3987_v58, %v3953_v40  ;;  %4159 = vmatprep.mubr.msk.bf16.mxu0 %vm631_vm1, %v6505_v5 }
  0xf2   : > { %v730_v30 = vpop.f32.mrf.mxu0  ;;  %v3988_v27 = vpop.f32.mrf.mxu1 }
  0xf3   : > { %v5276_v15 = vadd.f32 %v945_v7, %v730_v30 }
  0xf4   : > { %v3954_v0 = vpop.f32.mrf.mxu0  ;;  %v948_v10 = vpop.f32.mrf.mxu1 }
  0xf5   : > { %v5278_v2 = vadd.f32 %v3988_v27, %v3954_v0 }
  0xf6   : > { %v733_v53 = vpop.f32.mrf.mxu0  ;;  %v3991_v17 = vpop.f32.mrf.mxu1  ;;  %4194 = vmatmul.mubr.msk.bf16.gmra.mxu1 %vm631_vm1, %v4834_v13 }
  0xf7   : > { %v5280_v6 = vadd.f32 %v948_v10, %v733_v53  ;;  %4197 = vmatprep.mubr.msk.bf16.mxu1 %vm631_vm1, %v4849_v18 }
  0xf8   : > { %v3957_v12 = vpop.f32.mrf.mxu0  ;;  %4160 = vmatmul.mubr.msk.bf16.gmra.mxu0 %vm631_vm1, %v4814_v38  ;;  %v961_v3 = vpop.f32.mrf.mxu1 }
  0xf9   : > { %v5288_v5 = vadd.f32 %v3991_v17, %v3957_v12  ;;  %4163 = vmatprep.mubr.msk.bf16.mxu0 %vm631_vm1, %v4819_v37 }
  0xfa   : > { %v746_v50 = vpop.f32.mrf.mxu0  ;;  %v3992_v14 = vpop.f32.mrf.mxu1 }
  0xfb   : > { %v5292_v1 = vadd.f32 %v961_v3, %v746_v50 }
  0xfc   : > { %v3958_v58 = vpop.f32.mrf.mxu0  ;;  %v964_v13 = vpop.f32.mrf.mxu1 }
  0xfd   : > { %v5294_v40 = vadd.f32 %v3992_v14, %v3958_v58 }
  0xfe   : > { %v749_v7 = vpop.f32.mrf.mxu0  ;;  %v3995_v38 = vpop.f32.mrf.mxu1  ;;  %4198 = vmatmul.mubr.msk.bf16.gmra.mxu1 %vm631_vm1, %v4851_v57 }
  0xff   : > { %v5296_v30 = vadd.f32 %v964_v13, %v749_v7  ;;  %4201 = vmatprep.mubr.msk.bf16.mxu1 %vm631_vm1, %v4877_v42 }
 0x100   : > { %v3961_v18 = vpop.f32.mrf.mxu0  ;;  %4164 = vmatmul.mubr.msk.bf16.gmra.mxu0 %vm631_vm1, %v4855_v21  ;;  %v977_v27 = vpop.f32.mrf.mxu1 }
 0x101   : > { %v5304_v37 = vadd.f32 %v3995_v38, %v3961_v18  ;;  %4167 = vmatprep.mubr.msk.bf16.mxu0 %vm631_vm1, %v4859_v20 }
 0x102   : > { %v762_v0 = vpop.f32.mrf.mxu0  ;;  %v3996_v53 = vpop.f32.mrf.mxu1 }
 0x103   : > { %v5308_v10 = vadd.f32 %v977_v27, %v762_v0 }
 0x104   : > { %v3962_v17 = vpop.f32.mrf.mxu0  ;;  %v980_v57 = vpop.f32.mrf.mxu1 }
 0x105   : > { %v5310_v12 = vadd.f32 %v3996_v53, %v3962_v17 }
 0x106   : > { %v765_v3 = vpop.f32.mrf.mxu0  ;;  %v3999_v21 = vpop.f32.mrf.mxu1  ;;  %4202 = vmatmul.mubr.msk.bf16.gmra.mxu1 %vm631_vm1, %v4879_v44 }
 0x107   : > { %v5312_v50 = vadd.f32 %v980_v57, %v765_v3  ;;  %4205 = vmatprep.mubr.msk.bf16.mxu1 %vm631_vm1, %v4906_v4  ;;  %v2280_v57 = vrot.slane %v5217_v8, 1 }
 0x108   : > { %v3965_v42 = vpop.f32.mrf.mxu0  ;;  %4168 = vmatmul.mubr.msk.bf16.gmra.mxu0 %vm631_vm1, %v4869_v48  ;;  %v5322_v14 = vpop.f32.mrf.mxu1 }
 0x109   : > { %v5320_v20 = vadd.f32 %v3999_v21, %v3965_v42  ;;  %4171 = vmatprep.mubr.msk.bf16.mxu0 %vm631_vm1, %v4893_v63 }
 0x10a   : > { %v5326_v58 = vpop.f32.mrf.mxu0  ;;  %v4000_v13 = vpop.f32.mrf.mxu1 }
 0x10c   : > { %v3966_v7 = vpop.f32.mrf.mxu0  ;;  %v5330_v44 = vpop.f32.mrf.mxu1 }
 0x10d   : > { %v5328_v38 = vadd.f32 %v4000_v13, %v3966_v7 }
 0x10e   : > { %v5332_v18 = vpop.f32.mrf.mxu0  ;;  %v4003_v48 = vpop.f32.mrf.mxu1  ;;  %4206 = vmatmul.mubr.msk.bf16.gmra.mxu1 %vm631_vm1, %v5029_v16  ;;  %v2279_v16 = vrot.slane %v5214_v23, 1 }
 0x10f   : > { %4209 = vmatprep.mubr.msk.bf16.mxu1 %vm631_vm1, %v5036_v26 }
 0x110   : > { %v3969_v4 = vpop.f32.mrf.mxu0  ;;  %4172 = vmatmul.mubr.msk.bf16.gmra.mxu0 %vm631_vm1, %v4897_v49  ;;  %v5342_v27 = vpop.f32.mrf.mxu1  ;;  %v2282_v49 = vrot.slane %v5226_v22, 1  ;;  %v2281_v13 = vsel %vm493_vm0, %v2279_v16, %v2280_v57 }
 0x111   : > { %v5340_v63 = vadd.f32 %v4003_v48, %v3969_v4  ;;  %4175 = vmatprep.mubr.msk.bf16.mxu0 %vm631_vm1, %v4926_v32 }
 0x112   : > { %v5346_v0 = vpop.f32.mrf.mxu0  ;;  %v4004_v53 = vpop.f32.mrf.mxu1  ;;  %v2283_v22 = vsel %vm493_vm0, %v2280_v57, %v2282_v49 }
 0x114   : > { %v3970_v17 = vpop.f32.mrf.mxu0  ;;  %v5353_v26 = vpop.f32.mrf.mxu1 }
 0x115   : > { %v5351_v3 = vadd.f32 %v4004_v53, %v3970_v17  ;;  %v2286_v53 = vpack.c.bf16 %v2283_v22, %v2281_v13 }
 0x116   : > { %v5355_v21 = vpop.f32.mrf.mxu0  ;;  %v4007_v42 = vpop.f32.mrf.mxu1  ;;  %4210 = vmatmul.mubr.msk.bf16.gmra.mxu1 %vm631_vm1, %v5058_v47 }
 0x117   : > { %4213 = vmatprep.mubr.msk.bf16.mxu1 %vm631_vm1, %v5231_v29 }
 0x118   : > { %v3973_v32 = vpop.f32.mrf.mxu0  ;;  %4176 = vmatmul.mubr.msk.bf16.gmra.mxu0 %vm631_vm1, %v5056_v61  ;;  %v5367_v48 = vpop.f32.mrf.mxu1  ;;  %v2070_v61 = vpack.c.bf16 %v5217_v8, %v5214_v23 }
 0x119   : > { %v5365_v7 = vadd.f32 %v4007_v42, %v3973_v32  ;;  %4179 = vmatprep.mubr.msk.bf16.mxu0 %vm631_vm1, %v5140_v34 }
 0x11a   : > { %v5371_v4 = vpop.f32.mrf.mxu0  ;;  %v4008_v47 = vpop.f32.mrf.mxu1 }
 0x11c   : > { %v3974_v17 = vpop.f32.mrf.mxu0  ;;  %v5377_v16 = vpop.f32.mrf.mxu1 }
 0x11d   : > { %v5375_v29 = vadd.f32 %v4008_v47, %v3974_v17 }
 0x11e   : > { %v5379_v57 = vpop.f32.mrf.mxu0  ;;  %v4011_v49 = vpop.f32.mrf.mxu1  ;;  %4214 = vmatmul.mubr.msk.bf16.gmra.mxu1 %vm631_vm1, %v2286_v53 }
 0x120   : > { %v3977_v42 = vpop.f32.mrf.mxu0  ;;  %4180 = vmatmul.mubr.msk.bf16.gmra.mxu0 %vm631_vm1, %v2070_v61  ;;  %v5385_v32 = vpop.f32.mrf.mxu1 }
 0x121   : > { %v5383_v34 = vadd.f32 %v4011_v49, %v3977_v42  ;;  %4219 = vmatprep.mubr.msk.bf16.mxu0 %vm631_vm1, %v5072_v35 }
 0x122   : > { %v5389_v23 = vpop.f32.mrf.mxu0  ;;  %v4012_v8 = vpop.f32.mrf.mxu1 }
 0x124   : > { %v3978_v13 = vpop.f32.mrf.mxu0  ;;  %v5393_v47 = vpop.f32.mrf.mxu1 }
 0x125   : > { %v5391_v22 = vadd.f32 %v4012_v8, %v3978_v13  ;;  %6513 = vst [vmem:[#allocation29_spill] sm:$0xff] %v5393_v47 }
 0x126   : > { %v5395_v17 = vpop.f32.mrf.mxu0  ;;  %v4051_v53 = vpop.f32.mrf.mxu1 }
 0x127   : > { %6512 = vst [vmem:[#allocation28_spill] sm:$0xff] %v5391_v22  ;;  %6514 = vst [vmem:[#allocation8_spill] sm:$0xff] %v5395_v17 }
 0x128   : > { %v4017_v62 = vpop.f32.mrf.mxu0  ;;  %4220 = vmatmul.mubr.msk.bf16.vlgmr.msra.gmra.mxu0 %vm631_vm1, %v4936_v31  ;;  %v5400_v49 = vpop.f32.mrf.mxu1 }
 0x129   : > { %v1405_v61 = vadd.f32 %v4017_v62, %v5255_v52  ;;  %6515 = vst [vmem:[#allocation9_spill] sm:$0xff] %v5400_v49  ;;  %4223 = vmatprep.mubr.msk.bf16.mxu0 %vm631_vm1, %v4941_v36 }
 0x12a   : > { %v1276_v35 = vpop.f32.mrf.mxu0  ;;  %v4052_v13 = vpop.f32.mrf.mxu1 }
 0x12b   : > { %v5405_v42 = vadd.f32 %v1276_v35, %v5260_v41  ;;  %v5407_v8 = vadd.f32 %v4051_v53, %v1405_v61 }
 0x12c   : > { %v4018_v22 = vpop.f32.mrf.mxu0  ;;  %v5410_v17 = vpop.f32.mrf.mxu1 }
 0x12d   : > { %v1406_v47 = vadd.f32 %v4018_v22, %v5262_v60 }
 0x12e   : > { %v1279_v31 = vpop.f32.mrf.mxu0  ;;  %v4055_v49 = vpop.f32.mrf.mxu1 }
 0x12f   : > { %v5413_v62 = vadd.f32 %v1279_v31, %v5264_v28  ;;  %v5415_v52 = vadd.f32 %v4052_v13, %v1406_v47 }
 0x130   : > { %v4021_v36 = vpop.f32.mrf.mxu0  ;;  %4224 = vmatmul.mubr.msk.bf16.gmra.mxu0 %vm631_vm1, %v4952_v46  ;;  %v5420_v53 = vpop.f32.mrf.mxu1 }
 0x131   : > { %v1409_v41 = vadd.f32 %v4021_v36, %v5272_v19  ;;  %4227 = vmatprep.mubr.msk.bf16.mxu0 %vm631_vm1, %v4961_v54 }
 0x132   : > { %v1292_v60 = vpop.f32.mrf.mxu0  ;;  %v4056_v47 = vpop.f32.mrf.mxu1 }
 0x133   : > { %v5425_v22 = vadd.f32 %v1292_v60, %v5276_v15  ;;  %v5427_v28 = vadd.f32 %v4055_v49, %v1409_v41 }
 0x134   : > { %v4022_v61 = vpop.f32.mrf.mxu0  ;;  %v5430_v13 = vpop.f32.mrf.mxu1 }
 0x135   : > { %v1410_v35 = vadd.f32 %v4022_v61, %v5278_v2  ;;  %v2985_v2 = vld [vmem:[%s6423_s5 + $0x8] sm:$0xff] }
 0x136   : > { %v1295_v46 = vpop.f32.mrf.mxu0  ;;  %v4059_v36 = vpop.f32.mrf.mxu1  ;;  %4251 = vmatprep.subr.mxu1 %v2985_v2 }
 0x137   : > { %v5433_v19 = vadd.f32 %v1295_v46, %v5280_v6  ;;  %v5435_v31 = vadd.f32 %v4056_v47, %v1410_v35  ;;  %4252 = vmatpush3.msra.mxu1 %v2985_v2 }
 0x138   : > { %v4025_v54 = vpop.f32.mrf.mxu0  ;;  %4228 = vmatmul.mubr.msk.bf16.gmra.mxu0 %vm631_vm1, %v4972_v25  ;;  %v5440_v49 = vpop.f32.mrf.mxu1 }
 0x139   : > { %v1413_v15 = vadd.f32 %v4025_v54, %v5288_v5  ;;  %6516 = vst [vmem:[#allocation10_spill] sm:$0xff] %v5440_v49  ;;  %4231 = vmatprep.mubr.msk.bf16.mxu0 %vm631_vm1, %v4981_v45 }
 0x13a   : > { %v1308_v6 = vpop.f32.mrf.mxu0  ;;  %v4060_v47 = vpop.f32.mrf.mxu1 }
 0x13b   : > { %v5448_v41 = vadd.f32 %v1308_v6, %v5292_v1  ;;  %v5450_v60 = vadd.f32 %v4059_v36, %v1413_v15 }
 0x13c   : > { %v4026_v25 = vpop.f32.mrf.mxu0  ;;  %v5453_v61 = vpop.f32.mrf.mxu1 }
 0x13d   : > { %v1414_v5 = vadd.f32 %v4026_v25, %v5294_v40 }
 0x13e   : > { %v1311_v35 = vpop.f32.mrf.mxu0  ;;  %v4063_v54 = vpop.f32.mrf.mxu1 }
 0x13f   : > { %v5456_v45 = vadd.f32 %v1311_v35, %v5296_v30  ;;  %v5458_v46 = vadd.f32 %v4060_v47, %v1414_v5 }
 0x140   : > { %v4029_v49 = vpop.f32.mrf.mxu0  ;;  %4232 = vmatmul.mubr.msk.bf16.gmra.mxu0 %vm631_vm1, %v4986_v51  ;;  %v5463_v36 = vpop.f32.mrf.mxu1 }
 0x141   : > { %v1417_v1 = vadd.f32 %v4029_v49, %v5304_v37  ;;  %4235 = vmatprep.mubr.msk.bf16.mxu0 %vm631_vm1, %v4991_v33 }
 0x142   : > { %v1324_v40 = vpop.f32.mrf.mxu0  ;;  %v4064_v2 = vpop.f32.mrf.mxu1 }
 0x143   : > { %v5468_v15 = vadd.f32 %v1324_v40, %v5308_v10  ;;  %v5470_v30 = vadd.f32 %v4063_v54, %v1417_v1  ;;  %v994_v10 = vadd.f32 %v5322_v14, %v5326_v58 }
 0x144   : > { %v4030_v6 = vpop.f32.mrf.mxu0  ;;  %v5473_v25 = vpop.f32.mrf.mxu1 }
 0x145   : > { %v1418_v47 = vadd.f32 %v4030_v6, %v5310_v12  ;;  %v997_v6 = vadd.f32 %v5330_v44, %v5332_v18 }
 0x146   : > { %v1327_v51 = vpop.f32.mrf.mxu0  ;;  %v4067_v5 = vpop.f32.mrf.mxu1 }
 0x147   : > { %v5476_v37 = vadd.f32 %v1327_v51, %v5312_v50  ;;  %v5478_v49 = vadd.f32 %v4064_v2, %v1418_v47 }
 0x148   : > { %v4033_v33 = vpop.f32.mrf.mxu0  ;;  %4236 = vmatmul.mubr.msk.bf16.gmra.mxu0 %vm631_vm1, %v5006_v43  ;;  %v1546_v54 = vpop.f32.mrf.mxu1 }
 0x149   : > { %v1421_v35 = vadd.f32 %v4033_v33, %v5320_v20  ;;  %4239 = vmatprep.mubr.msk.bf16.mxu0 %vm631_vm1, %v5020_v24 }
 0x14a   : > { %v1340_v12 = vpop.f32.mrf.mxu0  ;;  %v4068_v40 = vpop.f32.mrf.mxu1 }
 0x14b   : > { %v1419_v1 = vadd.f32 %v1340_v12, %v994_v10  ;;  %v5487_v50 = vadd.f32 %v4067_v5, %v1421_v35  ;;  %v1010_v5 = vadd.f32 %v5342_v27, %v5346_v0 }
 0x14c   : > { %v4034_v2 = vpop.f32.mrf.mxu0  ;;  %v1549_v14 = vpop.f32.mrf.mxu1 }
 0x14d   : > { %v1422_v43 = vadd.f32 %v4034_v2, %v5328_v38  ;;  %v5492_v47 = vadd.f32 %v1546_v54, %v1419_v1 }
 0x14e   : > { %v1343_v58 = vpop.f32.mrf.mxu0  ;;  %v4071_v33 = vpop.f32.mrf.mxu1 }
 0x14f   : > { %v1420_v20 = vadd.f32 %v1343_v58, %v997_v6  ;;  %v5494_v51 = vadd.f32 %v4068_v40, %v1422_v43 }
 0x150   : > { %v4037_v24 = vpop.f32.mrf.mxu0  ;;  %4240 = vmatmul.mubr.msk.bf16.gmra.mxu0 %vm631_vm1, %v5023_v9  ;;  %v1562_v38 = vpop.f32.mrf.mxu1  ;;  %v1013_v9 = vadd.f32 %v5353_v26, %v5355_v21  ;;  %v2984_v21 = vld [vmem:[%s6423_s5] sm:$0xff] }
 0x151   : > { %v1425_v10 = vadd.f32 %v4037_v24, %v5340_v63  ;;  %v5501_v44 = vadd.f32 %v1549_v14, %v1420_v20  ;;  %4243 = vmatprep.mubr.msk.bf16.mxu0 %vm631_vm1, %v5031_v59  ;;  %v1026_v14 = vadd.f32 %v5367_v48, %v5371_v4  ;;  %4253 = vmatprep.subr.mxu1 %v2984_v21 }
 0x152   : > { %v1356_v18 = vpop.f32.mrf.mxu0  ;;  %v4072_v12 = vpop.f32.mrf.mxu1  ;;  %4254 = vmatpush3.msra.mxu1 %v2984_v21 }
 0x153   : > { %v1423_v35 = vadd.f32 %v1356_v18, %v1010_v5  ;;  %v5505_v54 = vadd.f32 %v4071_v33, %v1425_v10 }
 0x154   : > { %v4038_v1 = vpop.f32.mrf.mxu0  ;;  %v1565_v63 = vpop.f32.mrf.mxu1 }
 0x155   : > { %v1426_v40 = vadd.f32 %v4038_v1, %v5351_v3  ;;  %v5510_v27 = vadd.f32 %v1562_v38, %v1423_v35  ;;  %v6517_v1 = vpack.c.bf16 %v5237_v55, %v5234_v39  ;;  %v6520_v39 = vld [vmem:[#allocation28_spill] sm:$0xff] }
 0x156   : > { %v1359_v0 = vpop.f32.mrf.mxu0  ;;  %v4075_v43 = vpop.f32.mrf.mxu1 }
 0x157   : > { %v1424_v2 = vadd.f32 %v1359_v0, %v1013_v9  ;;  %v5512_v6 = vadd.f32 %v4072_v12, %v1426_v40  ;;  %v1042_v9 = vadd.f32 %v5385_v32, %v5389_v23 }
 0x158   : > { %v4041_v59 = vpop.f32.mrf.mxu0  ;;  %4244 = vmatmul.mubr.msk.bf16.gmra.mxu0 %vm631_vm1, %v5042_v56  ;;  %v1578_v3 = vpop.f32.mrf.mxu1 }
 0x159   : > { %v1429_v58 = vadd.f32 %v4041_v59, %v5365_v7  ;;  %v5519_v26 = vadd.f32 %v1565_v63, %v1424_v2  ;;  %4247 = vmatprep.mubr.msk.bf16.mxu0 %vm631_vm1, %v5228_v11  ;;  %v1029_v7 = vadd.f32 %v5377_v16, %v5379_v57  ;;  %v6518_v59 = vld [vmem:[#allocation8_spill] sm:$0xff] }
 0x15a   : > { %v1372_v20 = vpop.f32.mrf.mxu0  ;;  %v4076_v56 = vpop.f32.mrf.mxu1 }
 0x15b   : > { %v1427_v33 = vadd.f32 %v1372_v20, %v1026_v14  ;;  %v5526_v24 = vadd.f32 %v4075_v43, %v1429_v58  ;;  %v6519_v14 = vld [vmem:[#allocation29_spill] sm:$0xff] }
 0x15c   : > { %v4042_v48 = vpop.f32.mrf.mxu0  ;;  %v1581_v11 = vpop.f32.mrf.mxu1  ;;  %v1045_v58 = vadd.f32 %v6519_v14, %v6518_v59  ;;  %v1614_v14 = vadd.f32 %v5430_v13, %v5433_v19 }
 0x15d   : > { %v1430_v4 = vadd.f32 %v4042_v48, %v5375_v29  ;;  %v5531_v5 = vadd.f32 %v1578_v3, %v1427_v33 }
 0x15e   : > { %v1375_v10 = vpop.f32.mrf.mxu0  ;;  %v4079_v35 = vpop.f32.mrf.mxu1 }
 0x15f   : > { %v1428_v38 = vadd.f32 %v1375_v10, %v1029_v7  ;;  %v5533_v18 = vadd.f32 %v4076_v56, %v1430_v4  ;;  %v6521_v56 = vld [vmem:[#allocation9_spill] sm:$0xff] }
 0x160   : > { %v4045_v12 = vpop.f32.mrf.mxu0  ;;  %4248 = vmatmul.mubr.msk.bf16.gmra.mxu0 %vm631_vm1, %v6517_v1  ;;  %v1594_v57 = vpop.f32.mrf.mxu1  ;;  %v1609_v48 = vadd.f32 %v6521_v56, %v5405_v42  ;;  %v1610_v1 = vadd.f32 %v5410_v17, %v5413_v62 }
 0x161   : > { %v1433_v16 = vadd.f32 %v4045_v12, %v5383_v34  ;;  %v5542_v29 = vadd.f32 %v1581_v11, %v1428_v38 }
 0x162   : > { %v1388_v40 = vpop.f32.mrf.mxu0  ;;  %v4080_v2 = vpop.f32.mrf.mxu1 }
 0x163   : > { %v1431_v63 = vadd.f32 %v1388_v40, %v1042_v9  ;;  %v5544_v0 = vadd.f32 %v4079_v35, %v1433_v16 }
 0x164   : > { %v4046_v43 = vpop.f32.mrf.mxu0  ;;  %v1597_v21 = vpop.f32.mrf.mxu1 }
 0x165   : > { %v1434_v55 = vadd.f32 %v4046_v43, %v6520_v39  ;;  %v5549_v3 = vadd.f32 %v1594_v57, %v1431_v63  ;;  %v1613_v63 = vadd.f32 %v5420_v53, %v5425_v22 }
 0x166   : > { %v1391_v32 = vpop.f32.mrf.mxu0  ;;  %v5553_v20 = vpop.f32.mrf.mxu1 }
 0x167   : > { %v1432_v23 = vadd.f32 %v1391_v32, %v1045_v58  ;;  %v5551_v34 = vadd.f32 %v4080_v2, %v1434_v55 }
 0x168   : > { %v4085_v33 = vpop.f32.mrf.mxu0  ;;  %v5562_v11 = vpop.f32.mrf.mxu1 }
 0x169   : > { %v5557_v7 = vadd.f32 %v1597_v21, %v1432_v23  ;;  %v5560_v4 = vadd.f32 %v4085_v33, %v5407_v8  ;;  %v6522_v21 = vld [vmem:[#allocation10_spill] sm:$0xff] }
 0x16a   : > { %v1698_v10 = vpop.f32.mrf.mxu0  ;;  %v5566_v35 = vpop.f32.mrf.mxu1  ;;  %v1617_v32 = vadd.f32 %v6522_v21, %v5448_v41 }
 0x16b   : > { %v5564_v38 = vadd.f32 %v1698_v10, %v1609_v48  ;;  %v1618_v48 = vadd.f32 %v5453_v61, %v5456_v45 }
 0x16c   : > { %v4086_v12 = vpop.f32.mrf.mxu0  ;;  %v5573_v42 = vpop.f32.mrf.mxu1 }
 0x16d   : > { %v5571_v9 = vadd.f32 %v4086_v12, %v5415_v52 }
 0x16e   : > { %v1701_v16 = vpop.f32.mrf.mxu0  ;;  %v5577_v8 = vpop.f32.mrf.mxu1 }
 0x16f   : > { %v5575_v57 = vadd.f32 %v1701_v16, %v1610_v1 }
 0x170   : > { %v4089_v40 = vpop.f32.mrf.mxu0  ;;  %v5584_v43 = vpop.f32.mrf.mxu1 }
 0x171   : > { %v5582_v2 = vadd.f32 %v4089_v40, %v5427_v28  ;;  %v1621_v40 = vadd.f32 %v5463_v36, %v5468_v15 }
 0x172   : > { %v1714_v17 = vpop.f32.mrf.mxu0  ;;  %v5588_v52 = vpop.f32.mrf.mxu1 }
 0x173   : > { %v5586_v62 = vadd.f32 %v1714_v17, %v1613_v63 }
 0x174   : > { %v4090_v59 = vpop.f32.mrf.mxu0  ;;  %v5595_v39 = vpop.f32.mrf.mxu1 }
 0x175   : > { %v5593_v58 = vadd.f32 %v4090_v59, %v5435_v31 }
 0x176   : > { %v1717_v53 = vpop.f32.mrf.mxu0  ;;  %v5599_v28 = vpop.f32.mrf.mxu1 }
 0x177   : > { %v5597_v22 = vadd.f32 %v1717_v53, %v1614_v14  ;;  %v1622_v14 = vadd.f32 %v5473_v25, %v5476_v37 }
 0x178   : > { %v4093_v55 = vpop.f32.mrf.mxu0  ;;  %v5606_v33 = vpop.f32.mrf.mxu1 }
 0x179   : > { %v5604_v23 = vadd.f32 %v4093_v55, %v5450_v60 }
 0x17a   : > { %v1730_v13 = vpop.f32.mrf.mxu0  ;;  %v5610_v31 = vpop.f32.mrf.mxu1 }
 0x17b   : > { %v5608_v19 = vadd.f32 %v1730_v13, %v1617_v32 }
 0x17c   : > { %v4094_v56 = vpop.f32.mrf.mxu0  ;;  %v5617_v12 = vpop.f32.mrf.mxu1 }
 0x17d   : > { %v5615_v10 = vadd.f32 %v4094_v56, %v5458_v46 }
 0x17e   : > { %v1733_v41 = vpop.f32.mrf.mxu0  ;;  %v5621_v60 = vpop.f32.mrf.mxu1 }
 0x17f   : > { %v5619_v1 = vadd.f32 %v1733_v41, %v1618_v48 }
 0x180   : > { %v4097_v16 = vpop.f32.mrf.mxu0  ;;  %v5628_v17 = vpop.f32.mrf.mxu1 }
 0x181   : > { %v5626_v63 = vadd.f32 %v4097_v16, %v5470_v30 }
 0x182   : > { %v1746_v61 = vpop.f32.mrf.mxu0  ;;  %v5632_v46 = vpop.f32.mrf.mxu1 }
 0x183   : > { %v5630_v45 = vadd.f32 %v1746_v61, %v1621_v40 }
 0x184   : > { %v4098_v59 = vpop.f32.mrf.mxu0  ;;  %v5639_v55 = vpop.f32.mrf.mxu1 }
 0x185   : > { %v5637_v53 = vadd.f32 %v4098_v59, %v5478_v49 }
 0x186   : > { %v1749_v36 = vpop.f32.mrf.mxu0  ;;  %v5643_v30 = vpop.f32.mrf.mxu1 }
 0x187   : > { %v5641_v15 = vadd.f32 %v1749_v36, %v1622_v14 }
 0x188   : > { %v4101_v21 = vpop.f32.mrf.mxu0  ;;  %v5648_v13 = vpop.f32.mrf.mxu1 }
 0x189   : > { %v5646_v32 = vadd.f32 %v4101_v21, %v5487_v50 }
 0x18a   : > { %v1762_v56 = vpop.f32.mrf.mxu0  ;;  %v5653_v25 = vpop.f32.mrf.mxu1 }
 0x18b   : > { %v5651_v48 = vadd.f32 %v1762_v56, %v5492_v47 }
 0x18c   : > { %v4102_v37 = vpop.f32.mrf.mxu0  ;;  %v5658_v41 = vpop.f32.mrf.mxu1 }
 0x18d   : > { %v5656_v49 = vadd.f32 %v4102_v37, %v5494_v51 }
 0x18e   : > { %v1765_v16 = vpop.f32.mrf.mxu0  ;;  %v5663_v50 = vpop.f32.mrf.mxu1 }
 0x18f   : > { %v5661_v40 = vadd.f32 %v1765_v16, %v5501_v44 }
 0x190   : > { %v4105_v61 = vpop.f32.mrf.mxu0  ;;  %v5668_v47 = vpop.f32.mrf.mxu1 }
 0x191   : > { %v5666_v59 = vadd.f32 %v4105_v61, %v5505_v54  ;;  %6523 = vst [vmem:[#allocation11_spill] sm:$0xff] %v5668_v47 }
 0x192   : > { %v1778_v14 = vpop.f32.mrf.mxu0  ;;  %v5673_v51 = vpop.f32.mrf.mxu1 }
 0x193   : > { %v5671_v36 = vadd.f32 %v1778_v14, %v5510_v27  ;;  %6524 = vst [vmem:[#allocation12_spill] sm:$0xff] %v5673_v51 }
 0x194   : > { %v4106_v21 = vpop.f32.mrf.mxu0  ;;  %v5678_v44 = vpop.f32.mrf.mxu1 }
 0x195   : > { %v5676_v56 = vadd.f32 %v4106_v21, %v5512_v6  ;;  %6525 = vst [vmem:[#allocation13_spill] sm:$0xff] %v5678_v44 }
 0x196   : > { %v1781_v37 = vpop.f32.mrf.mxu0  ;;  %v5683_v54 = vpop.f32.mrf.mxu1 }
 0x197   : > { %v5681_v16 = vadd.f32 %v1781_v37, %v5519_v26  ;;  %6526 = vst [vmem:[#allocation14_spill] sm:$0xff] %v5683_v54 }
 0x198   : > { %v4109_v61 = vpop.f32.mrf.mxu0  ;;  %v5688_v27 = vpop.f32.mrf.mxu1 }
 0x199   : > { %v5686_v47 = vadd.f32 %v4109_v61, %v5526_v24  ;;  %6527 = vst [vmem:[#allocation16_spill] sm:$0xff] %v5688_v27 }
 0x19a   : > { %v1794_v14 = vpop.f32.mrf.mxu0  ;;  %v5693_v6 = vpop.f32.mrf.mxu1 }
 0x19b   : > { %v5691_v51 = vadd.f32 %v1794_v14, %v5531_v5  ;;  %6528 = vst [vmem:[#allocation20_spill] sm:$0xff] %v5693_v6 }
 0x19c   : > { %v4110_v21 = vpop.f32.mrf.mxu0  ;;  %v5698_v26 = vpop.f32.mrf.mxu1 }
 0x19d   : > { %v5696_v44 = vadd.f32 %v4110_v21, %v5533_v18  ;;  %6529 = vst [vmem:[#allocation17_spill] sm:$0xff] %v5698_v26 }
 0x19e   : > { %v1797_v37 = vpop.f32.mrf.mxu0  ;;  %v5703_v24 = vpop.f32.mrf.mxu1 }
 0x19f   : > { %v5701_v54 = vadd.f32 %v1797_v37, %v5542_v29  ;;  %6530 = vst [vmem:[#allocation23_spill] sm:$0xff] %v5703_v24 }
 0x1a0   : > { %v4113_v61 = vpop.f32.mrf.mxu0  ;;  %v5708_v5 = vpop.f32.mrf.mxu1 }
 0x1a1   : > { %v5706_v27 = vadd.f32 %v4113_v61, %v5544_v0  ;;  %6531 = vst [vmem:[#allocation21_spill] sm:$0xff] %v5708_v5 }
 0x1a2   : > { %v1810_v14 = vpop.f32.mrf.mxu0  ;;  %v5713_v18 = vpop.f32.mrf.mxu1 }
 0x1a3   : > { %v5711_v6 = vadd.f32 %v1810_v14, %v5549_v3  ;;  %6533 = vst [vmem:[#allocation25_spill] sm:$0xff] %v5713_v18 }
 0x1a4   : > { %v4114_v21 = vpop.f32.mrf.mxu0  ;;  %v5718_v29 = vpop.f32.mrf.mxu1 }
 0x1a5   : > { %6532 = vst [vmem:[#allocation24_spill] sm:$0xff] %v5711_v6  ;;  %v5716_v26 = vadd.f32 %v4114_v21, %v5551_v34  ;;  %6535 = vst [vmem:[#allocation18_spill] sm:$0xff] %v5718_v29 }
 0x1a6   : > { %v1813_v37 = vpop.f32.mrf.mxu0  ;;  %v5723_v0 = vpop.f32.mrf.mxu1 }
 0x1a7   : > { %6534 = vst [vmem:[#allocation15_spill] sm:$0xff] %v5716_v26  ;;  %v5721_v24 = vadd.f32 %v1813_v37, %v5557_v7  ;;  %6537 = vst [vmem:[#allocation22_spill] sm:$0xff] %v5723_v0 }
 0x1a8   : > { %v5725_v61 = vpop.f32.mrf.mxu0  ;;  %v5729_v3 = vpop.f32.mrf.mxu1 }
 0x1a9   : > { %6536 = vst [vmem:[#allocation19_spill] sm:$0xff] %v5721_v24  ;;  %6538 = vst [vmem:[#allocation26_spill] sm:$0xff] %v5729_v3 }
 0x1aa   : > { %v5727_v5 = vpop.f32.mrf.mxu0  ;;  %v5735_v34 = vpop.f32.mrf.mxu1 }
 0x1ab   : > { %6540 = vst [vmem:[#allocation8_spill] sm:$0xff] %v5735_v34 }
 0x1ac   : > { %v5731_v14 = vpop.f32.mrf.mxu0  ;;  %v5739_v29 = vpop.f32.mrf.mxu1 }
 0x1ad   : > { %6542 = vst [vmem:[#allocation28_spill] sm:$0xff] %v5739_v29 }
 0x1ae   : > { %v5733_v18 = vpop.f32.mrf.mxu0  ;;  %v5745_v24 = vpop.f32.mrf.mxu1 }
 0x1af   : > { %6539 = vst [vmem:[#allocation27_spill] sm:$0xff] %v5733_v18  ;;  %6545 = vst [vmem:[#allocation30_spill] sm:$0xff] %v5745_v24 }
 0x1b0   : > { %v5737_v21 = vpop.f32.mrf.mxu0  ;;  %v5751_v3 = vpop.f32.mrf.mxu1 }
 0x1b1   : > { %6541 = vst [vmem:[#allocation29_spill] sm:$0xff] %v5737_v21  ;;  %6548 = vst [vmem:[#allocation33_spill] sm:$0xff] %v5751_v3 }
 0x1b2   : > { %v5741_v7 = vpop.f32.mrf.mxu0  ;;  %v5757_v34 = vpop.f32.mrf.mxu1 }
 0x1b3   : > { %6543 = vst [vmem:[#allocation9_spill] sm:$0xff] %v5741_v7  ;;  %6551 = vst [vmem:[#allocation36_spill] sm:$0xff] %v5757_v34 }
 0x1b4   : > { %v5743_v37 = vpop.f32.mrf.mxu0  ;;  %v5763_v7 = vpop.f32.mrf.mxu1 }
 0x1b5   : > { %6544 = vst [vmem:[#allocation10_spill] sm:$0xff] %v5743_v37  ;;  %6554 = vst [vmem:[#allocation39_spill] sm:$0xff] %v5763_v7 }
 0x1b6   : > { %v5747_v26 = vpop.f32.mrf.mxu0 }
 0x1b7   : > { %6546 = vst [vmem:[#allocation31_spill] sm:$0xff] %v5747_v26  ;;  %v5769_v26 = vpop.f32.mrf.mxu1 }
 0x1b8   : > { %v5749_v6 = vpop.f32.mrf.mxu0  ;;  %6557 = vst [vmem:[#allocation42_spill] sm:$0xff] %v5769_v26 }
 0x1b9   : > { %6547 = vst [vmem:[#allocation32_spill] sm:$0xff] %v5749_v6 }
 0x1ba   : > { %v5753_v0 = vpop.f32.mrf.mxu0 }
 0x1bb   : > { %6549 = vst [vmem:[#allocation34_spill] sm:$0xff] %v5753_v0  ;;  %v5775_v0 = vpop.f32.mrf.mxu1 }
 0x1bc   : > { %v5755_v18 = vpop.f32.mrf.mxu0  ;;  %6560 = vst [vmem:[#allocation45_spill] sm:$0xff] %v5775_v0 }
 0x1bd   : > { %6550 = vst [vmem:[#allocation35_spill] sm:$0xff] %v5755_v18 }
 0x1be   : > { %v5759_v21 = vpop.f32.mrf.mxu0 }
 0x1bf   : > { %6552 = vst [vmem:[#allocation37_spill] sm:$0xff] %v5759_v21  ;;  %v5781_v21 = vpop.f32.mrf.mxu1 }
 0x1c0   : > { %v5761_v29 = vpop.f32.mrf.mxu0  ;;  %6563 = vst [vmem:[#allocation48_spill] sm:$0xff] %v5781_v21 }
 0x1c1   : > { %6553 = vst [vmem:[#allocation38_spill] sm:$0xff] %v5761_v29 }
 0x1c2   : > { %v5765_v37 = vpop.f32.mrf.mxu0 }
 0x1c3   : > { %6555 = vst [vmem:[#allocation40_spill] sm:$0xff] %v5765_v37  ;;  %v5787_v37 = vpop.f32.mrf.mxu1 }
 0x1c4   : > { %v5767_v24 = vpop.f32.mrf.mxu0 }
 0x1c5   : > { %6556 = vst [vmem:[#allocation41_spill] sm:$0xff] %v5767_v24 }
 0x1c6   : > { %v5771_v6 = vpop.f32.mrf.mxu0 }
 0x1c7   : > { %6558 = vst [vmem:[#allocation43_spill] sm:$0xff] %v5771_v6  ;;  %v5793_v6 = vpop.f32.mrf.mxu1 }
 0x1c8   : > { %v5773_v3 = vpop.f32.mrf.mxu0 }
 0x1c9   : > { %6559 = vst [vmem:[#allocation44_spill] sm:$0xff] %v5773_v3 }
 0x1ca   : > { %v5777_v18 = vpop.f32.mrf.mxu0 }
 0x1cb   : > { %6561 = vst [vmem:[#allocation46_spill] sm:$0xff] %v5777_v18  ;;  %v5799_v18 = vpop.f32.mrf.mxu1 }
 0x1cc   : > { %v5779_v34 = vpop.f32.mrf.mxu0 }
 0x1cd   : > { %6562 = vst [vmem:[#allocation47_spill] sm:$0xff] %v5779_v34 }
 0x1ce   : > { %v5783_v29 = vpop.f32.mrf.mxu0 }
 0x1cf   : > { %6564 = vst [vmem:[#allocation49_spill] sm:$0xff] %v5783_v29  ;;  %v5805_v29 = vpop.f32.mrf.mxu1 }
 0x1d0   : > { %v5785_v7 = vpop.f32.mrf.mxu0  ;;  %6572 = vst [vmem:[#allocation57_spill] sm:$0xff] %v5805_v29 }
 0x1d1   : > { %6565 = vst [vmem:[#allocation50_spill] sm:$0xff] %v5785_v7 }
 0x1d2   : > { %v5789_v24 = vpop.f32.mrf.mxu0 }
 0x1d3   : > { %6566 = vst [vmem:[#allocation51_spill] sm:$0xff] %v5789_v24  ;;  %v2040_v24 = vadd.f32 %v5553_v20, %v5560_v4  ;;  %v2043_v20 = vadd.f32 %v5595_v39, %v5597_v22  ;;  %v2048_v4 = vadd.f32 %v5599_v28, %v5604_v23  ;;  %v5866_v39 = vadd.f32 %v5653_v25, %v5656_v49  ;;  %v6574_v23 = vld [vmem:[#allocation11_spill] sm:$0xff] }
 0x1d4   : > { %v5791_v26 = vpop.f32.mrf.mxu0  ;;  %v5870_v22 = vadd.f32 %v5658_v41, %v5661_v40  ;;  %v5874_v28 = vadd.f32 %v5663_v50, %v5666_v59  ;;  %v6581_v25 = vld [vmem:[#allocation23_spill] sm:$0xff]  ;;  %v6582_v41 = vld [vmem:[#allocation22_spill] sm:$0xff] }
 0x1d5   : > { %6567 = vst [vmem:[#allocation52_spill] sm:$0xff] %v5791_v26  ;;  %v2038_v26 = vadd.f32 %v5562_v11, %v5564_v38  ;;  %v2046_v11 = vadd.f32 %v5606_v33, %v5608_v19  ;;  %v2049_v38 = vadd.f32 %v5610_v31, %v5615_v10  ;;  %v5878_v33 = vadd.f32 %v6574_v23, %v5671_v36  ;;  %v6575_v31 = vld [vmem:[#allocation12_spill] sm:$0xff]  ;;  %v6583_v50 = vld [vmem:[#allocation27_spill] sm:$0xff] }
 0x1d6   : > { %v5795_v3 = vpop.f32.mrf.mxu0  ;;  %v5884_v10 = vadd.f32 %v6575_v31, %v5676_v56  ;;  %v5915_v49 = vadd.f32 %v6581_v25, %v5706_v27  ;;  %v6586_v56 = vld [vmem:[#allocation21_spill] sm:$0xff]  ;;  %v5930_v27 = vld [vmem:[%s6420_s2] ss:$0 sm:$0xff]  ;;  %v6593_v31 = vld [vmem:[#allocation32_spill] sm:$0xff] }
 0x1d7   : > { %6568 = vst [vmem:[#allocation53_spill] sm:$0xff] %v5795_v3  ;;  %v2041_v3 = vadd.f32 %v5566_v35, %v5571_v9  ;;  %v2047_v35 = vadd.f32 %v5617_v12, %v5619_v1  ;;  %v5837_v9 = vadd.f32 %v5621_v60, %v5626_v63  ;;  %v6576_v12 = vld [vmem:[#allocation13_spill] sm:$0xff]  ;;  %v6577_v60 = vld [vmem:[#allocation14_spill] sm:$0xff] }
 0x1d8   : > { %v5797_v0 = vpop.f32.mrf.mxu0  ;;  %v5888_v1 = vadd.f32 %v6576_v12, %v5681_v16  ;;  %v5892_v63 = vadd.f32 %v6577_v60, %v5686_v47  ;;  %v6584_v47 = vld [vmem:[#allocation29_spill] sm:$0xff]  ;;  %v2254_v12 = vadd.f32 %v6593_v31, %v2048_v4  ;;  %v5957_v4 = vld [vmem:[%s6421_s3] ss:$0 sm:$0xff] }
 0x1d9   : > { %6569 = vst [vmem:[#allocation54_spill] sm:$0xff] %v5797_v0  ;;  %v2039_v0 = vadd.f32 %v5573_v42, %v5575_v57  ;;  %v5841_v42 = vadd.f32 %v5628_v17, %v5630_v45  ;;  %v5845_v57 = vadd.f32 %v5632_v46, %v5637_v53  ;;  %v2244_v17 = vadd.f32 %v5727_v5, %v2038_v26  ;;  %v6578_v45 = vld [vmem:[#allocation16_spill] sm:$0xff]  ;;  %v6587_v16 = vld [vmem:[#allocation9_spill] sm:$0xff]  ;;  %v6588_v26 = vld [vmem:[#allocation10_spill] sm:$0xff] }
 0x1da   : > { %v5801_v34 = vpop.f32.mrf.mxu0  ;;  %v5897_v46 = vadd.f32 %v6578_v45, %v5691_v51  ;;  %v6579_v53 = vld [vmem:[#allocation20_spill] sm:$0xff]  ;;  %v6589_v5 = vld [vmem:[#allocation31_spill] sm:$0xff] }
 0x1db   : > { %6570 = vst [vmem:[#allocation55_spill] sm:$0xff] %v5801_v34  ;;  %v2044_v34 = vadd.f32 %v5577_v8, %v5582_v2  ;;  %v5847_v8 = vpop.f32.mrf.mxu1  ;;  %v2245_v59 = vadd.f32 %v6583_v50, %v2039_v0  ;;  %v6585_v51 = vld [vmem:[#allocation24_spill] sm:$0xff]  ;;  %v6591_v0 = vld [vmem:[#allocation25_spill] sm:$0xff] }
 0x1dc   : > { %v5803_v21 = vpop.f32.mrf.mxu0  ;;  %v6596_v45 = vld [vmem:[#allocation8_spill] sm:$0xff] }
 0x1dd   : > { %6571 = vst [vmem:[#allocation56_spill] sm:$0xff] %v5803_v21  ;;  %v2042_v21 = vadd.f32 %v5584_v43, %v5586_v62  ;;  %v5853_v43 = vadd.f32 %v5639_v55, %v5641_v15  ;;  %v5857_v62 = vadd.f32 %v5643_v30, %v5646_v32  ;;  %v5901_v55 = vadd.f32 %v6579_v53, %v5696_v44  ;;  %v6580_v15 = vld [vmem:[#allocation17_spill] sm:$0xff] }
 0x1de   : > { %v5807_v7 = vpop.f32.mrf.mxu0  ;;  %v5905_v30 = vadd.f32 %v6580_v15, %v5701_v54  ;;  %v2247_v32 = vadd.f32 %v5731_v14, %v2041_v3  ;;  %v2250_v36 = vadd.f32 %v6584_v47, %v2044_v34  ;;  %v5922_v44 = vadd.f32 %v6586_v56, %v6585_v51  ;;  %v6590_v14 = vld [vmem:[#allocation15_spill] sm:$0xff]  ;;  %v6592_v34 = vld [vmem:[#allocation26_spill] sm:$0xff] }
 0x1df   : > { %6573 = vst [vmem:[#allocation58_spill] sm:$0xff] %v5807_v7  ;;  %v2045_v7 = vadd.f32 %v5588_v52, %v5593_v58  ;;  %v5861_v52 = vadd.f32 %v5648_v13, %v5651_v48  ;;  %v2246_v58 = vadd.f32 %v5725_v61, %v2040_v24  ;;  %v5908_v13 = vpop.f32.mrf.mxu1  ;;  %v2248_v54 = vadd.f32 %v6587_v16, %v2042_v21  ;;  %v6597_v15 = vld [vmem:[#allocation34_spill] sm:$0xff] }
 0x1e0   : > { %v5823_v29 = vpop.f32.mrf.mxu0  ;;  %v2249_v61 = vadd.f32 %v6589_v5, %v2043_v20  ;;  %v2460_v23 = vadd.f32 %v6592_v34, %v2244_v17  ;;  %v6595_v20 = vld [vmem:[#allocation18_spill] sm:$0xff]  ;;  %v2463_v53 = vadd.f32 %v6596_v45, %v2247_v32  ;;  %v2252_v25 = vadd.f32 %v6597_v15, %v2046_v11  ;;  %v6601_v32 = vld [vmem:[#allocation33_spill] sm:$0xff] }
 0x1e1   : > { %v2462_v40 = vadd.f32 %v6582_v41, %v2246_v58  ;;  %v2251_v24 = vadd.f32 %v6588_v26, %v2045_v7  ;;  %v5934_v58 = vadd.f32 %v6591_v0, %v6590_v14  ;;  %v6594_v7 = vld [vmem:[#allocation19_spill] sm:$0xff]  ;;  %v5952_v50 = vpop.f32.mrf.mxu1  ;;  %v6600_v56 = vld [vmem:[#allocation30_spill] sm:$0xff]  ;;  %v2464_v11 = vadd.f32 %v6601_v32, %v2248_v54  ;;  %v6604_v34 = vld [vmem:[#allocation37_spill] sm:$0xff] }
 0x1e2   : > { %v5849_v2 = vpop.f32.mrf.mxu0  ;;  %v5947_v60 = vadd.f32 %v6595_v20, %v6594_v7  ;;  %v6598_v41 = vld [vmem:[#allocation35_spill] sm:$0xff]  ;;  %v2466_v16 = vadd.f32 %v6600_v56, %v2250_v36  ;;  %v2253_v31 = vadd.f32 %v6604_v34, %v2047_v35  ;;  %v2785_v7 = vld [vmem:[%s5943_s16 + $0x10] sm:$0xff] }
 0x1e3   : > { %v2255_v17 = vadd.f32 %v6598_v41, %v2049_v38  ;;  %v6603_v14 = vld [vmem:[#allocation39_spill] sm:$0xff]  ;;  %v6605_v45 = vld [vmem:[#allocation42_spill] sm:$0xff] }
 0x1e4   : > { %v5880_v19 = vpop.f32.mrf.mxu0  ;;  %v5965_v0 = vadd.f32 %v6603_v14, %v2249_v61  ;;  %v5970_v15 = vadd.f32 %v6605_v45, %v2254_v12  ;;  %v6608_v35 = vld [vmem:[#allocation38_spill] sm:$0xff]  ;;  %v2783_v56 = vld [vmem:[%s5943_s16] sm:$0xff] }
 0x1e5   : > { %v2258_v41 = vadd.f32 %v6608_v35, %v5837_v9  ;;  %v6611_v9 = vld [vmem:[#allocation43_spill] sm:$0xff] }
 0x1e6   : > { %v5910_v48 = vpop.f32.mrf.mxu0  ;;  %v2257_v34 = vadd.f32 %v6611_v9, %v5853_v43 }
 0x1e7   : > { %v6007_v43 = vadd.f32 %v5793_v6, %v2258_v41 }
 0x1e8   : > { %v4221_v3 = vpop.f32.mrf.mxu0 }
 0x1e9   : > { %v2675_v21 = vadd.f32 %v4221_v3, %v2462_v40  ;;  %v6599_v40 = vld [vmem:[#allocation28_spill] sm:$0xff] }
 0x1ea   : > { %v2546_v47 = vpop.f32.mrf.mxu0  ;;  %v2461_v51 = vadd.f32 %v6599_v40, %v2245_v59  ;;  %v6602_v3 = vld [vmem:[#allocation36_spill] sm:$0xff]  ;;  %v4204_v40 = vpop.f32.mrf.mxu1 }
 0x1eb   : > { %v2714_v26 = vmul.f32 %v5930_v27, %v2675_v21  ;;  %v2673_v5 = vadd.f32 %v2546_v47, %v2460_v23  ;;  %v2467_v38 = vadd.f32 %v6602_v3, %v2251_v24  ;;  %v6606_v21 = vld [vmem:[#allocation45_spill] sm:$0xff]  ;;  %v6607_v24 = vld [vmem:[#allocation48_spill] sm:$0xff]  ;;  %v5988_v3 = vadd.f32 %v5787_v37, %v2253_v31 }
 0x1ec   : > { %v4222_v20 = vpop.f32.mrf.mxu0  ;;  %v5975_v54 = vadd.f32 %v6606_v21, %v2252_v25  ;;  %v5978_v61 = vadd.f32 %v6607_v24, %v2255_v17  ;;  %v6609_v47 = vld [vmem:[#allocation40_spill] sm:$0xff]  ;;  %v6610_v17 = vld [vmem:[#allocation41_spill] sm:$0xff] }
 0x1ed   : > { %v2753_v59 = vadd.f32 %v5957_v4, %v2714_v26  ;;  %v2712_v36 = vmul.f32 %v5930_v27, %v2673_v5  ;;  %v2676_v23 = vadd.f32 %v4222_v20, %v2463_v53  ;;  %v2256_v12 = vadd.f32 %v6609_v47, %v5841_v42  ;;  %v6612_v42 = vld [vmem:[#allocation44_spill] sm:$0xff]  ;;  %v6614_v47 = vld [vmem:[#allocation47_spill] sm:$0xff] }
 0x1ee   : > { %v2549_v26 = vpop.f32.mrf.mxu0  ;;  %v2259_v14 = vadd.f32 %v6610_v17, %v5845_v57  ;;  %v2262_v20 = vadd.f32 %v6612_v42, %v5857_v62  ;;  %v2784_v21 = vld [vmem:[%s5943_s16 + $0x8] sm:$0xff]  ;;  %v2789_v17 = vld [vmem:[%s5943_s16 + $0x30] sm:$0xff] }
 0x1ef   : > { %v2817_v32 = vadd.f32 %v2785_v7, %v2753_v59  ;;  %v2751_v53 = vadd.f32 %v5957_v4, %v2712_v36  ;;  %v2715_v5 = vmul.f32 %v5930_v27, %v2676_v23  ;;  %v2674_v25 = vadd.f32 %v2549_v26, %v2461_v51  ;;  %v2786_v51 = vld [vmem:[%s5943_s16 + $0x18] sm:$0xff]  ;;  %v2400_v23 = vpop.f32.mrf.mxu1 }
 0x1f0   : > { %v4225_v7 = vpop.f32.mrf.mxu0  ;;  %v6010_v62 = vadd.f32 %v5799_v18, %v2256_v12  ;;  %v6613_v59 = vld [vmem:[#allocation46_spill] sm:$0xff]  ;;  %v6615_v18 = vld [vmem:[#allocation57_spill] sm:$0xff] }
 0x1f1   : > { %v2849_v37 = vmax.f32 %v2817_v32, 0.0  ;;  %v2815_v31 = vadd.f32 %v2783_v56, %v2751_v53  ;;  %v2754_v45 = vadd.f32 %v5957_v4, %v2715_v5  ;;  %v2713_v57 = vmul.f32 %v5930_v27, %v2674_v25 }
 0x1f2   : > { %v2260_v36 = vadd.f32 %v6613_v59, %v5861_v52  ;;  %v2679_v24 = vadd.f32 %v4225_v7, %v2466_v16  ;;  %v2562_v35 = vpop.f32.mrf.mxu0  ;;  %v2263_v56 = vadd.f32 %v6614_v47, %v5866_v39  ;;  %v6021_v12 = vadd.f32 %v6615_v18, %v2259_v14  ;;  %v6616_v14 = vld [vmem:[#allocation49_spill] sm:$0xff]  ;;  %v2787_v7 = vld [vmem:[%s5943_s16 + $0x20] sm:$0xff] }
 0x1f3   : > { %2881 = vst.msk [vmem:[%s6001_s24 + $0x10] sm:$0xff] %vm631_vm1, %v2849_v37  ;;  %v2847_v26 = vmax.f32 %v2815_v31, 0.0  ;;  %v2818_v6 = vadd.f32 %v2786_v51, %v2754_v45  ;;  %v2752_v41 = vadd.f32 %v5957_v4, %v2713_v57  ;;  %v6024_v52 = vadd.f32 %v5847_v8, %v2257_v34  ;;  %v4207_v34 = vpop.f32.mrf.mxu1  ;;  %v6617_v45 = vld [vmem:[#allocation50_spill] sm:$0xff]  ;;  %v2788_v18 = vld [vmem:[%s5943_s16 + $0x28] sm:$0xff] }
 0x1f4   : > { %v2718_v32 = vmul.f32 %v5930_v27, %v2679_v24  ;;  %v2677_v16 = vadd.f32 %v2562_v35, %v2464_v11  ;;  %v4226_v53 = vpop.f32.mrf.mxu0  ;;  %v6028_v5 = vadd.f32 %v5908_v13, %v2262_v20  ;;  %v6035_v8 = vadd.f32 %v5952_v50, %v2260_v36 }
 0x1f5   : > { %2879 = vst.msk [vmem:[%s6001_s24] sm:$0xff] %vm631_vm1, %v2847_v26  ;;  %v2850_v39 = vmax.f32 %v2818_v6, 0.0  ;;  %v2816_v25 = vadd.f32 %v2784_v21, %v2752_v41  ;;  %v2680_v9 = vadd.f32 %v4226_v53, %v2467_v38  ;;  %4255 = vmatprep.mubr.msk.f32.mxu1 %vm631_vm1, %v2847_v26  ;;  %v2261_v11 = vadd.f32 %v6616_v14, %v5870_v22  ;;  %v2790_v21 = vld [vmem:[%s5943_s16 + $0x38] sm:$0xff] }
 0x1f6   : > { %v2757_v13 = vadd.f32 %v5957_v4, %v2718_v32  ;;  %v2716_v42 = vmul.f32 %v5930_v27, %v2677_v16  ;;  %v2565_v20 = vpop.f32.mrf.mxu0  ;;  %v6041_v51 = vadd.f32 %v4204_v40, %v2263_v56  ;;  %v2266_v22 = vadd.f32 %v6617_v45, %v5874_v28  ;;  %v6060_v28 = vpop.f32.mrf.mxu1 }
 0x1f7   : > { %2882 = vst.msk [vmem:[%s6001_s24 + $0x18] sm:$0xff] %vm631_vm1, %v2850_v39  ;;  %v2848_v38 = vmax.f32 %v2816_v25, 0.0  ;;  %v2719_v50 = vmul.f32 %v5930_v27, %v2680_v9  ;;  %v2678_v31 = vadd.f32 %v2565_v20, %v5965_v0  ;;  %v2911_v57 = vsel %vm631_vm1, %v2847_v26, 0.0 }
 0x1f8   : > { %v2821_v59 = vadd.f32 %v2789_v17, %v2757_v13  ;;  %v2755_v36 = vadd.f32 %v5957_v4, %v2716_v42  ;;  %v4229_v40 = vpop.f32.mrf.mxu0  ;;  %v2914_v56 = vsel %vm631_vm1, %v2849_v37, 0.0  ;;  %v6068_v17 = vadd.f32 %v2400_v23, %v2261_v11  ;;  %v2793_v42 = vld [vmem:[%s5943_s16 + $0x50] sm:$0xff] }
 0x1f9   : > { %2880 = vst.msk [vmem:[%s6001_s24 + $0x8] sm:$0xff] %vm631_vm1, %v2848_v38  ;;  %v2912_v24 = vsel %vm631_vm1, %v2848_v38, 0.0  ;;  %v2758_v35 = vadd.f32 %v5957_v4, %v2719_v50  ;;  %v2717_v47 = vmul.f32 %v5930_v27, %v2678_v31  ;;  %v2683_v0 = vadd.f32 %v4229_v40, %v5970_v15  ;;  %4256 = vmatmul.mubr.msk.f32.vlgmr.msra.gmra.mxu1 %vm631_vm1, %v2848_v38  ;;  %v4208_v31 = vpop.f32.mrf.mxu1 }
 0x1fa   : > { %v2913_v26 = vadd.f32 %v2912_v24, %v2911_v57  ;;  %v2853_v6 = vmax.f32 %v2821_v59, 0.0  ;;  %v2819_v41 = vadd.f32 %v2787_v7, %v2755_v36  ;;  %v2578_v32 = vpop.f32.mrf.mxu0  ;;  %4258 = vmatprep.mubr.msk.f32.mxu1 %vm631_vm1, %v2849_v37  ;;  %v2916_v9 = vsel %vm631_vm1, %v2850_v39, 0.0  ;;  %v2791_v57 = vld [vmem:[%s5943_s16 + $0x40] sm:$0xff] }
 0x1fb   : > { %v2822_v16 = vadd.f32 %v2790_v21, %v2758_v35  ;;  %v2756_v53 = vadd.f32 %v5957_v4, %v2717_v47  ;;  %v2722_v15 = vmul.f32 %v5930_v27, %v2683_v0  ;;  %v2681_v25 = vadd.f32 %v2578_v32, %v5975_v54  ;;  %v6618_v54 = vld [vmem:[#allocation51_spill] sm:$0xff] }
 0x1fc   : > { %v2915_v14 = vadd.f32 %v2914_v56, %v2913_v26  ;;  %2885 = vst.msk [vmem:[%s6001_s24 + $0x30] sm:$0xff] %vm631_vm1, %v2853_v6  ;;  %v2851_v13 = vmax.f32 %v2819_v41, 0.0  ;;  %v4230_v20 = vpop.f32.mrf.mxu0  ;;  %v6079_v23 = vadd.f32 %v6618_v54, %v5878_v33  ;;  %v6081_v11 = vadd.f32 %v4207_v34, %v2266_v22  ;;  %v6619_v22 = vld [vmem:[#allocation52_spill] sm:$0xff]  ;;  %v2794_v41 = vld [vmem:[%s5943_s16 + $0x58] sm:$0xff]  ;;  %v2797_v54 = vld [vmem:[%s5943_s16 + $0x70] sm:$0xff] }
 0x1fd   : > { %v2854_v37 = vmax.f32 %v2822_v16, 0.0  ;;  %v2820_v38 = vadd.f32 %v2788_v18, %v2756_v53  ;;  %v2761_v7 = vadd.f32 %v5957_v4, %v2722_v15  ;;  %v2720_v50 = vmul.f32 %v5930_v27, %v2681_v25  ;;  %4259 = vmatmul.mubr.msk.f32.gmra.mxu1 %vm631_vm1, %v2850_v39  ;;  %v2416_v16 = vpop.f32.mrf.mxu1 }
 0x1fe   : > { %2883 = vst.msk [vmem:[%s6001_s24 + $0x20] sm:$0xff] %vm631_vm1, %v2851_v13  ;;  %v2917_v45 = vadd.f32 %v2916_v9, %v2915_v14  ;;  %v2684_v59 = vadd.f32 %v4230_v20, %v5978_v61  ;;  %v2581_v36 = vpop.f32.mrf.mxu0  ;;  %4261 = vmatprep.mubr.msk.f32.mxu1 %vm631_vm1, %v2851_v13  ;;  %v2918_v39 = vsel %vm631_vm1, %v2851_v13, 0.0  ;;  %v2267_v40 = vadd.f32 %v6619_v22, %v5884_v10  ;;  %v6620_v10 = vld [vmem:[#allocation53_spill] sm:$0xff] }
 0x1ff   : > { %2886 = vst.msk [vmem:[%s6001_s24 + $0x38] sm:$0xff] %vm631_vm1, %v2854_v37  ;;  %v2852_v33 = vmax.f32 %v2820_v38, 0.0  ;;  %v2825_v21 = vadd.f32 %v2793_v42, %v2761_v7  ;;  %v2759_v34 = vadd.f32 %v5957_v4, %v2720_v50  ;;  %v2682_v61 = vadd.f32 %v2581_v36, %v5988_v3  ;;  %v2792_v14 = vld [vmem:[%s5943_s16 + $0x48] sm:$0xff]  ;;  %v6621_v42 = vld [vmem:[#allocation54_spill] sm:$0xff] }
 0x200   : > { %v2919_v24 = vadd.f32 %v2918_v39, %v2917_v45  ;;  %v2723_v35 = vmul.f32 %v5930_v27, %v2684_v59  ;;  %v4233_v47 = vpop.f32.mrf.mxu0  ;;  %v2265_v32 = vadd.f32 %v6620_v10, %v5888_v1  ;;  %v2922_v9 = vsel %vm631_vm1, %v2853_v6, 0.0 }
 0x201   : > { %2884 = vst.msk [vmem:[%s6001_s24 + $0x28] sm:$0xff] %vm631_vm1, %v2852_v33  ;;  %v2920_v0 = vsel %vm631_vm1, %v2852_v33, 0.0  ;;  %v6099_v56 = vmax.f32 %v2825_v21, 0.0  ;;  %v2823_v26 = vadd.f32 %v2791_v57, %v2759_v34  ;;  %v2687_v18 = vadd.f32 %v4233_v47, %v6007_v43  ;;  %4262 = vmatmul.mubr.msk.f32.gmra.mxu1 %vm631_vm1, %v2852_v33  ;;  %v2795_v34 = vld [vmem:[%s5943_s16 + $0x60] sm:$0xff] }
 0x202   : > { %v2921_v3 = vadd.f32 %v2920_v0, %v2919_v24  ;;  %v2762_v53 = vadd.f32 %v5957_v4, %v2723_v35  ;;  %v2721_v15 = vmul.f32 %v5930_v27, %v2682_v61  ;;  %v2594_v25 = vpop.f32.mrf.mxu0  ;;  %4264 = vmatprep.mubr.msk.f32.mxu1 %vm631_vm1, %v2853_v6  ;;  %v2270_v20 = vadd.f32 %v6621_v42, %v5892_v63  ;;  %v4211_v63 = vpop.f32.mrf.mxu1 }
 0x203   : > { %2889 = vst.msk [vmem:[%s6001_s24 + $0x50] sm:$0xff] %vm631_vm1, %v6099_v56  ;;  %v2855_v43 = vmax.f32 %v2823_v26, 0.0  ;;  %v2726_v1 = vmul.f32 %v5930_v27, %v2687_v18  ;;  %v2685_v13 = vadd.f32 %v2594_v25, %v6010_v62  ;;  %v2924_v6 = vsel %vm631_vm1, %v2854_v37, 0.0 }
 0x204   : > { %v2923_v38 = vadd.f32 %v2922_v9, %v2921_v3  ;;  %v2826_v7 = vadd.f32 %v2794_v41, %v2762_v53  ;;  %v2760_v50 = vadd.f32 %v5957_v4, %v2721_v15  ;;  %v4234_v45 = vpop.f32.mrf.mxu0  ;;  %v6137_v47 = vadd.f32 %v4208_v31, %v2267_v40  ;;  %v2798_v41 = vld [vmem:[%s5943_s16 + $0x78] sm:$0xff]  ;;  %v2429_v31 = vpop.f32.mrf.mxu1 }
 0x205   : > { %2887 = vst.msk [vmem:[%s6001_s24 + $0x40] sm:$0xff] %vm631_vm1, %v2855_v43  ;;  %v2765_v57 = vadd.f32 %v5957_v4, %v2726_v1  ;;  %v2724_v59 = vmul.f32 %v5930_v27, %v2685_v13  ;;  %v2688_v62 = vadd.f32 %v4234_v45, %v6021_v12  ;;  %4265 = vmatmul.mubr.msk.f32.gmra.mxu1 %vm631_vm1, %v2854_v37  ;;  %v2926_v39 = vsel %vm631_vm1, %v2855_v43, 0.0  ;;  %v2801_v45 = vld [vmem:[%s5943_s16 + $0x90] sm:$0xff] }
 0x206   : > { %v2925_v36 = vadd.f32 %v2924_v6, %v2923_v38  ;;  %v2858_v33 = vmax.f32 %v2826_v7, 0.0  ;;  %v2824_v21 = vadd.f32 %v2792_v14, %v2760_v50  ;;  %v2597_v22 = vpop.f32.mrf.mxu0  ;;  %4267 = vmatprep.mubr.msk.f32.mxu1 %vm631_vm1, %v2855_v43  ;;  %v6135_v37 = vadd.f32 %v6060_v28, %v6079_v23  ;;  %v6622_v28 = vld [vmem:[#allocation55_spill] sm:$0xff]  ;;  %v6623_v38 = vld [vmem:[#allocation56_spill] sm:$0xff] }
 0x207   : > { %v2829_v24 = vadd.f32 %v2797_v54, %v2765_v57  ;;  %v2763_v35 = vadd.f32 %v5957_v4, %v2724_v59  ;;  %v2727_v61 = vmul.f32 %v5930_v27, %v2688_v62  ;;  %v2686_v12 = vadd.f32 %v2597_v22, %v6024_v52 }
 0x208   : > { %v2927_v0 = vadd.f32 %v2926_v39, %v2925_v36  ;;  %2890 = vst.msk [vmem:[%s6001_s24 + $0x58] sm:$0xff] %vm631_vm1, %v2858_v33  ;;  %v2856_v26 = vmax.f32 %v2824_v21, 0.0  ;;  %v4237_v18 = vpop.f32.mrf.mxu0  ;;  %v6146_v15 = vadd.f32 %v2416_v16, %v2265_v32  ;;  %v2268_v23 = vadd.f32 %v6622_v28, %v5897_v46  ;;  %v2796_v16 = vld [vmem:[%s5943_s16 + $0x68] sm:$0xff]  ;;  %v2799_v39 = vld [vmem:[%s5943_s16 + $0x80] sm:$0xff] }
 0x209   : > { %v6142_v10 = vmax.f32 %v2829_v24, 0.0  ;;  %v2827_v3 = vadd.f32 %v2795_v34, %v2763_v35  ;;  %v2766_v53 = vadd.f32 %v5957_v4, %v2727_v61  ;;  %v2725_v52 = vmul.f32 %v5930_v27, %v2686_v12  ;;  %v2802_v35 = vld [vmem:[%s5943_s16 + $0x98] sm:$0xff] }
 0x20a   : > { %2888 = vst.msk [vmem:[%s6001_s24 + $0x48] sm:$0xff] %vm631_vm1, %v2856_v26  ;;  %v2928_v40 = vsel %vm631_vm1, %v2856_v26, 0.0  ;;  %v2691_v25 = vadd.f32 %v4237_v18, %v6028_v5  ;;  %4268 = vmatmul.mubr.msk.f32.gmra.mxu1 %vm631_vm1, %v2856_v26  ;;  %v2610_v9 = vpop.f32.mrf.mxu0  ;;  %v6155_v43 = vadd.f32 %v4211_v63, %v2270_v20  ;;  %v2930_v5 = vsel %vm631_vm1, %v6099_v56, 0.0 }
 0x20b   : > { %v2929_v14 = vadd.f32 %v2928_v40, %v2927_v0  ;;  %2893 = vst.msk [vmem:[%s6001_s24 + $0x70] sm:$0xff] %vm631_vm1, %v6142_v10  ;;  %v2859_v32 = vmax.f32 %v2827_v3, 0.0  ;;  %v2830_v46 = vadd.f32 %v2798_v41, %v2766_v53  ;;  %4270 = vmatprep.mubr.msk.f32.mxu1 %vm631_vm1, %v6099_v56  ;;  %v2764_v1 = vadd.f32 %v5957_v4, %v2725_v52  ;;  %v4212_v56 = vpop.f32.mrf.mxu1 }
 0x20c   : > { %v2730_v13 = vmul.f32 %v5930_v27, %v2691_v25  ;;  %v2689_v42 = vadd.f32 %v2610_v9, %v6035_v8  ;;  %v4238_v20 = vpop.f32.mrf.mxu0  ;;  %v2271_v7 = vadd.f32 %v6623_v38, %v5901_v55  ;;  %v2932_v57 = vsel %vm631_vm1, %v2858_v33, 0.0 }
 0x20d   : > { %v2931_v50 = vadd.f32 %v2930_v5, %v2929_v14  ;;  %2891 = vst.msk [vmem:[%s6001_s24 + $0x60] sm:$0xff] %vm631_vm1, %v2859_v32  ;;  %v2862_v54 = vmax.f32 %v2830_v46, 0.0  ;;  %v2692_v6 = vadd.f32 %v4238_v20, %v6041_v51  ;;  %v2828_v59 = vadd.f32 %v2796_v16, %v2764_v1  ;;  %v2432_v3 = vpop.f32.mrf.mxu1  ;;  %v2805_v46 = vld [vmem:[%s5943_s16 + $0xb0] sm:$0xff] }
 0x20e   : > { %v2769_v8 = vadd.f32 %v5957_v4, %v2730_v13  ;;  %v2728_v62 = vmul.f32 %v5930_v27, %v2689_v42  ;;  %4271 = vmatmul.mubr.msk.f32.gmra.mxu1 %vm631_vm1, %v2858_v33  ;;  %v2613_v55 = vpop.f32.mrf.mxu0  ;;  %v6178_v63 = vadd.f32 %v2429_v31, %v2268_v23  ;;  %v2934_v34 = vsel %vm631_vm1, %v2859_v32, 0.0  ;;  %v2800_v23 = vld [vmem:[%s5943_s16 + $0x88] sm:$0xff] }
 0x20f   : > { %v2933_v36 = vadd.f32 %v2932_v57, %v2931_v50  ;;  %2894 = vst.msk [vmem:[%s6001_s24 + $0x78] sm:$0xff] %vm631_vm1, %v2862_v54  ;;  %v2731_v51 = vmul.f32 %v5930_v27, %v2692_v6  ;;  %v2690_v21 = vadd.f32 %v2613_v55, %v6068_v17  ;;  %4273 = vmatprep.mubr.msk.f32.mxu1 %vm631_vm1, %v2859_v32  ;;  %v2860_v22 = vmax.f32 %v2828_v59, 0.0  ;;  %v6624_v17 = vld [vmem:[#allocation58_spill] sm:$0xff] }
 0x210   : > { %v2833_v24 = vadd.f32 %v2801_v45, %v2769_v8  ;;  %v2767_v33 = vadd.f32 %v5957_v4, %v2728_v62  ;;  %v4241_v61 = vpop.f32.mrf.mxu0  ;;  %v2269_v18 = vadd.f32 %v6624_v17, %v5905_v30  ;;  %v2487_v30 = vadd.f32 %v4212_v56, %v2271_v7  ;;  %v4215_v7 = vpop.f32.mrf.mxu1 }
 0x211   : > { %v2935_v12 = vadd.f32 %v2934_v34, %v2933_v36  ;;  %v2770_v0 = vadd.f32 %v5957_v4, %v2731_v51  ;;  %v2729_v26 = vmul.f32 %v5930_v27, %v2690_v21  ;;  %v2695_v41 = vadd.f32 %v4241_v61, %v6081_v11  ;;  %2892 = vst.msk [vmem:[%s6001_s24 + $0x68] sm:$0xff] %vm631_vm1, %v2860_v22  ;;  %v2806_v51 = vld [vmem:[%s5943_s16 + $0xb8] sm:$0xff] }
 0x212   : > { %v2936_v53 = vsel %vm631_vm1, %v2860_v22, 0.0  ;;  %v2865_v52 = vmax.f32 %v2833_v24, 0.0  ;;  %v2831_v28 = vadd.f32 %v2799_v39, %v2767_v33  ;;  %4274 = vmatmul.mubr.msk.f32.gmra.mxu1 %vm631_vm1, %v2860_v22  ;;  %v2626_v31 = vpop.f32.mrf.mxu0  ;;  %v2938_v14 = vsel %vm631_vm1, %v6142_v10, 0.0  ;;  %v2445_v22 = vpop.f32.mrf.mxu1 }
 0x213   : > { %v2937_v40 = vadd.f32 %v2936_v53, %v2935_v12  ;;  %v2834_v25 = vadd.f32 %v2802_v35, %v2770_v0  ;;  %v2768_v11 = vadd.f32 %v5957_v4, %v2729_v26  ;;  %v2734_v9 = vmul.f32 %v5930_v27, %v2695_v41  ;;  %4276 = vmatprep.mubr.msk.f32.mxu1 %vm631_vm1, %v6142_v10  ;;  %v2804_v0 = vld [vmem:[%s5943_s16 + $0xa8] sm:$0xff] }
 0x214   : > { %2897 = vst.msk [vmem:[%s6001_s24 + $0x90] sm:$0xff] %vm631_vm1, %v2865_v52  ;;  %v2863_v32 = vmax.f32 %v2831_v28, 0.0  ;;  %v2693_v16 = vadd.f32 %v2626_v31, %v6135_v37  ;;  %v4242_v5 = vpop.f32.mrf.mxu0  ;;  %v2274_v38 = vadd.f32 %v5823_v29, %v5915_v49  ;;  %v2940_v10 = vsel %vm631_vm1, %v2862_v54, 0.0  ;;  %v2803_v49 = vld [vmem:[%s5943_s16 + $0xa0] sm:$0xff] }
 0x215   : > { %v2939_v1 = vadd.f32 %v2938_v14, %v2937_v40  ;;  %v2866_v13 = vmax.f32 %v2834_v25, 0.0  ;;  %v2832_v42 = vadd.f32 %v2800_v23, %v2768_v11  ;;  %v2773_v20 = vadd.f32 %v5957_v4, %v2734_v9  ;;  %v4216_v40 = vpop.f32.mrf.mxu1  ;;  %v2807_v9 = vld [vmem:[%s5943_s16 + $0xc0] sm:$0xff] }
 0x216   : > { %2895 = vst.msk [vmem:[%s6001_s24 + $0x80] sm:$0xff] %vm631_vm1, %v2863_v32  ;;  %v2732_v50 = vmul.f32 %v5930_v27, %v2693_v16  ;;  %v2696_v37 = vadd.f32 %v4242_v5, %v6137_v47  ;;  %4277 = vmatmul.mubr.msk.f32.gmra.mxu1 %vm631_vm1, %v2862_v54  ;;  %v2629_v45 = vpop.f32.mrf.mxu0  ;;  %v2485_v6 = vadd.f32 %v2432_v3, %v2269_v18  ;;  %v2942_v59 = vsel %vm631_vm1, %v2863_v32, 0.0  ;;  %v2809_v18 = vld [vmem:[%s5943_s16 + $0xd0] sm:$0xff] }
 0x217   : > { %v2941_v56 = vadd.f32 %v2940_v10, %v2939_v1  ;;  %2898 = vst.msk [vmem:[%s6001_s24 + $0x98] sm:$0xff] %vm631_vm1, %v2866_v13  ;;  %v2864_v57 = vmax.f32 %v2832_v42, 0.0  ;;  %v2837_v29 = vadd.f32 %v2805_v46, %v2773_v20  ;;  %4279 = vmatprep.mubr.msk.f32.mxu1 %vm631_vm1, %v2863_v32  ;;  %v2694_v62 = vadd.f32 %v2629_v45, %v6146_v15  ;;  %v2810_v1 = vld [vmem:[%s5943_s16 + $0xd8] sm:$0xff] }
 0x218   : > { %v2771_v8 = vadd.f32 %v5957_v4, %v2732_v50  ;;  %v2735_v47 = vmul.f32 %v5930_v27, %v2696_v37  ;;  %v4245_v54 = vpop.f32.mrf.mxu0  ;;  %v2272_v34 = vadd.f32 %v5849_v2, %v5922_v44  ;;  %v2490_v61 = vadd.f32 %v4215_v7, %v2274_v38  ;;  %v2448_v37 = vpop.f32.mrf.mxu1 }
 0x219   : > { %v2943_v55 = vadd.f32 %v2942_v59, %v2941_v56  ;;  %2896 = vst.msk [vmem:[%s6001_s24 + $0x88] sm:$0xff] %vm631_vm1, %v2864_v57  ;;  %v2944_v36 = vsel %vm631_vm1, %v2864_v57, 0.0  ;;  %v6229_v39 = vmax.f32 %v2837_v29, 0.0  ;;  %v2699_v21 = vadd.f32 %v4245_v54, %v6155_v43  ;;  %v2808_v59 = vld [vmem:[%s5943_s16 + $0xc8] sm:$0xff] }
 0x21a   : > { %v2835_v24 = vadd.f32 %v2803_v49, %v2771_v8  ;;  %v2774_v15 = vadd.f32 %v5957_v4, %v2735_v47  ;;  %v2733_v33 = vmul.f32 %v5930_v27, %v2694_v62  ;;  %4280 = vmatmul.mubr.msk.f32.gmra.mxu1 %vm631_vm1, %v2864_v57  ;;  %v2642_v35 = vpop.f32.mrf.mxu0  ;;  %v2946_v44 = vsel %vm631_vm1, %v2865_v52, 0.0 }
 0x21b   : > { %v2945_v12 = vadd.f32 %v2944_v36, %v2943_v55  ;;  %2901 = vst.msk [vmem:[%s6001_s24 + $0xb0] sm:$0xff] %vm631_vm1, %v6229_v39  ;;  %v2738_v43 = vmul.f32 %v5930_v27, %v2699_v21  ;;  %v2697_v2 = vadd.f32 %v2642_v35, %v6178_v63  ;;  %4282 = vmatprep.mubr.msk.f32.mxu1 %vm631_vm1, %v2865_v52  ;;  %v2948_v52 = vsel %vm631_vm1, %v2866_v13, 0.0 }
 0x21c   : > { %v2867_v26 = vmax.f32 %v2835_v24, 0.0  ;;  %v2838_v41 = vadd.f32 %v2806_v51, %v2774_v15  ;;  %v2772_v17 = vadd.f32 %v5957_v4, %v2733_v33  ;;  %v4246_v3 = vpop.f32.mrf.mxu0  ;;  %v2275_v63 = vadd.f32 %v5880_v19, %v5934_v58 }
 0x21d   : > { %v2947_v53 = vadd.f32 %v2946_v44, %v2945_v12  ;;  %v2777_v28 = vadd.f32 %v5957_v4, %v2738_v43  ;;  %v2736_v23 = vmul.f32 %v5930_v27, %v2697_v2  ;;  %v2700_v31 = vadd.f32 %v4246_v3, %v2487_v30  ;;  %v2811_v12 = vld [vmem:[%s5943_s16 + $0xe0] sm:$0xff] }
 0x21e   : > { %2899 = vst.msk [vmem:[%s6001_s24 + $0xa0] sm:$0xff] %vm631_vm1, %v2867_v26  ;;  %v2870_v25 = vmax.f32 %v2838_v41, 0.0  ;;  %v2836_v11 = vadd.f32 %v2804_v0, %v2772_v17  ;;  %4283 = vmatmul.mubr.msk.f32.gmra.mxu1 %vm631_vm1, %v2866_v13  ;;  %v2645_v14 = vpop.f32.mrf.mxu0  ;;  %v2273_v58 = vadd.f32 %v5910_v48, %v5947_v60  ;;  %v2950_v16 = vsel %vm631_vm1, %v2867_v26, 0.0  ;;  %v2814_v17 = vld [vmem:[%s5943_s16 + $0xf8] sm:$0xff] }
 0x21f   : > { %v2949_v32 = vadd.f32 %v2948_v52, %v2947_v53  ;;  %v2841_v46 = vadd.f32 %v2809_v18, %v2777_v28  ;;  %v2775_v30 = vadd.f32 %v5957_v4, %v2736_v23  ;;  %v2739_v19 = vmul.f32 %v5930_v27, %v2700_v31  ;;  %4285 = vmatprep.mubr.msk.f32.mxu1 %vm631_vm1, %v2867_v26 }
 0x220   : > { %2902 = vst.msk [vmem:[%s6001_s24 + $0xb8] sm:$0xff] %vm631_vm1, %v2870_v25  ;;  %v2868_v5 = vmax.f32 %v2836_v11, 0.0  ;;  %v2698_v13 = vadd.f32 %v2645_v14, %v2485_v6  ;;  %v4249_v42 = vpop.f32.mrf.mxu0  ;;  %v2488_v50 = vadd.f32 %v2445_v22, %v2272_v34  ;;  %v2491_v56 = vadd.f32 %v4216_v40, %v2275_v63  ;;  %v2813_v34 = vld [vmem:[%s5943_s16 + $0xf0] sm:$0xff]  ;;  %v2812_v63 = vld [vmem:[%s5943_s16 + $0xe8] sm:$0xff]  ;;  %s3407_s16 = sshll.u32 %s350_s26, 4  ;;  %s3408_s16 = int_to_ptr.vmem [resolvable:$true] %s3407_s16 }
 0x221   : > { %v2951_v20 = vadd.f32 %v2950_v16, %v2949_v32  ;;  %v2873_v38 = vmax.f32 %v2841_v46, 0.0  ;;  %v2839_v7 = vadd.f32 %v2807_v9, %v2775_v30  ;;  %v2778_v10 = vadd.f32 %v5957_v4, %v2739_v19  ;;  %s4357_s21 = scalar_lea.vmem %s3408_s16, 16  ;;  %p4364_p0 = scmp.lt.s32.totalorder %s3408_s16, %s4362_s23 }
 0x222   : > { %2900 = vst.msk [vmem:[%s6001_s24 + $0xa8] sm:$0xff] %vm631_vm1, %v2868_v5  ;;  %v2952_v48 = vsel %vm631_vm1, %v2868_v5, 0.0  ;;  %v2737_v60 = vmul.f32 %v5930_v27, %v2698_v13  ;;  %v2703_v45 = vadd.f32 %v4249_v42, %v2490_v61  ;;  %4286 = vmatmul.mubr.msk.f32.gmra.mxu1 %vm631_vm1, %v2868_v5  ;;  %v2658_v6 = vpop.f32.mrf.mxu0  ;;  %v2954_v8 = vsel %vm631_vm1, %v6229_v39, 0.0  ;;  %p4358_p11 = scmp.ne.s32.totalorder %s3408_s16, %s4357_s21 }
 0x223   : > { %v2953_v57 = vadd.f32 %v2952_v48, %v2951_v20  ;;  %2905 = vst.msk [vmem:[%s6001_s24 + $0xd0] sm:$0xff] %vm631_vm1, %v2873_v38  ;;  %v2871_v29 = vmax.f32 %v2839_v7, 0.0  ;;  %v2842_v49 = vadd.f32 %v2810_v1, %v2778_v10  ;;  %4288 = vmatprep.mubr.msk.f32.mxu1 %vm631_vm1, %v6229_v39  ;;  %v2701_v54 = vadd.f32 %v2658_v6, %v2488_v50 }
 0x224   : > { %v2776_v47 = vadd.f32 %v5957_v4, %v2737_v60  ;;  %v2742_v62 = vmul.f32 %v5930_v27, %v2703_v45  ;;  %v4250_v55 = vpop.f32.mrf.mxu0  ;;  %v2489_v36 = vadd.f32 %v2448_v37, %v2273_v58  ;;  %v2956_v24 = vsel %vm631_vm1, %v2870_v25, 0.0  ;;  %p4359_p12 = pnand %p4358_p11, %p4539_p5 }
 0x225   : > { %v2955_v51 = vadd.f32 %v2954_v8, %v2953_v57  ;;  %2903 = vst.msk [vmem:[%s6001_s24 + $0xc0] sm:$0xff] %vm631_vm1, %v2871_v29  ;;  %v2874_v21 = vmax.f32 %v2842_v49, 0.0  ;;  %v2704_v22 = vadd.f32 %v4250_v55, %v2491_v56  ;;  %v2740_v33 = vmul.f32 %v5930_v27, %v2701_v54 }
 0x226   : > { %v2840_v15 = vadd.f32 %v2808_v59, %v2776_v47  ;;  %v2781_v39 = vadd.f32 %v5957_v4, %v2742_v62  ;;  %4289 = vmatmul.mubr.msk.f32.gmra.mxu1 %vm631_vm1, %v2870_v25  ;;  %v2661_v35 = vpop.f32.mrf.mxu0  ;;  %v2958_v2 = vsel %vm631_vm1, %v2871_v29, 0.0  ;;  %p4360_p13 = pneg %p4359_p12 }
 0x227   : > { %v2957_v61 = vadd.f32 %v2956_v24, %v2955_v51  ;;  %2906 = vst.msk [vmem:[%s6001_s24 + $0xd8] sm:$0xff] %vm631_vm1, %v2874_v21  ;;  %v2743_v0 = vmul.f32 %v5930_v27, %v2704_v22  ;;  %v2702_v43 = vadd.f32 %v2661_v35, %v2489_v36  ;;  %4291 = vmatprep.mubr.msk.f32.mxu1 %vm631_vm1, %v2871_v29  ;;  %v2964_v46 = vsel %vm631_vm1, %v2874_v21, 0.0 }
 0x228   : > { %v2872_v44 = vmax.f32 %v2840_v15, 0.0  ;;  %v2845_v26 = vadd.f32 %v2813_v34, %v2781_v39  ;;  %v2779_v41 = vadd.f32 %v5957_v4, %v2740_v33 }
 0x229   : > { %v2959_v18 = vadd.f32 %v2958_v2, %v2957_v61  ;;  %v2782_v3 = vadd.f32 %v5957_v4, %v2743_v0  ;;  %v2741_v53 = vmul.f32 %v5930_v27, %v2702_v43  ;;  %v2962_v27 = vsel %vm631_vm1, %v2873_v38, 0.0 }
 0x22a   : > { %2904 = vst.msk [vmem:[%s6001_s24 + $0xc8] sm:$0xff] %vm631_vm1, %v2872_v44  ;;  %v2960_v28 = vsel %vm631_vm1, %v2872_v44, 0.0  ;;  %v2877_v23 = vmax.f32 %v2845_v26, 0.0  ;;  %v2843_v31 = vadd.f32 %v2811_v12, %v2779_v41  ;;  %4292 = vmatmul.mubr.msk.f32.gmra.mxu1 %vm631_vm1, %v2872_v44 }
 0x22b   : > { %v2961_v40 = vadd.f32 %v2960_v28, %v2959_v18  ;;  %v2846_v52 = vadd.f32 %v2814_v17, %v2782_v3  ;;  %v2780_v25 = vadd.f32 %v5957_v4, %v2741_v53  ;;  %4294 = vmatprep.mubr.msk.f32.mxu1 %vm631_vm1, %v2873_v38 }
 0x22c   : > { %2909 = vst.msk [vmem:[%s6001_s24 + $0xf0] sm:$0xff] %vm631_vm1, %v2877_v23  ;;  %v2875_v11 = vmax.f32 %v2843_v31, 0.0  ;;  %v2970_v1 = vsel %vm631_vm1, %v2877_v23, 0.0 }
 0x22d   : > { %v2963_v9 = vadd.f32 %v2962_v27, %v2961_v40  ;;  %v2878_v14 = vmax.f32 %v2846_v52, 0.0  ;;  %v2844_v32 = vadd.f32 %v2812_v63, %v2780_v25 }
 0x22e   : > { %2907 = vst.msk [vmem:[%s6001_s24 + $0xe0] sm:$0xff] %vm631_vm1, %v2875_v11  ;;  %4295 = vmatmul.mubr.msk.f32.gmra.mxu1 %vm631_vm1, %v2874_v21  ;;  %v2966_v19 = vsel %vm631_vm1, %v2875_v11, 0.0 }
 0x22f   : > { %v2965_v30 = vadd.f32 %v2964_v46, %v2963_v9  ;;  %2910 = vst.msk [vmem:[%s6001_s24 + $0xf8] sm:$0xff] %vm631_vm1, %v2878_v14  ;;  %v2876_v4 = vmax.f32 %v2844_v32, 0.0  ;;  %4297 = vmatprep.mubr.msk.f32.mxu1 %vm631_vm1, %v2875_v11  ;;  %v2972_v42 = vsel %vm631_vm1, %v2878_v14, 0.0 }
 0x231   : > { %v2967_v58 = vadd.f32 %v2966_v19, %v2965_v30  ;;  %2908 = vst.msk [vmem:[%s6001_s24 + $0xe8] sm:$0xff] %vm631_vm1, %v2876_v4  ;;  %v2968_v16 = vsel %vm631_vm1, %v2876_v4, 0.0  ;;  %s4363_s24 = scalar_lea.vmem %s4362_s23, 32 }
 0x232   : > { %4298 = vmatmul.mubr.msk.f32.gmra.mxu1 %vm631_vm1, %v2876_v4  ;;  %p4365_p1 = scmp.lt.s32.totalorder %s4363_s24, %s4357_s21 }
 0x233   : > { %v2969_v5 = vadd.f32 %v2968_v16, %v2967_v58  ;;  %4300 = vmatprep.mubr.msk.f32.mxu1 %vm631_vm1, %v2877_v23 }
 0x234   : > { %p4366_p2 = por %p4365_p1, %p4364_p0 }
 0x235   : > { %v2971_v13 = vadd.f32 %v2970_v1, %v2969_v5 }
 0x236   : > { %4301 = vmatmul.mubr.msk.f32.gmra.mxu1 %vm631_vm1, %v2878_v14  ;;  %p4367_p3 = pnand %p4366_p2, %p4360_p13 }
 0x237   : > { %v2973_v20 = vadd.f32 %v2972_v42, %v2971_v13 }
 0x239   : > { %v2974_v38 = vrot.slane %v2973_v20, 4 }
 0x23b   : > { %v2975_v7 = vadd.f32 %v2974_v38, %v2973_v20 }
 0x23d   : > { %v2976_v10 = vrot.slane %v2975_v7, 2 }
 0x23f   : > { %v2977_v50 = vadd.f32 %v2976_v10, %v2975_v7 }
 0x241   : > { %v2978_v37 = vrot.slane %v2977_v50, 1 }
 0x243   : > { %v2979_v48 = vadd.f32 %v2978_v37, %v2977_v50 }
 0x245   : > { %v2981_v60 = vmul.f32 0.00390625, %v2979_v48 }
 0x247   : > { %2983 = vst.msk [vmem:[%s350_s26] sm:$0x1] %vm2982_vm3, %v2981_v60 }
 0x248   : > { %4370 = shalt.err (!%p4367_p3)
}
 0x249   : > { %s4371_s0 = scalar_lea.hbm %s3405_s14, 16  ;;  %s4375_s29 = scalar_lea.hbm %s6426_s8, 32 }
 0x24a   : > { %p4372_p4 = scmp.ne.s32.totalorder %s3405_s14, %s4371_s0  ;;  %p4376_p9 = scmp.lt.s32.totalorder %s3405_s14, %s6426_s8 }
 0x24b   : > { %p4377_p10 = scmp.lt.s32.totalorder %s4375_s29, %s4371_s0 }
 0x24c   : > { %p4373_p7 = pnand %p4372_p4, %p4539_p5 }
 0x24d   : > { %p4378_p11 = por %p4377_p10, %p4376_p9 }
 0x24e   : > { %p4374_p8 = pneg %p4373_p7 }
 0x250   : > { %p4379_p12 = pnand %p4378_p11, %p4374_p8 }
 0x252   : > { %4382 = shalt.err (!%p4379_p12)
}
 0x253   : > { %4304 = dma.vmem_to_hbm [thread:$0]  (%p4539_p5), %s3408_s16, 16, %s3405_s14, %s3388_s17   ;;  %vm3307_vm4 = vcmask 80896   ;;  %vm3380_vm5 = vcmask 73728  }
 0x254   : > { %s356_s27 = scalar_lea.vmem [#allocation4], %s6325_s25  ;;  %s6625_s16 = sshll.u32 %s4522_s13, 4 }
 0x255   : > { %s3420_s14 = sshll.u32 %s356_s27, 4  ;;  %s3418_s22 = scalar_lea.hbm %s6427_s9, %s6625_s16  ;;  %s3421_s14 = int_to_ptr.vmem [resolvable:$true] %s3420_s14 }
 0x256   : > { %s3392_s23 = scalar_lea.sflag [#allocation5], %s6325_s25  ;;  %s4383_s24 = scalar_lea.vmem %s3421_s14, 16 }
 0x257   : > { %p4384_p13 = scmp.ne.s32.totalorder %s3421_s14, %s4383_s24  ;;  %s4450_s26 = smov [#allocation4]  }
 0x258   : > { %s4387_s28 = sshll.u32 %s4450_s26, 4  ;;  %s4388_s28 = int_to_ptr.vmem [resolvable:$false] %s4387_s28 }
 0x259   : > { %p4385_p0 = pnand %p4384_p13, %p4539_p5  ;;  %s4389_s29 = scalar_lea.vmem %s4388_s28, 32 }
 0x25a   : > { %p4390_p2 = scmp.lt.s32.totalorder %s3421_s14, %s4388_s28  ;;  %p4391_p3 = scmp.lt.s32.totalorder %s4389_s29, %s4383_s24 }
 0x25b   : > { %p4386_p1 = pneg %p4385_p0 }
 0x25c   : > { %p4392_p4 = por %p4391_p3, %p4390_p2 }
 0x25e   : > { %p4393_p7 = pnand %p4392_p4, %p4386_p1 }
 0x2b9   : > { %v4257_v45 = vpop.f32.mrf.mxu1 }
 0x2ba   : > { %v3309_v29 = vsel %vm3307_vm4, %v4257_v45, 0.0 }
 0x2bb   : > { %v3148_v6 = vpop.f32.mrf.mxu1 }
 0x2bc   : > { %v3308_v56 = vsel %vm3307_vm4, %v3148_v6, 0.0 }
 0x2bd   : > { %v4260_v57 = vpop.f32.mrf.mxu1  ;;  %v3310_v49 = vadd.f32 %v3309_v29, %v3308_v56 }
 0x2be   : > { %v3313_v54 = vsel %vm3307_vm4, %v4260_v57, 0.0 }
 0x2bf   : > { %v3158_v59 = vpop.f32.mrf.mxu1 }
 0x2c0   : > { %v3311_v8 = vsel %vm3307_vm4, %v3158_v59, 0.0 }
 0x2c1   : > { %v3312_v47 = vadd.f32 %v3311_v8, %v3310_v49  ;;  %v4263_v62 = vpop.f32.mrf.mxu1 }
 0x2c2   : > { %v3317_v22 = vsel %vm3307_vm4, %v4263_v62, 0.0 }
 0x2c3   : > { %v3168_v55 = vpop.f32.mrf.mxu1  ;;  %v3314_v36 = vadd.f32 %v3313_v54, %v3312_v47 }
 0x2c4   : > { %v3315_v51 = vsel %vm3307_vm4, %v3168_v55, 0.0 }
 0x2c5   : > { %v3316_v21 = vadd.f32 %v3315_v51, %v3314_v36  ;;  %v4266_v34 = vpop.f32.mrf.mxu1 }
 0x2c6   : > { %v3321_v35 = vsel %vm3307_vm4, %v4266_v34, 0.0 }
 0x2c7   : > { %v3178_v24 = vpop.f32.mrf.mxu1  ;;  %v3318_v15 = vadd.f32 %v3317_v22, %v3316_v21 }
 0x2c8   : > { %v3319_v39 = vsel %vm3307_vm4, %v3178_v24, 0.0 }
 0x2c9   : > { %v3320_v33 = vadd.f32 %v3319_v39, %v3318_v15 }
 0x2ca   : > { %v4269_v61 = vpop.f32.mrf.mxu1 }
 0x2cb   : > { %v3322_v12 = vadd.f32 %v3321_v35, %v3320_v33  ;;  %v3325_v26 = vsel %vm3307_vm4, %v4269_v61, 0.0 }
 0x2cc   : > { %v3188_v0 = vpop.f32.mrf.mxu1 }
 0x2cd   : > { %v3323_v43 = vsel %vm3307_vm4, %v3188_v0, 0.0 }
 0x2ce   : > { %v3324_v2 = vadd.f32 %v3323_v43, %v3322_v12  ;;  %v4272_v44 = vpop.f32.mrf.mxu1 }
 0x2cf   : > { %v3329_v28 = vsel %vm3307_vm4, %v4272_v44, 0.0 }
 0x2d0   : > { %v3198_v41 = vpop.f32.mrf.mxu1  ;;  %v3326_v17 = vadd.f32 %v3325_v26, %v3324_v2 }
 0x2d1   : > { %v3327_v18 = vsel %vm3307_vm4, %v3198_v41, 0.0 }
 0x2d2   : > { %v3328_v3 = vadd.f32 %v3327_v18, %v3326_v17  ;;  %v4275_v53 = vpop.f32.mrf.mxu1 }
 0x2d3   : > { %v3333_v25 = vsel %vm3307_vm4, %v4275_v53, 0.0 }
 0x2d4   : > { %v3208_v23 = vpop.f32.mrf.mxu1  ;;  %v3330_v31 = vadd.f32 %v3329_v28, %v3328_v3 }
 0x2d5   : > { %v3331_v63 = vsel %vm3307_vm4, %v3208_v23, 0.0 }
 0x2d6   : > { %v3332_v40 = vadd.f32 %v3331_v63, %v3330_v31  ;;  %v4278_v52 = vpop.f32.mrf.mxu1  ;;  %v3378_v63 = vld [vmem:[%s6424_s6] sm:$0x1] }
 0x2d7   : > { %v3337_v46 = vsel %vm3307_vm4, %v4278_v52, 0.0 }
 0x2d8   : > { %v3218_v27 = vpop.f32.mrf.mxu1  ;;  %v3334_v11 = vadd.f32 %v3333_v25, %v3332_v40 }
 0x2d9   : > { %v3335_v9 = vsel %vm3307_vm4, %v3218_v27, 0.0 }
 0x2da   : > { %v3336_v14 = vadd.f32 %v3335_v9, %v3334_v11  ;;  %v4281_v32 = vpop.f32.mrf.mxu1 }
 0x2db   : > { %v3341_v5 = vsel %vm3307_vm4, %v4281_v32, 0.0 }
 0x2dc   : > { %v3228_v30 = vpop.f32.mrf.mxu1  ;;  %v3338_v4 = vadd.f32 %v3337_v46, %v3336_v14 }
 0x2dd   : > { %v3339_v19 = vsel %vm3307_vm4, %v3228_v30, 0.0 }
 0x2de   : > { %v3340_v58 = vadd.f32 %v3339_v19, %v3338_v4  ;;  %v4284_v16 = vpop.f32.mrf.mxu1 }
 0x2df   : > { %v3345_v7 = vsel %vm3307_vm4, %v4284_v16, 0.0 }
 0x2e0   : > { %v3238_v1 = vpop.f32.mrf.mxu1  ;;  %v3342_v13 = vadd.f32 %v3341_v5, %v3340_v58 }
 0x2e1   : > { %v3343_v42 = vsel %vm3307_vm4, %v3238_v1, 0.0 }
 0x2e2   : > { %v3344_v20 = vadd.f32 %v3343_v42, %v3342_v13  ;;  %v4287_v38 = vpop.f32.mrf.mxu1 }
 0x2e3   : > { %v3349_v45 = vsel %vm3307_vm4, %v4287_v38, 0.0 }
 0x2e4   : > { %v3248_v10 = vpop.f32.mrf.mxu1  ;;  %v3346_v50 = vadd.f32 %v3345_v7, %v3344_v20 }
 0x2e5   : > { %v3347_v37 = vsel %vm3307_vm4, %v3248_v10, 0.0 }
 0x2e6   : > { %v3348_v48 = vadd.f32 %v3347_v37, %v3346_v50  ;;  %v4290_v60 = vpop.f32.mrf.mxu1 }
 0x2e7   : > { %v3353_v59 = vsel %vm3307_vm4, %v4290_v60, 0.0 }
 0x2e8   : > { %v3258_v6 = vpop.f32.mrf.mxu1  ;;  %v3350_v56 = vadd.f32 %v3349_v45, %v3348_v48 }
 0x2e9   : > { %v3351_v57 = vsel %vm3307_vm4, %v3258_v6, 0.0 }
 0x2ea   : > { %v3352_v29 = vadd.f32 %v3351_v57, %v3350_v56  ;;  %v4293_v49 = vpop.f32.mrf.mxu1 }
 0x2eb   : > { %v3357_v36 = vsel %vm3307_vm4, %v4293_v49, 0.0 }
 0x2ec   : > { %v3268_v8 = vpop.f32.mrf.mxu1  ;;  %v3354_v47 = vadd.f32 %v3353_v59, %v3352_v29 }
 0x2ed   : > { %v3355_v62 = vsel %vm3307_vm4, %v3268_v8, 0.0 }
 0x2ee   : > { %v3356_v54 = vadd.f32 %v3355_v62, %v3354_v47  ;;  %v4296_v55 = vpop.f32.mrf.mxu1 }
 0x2ef   : > { %v3361_v15 = vsel %vm3307_vm4, %v4296_v55, 0.0 }
 0x2f0   : > { %v3278_v51 = vpop.f32.mrf.mxu1  ;;  %v3358_v21 = vadd.f32 %v3357_v36, %v3356_v54 }
 0x2f1   : > { %v3359_v34 = vsel %vm3307_vm4, %v3278_v51, 0.0 }
 0x2f2   : > { %v3360_v22 = vadd.f32 %v3359_v34, %v3358_v21  ;;  %v4299_v24 = vpop.f32.mrf.mxu1 }
 0x2f3   : > { %v3365_v0 = vsel %vm3307_vm4, %v4299_v24, 0.0 }
 0x2f4   : > { %v3288_v39 = vpop.f32.mrf.mxu1  ;;  %v3362_v33 = vadd.f32 %v3361_v15, %v3360_v22 }
 0x2f5   : > { %v3363_v35 = vsel %vm3307_vm4, %v3288_v39, 0.0 }
 0x2f6   : > { %v3364_v61 = vadd.f32 %v3363_v35, %v3362_v33  ;;  %v4302_v12 = vpop.f32.mrf.mxu1 }
 0x2f7   : > { %v3369_v41 = vsel %vm3307_vm4, %v4302_v12, 0.0 }
 0x2f8   : > { %v3298_v43 = vpop.f32.mrf.mxu1  ;;  %v3366_v2 = vadd.f32 %v3365_v0, %v3364_v61 }
 0x2f9   : > { %v3367_v44 = vsel %vm3307_vm4, %v3298_v43, 0.0 }
 0x2fa   : > { %v3368_v26 = vadd.f32 %v3367_v44, %v3366_v2 }
 0x2fc   : > { %v3370_v17 = vadd.f32 %v3369_v41, %v3368_v26 }
 0x2fe   : > { %v3371_v18 = vrot.slane %v3370_v17, 4 }
 0x300   : > { %v3372_v3 = vadd.f32 %v3371_v18, %v3370_v17 }
 0x302   : > { %v3373_v53 = vrot.slane %v3372_v3, 2 }
 0x304   : > { %v3374_v28 = vadd.f32 %v3373_v53, %v3372_v3 }
 0x306   : > { %v3375_v23 = vrot.slane %v3374_v28, 1 }
 0x308   : > { %v3376_v31 = vadd.f32 %v3375_v23, %v3374_v28 }
 0x30a   : > { %v3377_v40 = vmul.f32 0.00390625, %v3376_v31 }
 0x30c   : > { %v3379_v52 = vadd.f32 %v3378_v63, %v3377_v40 }
 0x30e   : > { %3381 = vst.msk [vmem:[%s356_s27] sm:$0x1] %vm3380_vm5, %v3379_v52 }
 0x30f   : > { %4396 = shalt.err (!%p4393_p7)
}
 0x310   : > { %s4397_s13 = scalar_lea.hbm %s3418_s22, 16  ;;  %s4401_s1 = scalar_lea.hbm %s6427_s9, 32 }
 0x311   : > { %p4398_p8 = scmp.ne.s32.totalorder %s3418_s22, %s4397_s13  ;;  %p4402_p11 = scmp.lt.s32.totalorder %s3418_s22, %s6427_s9 }
 0x312   : > { %p4403_p12 = scmp.lt.s32.totalorder %s4401_s1, %s4397_s13 }
 0x313   : > { %p4399_p9 = pnand %p4398_p8, %p4539_p5 }
 0x314   : > { %p4404_p13 = por %p4403_p12, %p4402_p11 }
 0x315   : > { %p4400_p10 = pneg %p4399_p9 }
 0x317   : > { %p4405_p0 = pnand %p4404_p13, %p4400_p10 }
 0x319   : > { %4408 = shalt.err (!%p4405_p0)
}
 0x31a   : > { %4305 = dma.vmem_to_hbm [thread:$0]  (%p4539_p5), %s3421_s14, 16, %s3418_s22, %s3392_s23  }
 0x31b PF: > { %p4315_p1 = scmp.ge.s32.totalorder %s4447_s12, 2  ;;  %s3440_s17 = sand.u32 1, %s4435_s30  }
 0x31c   : > { %s3441_s21 = scalar_lea.sflag [#allocation3], %s3440_s17 }
 0x31d   : > { %p4309_p2 = pnand %p4315_p1, %p4543_p6 }
 0x31f   : > { %p4310_p3 = pneg %p4309_p2 }
 0x321   : > { %4426 = dma.done.wait (%p4310_p3), %s3441_s21, 16  }
 0x322   : > { %4428 = vsyncadd (%p4310_p3), %s3441_s21, 4294967280  ;;  %s3449_s24 = scalar_lea.sflag [#allocation5], %s3440_s17 }
 0x323   : > { %4430 = dma.done.wait (%p4310_p3), %s3449_s24, 16  }
 0x324   : > { %4432 = vsyncadd (%p4310_p3), %s3449_s24, 4294967280  ;;  %p23_p5 = scmp.ge.s32.totalorder %s4526_s15, 4   ;;  %s6626_s30 = smov %s4439_s10 }
 0x325   : > { %s6627_s10 = smov %s4443_s11  ;;  %s6628_s11 = smov %s4537_s18 }
 0x326   : > { %s6629_s12 = smov %s4526_s15  ;;  %25 = sbr.rel (!%p23_p5) target bundleno = 8 (0x8), region = 123 }
 0x32b   :  { %3453 = vsyncpa [#allocation3], 1 }
 0x32c   :  { %3455 = vsyncpa [#allocation3 + $0x1], 1 }
 0x32d   :  { %3456 = vsyncpa [#allocation5], 1 }
 0x32e   :  { %3458 = vsyncpa [#allocation5 + $0x1], 1 }

</bundles_post_ra>
